<compile_context>
chip_gen: v6e
topology: v6e:2x2x1
jax: 0.10.0
libtpu: 0.0.40
codegen_flags: <defaults>
</compile_context>

<pallas_src>
import functools

import numpy as np
import jax
import jax.numpy as jnp
from jax.experimental import pallas as pl
from jax.experimental.pallas import tpu as pltpu


# ----------------------------- geometry helpers ----------------------------- #

def _geom(h, w):
    """Padded-grid geometry for an (h, w) feature map.

    Returns (hp, wp, npix, halo, length):
      hp, wp : grid with the 1-pixel zero ring
      npix   : hp*wp flattened padded pixels
      halo   : wp+1 zero lanes on each side so every 3x3 tap of the flattened
               grid is a contiguous lane window
      length : npix + 2*halo lane extent of the haloed activation
    """
    hp, wp = h + 2, w + 2
    npix = hp * wp
    halo = wp + 1
    return hp, wp, npix, halo, npix + 2 * halo


def _stage_dims(h, w):
    dims = [(h, w)]
    for _ in range(4):
        ph, pw = dims[-1]
        dims.append(((ph + 1) // 2, (pw + 1) // 2))
    return dims


# ------------------- host-built constant selection matrices ----------------- #
# Every layout move (embed-with-ring, ring-zero + re-halo, stride-2 decimation,
# interior extraction) is a tiny 0/1 matmul, keeping the kernel's data path on
# the MXU with pixels lane-dense -- no in-kernel gathers / strided reads.

def _embed_mat(h, w):
    """(h*w, L): row-major image pixels -> haloed padded-flat positions."""
    _, wp, _, halo, length = _geom(h, w)
    m = np.zeros((h * w, length), np.float32)
    for i in range(h):
        for j in range(w):
            m[i * w + j, halo + (i + 1) * wp + (j + 1)] = 1.0
    return m


def _ring_halo_mat(h, w):
    """(Np, L): identity on interior pixels, zeros the padding ring, re-halos."""
    _, wp, npix, halo, length = _geom(h, w)
    m = np.zeros((npix, length), np.float32)
    for i in range(1, h + 1):
        for j in range(1, w + 1):
            p = i * wp + j
            m[p, halo + p] = 1.0
    return m


def _extract_mat(h, w):
    """(Np, h*w): interior of the padded grid -> row-major image pixels."""
    _, wp, npix, _, _ = _geom(h, w)
    m = np.zeros((npix, h * w), np.float32)
    for i in range(h):
        for j in range(w):
            m[(i + 1) * wp + (j + 1), i * w + j] = 1.0
    return m


def _decimate_mat(h, w):
    """(Np_in, L_out): stride-2 pick of a full-res conv output, embedded
    (ring-zeroed + haloed) into the next stage's padded-flat geometry."""
    ho, wo = (h + 1) // 2, (w + 1) // 2
    _, wp_in, np_in, _, _ = _geom(h, w)
    _, wp_out, _, halo_out, l_out = _geom(ho, wo)
    m = np.zeros((np_in, l_out), np.float32)
    for oi in range(1, ho + 1):
        for oj in range(1, wo + 1):
            src = (2 * oi - 1) * wp_in + (2 * oj - 1)
            m[src, halo_out + oi * wp_out + oj] = 1.0
    return m


# --------------------------------- kernel ----------------------------------- #

def _rgb_encoder_kernel(*refs, dims):
    """Fully fused RGBEncoder forward for one batch element (grid=(N,)).

    Activations are (C, pixels) with the flattened, ring-padded, haloed grid on
    the lane axis.  Each 3x3 conv = im2col into a VMEM scratch + ONE bf16 MXU
    matmul (K = 9*Cin), f32 accumulation.  Stride-2 convs are computed at full
    resolution and decimated with a 0/1 selection matmul.  Only the 5 outputs
    ever leave VMEM.
    """
    assert len(refs) == 41  # 35 inputs + 5 outputs + 1 scratch
    x_ref, p0_ref = refs[0], refs[1]
    w_refs = refs[2:22]            # 5 stages x (w1, b1, w2, b2)
    z_refs = refs[22:26]           # ring-zero + re-halo, stages 0..3
    d_refs = refs[26:30]           # stride-2 decimation for enc1..enc4
    e_refs = refs[30:35]           # interior extraction, stages 0..4
    o_refs = refs[35:40]           # outputs x0..x4
    col = refs[40]                 # (9*C, Np0) bf16 im2col scratch

    f32 = jnp.float32
    bf16 = jnp.bfloat16

    def conv3x3(a_hal, w_ref, b_ref, h, w):
        # a_hal: (Cin, L) f32 with zero ring & halo.  Returns (Cout, Np) f32;
        # values are valid at interior pixels (ring lanes carry garbage that is
        # never selected by the downstream Z/D/E matrices).
        cin = a_hal.shape[0]
        _, wp, npix, halo, _ = _geom(h, w)
        for dy in range(3):
            for dx in range(3):
                t = dy * 3 + dx
                off = halo + (dy - 1) * wp + (dx - 1)
                col[t * cin:(t + 1) * cin, :npix] = (
                    a_hal[:, off:off + npix].astype(bf16))
        y = jnp.dot(w_ref[...], col[:9 * cin, :npix],
                    preferred_element_type=f32)
        return y + b_ref[...]

    def sel(y, m_ref):
        # 0/1 selection matmul (f32: exact re-layout; the MXU has ample slack).
        return jnp.dot(y, m_ref[...], preferred_element_type=f32)

    h0, w0 = dims[0]

    # ---- init: Conv3x3(s1) -> ReLU -> Conv3x3(s1) ---------------------------
    a = sel(x_ref[0, :, :], p0_ref)                  # embed input -> (Cin, L0)
    w1, b1, w2, b2 = w_refs[0:4]
    y = conv3x3(a, w1, b1, h0, w0)
    a = sel(jnp.maximum(y, 0.0), z_refs[0])          # ReLU, zero ring, re-halo
    y = conv3x3(a, w2, b2, h0, w0)
    o_refs[0][0, :, :] = sel(y, e_refs[0]).astype(o_refs[0].dtype)
    a = sel(y, z_refs[0])                            # x0 feeds enc1 (pre-ReLU)

    # ---- enc1..enc4: ReLU -> Conv3x3(s2) -> ReLU -> Conv3x3(s1) -------------
    for s in range(1, 5):
        hi, wi = dims[s - 1]
        ho, wo = dims[s]
        w1, b1, w2, b2 = w_refs[4 * s:4 * s + 4]
        # stride-2 conv == full-res stride-1 conv followed by decimation.
        yf = conv3x3(jnp.maximum(a, 0.0), w1, b1, hi, wi)
        a = jnp.maximum(sel(yf, d_refs[s - 1]), 0.0)
        y = conv3x3(a, w2, b2, ho, wo)
        o_refs[s][0, :, :] = sel(y, e_refs[s]).astype(o_refs[s].dtype)
        if s < 4:
            a = sel(y, z_refs[s])


# ------------------------------ module wrapper ------------------------------ #

def _to_col_weight(wt, cin_target):
    """(3,3,cin,cout) -> (cout, 9*cin_target) bf16, K ordered (dy, dx, cin)."""
    cin, cout = wt.shape[2], wt.shape[3]
    wt = jnp.pad(wt, ((0, 0), (0, 0), (0, cin_target - cin), (0, 0)))
    wt = jnp.transpose(wt, (3, 0, 1, 2)).reshape(cout, 9 * cin_target)
    return wt.astype(jnp.bfloat16)


def rgb_encoder_forward(x_nchw, params):
    """Pallas forward; returns (x0..x4) in NCHW like the PyTorch module."""
    n, cin, h, w = x_nchw.shape
    cout = params[0][0].shape[-1]
    dims = _stage_dims(h, w)

    # Pad the tiny input channel dim up to a sublane-friendly multiple of 8 and
    # flatten spatial; everything else happens inside the kernel.
    cin_p = max(8, ((cin + 7) // 8) * 8)
    x_flat = jnp.pad(x_nchw, ((0, 0), (0, cin_p - cin), (0, 0), (0, 0)))
    x_flat = x_flat.reshape(n, cin_p, h * w)

    # Constant 0/1 layout matrices (trace-time host constants, VMEM-resident).
    p0 = jnp.asarray(_embed_mat(h, w))
    z_mats = [jnp.asarray(_ring_halo_mat(*dims[s])) for s in range(4)]
    d_mats = [jnp.asarray(_decimate_mat(*dims[s])) for s in range(4)]
    e_mats = [jnp.asarray(_extract_mat(*dims[s])) for s in range(5)]

    # Weights in im2col layout (bf16 MXU inputs); biases as (cout, 1) f32.
    w_args = []
    for s, (w1, b1, w2, b2) in enumerate(params):
        tgt = cin_p if s == 0 else cout
        w_args += [_to_col_weight(w1, tgt),
                   b1.reshape(cout, 1).astype(jnp.float32),
                   _to_col_weight(w2, cout),
                   b2.reshape(cout, 1).astype(jnp.float32)]

    inputs = [x_flat, p0] + w_args + z_mats + d_mats + e_mats

    def bcast(arr):
        nd = arr.ndim
        return pl.BlockSpec(arr.shape, lambda i: (0,) * nd)

    in_specs = [pl.BlockSpec((1, cin_p, h * w), lambda i: (i, 0, 0))]
    in_specs += [bcast(a) for a in inputs[1:]]

    out_shape = tuple(jax.ShapeDtypeStruct((n, cout, hs * ws), x_nchw.dtype)
                      for hs, ws in dims)
    out_specs = tuple(pl.BlockSpec((1, cout, hs * ws), lambda i: (i, 0, 0))
                      for hs, ws in dims)

    np0 = _geom(h, w)[2]
    sc_rows = 9 * max(cout, cin_p)
    outs = pl.pallas_call(
        functools.partial(_rgb_encoder_kernel, dims=tuple(dims)),
        out_shape=out_shape,
        grid=(n,),
        in_specs=in_specs,
        out_specs=out_specs,
        scratch_shapes=[pltpu.VMEM((sc_rows, np0), jnp.bfloat16)],
        compiler_params=pltpu.CompilerParams(
            dimension_semantics=("parallel",)),
    )(*inputs)

    return tuple(o.reshape(n, cout, hs, ws) for o, (hs, ws) in zip(outs, dims))


# ------------------------------- param init --------------------------------- #

def init_rgb_encoder_params(key, in_layers, layers, filter_size=3):
    """Params matching nn.Conv2d(cin, cout, 3): xavier_normal weights, bias=0.01."""
    assert filter_size == 3, "Pallas path implements the module's default 3x3 convs"

    def conv_params(k, cin, cout):
        std = (2.0 / (cin * 9 + cout * 9)) ** 0.5
        wt = jax.random.normal(k, (3, 3, cin, cout), jnp.float32) * std
        bias = jnp.full((cout,), 0.01, jnp.float32)
        return wt, bias

    keys = jax.random.split(key, 10)
    params, cin = [], in_layers
    for s in range(5):
        w1, b1 = conv_params(keys[2 * s], cin, layers)
        w2, b2 = conv_params(keys[2 * s + 1], layers, layers)
        params.append((w1, b1, w2, b2))
        cin = layers
    return params


# ----------------------------- pure-JAX reference --------------------------- #

def _conv2d_ref(x_nhwc, wt, bias, stride):
    n, h, w, cin = x_nhwc.shape
    ho = (h + 2 - 3) // stride + 1
    wo = (w + 2 - 3) // stride + 1
    xp = jnp.pad(x_nhwc, ((0, 0), (1, 1), (1, 1), (0, 0)))
    acc = jnp.zeros((n, ho, wo, wt.shape[-1]), jnp.float32) + bias
    for dy in range(3):
        for dx in range(3):
            win = xp[:, dy:dy + (ho - 1) * stride + 1:stride,
                        dx:dx + (wo - 1) * stride + 1:stride, :]
            acc = acc + jnp.einsum('nhwc,cd->nhwd', win, wt[dy, dx])
    return acc


def rgb_encoder_forward_ref(x_nchw, params):
    relu = lambda t: jnp.maximum(t, 0.0)
    x = jnp.transpose(x_nchw, (0, 2, 3, 1))
    w1, b1, w2, b2 = params[0]
    y = _conv2d_ref(relu(_conv2d_ref(x, w1, b1, 1)), w2, b2, 1)
    feats = [y]
    for s in range(1, 5):
        w1, b1, w2, b2 = params[s]
        y = _conv2d_ref(relu(_conv2d_ref(relu(y), w1, b1, 2)), w2, b2, 1)
        feats.append(y)
    return tuple(jnp.transpose(f, (0, 3, 1, 2)) for f in feats)


# ---------------------------------- main ------------------------------------ #

if __name__ == "__main__":
    key = jax.random.PRNGKey(0)
    k_in, k_par = jax.random.split(key)

    in_layers, layers, filter_size = 3, 32, 3
    N, H, W = 2, 16, 16

    x = jax.random.normal(k_in, (N, in_layers, H, W), jnp.float32)
    params = init_rgb_encoder_params(k_par, in_layers, layers, filter_size)

    fwd = jax.jit(rgb_encoder_forward)
    outs = jax.block_until_ready(fwd(x, params))

    refs = rgb_encoder_forward_ref(x, params)
    dims = _stage_dims(H, W)
    for i, (o, r, (hs, ws)) in enumerate(zip(outs, refs, dims)):
        assert o.shape == (N, layers, hs, ws), (i, o.shape, (N, layers, hs, ws))
        # bf16 MXU inputs vs. f32 reference -> relaxed tolerance.
        assert jnp.allclose(o, r, atol=3e-2, rtol=3e-2), (
            f"x{i} mismatch: max abs diff {jnp.max(jnp.abs(o - r))}")

    print("KERNEL_OK")
</pallas_src>

<mosaic_0001>
module attributes {stable_mosaic.version = 11 : i64} {
  func.func @_rgb_encoder_kernel(%arg0: i32, %arg1: memref<1x8x256xf32, #tpu.memory_space<vmem>>, %arg2: memref<256x362xf32, #tpu.memory_space<vmem>>, %arg3: memref<32x72xbf16, #tpu.memory_space<vmem>>, %arg4: memref<32x1xf32, #tpu.memory_space<vmem>>, %arg5: memref<32x288xbf16, #tpu.memory_space<vmem>>, %arg6: memref<32x1xf32, #tpu.memory_space<vmem>>, %arg7: memref<32x288xbf16, #tpu.memory_space<vmem>>, %arg8: memref<32x1xf32, #tpu.memory_space<vmem>>, %arg9: memref<32x288xbf16, #tpu.memory_space<vmem>>, %arg10: memref<32x1xf32, #tpu.memory_space<vmem>>, %arg11: memref<32x288xbf16, #tpu.memory_space<vmem>>, %arg12: memref<32x1xf32, #tpu.memory_space<vmem>>, %arg13: memref<32x288xbf16, #tpu.memory_space<vmem>>, %arg14: memref<32x1xf32, #tpu.memory_space<vmem>>, %arg15: memref<32x288xbf16, #tpu.memory_space<vmem>>, %arg16: memref<32x1xf32, #tpu.memory_space<vmem>>, %arg17: memref<32x288xbf16, #tpu.memory_space<vmem>>, %arg18: memref<32x1xf32, #tpu.memory_space<vmem>>, %arg19: memref<32x288xbf16, #tpu.memory_space<vmem>>, %arg20: memref<32x1xf32, #tpu.memory_space<vmem>>, %arg21: memref<32x288xbf16, #tpu.memory_space<vmem>>, %arg22: memref<32x1xf32, #tpu.memory_space<vmem>>, %arg23: memref<324x362xf32, #tpu.memory_space<vmem>>, %arg24: memref<100x122xf32, #tpu.memory_space<vmem>>, %arg25: memref<36x50xf32, #tpu.memory_space<vmem>>, %arg26: memref<16x26xf32, #tpu.memory_space<vmem>>, %arg27: memref<324x122xf32, #tpu.memory_space<vmem>>, %arg28: memref<100x50xf32, #tpu.memory_space<vmem>>, %arg29: memref<36x26xf32, #tpu.memory_space<vmem>>, %arg30: memref<16x17xf32, #tpu.memory_space<vmem>>, %arg31: memref<324x256xf32, #tpu.memory_space<vmem>>, %arg32: memref<100x64xf32, #tpu.memory_space<vmem>>, %arg33: memref<36x16xf32, #tpu.memory_space<vmem>>, %arg34: memref<16x4xf32, #tpu.memory_space<vmem>>, %arg35: memref<9x1xf32, #tpu.memory_space<vmem>>, %arg36: memref<1x32x256xf32, #tpu.memory_space<vmem>>, %arg37: memref<1x32x64xf32, #tpu.memory_space<vmem>>, %arg38: memref<1x32x16xf32, #tpu.memory_space<vmem>>, %arg39: memref<1x32x4xf32, #tpu.memory_space<vmem>>, %arg40: memref<1x32x1xf32, #tpu.memory_space<vmem>>, %arg41: memref<288x324xbf16, #tpu.memory_space<vmem>>) attributes {dimension_semantics = [#tpu.dimension_semantics<parallel>], iteration_bounds = array<i64: 2>, scalar_prefetch = 0 : i64, scratch_operands = 1 : i64, tpu.core_type = #tpu.core_type<tc>, window_params = [{transform_indices = @transform_0, window_bounds = array<i64: 1, 8, 256>}, {pipeline_mode = #tpu.pipeline_mode<synchronous>, transform_indices = @transform_1, window_bounds = array<i64: 256, 362>}, {pipeline_mode = #tpu.pipeline_mode<synchronous>, transform_indices = @transform_2, window_bounds = array<i64: 32, 72>}, {pipeline_mode = #tpu.pipeline_mode<synchronous>, transform_indices = @transform_3, window_bounds = array<i64: 32, 1>}, {pipeline_mode = #tpu.pipeline_mode<synchronous>, transform_indices = @transform_4, window_bounds = array<i64: 32, 288>}, {pipeline_mode = #tpu.pipeline_mode<synchronous>, transform_indices = @transform_5, window_bounds = array<i64: 32, 1>}, {pipeline_mode = #tpu.pipeline_mode<synchronous>, transform_indices = @transform_6, window_bounds = array<i64: 32, 288>}, {pipeline_mode = #tpu.pipeline_mode<synchronous>, transform_indices = @transform_7, window_bounds = array<i64: 32, 1>}, {pipeline_mode = #tpu.pipeline_mode<synchronous>, transform_indices = @transform_8, window_bounds = array<i64: 32, 288>}, {pipeline_mode = #tpu.pipeline_mode<synchronous>, transform_indices = @transform_9, window_bounds = array<i64: 32, 1>}, {pipeline_mode = #tpu.pipeline_mode<synchronous>, transform_indices = @transform_10, window_bounds = array<i64: 32, 288>}, {pipeline_mode = #tpu.pipeline_mode<synchronous>, transform_indices = @transform_11, window_bounds = array<i64: 32, 1>}, {pipeline_mode = #tpu.pipeline_mode<synchronous>, transform_indices = @transform_12, window_bounds = array<i64: 32, 288>}, {pipeline_mode = #tpu.pipeline_mode<synchronous>, transform_indices = @transform_13, window_bounds = array<i64: 32, 1>}, {pipeline_mode = #tpu.pipeline_mode<synchronous>, transform_indices = @transform_14, window_bounds = array<i64: 32, 288>}, {pipeline_mode = #tpu.pipeline_mode<synchronous>, transform_indices = @transform_15, window_bounds = array<i64: 32, 1>}, {pipeline_mode = #tpu.pipeline_mode<synchronous>, transform_indices = @transform_16, window_bounds = array<i64: 32, 288>}, {pipeline_mode = #tpu.pipeline_mode<synchronous>, transform_indices = @transform_17, window_bounds = array<i64: 32, 1>}, {pipeline_mode = #tpu.pipeline_mode<synchronous>, transform_indices = @transform_18, window_bounds = array<i64: 32, 288>}, {pipeline_mode = #tpu.pipeline_mode<synchronous>, transform_indices = @transform_19, window_bounds = array<i64: 32, 1>}, {pipeline_mode = #tpu.pipeline_mode<synchronous>, transform_indices = @transform_20, window_bounds = array<i64: 32, 288>}, {pipeline_mode = #tpu.pipeline_mode<synchronous>, transform_indices = @transform_21, window_bounds = array<i64: 32, 1>}, {pipeline_mode = #tpu.pipeline_mode<synchronous>, transform_indices = @transform_22, window_bounds = array<i64: 324, 362>}, {pipeline_mode = #tpu.pipeline_mode<synchronous>, transform_indices = @transform_23, window_bounds = array<i64: 100, 122>}, {pipeline_mode = #tpu.pipeline_mode<synchronous>, transform_indices = @transform_24, window_bounds = array<i64: 36, 50>}, {pipeline_mode = #tpu.pipeline_mode<synchronous>, transform_indices = @transform_25, window_bounds = array<i64: 16, 26>}, {pipeline_mode = #tpu.pipeline_mode<synchronous>, transform_indices = @transform_26, window_bounds = array<i64: 324, 122>}, {pipeline_mode = #tpu.pipeline_mode<synchronous>, transform_indices = @transform_27, window_bounds = array<i64: 100, 50>}, {pipeline_mode = #tpu.pipeline_mode<synchronous>, transform_indices = @transform_28, window_bounds = array<i64: 36, 26>}, {pipeline_mode = #tpu.pipeline_mode<synchronous>, transform_indices = @transform_29, window_bounds = array<i64: 16, 17>}, {pipeline_mode = #tpu.pipeline_mode<synchronous>, transform_indices = @transform_30, window_bounds = array<i64: 324, 256>}, {pipeline_mode = #tpu.pipeline_mode<synchronous>, transform_indices = @transform_31, window_bounds = array<i64: 100, 64>}, {pipeline_mode = #tpu.pipeline_mode<synchronous>, transform_indices = @transform_32, window_bounds = array<i64: 36, 16>}, {pipeline_mode = #tpu.pipeline_mode<synchronous>, transform_indices = @transform_33, window_bounds = array<i64: 16, 4>}, {pipeline_mode = #tpu.pipeline_mode<synchronous>, transform_indices = @transform_34, window_bounds = array<i64: 9, 1>}, {transform_indices = @transform_35, window_bounds = array<i64: 1, 32, 256>}, {transform_indices = @transform_36, window_bounds = array<i64: 1, 32, 64>}, {transform_indices = @transform_37, window_bounds = array<i64: 1, 32, 16>}, {transform_indices = @transform_38, window_bounds = array<i64: 1, 32, 4>}, {transform_indices = @transform_39, window_bounds = array<i64: 1, 32, 1>}]} {
    %c0 = arith.constant 0 : index
    %c0_0 = arith.constant 0 : index
    %c0_1 = arith.constant 0 : index
    %0 = vector.load %arg1[%c0, %c0_0, %c0_1] : memref<1x8x256xf32, #tpu.memory_space<vmem>>, vector<1x8x256xf32>
    %1 = vector.shape_cast %0 : vector<1x8x256xf32> to vector<8x256xf32>
    %c0_2 = arith.constant 0 : index
    %c0_3 = arith.constant 0 : index
    %2 = vector.load %arg2[%c0_2, %c0_3] : memref<256x362xf32, #tpu.memory_space<vmem>>, vector<256x362xf32>
    %cst = arith.constant dense<0.000000e+00> : vector<8x362xf32>
    %3 = tpu.matmul %1, %2, %cst {dimension_numbers = #tpu.dot_dimension_numbers<[1], [0], [0], [1], [0, 0, 1, 1], [], []>} : vector<8x256xf32>, vector<256x362xf32>, vector<8x362xf32> -> vector<8x362xf32>
    %4 = vector.extract_strided_slice %3 {offsets = [0, 0], sizes = [8, 324], strides = [1, 1]} : vector<8x362xf32> to vector<8x324xf32>
    %5 = arith.truncf %4 : vector<8x324xf32> to vector<8x324xbf16>
    %c0_4 = arith.constant 0 : index
    %c0_5 = arith.constant 0 : index
    %6 = vector.load %arg41[%c0_4, %c0_5] : memref<288x324xbf16, #tpu.memory_space<vmem>>, vector<8x324xbf16>
    tpu.vector_store %arg41[%c0_4, %c0_5], %5 {strides = array<i32>} : memref<288x324xbf16, #tpu.memory_space<vmem>>, vector<8x324xbf16>,
    %7 = vector.extract_strided_slice %3 {offsets = [0, 1], sizes = [8, 324], strides = [1, 1]} : vector<8x362xf32> to vector<8x324xf32>
    %8 = arith.truncf %7 : vector<8x324xf32> to vector<8x324xbf16>
    %c8 = arith.constant 8 : index
    %c0_6 = arith.constant 0 : index
    %9 = vector.load %arg41[%c8, %c0_6] : memref<288x324xbf16, #tpu.memory_space<vmem>>, vector<8x324xbf16>
    tpu.vector_store %arg41[%c8, %c0_6], %8 {strides = array<i32>} : memref<288x324xbf16, #tpu.memory_space<vmem>>, vector<8x324xbf16>,
    %10 = vector.extract_strided_slice %3 {offsets = [0, 2], sizes = [8, 324], strides = [1, 1]} : vector<8x362xf32> to vector<8x324xf32>
    %11 = arith.truncf %10 : vector<8x324xf32> to vector<8x324xbf16>
    %c16 = arith.constant 16 : index
    %c0_7 = arith.constant 0 : index
    %12 = vector.load %arg41[%c16, %c0_7] : memref<288x324xbf16, #tpu.memory_space<vmem>>, vector<8x324xbf16>
    tpu.vector_store %arg41[%c16, %c0_7], %11 {strides = array<i32>} : memref<288x324xbf16, #tpu.memory_space<vmem>>, vector<8x324xbf16>,
    %13 = vector.extract_strided_slice %3 {offsets = [0, 18], sizes = [8, 324], strides = [1, 1]} : vector<8x362xf32> to vector<8x324xf32>
    %14 = arith.truncf %13 : vector<8x324xf32> to vector<8x324xbf16>
    %c24 = arith.constant 24 : index
    %c0_8 = arith.constant 0 : index
    %15 = vector.load %arg41[%c24, %c0_8] : memref<288x324xbf16, #tpu.memory_space<vmem>>, vector<8x324xbf16>
    tpu.vector_store %arg41[%c24, %c0_8], %14 {strides = array<i32>} : memref<288x324xbf16, #tpu.memory_space<vmem>>, vector<8x324xbf16>,
    %16 = vector.extract_strided_slice %3 {offsets = [0, 19], sizes = [8, 324], strides = [1, 1]} : vector<8x362xf32> to vector<8x324xf32>
    %17 = arith.truncf %16 : vector<8x324xf32> to vector<8x324xbf16>
    %c32 = arith.constant 32 : index
    %c0_9 = arith.constant 0 : index
    %18 = vector.load %arg41[%c32, %c0_9] : memref<288x324xbf16, #tpu.memory_space<vmem>>, vector<8x324xbf16>
    tpu.vector_store %arg41[%c32, %c0_9], %17 {strides = array<i32>} : memref<288x324xbf16, #tpu.memory_space<vmem>>, vector<8x324xbf16>,
    %19 = vector.extract_strided_slice %3 {offsets = [0, 20], sizes = [8, 324], strides = [1, 1]} : vector<8x362xf32> to vector<8x324xf32>
    %20 = arith.truncf %19 : vector<8x324xf32> to vector<8x324xbf16>
    %c40 = arith.constant 40 : index
    %c0_10 = arith.constant 0 : index
    %21 = vector.load %arg41[%c40, %c0_10] : memref<288x324xbf16, #tpu.memory_space<vmem>>, vector<8x324xbf16>
    tpu.vector_store %arg41[%c40, %c0_10], %20 {strides = array<i32>} : memref<288x324xbf16, #tpu.memory_space<vmem>>, vector<8x324xbf16>,
    %22 = vector.extract_strided_slice %3 {offsets = [0, 36], sizes = [8, 324], strides = [1, 1]} : vector<8x362xf32> to vector<8x324xf32>
    %23 = arith.truncf %22 : vector<8x324xf32> to vector<8x324xbf16>
    %c48 = arith.constant 48 : index
    %c0_11 = arith.constant 0 : index
    %24 = vector.load %arg41[%c48, %c0_11] : memref<288x324xbf16, #tpu.memory_space<vmem>>, vector<8x324xbf16>
    tpu.vector_store %arg41[%c48, %c0_11], %23 {strides = array<i32>} : memref<288x324xbf16, #tpu.memory_space<vmem>>, vector<8x324xbf16>,
    %25 = vector.extract_strided_slice %3 {offsets = [0, 37], sizes = [8, 324], strides = [1, 1]} : vector<8x362xf32> to vector<8x324xf32>
    %26 = arith.truncf %25 : vector<8x324xf32> to vector<8x324xbf16>
    %c56 = arith.constant 56 : index
    %c0_12 = arith.constant 0 : index
    %27 = vector.load %arg41[%c56, %c0_12] : memref<288x324xbf16, #tpu.memory_space<vmem>>, vector<8x324xbf16>
    tpu.vector_store %arg41[%c56, %c0_12], %26 {strides = array<i32>} : memref<288x324xbf16, #tpu.memory_space<vmem>>, vector<8x324xbf16>,
    %28 = vector.extract_strided_slice %3 {offsets = [0, 38], sizes = [8, 324], strides = [1, 1]} : vector<8x362xf32> to vector<8x324xf32>
    %29 = arith.truncf %28 : vector<8x324xf32> to vector<8x324xbf16>
    %c64 = arith.constant 64 : index
    %c0_13 = arith.constant 0 : index
    %30 = vector.load %arg41[%c64, %c0_13] : memref<288x324xbf16, #tpu.memory_space<vmem>>, vector<8x324xbf16>
    tpu.vector_store %arg41[%c64, %c0_13], %29 {strides = array<i32>} : memref<288x324xbf16, #tpu.memory_space<vmem>>, vector<8x324xbf16>,
    %c0_14 = arith.constant 0 : index
    %c0_15 = arith.constant 0 : index
    %31 = vector.load %arg3[%c0_14, %c0_15] : memref<32x72xbf16, #tpu.memory_space<vmem>>, vector<32x72xbf16>
    %c0_16 = arith.constant 0 : index
    %c0_17 = arith.constant 0 : index
    %32 = vector.load %arg41[%c0_16, %c0_17] : memref<288x324xbf16, #tpu.memory_space<vmem>>, vector<72x324xbf16>
    %cst_18 = arith.constant dense<0.000000e+00> : vector<32x324xf32>
    %33 = tpu.matmul %31, %32, %cst_18 {dimension_numbers = #tpu.dot_dimension_numbers<[1], [0], [0], [1], [0, 0, 1, 1], [], []>} : vector<32x72xbf16>, vector<72x324xbf16>, vector<32x324xf32> -> vector<32x324xf32>
    %c0_19 = arith.constant 0 : index
    %c0_20 = arith.constant 0 : index
    %34 = vector.load %arg4[%c0_19, %c0_20] : memref<32x1xf32, #tpu.memory_space<vmem>>, vector<32x1xf32>
    %35 = vector.broadcast %34 : vector<32x1xf32> to vector<32x324xf32>
    %36 = arith.addf %33, %35 : vector<32x324xf32>
    %cst_21 = arith.constant 0.000000e+00 : f32
    %37 = vector.broadcast %cst_21 : f32 to vector<32x324xf32>
    %38 = arith.maximumf %36, %37 : vector<32x324xf32>
    %c0_22 = arith.constant 0 : index
    %c0_23 = arith.constant 0 : index
    %39 = vector.load %arg23[%c0_22, %c0_23] : memref<324x362xf32, #tpu.memory_space<vmem>>, vector<324x362xf32>
    %cst_24 = arith.constant dense<0.000000e+00> : vector<32x362xf32>
    %40 = tpu.matmul %38, %39, %cst_24 {dimension_numbers = #tpu.dot_dimension_numbers<[1], [0], [0], [1], [0, 0, 1, 1], [], []>} : vector<32x324xf32>, vector<324x362xf32>, vector<32x362xf32> -> vector<32x362xf32>
    %41 = vector.extract_strided_slice %40 {offsets = [0, 0], sizes = [32, 324], strides = [1, 1]} : vector<32x362xf32> to vector<32x324xf32>
    %42 = arith.truncf %41 : vector<32x324xf32> to vector<32x324xbf16>
    %c0_25 = arith.constant 0 : index
    %c0_26 = arith.constant 0 : index
    %43 = vector.load %arg41[%c0_25, %c0_26] : memref<288x324xbf16, #tpu.memory_space<vmem>>, vector<32x324xbf16>
    tpu.vector_store %arg41[%c0_25, %c0_26], %42 {strides = array<i32>} : memref<288x324xbf16, #tpu.memory_space<vmem>>, vector<32x324xbf16>,
    %44 = vector.extract_strided_slice %40 {offsets = [0, 1], sizes = [32, 324], strides = [1, 1]} : vector<32x362xf32> to vector<32x324xf32>
    %45 = arith.truncf %44 : vector<32x324xf32> to vector<32x324xbf16>
    %c32_27 = arith.constant 32 : index
    %c0_28 = arith.constant 0 : index
    %46 = vector.load %arg41[%c32_27, %c0_28] : memref<288x324xbf16, #tpu.memory_space<vmem>>, vector<32x324xbf16>
    tpu.vector_store %arg41[%c32_27, %c0_28], %45 {strides = array<i32>} : memref<288x324xbf16, #tpu.memory_space<vmem>>, vector<32x324xbf16>,
    %47 = vector.extract_strided_slice %40 {offsets = [0, 2], sizes = [32, 324], strides = [1, 1]} : vector<32x362xf32> to vector<32x324xf32>
    %48 = arith.truncf %47 : vector<32x324xf32> to vector<32x324xbf16>
    %c64_29 = arith.constant 64 : index
    %c0_30 = arith.constant 0 : index
    %49 = vector.load %arg41[%c64_29, %c0_30] : memref<288x324xbf16, #tpu.memory_space<vmem>>, vector<32x324xbf16>
    tpu.vector_store %arg41[%c64_29, %c0_30], %48 {strides = array<i32>} : memref<288x324xbf16, #tpu.memory_space<vmem>>, vector<32x324xbf16>,
    %50 = vector.extract_strided_slice %40 {offsets = [0, 18], sizes = [32, 324], strides = [1, 1]} : vector<32x362xf32> to vector<32x324xf32>
    %51 = arith.truncf %50 : vector<32x324xf32> to vector<32x324xbf16>
    %c96 = arith.constant 96 : index
    %c0_31 = arith.constant 0 : index
    %52 = vector.load %arg41[%c96, %c0_31] : memref<288x324xbf16, #tpu.memory_space<vmem>>, vector<32x324xbf16>
    tpu.vector_store %arg41[%c96, %c0_31], %51 {strides = array<i32>} : memref<288x324xbf16, #tpu.memory_space<vmem>>, vector<32x324xbf16>,
    %53 = vector.extract_strided_slice %40 {offsets = [0, 19], sizes = [32, 324], strides = [1, 1]} : vector<32x362xf32> to vector<32x324xf32>
    %54 = arith.truncf %53 : vector<32x324xf32> to vector<32x324xbf16>
    %c128 = arith.constant 128 : index
    %c0_32 = arith.constant 0 : index
    %55 = vector.load %arg41[%c128, %c0_32] : memref<288x324xbf16, #tpu.memory_space<vmem>>, vector<32x324xbf16>
    tpu.vector_store %arg41[%c128, %c0_32], %54 {strides = array<i32>} : memref<288x324xbf16, #tpu.memory_space<vmem>>, vector<32x324xbf16>,
    %56 = vector.extract_strided_slice %40 {offsets = [0, 20], sizes = [32, 324], strides = [1, 1]} : vector<32x362xf32> to vector<32x324xf32>
    %57 = arith.truncf %56 : vector<32x324xf32> to vector<32x324xbf16>
    %c160 = arith.constant 160 : index
    %c0_33 = arith.constant 0 : index
    %58 = vector.load %arg41[%c160, %c0_33] : memref<288x324xbf16, #tpu.memory_space<vmem>>, vector<32x324xbf16>
    tpu.vector_store %arg41[%c160, %c0_33], %57 {strides = array<i32>} : memref<288x324xbf16, #tpu.memory_space<vmem>>, vector<32x324xbf16>,
    %59 = vector.extract_strided_slice %40 {offsets = [0, 36], sizes = [32, 324], strides = [1, 1]} : vector<32x362xf32> to vector<32x324xf32>
    %60 = arith.truncf %59 : vector<32x324xf32> to vector<32x324xbf16>
    %c192 = arith.constant 192 : index
    %c0_34 = arith.constant 0 : index
    %61 = vector.load %arg41[%c192, %c0_34] : memref<288x324xbf16, #tpu.memory_space<vmem>>, vector<32x324xbf16>
    tpu.vector_store %arg41[%c192, %c0_34], %60 {strides = array<i32>} : memref<288x324xbf16, #tpu.memory_space<vmem>>, vector<32x324xbf16>,
    %62 = vector.extract_strided_slice %40 {offsets = [0, 37], sizes = [32, 324], strides = [1, 1]} : vector<32x362xf32> to vector<32x324xf32>
    %63 = arith.truncf %62 : vector<32x324xf32> to vector<32x324xbf16>
    %c224 = arith.constant 224 : index
    %c0_35 = arith.constant 0 : index
    %64 = vector.load %arg41[%c224, %c0_35] : memref<288x324xbf16, #tpu.memory_space<vmem>>, vector<32x324xbf16>
    tpu.vector_store %arg41[%c224, %c0_35], %63 {strides = array<i32>} : memref<288x324xbf16, #tpu.memory_space<vmem>>, vector<32x324xbf16>,
    %65 = vector.extract_strided_slice %40 {offsets = [0, 38], sizes = [32, 324], strides = [1, 1]} : vector<32x362xf32> to vector<32x324xf32>
    %66 = arith.truncf %65 : vector<32x324xf32> to vector<32x324xbf16>
    %c256 = arith.constant 256 : index
    %c0_36 = arith.constant 0 : index
    %67 = vector.load %arg41[%c256, %c0_36] : memref<288x324xbf16, #tpu.memory_space<vmem>>, vector<32x324xbf16>
    tpu.vector_store %arg41[%c256, %c0_36], %66 {strides = array<i32>} : memref<288x324xbf16, #tpu.memory_space<vmem>>, vector<32x324xbf16>,
    %c0_37 = arith.constant 0 : index
    %c0_38 = arith.constant 0 : index
    %68 = vector.load %arg5[%c0_37, %c0_38] : memref<32x288xbf16, #tpu.memory_space<vmem>>, vector<32x288xbf16>
    %c0_39 = arith.constant 0 : index
    %c0_40 = arith.constant 0 : index
    %69 = vector.load %arg41[%c0_39, %c0_40] : memref<288x324xbf16, #tpu.memory_space<vmem>>, vector<288x324xbf16>
    %cst_41 = arith.constant dense<0.000000e+00> : vector<32x324xf32>
    %70 = tpu.matmul %68, %69, %cst_41 {dimension_numbers = #tpu.dot_dimension_numbers<[1], [0], [0], [1], [0, 0, 1, 1], [], []>} : vector<32x288xbf16>, vector<288x324xbf16>, vector<32x324xf32> -> vector<32x324xf32>
    %c0_42 = arith.constant 0 : index
    %c0_43 = arith.constant 0 : index
    %71 = vector.load %arg6[%c0_42, %c0_43] : memref<32x1xf32, #tpu.memory_space<vmem>>, vector<32x1xf32>
    %72 = vector.broadcast %71 : vector<32x1xf32> to vector<32x324xf32>
    %73 = arith.addf %70, %72 : vector<32x324xf32>
    %c0_44 = arith.constant 0 : index
    %c0_45 = arith.constant 0 : index
    %74 = vector.load %arg31[%c0_44, %c0_45] : memref<324x256xf32, #tpu.memory_space<vmem>>, vector<324x256xf32>
    %cst_46 = arith.constant dense<0.000000e+00> : vector<32x256xf32>
    %75 = tpu.matmul %73, %74, %cst_46 {dimension_numbers = #tpu.dot_dimension_numbers<[1], [0], [0], [1], [0, 0, 1, 1], [], []>} : vector<32x324xf32>, vector<324x256xf32>, vector<32x256xf32> -> vector<32x256xf32>
    %c0_47 = arith.constant 0 : index
    %c0_48 = arith.constant 0 : index
    %c0_49 = arith.constant 0 : index
    %76 = vector.load %arg36[%c0_47, %c0_48, %c0_49] : memref<1x32x256xf32, #tpu.memory_space<vmem>>, vector<1x32x256xf32>
    %77 = vector.shape_cast %76 : vector<1x32x256xf32> to vector<32x256xf32>
    %78 = vector.shape_cast %75 : vector<32x256xf32> to vector<1x32x256xf32>
    tpu.vector_store %arg36[%c0_47, %c0_48, %c0_49], %78 {strides = array<i32>} : memref<1x32x256xf32, #tpu.memory_space<vmem>>, vector<1x32x256xf32>,
    %c0_50 = arith.constant 0 : index
    %c0_51 = arith.constant 0 : index
    %79 = vector.load %arg23[%c0_50, %c0_51] : memref<324x362xf32, #tpu.memory_space<vmem>>, vector<324x362xf32>
    %cst_52 = arith.constant dense<0.000000e+00> : vector<32x362xf32>
    %80 = tpu.matmul %73, %79, %cst_52 {dimension_numbers = #tpu.dot_dimension_numbers<[1], [0], [0], [1], [0, 0, 1, 1], [], []>} : vector<32x324xf32>, vector<324x362xf32>, vector<32x362xf32> -> vector<32x362xf32>
    %cst_53 = arith.constant 0.000000e+00 : f32
    %81 = vector.broadcast %cst_53 : f32 to vector<32x362xf32>
    %82 = arith.maximumf %80, %81 : vector<32x362xf32>
    %83 = vector.extract_strided_slice %82 {offsets = [0, 0], sizes = [32, 324], strides = [1, 1]} : vector<32x362xf32> to vector<32x324xf32>
    %84 = arith.truncf %83 : vector<32x324xf32> to vector<32x324xbf16>
    %c0_54 = arith.constant 0 : index
    %c0_55 = arith.constant 0 : index
    %85 = vector.load %arg41[%c0_54, %c0_55] : memref<288x324xbf16, #tpu.memory_space<vmem>>, vector<32x324xbf16>
    tpu.vector_store %arg41[%c0_54, %c0_55], %84 {strides = array<i32>} : memref<288x324xbf16, #tpu.memory_space<vmem>>, vector<32x324xbf16>,
    %86 = vector.extract_strided_slice %82 {offsets = [0, 1], sizes = [32, 324], strides = [1, 1]} : vector<32x362xf32> to vector<32x324xf32>
    %87 = arith.truncf %86 : vector<32x324xf32> to vector<32x324xbf16>
    %c32_56 = arith.constant 32 : index
    %c0_57 = arith.constant 0 : index
    %88 = vector.load %arg41[%c32_56, %c0_57] : memref<288x324xbf16, #tpu.memory_space<vmem>>, vector<32x324xbf16>
    tpu.vector_store %arg41[%c32_56, %c0_57], %87 {strides = array<i32>} : memref<288x324xbf16, #tpu.memory_space<vmem>>, vector<32x324xbf16>,
    %89 = vector.extract_strided_slice %82 {offsets = [0, 2], sizes = [32, 324], strides = [1, 1]} : vector<32x362xf32> to vector<32x324xf32>
    %90 = arith.truncf %89 : vector<32x324xf32> to vector<32x324xbf16>
    %c64_58 = arith.constant 64 : index
    %c0_59 = arith.constant 0 : index
    %91 = vector.load %arg41[%c64_58, %c0_59] : memref<288x324xbf16, #tpu.memory_space<vmem>>, vector<32x324xbf16>
    tpu.vector_store %arg41[%c64_58, %c0_59], %90 {strides = array<i32>} : memref<288x324xbf16, #tpu.memory_space<vmem>>, vector<32x324xbf16>,
    %92 = vector.extract_strided_slice %82 {offsets = [0, 18], sizes = [32, 324], strides = [1, 1]} : vector<32x362xf32> to vector<32x324xf32>
    %93 = arith.truncf %92 : vector<32x324xf32> to vector<32x324xbf16>
    %c96_60 = arith.constant 96 : index
    %c0_61 = arith.constant 0 : index
    %94 = vector.load %arg41[%c96_60, %c0_61] : memref<288x324xbf16, #tpu.memory_space<vmem>>, vector<32x324xbf16>
    tpu.vector_store %arg41[%c96_60, %c0_61], %93 {strides = array<i32>} : memref<288x324xbf16, #tpu.memory_space<vmem>>, vector<32x324xbf16>,
    %95 = vector.extract_strided_slice %82 {offsets = [0, 19], sizes = [32, 324], strides = [1, 1]} : vector<32x362xf32> to vector<32x324xf32>
    %96 = arith.truncf %95 : vector<32x324xf32> to vector<32x324xbf16>
    %c128_62 = arith.constant 128 : index
    %c0_63 = arith.constant 0 : index
    %97 = vector.load %arg41[%c128_62, %c0_63] : memref<288x324xbf16, #tpu.memory_space<vmem>>, vector<32x324xbf16>
    tpu.vector_store %arg41[%c128_62, %c0_63], %96 {strides = array<i32>} : memref<288x324xbf16, #tpu.memory_space<vmem>>, vector<32x324xbf16>,
    %98 = vector.extract_strided_slice %82 {offsets = [0, 20], sizes = [32, 324], strides = [1, 1]} : vector<32x362xf32> to vector<32x324xf32>
    %99 = arith.truncf %98 : vector<32x324xf32> to vector<32x324xbf16>
    %c160_64 = arith.constant 160 : index
    %c0_65 = arith.constant 0 : index
    %100 = vector.load %arg41[%c160_64, %c0_65] : memref<288x324xbf16, #tpu.memory_space<vmem>>, vector<32x324xbf16>
    tpu.vector_store %arg41[%c160_64, %c0_65], %99 {strides = array<i32>} : memref<288x324xbf16, #tpu.memory_space<vmem>>, vector<32x324xbf16>,
    %101 = vector.extract_strided_slice %82 {offsets = [0, 36], sizes = [32, 324], strides = [1, 1]} : vector<32x362xf32> to vector<32x324xf32>
    %102 = arith.truncf %101 : vector<32x324xf32> to vector<32x324xbf16>
    %c192_66 = arith.constant 192 : index
    %c0_67 = arith.constant 0 : index
    %103 = vector.load %arg41[%c192_66, %c0_67] : memref<288x324xbf16, #tpu.memory_space<vmem>>, vector<32x324xbf16>
    tpu.vector_store %arg41[%c192_66, %c0_67], %102 {strides = array<i32>} : memref<288x324xbf16, #tpu.memory_space<vmem>>, vector<32x324xbf16>,
    %104 = vector.extract_strided_slice %82 {offsets = [0, 37], sizes = [32, 324], strides = [1, 1]} : vector<32x362xf32> to vector<32x324xf32>
    %105 = arith.truncf %104 : vector<32x324xf32> to vector<32x324xbf16>
    %c224_68 = arith.constant 224 : index
    %c0_69 = arith.constant 0 : index
    %106 = vector.load %arg41[%c224_68, %c0_69] : memref<288x324xbf16, #tpu.memory_space<vmem>>, vector<32x324xbf16>
    tpu.vector_store %arg41[%c224_68, %c0_69], %105 {strides = array<i32>} : memref<288x324xbf16, #tpu.memory_space<vmem>>, vector<32x324xbf16>,
    %107 = vector.extract_strided_slice %82 {offsets = [0, 38], sizes = [32, 324], strides = [1, 1]} : vector<32x362xf32> to vector<32x324xf32>
    %108 = arith.truncf %107 : vector<32x324xf32> to vector<32x324xbf16>
    %c256_70 = arith.constant 256 : index
    %c0_71 = arith.constant 0 : index
    %109 = vector.load %arg41[%c256_70, %c0_71] : memref<288x324xbf16, #tpu.memory_space<vmem>>, vector<32x324xbf16>
    tpu.vector_store %arg41[%c256_70, %c0_71], %108 {strides = array<i32>} : memref<288x324xbf16, #tpu.memory_space<vmem>>, vector<32x324xbf16>,
    %c0_72 = arith.constant 0 : index
    %c0_73 = arith.constant 0 : index
    %110 = vector.load %arg7[%c0_72, %c0_73] : memref<32x288xbf16, #tpu.memory_space<vmem>>, vector<32x288xbf16>
    %c0_74 = arith.constant 0 : index
    %c0_75 = arith.constant 0 : index
    %111 = vector.load %arg41[%c0_74, %c0_75] : memref<288x324xbf16, #tpu.memory_space<vmem>>, vector<288x324xbf16>
    %cst_76 = arith.constant dense<0.000000e+00> : vector<32x324xf32>
    %112 = tpu.matmul %110, %111, %cst_76 {dimension_numbers = #tpu.dot_dimension_numbers<[1], [0], [0], [1], [0, 0, 1, 1], [], []>} : vector<32x288xbf16>, vector<288x324xbf16>, vector<32x324xf32> -> vector<32x324xf32>
    %c0_77 = arith.constant 0 : index
    %c0_78 = arith.constant 0 : index
    %113 = vector.load %arg8[%c0_77, %c0_78] : memref<32x1xf32, #tpu.memory_space<vmem>>, vector<32x1xf32>
    %114 = vector.broadcast %113 : vector<32x1xf32> to vector<32x324xf32>
    %115 = arith.addf %112, %114 : vector<32x324xf32>
    %c0_79 = arith.constant 0 : index
    %c0_80 = arith.constant 0 : index
    %116 = vector.load %arg27[%c0_79, %c0_80] : memref<324x122xf32, #tpu.memory_space<vmem>>, vector<324x122xf32>
    %cst_81 = arith.constant dense<0.000000e+00> : vector<32x122xf32>
    %117 = tpu.matmul %115, %116, %cst_81 {dimension_numbers = #tpu.dot_dimension_numbers<[1], [0], [0], [1], [0, 0, 1, 1], [], []>} : vector<32x324xf32>, vector<324x122xf32>, vector<32x122xf32> -> vector<32x122xf32>
    %cst_82 = arith.constant 0.000000e+00 : f32
    %118 = vector.broadcast %cst_82 : f32 to vector<32x122xf32>
    %119 = arith.maximumf %117, %118 : vector<32x122xf32>
    %120 = vector.extract_strided_slice %119 {offsets = [0, 0], sizes = [32, 100], strides = [1, 1]} : vector<32x122xf32> to vector<32x100xf32>
    %121 = arith.truncf %120 : vector<32x100xf32> to vector<32x100xbf16>
    %c0_83 = arith.constant 0 : index
    %c0_84 = arith.constant 0 : index
    %122 = vector.load %arg41[%c0_83, %c0_84] : memref<288x324xbf16, #tpu.memory_space<vmem>>, vector<32x100xbf16>
    tpu.vector_store %arg41[%c0_83, %c0_84], %121 {strides = array<i32>} : memref<288x324xbf16, #tpu.memory_space<vmem>>, vector<32x100xbf16>,
    %123 = vector.extract_strided_slice %119 {offsets = [0, 1], sizes = [32, 100], strides = [1, 1]} : vector<32x122xf32> to vector<32x100xf32>
    %124 = arith.truncf %123 : vector<32x100xf32> to vector<32x100xbf16>
    %c32_85 = arith.constant 32 : index
    %c0_86 = arith.constant 0 : index
    %125 = vector.load %arg41[%c32_85, %c0_86] : memref<288x324xbf16, #tpu.memory_space<vmem>>, vector<32x100xbf16>
    tpu.vector_store %arg41[%c32_85, %c0_86], %124 {strides = array<i32>} : memref<288x324xbf16, #tpu.memory_space<vmem>>, vector<32x100xbf16>,
    %126 = vector.extract_strided_slice %119 {offsets = [0, 2], sizes = [32, 100], strides = [1, 1]} : vector<32x122xf32> to vector<32x100xf32>
    %127 = arith.truncf %126 : vector<32x100xf32> to vector<32x100xbf16>
    %c64_87 = arith.constant 64 : index
    %c0_88 = arith.constant 0 : index
    %128 = vector.load %arg41[%c64_87, %c0_88] : memref<288x324xbf16, #tpu.memory_space<vmem>>, vector<32x100xbf16>
    tpu.vector_store %arg41[%c64_87, %c0_88], %127 {strides = array<i32>} : memref<288x324xbf16, #tpu.memory_space<vmem>>, vector<32x100xbf16>,
    %129 = vector.extract_strided_slice %119 {offsets = [0, 10], sizes = [32, 100], strides = [1, 1]} : vector<32x122xf32> to vector<32x100xf32>
    %130 = arith.truncf %129 : vector<32x100xf32> to vector<32x100xbf16>
    %c96_89 = arith.constant 96 : index
    %c0_90 = arith.constant 0 : index
    %131 = vector.load %arg41[%c96_89, %c0_90] : memref<288x324xbf16, #tpu.memory_space<vmem>>, vector<32x100xbf16>
    tpu.vector_store %arg41[%c96_89, %c0_90], %130 {strides = array<i32>} : memref<288x324xbf16, #tpu.memory_space<vmem>>, vector<32x100xbf16>,
    %132 = vector.extract_strided_slice %119 {offsets = [0, 11], sizes = [32, 100], strides = [1, 1]} : vector<32x122xf32> to vector<32x100xf32>
    %133 = arith.truncf %132 : vector<32x100xf32> to vector<32x100xbf16>
    %c128_91 = arith.constant 128 : index
    %c0_92 = arith.constant 0 : index
    %134 = vector.load %arg41[%c128_91, %c0_92] : memref<288x324xbf16, #tpu.memory_space<vmem>>, vector<32x100xbf16>
    tpu.vector_store %arg41[%c128_91, %c0_92], %133 {strides = array<i32>} : memref<288x324xbf16, #tpu.memory_space<vmem>>, vector<32x100xbf16>,
    %135 = vector.extract_strided_slice %119 {offsets = [0, 12], sizes = [32, 100], strides = [1, 1]} : vector<32x122xf32> to vector<32x100xf32>
    %136 = arith.truncf %135 : vector<32x100xf32> to vector<32x100xbf16>
    %c160_93 = arith.constant 160 : index
    %c0_94 = arith.constant 0 : index
    %137 = vector.load %arg41[%c160_93, %c0_94] : memref<288x324xbf16, #tpu.memory_space<vmem>>, vector<32x100xbf16>
    tpu.vector_store %arg41[%c160_93, %c0_94], %136 {strides = array<i32>} : memref<288x324xbf16, #tpu.memory_space<vmem>>, vector<32x100xbf16>,
    %138 = vector.extract_strided_slice %119 {offsets = [0, 20], sizes = [32, 100], strides = [1, 1]} : vector<32x122xf32> to vector<32x100xf32>
    %139 = arith.truncf %138 : vector<32x100xf32> to vector<32x100xbf16>
    %c192_95 = arith.constant 192 : index
    %c0_96 = arith.constant 0 : index
    %140 = vector.load %arg41[%c192_95, %c0_96] : memref<288x324xbf16, #tpu.memory_space<vmem>>, vector<32x100xbf16>
    tpu.vector_store %arg41[%c192_95, %c0_96], %139 {strides = array<i32>} : memref<288x324xbf16, #tpu.memory_space<vmem>>, vector<32x100xbf16>,
    %141 = vector.extract_strided_slice %119 {offsets = [0, 21], sizes = [32, 100], strides = [1, 1]} : vector<32x122xf32> to vector<32x100xf32>
    %142 = arith.truncf %141 : vector<32x100xf32> to vector<32x100xbf16>
    %c224_97 = arith.constant 224 : index
    %c0_98 = arith.constant 0 : index
    %143 = vector.load %arg41[%c224_97, %c0_98] : memref<288x324xbf16, #tpu.memory_space<vmem>>, vector<32x100xbf16>
    tpu.vector_store %arg41[%c224_97, %c0_98], %142 {strides = array<i32>} : memref<288x324xbf16, #tpu.memory_space<vmem>>, vector<32x100xbf16>,
    %144 = vector.extract_strided_slice %119 {offsets = [0, 22], sizes = [32, 100], strides = [1, 1]} : vector<32x122xf32> to vector<32x100xf32>
    %145 = arith.truncf %144 : vector<32x100xf32> to vector<32x100xbf16>
    %c256_99 = arith.constant 256 : index
    %c0_100 = arith.constant 0 : index
    %146 = vector.load %arg41[%c256_99, %c0_100] : memref<288x324xbf16, #tpu.memory_space<vmem>>, vector<32x100xbf16>
    tpu.vector_store %arg41[%c256_99, %c0_100], %145 {strides = array<i32>} : memref<288x324xbf16, #tpu.memory_space<vmem>>, vector<32x100xbf16>,
    %c0_101 = arith.constant 0 : index
    %c0_102 = arith.constant 0 : index
    %147 = vector.load %arg9[%c0_101, %c0_102] : memref<32x288xbf16, #tpu.memory_space<vmem>>, vector<32x288xbf16>
    %c0_103 = arith.constant 0 : index
    %c0_104 = arith.constant 0 : index
    %148 = vector.load %arg41[%c0_103, %c0_104] : memref<288x324xbf16, #tpu.memory_space<vmem>>, vector<288x100xbf16>
    %cst_105 = arith.constant dense<0.000000e+00> : vector<32x100xf32>
    %149 = tpu.matmul %147, %148, %cst_105 {dimension_numbers = #tpu.dot_dimension_numbers<[1], [0], [0], [1], [0, 0, 1, 1], [], []>} : vector<32x288xbf16>, vector<288x100xbf16>, vector<32x100xf32> -> vector<32x100xf32>
    %c0_106 = arith.constant 0 : index
    %c0_107 = arith.constant 0 : index
    %150 = vector.load %arg10[%c0_106, %c0_107] : memref<32x1xf32, #tpu.memory_space<vmem>>, vector<32x1xf32>
    %151 = vector.broadcast %150 : vector<32x1xf32> to vector<32x100xf32>
    %152 = arith.addf %149, %151 : vector<32x100xf32>
    %c0_108 = arith.constant 0 : index
    %c0_109 = arith.constant 0 : index
    %153 = vector.load %arg32[%c0_108, %c0_109] : memref<100x64xf32, #tpu.memory_space<vmem>>, vector<100x64xf32>
    %cst_110 = arith.constant dense<0.000000e+00> : vector<32x64xf32>
    %154 = tpu.matmul %152, %153, %cst_110 {dimension_numbers = #tpu.dot_dimension_numbers<[1], [0], [0], [1], [0, 0, 1, 1], [], []>} : vector<32x100xf32>, vector<100x64xf32>, vector<32x64xf32> -> vector<32x64xf32>
    %c0_111 = arith.constant 0 : index
    %c0_112 = arith.constant 0 : index
    %c0_113 = arith.constant 0 : index
    %155 = vector.load %arg37[%c0_111, %c0_112, %c0_113] : memref<1x32x64xf32, #tpu.memory_space<vmem>>, vector<1x32x64xf32>
    %156 = vector.shape_cast %155 : vector<1x32x64xf32> to vector<32x64xf32>
    %157 = vector.shape_cast %154 : vector<32x64xf32> to vector<1x32x64xf32>
    tpu.vector_store %arg37[%c0_111, %c0_112, %c0_113], %157 {strides = array<i32>} : memref<1x32x64xf32, #tpu.memory_space<vmem>>, vector<1x32x64xf32>,
    %c0_114 = arith.constant 0 : index
    %c0_115 = arith.constant 0 : index
    %158 = vector.load %arg24[%c0_114, %c0_115] : memref<100x122xf32, #tpu.memory_space<vmem>>, vector<100x122xf32>
    %cst_116 = arith.constant dense<0.000000e+00> : vector<32x122xf32>
    %159 = tpu.matmul %152, %158, %cst_116 {dimension_numbers = #tpu.dot_dimension_numbers<[1], [0], [0], [1], [0, 0, 1, 1], [], []>} : vector<32x100xf32>, vector<100x122xf32>, vector<32x122xf32> -> vector<32x122xf32>
    %cst_117 = arith.constant 0.000000e+00 : f32
    %160 = vector.broadcast %cst_117 : f32 to vector<32x122xf32>
    %161 = arith.maximumf %159, %160 : vector<32x122xf32>
    %162 = vector.extract_strided_slice %161 {offsets = [0, 0], sizes = [32, 100], strides = [1, 1]} : vector<32x122xf32> to vector<32x100xf32>
    %163 = arith.truncf %162 : vector<32x100xf32> to vector<32x100xbf16>
    %c0_118 = arith.constant 0 : index
    %c0_119 = arith.constant 0 : index
    %164 = vector.load %arg41[%c0_118, %c0_119] : memref<288x324xbf16, #tpu.memory_space<vmem>>, vector<32x100xbf16>
    tpu.vector_store %arg41[%c0_118, %c0_119], %163 {strides = array<i32>} : memref<288x324xbf16, #tpu.memory_space<vmem>>, vector<32x100xbf16>,
    %165 = vector.extract_strided_slice %161 {offsets = [0, 1], sizes = [32, 100], strides = [1, 1]} : vector<32x122xf32> to vector<32x100xf32>
    %166 = arith.truncf %165 : vector<32x100xf32> to vector<32x100xbf16>
    %c32_120 = arith.constant 32 : index
    %c0_121 = arith.constant 0 : index
    %167 = vector.load %arg41[%c32_120, %c0_121] : memref<288x324xbf16, #tpu.memory_space<vmem>>, vector<32x100xbf16>
    tpu.vector_store %arg41[%c32_120, %c0_121], %166 {strides = array<i32>} : memref<288x324xbf16, #tpu.memory_space<vmem>>, vector<32x100xbf16>,
    %168 = vector.extract_strided_slice %161 {offsets = [0, 2], sizes = [32, 100], strides = [1, 1]} : vector<32x122xf32> to vector<32x100xf32>
    %169 = arith.truncf %168 : vector<32x100xf32> to vector<32x100xbf16>
    %c64_122 = arith.constant 64 : index
    %c0_123 = arith.constant 0 : index
    %170 = vector.load %arg41[%c64_122, %c0_123] : memref<288x324xbf16, #tpu.memory_space<vmem>>, vector<32x100xbf16>
    tpu.vector_store %arg41[%c64_122, %c0_123], %169 {strides = array<i32>} : memref<288x324xbf16, #tpu.memory_space<vmem>>, vector<32x100xbf16>,
    %171 = vector.extract_strided_slice %161 {offsets = [0, 10], sizes = [32, 100], strides = [1, 1]} : vector<32x122xf32> to vector<32x100xf32>
    %172 = arith.truncf %171 : vector<32x100xf32> to vector<32x100xbf16>
    %c96_124 = arith.constant 96 : index
    %c0_125 = arith.constant 0 : index
    %173 = vector.load %arg41[%c96_124, %c0_125] : memref<288x324xbf16, #tpu.memory_space<vmem>>, vector<32x100xbf16>
    tpu.vector_store %arg41[%c96_124, %c0_125], %172 {strides = array<i32>} : memref<288x324xbf16, #tpu.memory_space<vmem>>, vector<32x100xbf16>,
    %174 = vector.extract_strided_slice %161 {offsets = [0, 11], sizes = [32, 100], strides = [1, 1]} : vector<32x122xf32> to vector<32x100xf32>
    %175 = arith.truncf %174 : vector<32x100xf32> to vector<32x100xbf16>
    %c128_126 = arith.constant 128 : index
    %c0_127 = arith.constant 0 : index
    %176 = vector.load %arg41[%c128_126, %c0_127] : memref<288x324xbf16, #tpu.memory_space<vmem>>, vector<32x100xbf16>
    tpu.vector_store %arg41[%c128_126, %c0_127], %175 {strides = array<i32>} : memref<288x324xbf16, #tpu.memory_space<vmem>>, vector<32x100xbf16>,
    %177 = vector.extract_strided_slice %161 {offsets = [0, 12], sizes = [32, 100], strides = [1, 1]} : vector<32x122xf32> to vector<32x100xf32>
    %178 = arith.truncf %177 : vector<32x100xf32> to vector<32x100xbf16>
    %c160_128 = arith.constant 160 : index
    %c0_129 = arith.constant 0 : index
    %179 = vector.load %arg41[%c160_128, %c0_129] : memref<288x324xbf16, #tpu.memory_space<vmem>>, vector<32x100xbf16>
    tpu.vector_store %arg41[%c160_128, %c0_129], %178 {strides = array<i32>} : memref<288x324xbf16, #tpu.memory_space<vmem>>, vector<32x100xbf16>,
    %180 = vector.extract_strided_slice %161 {offsets = [0, 20], sizes = [32, 100], strides = [1, 1]} : vector<32x122xf32> to vector<32x100xf32>
    %181 = arith.truncf %180 : vector<32x100xf32> to vector<32x100xbf16>
    %c192_130 = arith.constant 192 : index
    %c0_131 = arith.constant 0 : index
    %182 = vector.load %arg41[%c192_130, %c0_131] : memref<288x324xbf16, #tpu.memory_space<vmem>>, vector<32x100xbf16>
    tpu.vector_store %arg41[%c192_130, %c0_131], %181 {strides = array<i32>} : memref<288x324xbf16, #tpu.memory_space<vmem>>, vector<32x100xbf16>,
    %183 = vector.extract_strided_slice %161 {offsets = [0, 21], sizes = [32, 100], strides = [1, 1]} : vector<32x122xf32> to vector<32x100xf32>
    %184 = arith.truncf %183 : vector<32x100xf32> to vector<32x100xbf16>
    %c224_132 = arith.constant 224 : index
    %c0_133 = arith.constant 0 : index
    %185 = vector.load %arg41[%c224_132, %c0_133] : memref<288x324xbf16, #tpu.memory_space<vmem>>, vector<32x100xbf16>
    tpu.vector_store %arg41[%c224_132, %c0_133], %184 {strides = array<i32>} : memref<288x324xbf16, #tpu.memory_space<vmem>>, vector<32x100xbf16>,
    %186 = vector.extract_strided_slice %161 {offsets = [0, 22], sizes = [32, 100], strides = [1, 1]} : vector<32x122xf32> to vector<32x100xf32>
    %187 = arith.truncf %186 : vector<32x100xf32> to vector<32x100xbf16>
    %c256_134 = arith.constant 256 : index
    %c0_135 = arith.constant 0 : index
    %188 = vector.load %arg41[%c256_134, %c0_135] : memref<288x324xbf16, #tpu.memory_space<vmem>>, vector<32x100xbf16>
    tpu.vector_store %arg41[%c256_134, %c0_135], %187 {strides = array<i32>} : memref<288x324xbf16, #tpu.memory_space<vmem>>, vector<32x100xbf16>,
    %c0_136 = arith.constant 0 : index
    %c0_137 = arith.constant 0 : index
    %189 = vector.load %arg11[%c0_136, %c0_137] : memref<32x288xbf16, #tpu.memory_space<vmem>>, vector<32x288xbf16>
    %c0_138 = arith.constant 0 : index
    %c0_139 = arith.constant 0 : index
    %190 = vector.load %arg41[%c0_138, %c0_139] : memref<288x324xbf16, #tpu.memory_space<vmem>>, vector<288x100xbf16>
    %cst_140 = arith.constant dense<0.000000e+00> : vector<32x100xf32>
    %191 = tpu.matmul %189, %190, %cst_140 {dimension_numbers = #tpu.dot_dimension_numbers<[1], [0], [0], [1], [0, 0, 1, 1], [], []>} : vector<32x288xbf16>, vector<288x100xbf16>, vector<32x100xf32> -> vector<32x100xf32>
    %c0_141 = arith.constant 0 : index
    %c0_142 = arith.constant 0 : index
    %192 = vector.load %arg12[%c0_141, %c0_142] : memref<32x1xf32, #tpu.memory_space<vmem>>, vector<32x1xf32>
    %193 = vector.broadcast %192 : vector<32x1xf32> to vector<32x100xf32>
    %194 = arith.addf %191, %193 : vector<32x100xf32>
    %c0_143 = arith.constant 0 : index
    %c0_144 = arith.constant 0 : index
    %195 = vector.load %arg28[%c0_143, %c0_144] : memref<100x50xf32, #tpu.memory_space<vmem>>, vector<100x50xf32>
    %cst_145 = arith.constant dense<0.000000e+00> : vector<32x50xf32>
    %196 = tpu.matmul %194, %195, %cst_145 {dimension_numbers = #tpu.dot_dimension_numbers<[1], [0], [0], [1], [0, 0, 1, 1], [], []>} : vector<32x100xf32>, vector<100x50xf32>, vector<32x50xf32> -> vector<32x50xf32>
    %cst_146 = arith.constant 0.000000e+00 : f32
    %197 = vector.broadcast %cst_146 : f32 to vector<32x50xf32>
    %198 = arith.maximumf %196, %197 : vector<32x50xf32>
    %199 = vector.extract_strided_slice %198 {offsets = [0, 0], sizes = [32, 36], strides = [1, 1]} : vector<32x50xf32> to vector<32x36xf32>
    %200 = arith.truncf %199 : vector<32x36xf32> to vector<32x36xbf16>
    %c0_147 = arith.constant 0 : index
    %c0_148 = arith.constant 0 : index
    %201 = vector.load %arg41[%c0_147, %c0_148] : memref<288x324xbf16, #tpu.memory_space<vmem>>, vector<32x36xbf16>
    tpu.vector_store %arg41[%c0_147, %c0_148], %200 {strides = array<i32>} : memref<288x324xbf16, #tpu.memory_space<vmem>>, vector<32x36xbf16>,
    %202 = vector.extract_strided_slice %198 {offsets = [0, 1], sizes = [32, 36], strides = [1, 1]} : vector<32x50xf32> to vector<32x36xf32>
    %203 = arith.truncf %202 : vector<32x36xf32> to vector<32x36xbf16>
    %c32_149 = arith.constant 32 : index
    %c0_150 = arith.constant 0 : index
    %204 = vector.load %arg41[%c32_149, %c0_150] : memref<288x324xbf16, #tpu.memory_space<vmem>>, vector<32x36xbf16>
    tpu.vector_store %arg41[%c32_149, %c0_150], %203 {strides = array<i32>} : memref<288x324xbf16, #tpu.memory_space<vmem>>, vector<32x36xbf16>,
    %205 = vector.extract_strided_slice %198 {offsets = [0, 2], sizes = [32, 36], strides = [1, 1]} : vector<32x50xf32> to vector<32x36xf32>
    %206 = arith.truncf %205 : vector<32x36xf32> to vector<32x36xbf16>
    %c64_151 = arith.constant 64 : index
    %c0_152 = arith.constant 0 : index
    %207 = vector.load %arg41[%c64_151, %c0_152] : memref<288x324xbf16, #tpu.memory_space<vmem>>, vector<32x36xbf16>
    tpu.vector_store %arg41[%c64_151, %c0_152], %206 {strides = array<i32>} : memref<288x324xbf16, #tpu.memory_space<vmem>>, vector<32x36xbf16>,
    %208 = vector.extract_strided_slice %198 {offsets = [0, 6], sizes = [32, 36], strides = [1, 1]} : vector<32x50xf32> to vector<32x36xf32>
    %209 = arith.truncf %208 : vector<32x36xf32> to vector<32x36xbf16>
    %c96_153 = arith.constant 96 : index
    %c0_154 = arith.constant 0 : index
    %210 = vector.load %arg41[%c96_153, %c0_154] : memref<288x324xbf16, #tpu.memory_space<vmem>>, vector<32x36xbf16>
    tpu.vector_store %arg41[%c96_153, %c0_154], %209 {strides = array<i32>} : memref<288x324xbf16, #tpu.memory_space<vmem>>, vector<32x36xbf16>,
    %211 = vector.extract_strided_slice %198 {offsets = [0, 7], sizes = [32, 36], strides = [1, 1]} : vector<32x50xf32> to vector<32x36xf32>
    %212 = arith.truncf %211 : vector<32x36xf32> to vector<32x36xbf16>
    %c128_155 = arith.constant 128 : index
    %c0_156 = arith.constant 0 : index
    %213 = vector.load %arg41[%c128_155, %c0_156] : memref<288x324xbf16, #tpu.memory_space<vmem>>, vector<32x36xbf16>
    tpu.vector_store %arg41[%c128_155, %c0_156], %212 {strides = array<i32>} : memref<288x324xbf16, #tpu.memory_space<vmem>>, vector<32x36xbf16>,
    %214 = vector.extract_strided_slice %198 {offsets = [0, 8], sizes = [32, 36], strides = [1, 1]} : vector<32x50xf32> to vector<32x36xf32>
    %215 = arith.truncf %214 : vector<32x36xf32> to vector<32x36xbf16>
    %c160_157 = arith.constant 160 : index
    %c0_158 = arith.constant 0 : index
    %216 = vector.load %arg41[%c160_157, %c0_158] : memref<288x324xbf16, #tpu.memory_space<vmem>>, vector<32x36xbf16>
    tpu.vector_store %arg41[%c160_157, %c0_158], %215 {strides = array<i32>} : memref<288x324xbf16, #tpu.memory_space<vmem>>, vector<32x36xbf16>,
    %217 = vector.extract_strided_slice %198 {offsets = [0, 12], sizes = [32, 36], strides = [1, 1]} : vector<32x50xf32> to vector<32x36xf32>
    %218 = arith.truncf %217 : vector<32x36xf32> to vector<32x36xbf16>
    %c192_159 = arith.constant 192 : index
    %c0_160 = arith.constant 0 : index
    %219 = vector.load %arg41[%c192_159, %c0_160] : memref<288x324xbf16, #tpu.memory_space<vmem>>, vector<32x36xbf16>
    tpu.vector_store %arg41[%c192_159, %c0_160], %218 {strides = array<i32>} : memref<288x324xbf16, #tpu.memory_space<vmem>>, vector<32x36xbf16>,
    %220 = vector.extract_strided_slice %198 {offsets = [0, 13], sizes = [32, 36], strides = [1, 1]} : vector<32x50xf32> to vector<32x36xf32>
    %221 = arith.truncf %220 : vector<32x36xf32> to vector<32x36xbf16>
    %c224_161 = arith.constant 224 : index
    %c0_162 = arith.constant 0 : index
    %222 = vector.load %arg41[%c224_161, %c0_162] : memref<288x324xbf16, #tpu.memory_space<vmem>>, vector<32x36xbf16>
    tpu.vector_store %arg41[%c224_161, %c0_162], %221 {strides = array<i32>} : memref<288x324xbf16, #tpu.memory_space<vmem>>, vector<32x36xbf16>,
    %223 = vector.extract_strided_slice %198 {offsets = [0, 14], sizes = [32, 36], strides = [1, 1]} : vector<32x50xf32> to vector<32x36xf32>
    %224 = arith.truncf %223 : vector<32x36xf32> to vector<32x36xbf16>
    %c256_163 = arith.constant 256 : index
    %c0_164 = arith.constant 0 : index
    %225 = vector.load %arg41[%c256_163, %c0_164] : memref<288x324xbf16, #tpu.memory_space<vmem>>, vector<32x36xbf16>
    tpu.vector_store %arg41[%c256_163, %c0_164], %224 {strides = array<i32>} : memref<288x324xbf16, #tpu.memory_space<vmem>>, vector<32x36xbf16>,
    %c0_165 = arith.constant 0 : index
    %c0_166 = arith.constant 0 : index
    %226 = vector.load %arg13[%c0_165, %c0_166] : memref<32x288xbf16, #tpu.memory_space<vmem>>, vector<32x288xbf16>
    %c0_167 = arith.constant 0 : index
    %c0_168 = arith.constant 0 : index
    %227 = vector.load %arg41[%c0_167, %c0_168] : memref<288x324xbf16, #tpu.memory_space<vmem>>, vector<288x36xbf16>
    %cst_169 = arith.constant dense<0.000000e+00> : vector<32x36xf32>
    %228 = tpu.matmul %226, %227, %cst_169 {dimension_numbers = #tpu.dot_dimension_numbers<[1], [0], [0], [1], [0, 0, 1, 1], [], []>} : vector<32x288xbf16>, vector<288x36xbf16>, vector<32x36xf32> -> vector<32x36xf32>
    %c0_170 = arith.constant 0 : index
    %c0_171 = arith.constant 0 : index
    %229 = vector.load %arg14[%c0_170, %c0_171] : memref<32x1xf32, #tpu.memory_space<vmem>>, vector<32x1xf32>
    %230 = vector.broadcast %229 : vector<32x1xf32> to vector<32x36xf32>
    %231 = arith.addf %228, %230 : vector<32x36xf32>
    %c0_172 = arith.constant 0 : index
    %c0_173 = arith.constant 0 : index
    %232 = vector.load %arg33[%c0_172, %c0_173] : memref<36x16xf32, #tpu.memory_space<vmem>>, vector<36x16xf32>
    %cst_174 = arith.constant dense<0.000000e+00> : vector<32x16xf32>
    %233 = tpu.matmul %231, %232, %cst_174 {dimension_numbers = #tpu.dot_dimension_numbers<[1], [0], [0], [1], [0, 0, 1, 1], [], []>} : vector<32x36xf32>, vector<36x16xf32>, vector<32x16xf32> -> vector<32x16xf32>
    %c0_175 = arith.constant 0 : index
    %c0_176 = arith.constant 0 : index
    %c0_177 = arith.constant 0 : index
    %234 = vector.load %arg38[%c0_175, %c0_176, %c0_177] : memref<1x32x16xf32, #tpu.memory_space<vmem>>, vector<1x32x16xf32>
    %235 = vector.shape_cast %234 : vector<1x32x16xf32> to vector<32x16xf32>
    %236 = vector.shape_cast %233 : vector<32x16xf32> to vector<1x32x16xf32>
    tpu.vector_store %arg38[%c0_175, %c0_176, %c0_177], %236 {strides = array<i32>} : memref<1x32x16xf32, #tpu.memory_space<vmem>>, vector<1x32x16xf32>,
    %c0_178 = arith.constant 0 : index
    %c0_179 = arith.constant 0 : index
    %237 = vector.load %arg25[%c0_178, %c0_179] : memref<36x50xf32, #tpu.memory_space<vmem>>, vector<36x50xf32>
    %cst_180 = arith.constant dense<0.000000e+00> : vector<32x50xf32>
    %238 = tpu.matmul %231, %237, %cst_180 {dimension_numbers = #tpu.dot_dimension_numbers<[1], [0], [0], [1], [0, 0, 1, 1], [], []>} : vector<32x36xf32>, vector<36x50xf32>, vector<32x50xf32> -> vector<32x50xf32>
    %cst_181 = arith.constant 0.000000e+00 : f32
    %239 = vector.broadcast %cst_181 : f32 to vector<32x50xf32>
    %240 = arith.maximumf %238, %239 : vector<32x50xf32>
    %241 = vector.extract_strided_slice %240 {offsets = [0, 0], sizes = [32, 36], strides = [1, 1]} : vector<32x50xf32> to vector<32x36xf32>
    %242 = arith.truncf %241 : vector<32x36xf32> to vector<32x36xbf16>
    %c0_182 = arith.constant 0 : index
    %c0_183 = arith.constant 0 : index
    %243 = vector.load %arg41[%c0_182, %c0_183] : memref<288x324xbf16, #tpu.memory_space<vmem>>, vector<32x36xbf16>
    tpu.vector_store %arg41[%c0_182, %c0_183], %242 {strides = array<i32>} : memref<288x324xbf16, #tpu.memory_space<vmem>>, vector<32x36xbf16>,
    %244 = vector.extract_strided_slice %240 {offsets = [0, 1], sizes = [32, 36], strides = [1, 1]} : vector<32x50xf32> to vector<32x36xf32>
    %245 = arith.truncf %244 : vector<32x36xf32> to vector<32x36xbf16>
    %c32_184 = arith.constant 32 : index
    %c0_185 = arith.constant 0 : index
    %246 = vector.load %arg41[%c32_184, %c0_185] : memref<288x324xbf16, #tpu.memory_space<vmem>>, vector<32x36xbf16>
    tpu.vector_store %arg41[%c32_184, %c0_185], %245 {strides = array<i32>} : memref<288x324xbf16, #tpu.memory_space<vmem>>, vector<32x36xbf16>,
    %247 = vector.extract_strided_slice %240 {offsets = [0, 2], sizes = [32, 36], strides = [1, 1]} : vector<32x50xf32> to vector<32x36xf32>
    %248 = arith.truncf %247 : vector<32x36xf32> to vector<32x36xbf16>
    %c64_186 = arith.constant 64 : index
    %c0_187 = arith.constant 0 : index
    %249 = vector.load %arg41[%c64_186, %c0_187] : memref<288x324xbf16, #tpu.memory_space<vmem>>, vector<32x36xbf16>
    tpu.vector_store %arg41[%c64_186, %c0_187], %248 {strides = array<i32>} : memref<288x324xbf16, #tpu.memory_space<vmem>>, vector<32x36xbf16>,
    %250 = vector.extract_strided_slice %240 {offsets = [0, 6], sizes = [32, 36], strides = [1, 1]} : vector<32x50xf32> to vector<32x36xf32>
    %251 = arith.truncf %250 : vector<32x36xf32> to vector<32x36xbf16>
    %c96_188 = arith.constant 96 : index
    %c0_189 = arith.constant 0 : index
    %252 = vector.load %arg41[%c96_188, %c0_189] : memref<288x324xbf16, #tpu.memory_space<vmem>>, vector<32x36xbf16>
    tpu.vector_store %arg41[%c96_188, %c0_189], %251 {strides = array<i32>} : memref<288x324xbf16, #tpu.memory_space<vmem>>, vector<32x36xbf16>,
    %253 = vector.extract_strided_slice %240 {offsets = [0, 7], sizes = [32, 36], strides = [1, 1]} : vector<32x50xf32> to vector<32x36xf32>
    %254 = arith.truncf %253 : vector<32x36xf32> to vector<32x36xbf16>
    %c128_190 = arith.constant 128 : index
    %c0_191 = arith.constant 0 : index
    %255 = vector.load %arg41[%c128_190, %c0_191] : memref<288x324xbf16, #tpu.memory_space<vmem>>, vector<32x36xbf16>
    tpu.vector_store %arg41[%c128_190, %c0_191], %254 {strides = array<i32>} : memref<288x324xbf16, #tpu.memory_space<vmem>>, vector<32x36xbf16>,
    %256 = vector.extract_strided_slice %240 {offsets = [0, 8], sizes = [32, 36], strides = [1, 1]} : vector<32x50xf32> to vector<32x36xf32>
    %257 = arith.truncf %256 : vector<32x36xf32> to vector<32x36xbf16>
    %c160_192 = arith.constant 160 : index
    %c0_193 = arith.constant 0 : index
    %258 = vector.load %arg41[%c160_192, %c0_193] : memref<288x324xbf16, #tpu.memory_space<vmem>>, vector<32x36xbf16>
    tpu.vector_store %arg41[%c160_192, %c0_193], %257 {strides = array<i32>} : memref<288x324xbf16, #tpu.memory_space<vmem>>, vector<32x36xbf16>,
    %259 = vector.extract_strided_slice %240 {offsets = [0, 12], sizes = [32, 36], strides = [1, 1]} : vector<32x50xf32> to vector<32x36xf32>
    %260 = arith.truncf %259 : vector<32x36xf32> to vector<32x36xbf16>
    %c192_194 = arith.constant 192 : index
    %c0_195 = arith.constant 0 : index
    %261 = vector.load %arg41[%c192_194, %c0_195] : memref<288x324xbf16, #tpu.memory_space<vmem>>, vector<32x36xbf16>
    tpu.vector_store %arg41[%c192_194, %c0_195], %260 {strides = array<i32>} : memref<288x324xbf16, #tpu.memory_space<vmem>>, vector<32x36xbf16>,
    %262 = vector.extract_strided_slice %240 {offsets = [0, 13], sizes = [32, 36], strides = [1, 1]} : vector<32x50xf32> to vector<32x36xf32>
    %263 = arith.truncf %262 : vector<32x36xf32> to vector<32x36xbf16>
    %c224_196 = arith.constant 224 : index
    %c0_197 = arith.constant 0 : index
    %264 = vector.load %arg41[%c224_196, %c0_197] : memref<288x324xbf16, #tpu.memory_space<vmem>>, vector<32x36xbf16>
    tpu.vector_store %arg41[%c224_196, %c0_197], %263 {strides = array<i32>} : memref<288x324xbf16, #tpu.memory_space<vmem>>, vector<32x36xbf16>,
    %265 = vector.extract_strided_slice %240 {offsets = [0, 14], sizes = [32, 36], strides = [1, 1]} : vector<32x50xf32> to vector<32x36xf32>
    %266 = arith.truncf %265 : vector<32x36xf32> to vector<32x36xbf16>
    %c256_198 = arith.constant 256 : index
    %c0_199 = arith.constant 0 : index
    %267 = vector.load %arg41[%c256_198, %c0_199] : memref<288x324xbf16, #tpu.memory_space<vmem>>, vector<32x36xbf16>
    tpu.vector_store %arg41[%c256_198, %c0_199], %266 {strides = array<i32>} : memref<288x324xbf16, #tpu.memory_space<vmem>>, vector<32x36xbf16>,
    %c0_200 = arith.constant 0 : index
    %c0_201 = arith.constant 0 : index
    %268 = vector.load %arg15[%c0_200, %c0_201] : memref<32x288xbf16, #tpu.memory_space<vmem>>, vector<32x288xbf16>
    %c0_202 = arith.constant 0 : index
    %c0_203 = arith.constant 0 : index
    %269 = vector.load %arg41[%c0_202, %c0_203] : memref<288x324xbf16, #tpu.memory_space<vmem>>, vector<288x36xbf16>
    %cst_204 = arith.constant dense<0.000000e+00> : vector<32x36xf32>
    %270 = tpu.matmul %268, %269, %cst_204 {dimension_numbers = #tpu.dot_dimension_numbers<[1], [0], [0], [1], [0, 0, 1, 1], [], []>} : vector<32x288xbf16>, vector<288x36xbf16>, vector<32x36xf32> -> vector<32x36xf32>
    %c0_205 = arith.constant 0 : index
    %c0_206 = arith.constant 0 : index
    %271 = vector.load %arg16[%c0_205, %c0_206] : memref<32x1xf32, #tpu.memory_space<vmem>>, vector<32x1xf32>
    %272 = vector.broadcast %271 : vector<32x1xf32> to vector<32x36xf32>
    %273 = arith.addf %270, %272 : vector<32x36xf32>
    %c0_207 = arith.constant 0 : index
    %c0_208 = arith.constant 0 : index
    %274 = vector.load %arg29[%c0_207, %c0_208] : memref<36x26xf32, #tpu.memory_space<vmem>>, vector<36x26xf32>
    %cst_209 = arith.constant dense<0.000000e+00> : vector<32x26xf32>
    %275 = tpu.matmul %273, %274, %cst_209 {dimension_numbers = #tpu.dot_dimension_numbers<[1], [0], [0], [1], [0, 0, 1, 1], [], []>} : vector<32x36xf32>, vector<36x26xf32>, vector<32x26xf32> -> vector<32x26xf32>
    %cst_210 = arith.constant 0.000000e+00 : f32
    %276 = vector.broadcast %cst_210 : f32 to vector<32x26xf32>
    %277 = arith.maximumf %275, %276 : vector<32x26xf32>
    %278 = vector.extract_strided_slice %277 {offsets = [0, 0], sizes = [32, 16], strides = [1, 1]} : vector<32x26xf32> to vector<32x16xf32>
    %279 = arith.truncf %278 : vector<32x16xf32> to vector<32x16xbf16>
    %c0_211 = arith.constant 0 : index
    %c0_212 = arith.constant 0 : index
    %280 = vector.load %arg41[%c0_211, %c0_212] : memref<288x324xbf16, #tpu.memory_space<vmem>>, vector<32x16xbf16>
    tpu.vector_store %arg41[%c0_211, %c0_212], %279 {strides = array<i32>} : memref<288x324xbf16, #tpu.memory_space<vmem>>, vector<32x16xbf16>,
    %281 = vector.extract_strided_slice %277 {offsets = [0, 1], sizes = [32, 16], strides = [1, 1]} : vector<32x26xf32> to vector<32x16xf32>
    %282 = arith.truncf %281 : vector<32x16xf32> to vector<32x16xbf16>
    %c32_213 = arith.constant 32 : index
    %c0_214 = arith.constant 0 : index
    %283 = vector.load %arg41[%c32_213, %c0_214] : memref<288x324xbf16, #tpu.memory_space<vmem>>, vector<32x16xbf16>
    tpu.vector_store %arg41[%c32_213, %c0_214], %282 {strides = array<i32>} : memref<288x324xbf16, #tpu.memory_space<vmem>>, vector<32x16xbf16>,
    %284 = vector.extract_strided_slice %277 {offsets = [0, 2], sizes = [32, 16], strides = [1, 1]} : vector<32x26xf32> to vector<32x16xf32>
    %285 = arith.truncf %284 : vector<32x16xf32> to vector<32x16xbf16>
    %c64_215 = arith.constant 64 : index
    %c0_216 = arith.constant 0 : index
    %286 = vector.load %arg41[%c64_215, %c0_216] : memref<288x324xbf16, #tpu.memory_space<vmem>>, vector<32x16xbf16>
    tpu.vector_store %arg41[%c64_215, %c0_216], %285 {strides = array<i32>} : memref<288x324xbf16, #tpu.memory_space<vmem>>, vector<32x16xbf16>,
    %287 = vector.extract_strided_slice %277 {offsets = [0, 4], sizes = [32, 16], strides = [1, 1]} : vector<32x26xf32> to vector<32x16xf32>
    %288 = arith.truncf %287 : vector<32x16xf32> to vector<32x16xbf16>
    %c96_217 = arith.constant 96 : index
    %c0_218 = arith.constant 0 : index
    %289 = vector.load %arg41[%c96_217, %c0_218] : memref<288x324xbf16, #tpu.memory_space<vmem>>, vector<32x16xbf16>
    tpu.vector_store %arg41[%c96_217, %c0_218], %288 {strides = array<i32>} : memref<288x324xbf16, #tpu.memory_space<vmem>>, vector<32x16xbf16>,
    %290 = vector.extract_strided_slice %277 {offsets = [0, 5], sizes = [32, 16], strides = [1, 1]} : vector<32x26xf32> to vector<32x16xf32>
    %291 = arith.truncf %290 : vector<32x16xf32> to vector<32x16xbf16>
    %c128_219 = arith.constant 128 : index
    %c0_220 = arith.constant 0 : index
    %292 = vector.load %arg41[%c128_219, %c0_220] : memref<288x324xbf16, #tpu.memory_space<vmem>>, vector<32x16xbf16>
    tpu.vector_store %arg41[%c128_219, %c0_220], %291 {strides = array<i32>} : memref<288x324xbf16, #tpu.memory_space<vmem>>, vector<32x16xbf16>,
    %293 = vector.extract_strided_slice %277 {offsets = [0, 6], sizes = [32, 16], strides = [1, 1]} : vector<32x26xf32> to vector<32x16xf32>
    %294 = arith.truncf %293 : vector<32x16xf32> to vector<32x16xbf16>
    %c160_221 = arith.constant 160 : index
    %c0_222 = arith.constant 0 : index
    %295 = vector.load %arg41[%c160_221, %c0_222] : memref<288x324xbf16, #tpu.memory_space<vmem>>, vector<32x16xbf16>
    tpu.vector_store %arg41[%c160_221, %c0_222], %294 {strides = array<i32>} : memref<288x324xbf16, #tpu.memory_space<vmem>>, vector<32x16xbf16>,
    %296 = vector.extract_strided_slice %277 {offsets = [0, 8], sizes = [32, 16], strides = [1, 1]} : vector<32x26xf32> to vector<32x16xf32>
    %297 = arith.truncf %296 : vector<32x16xf32> to vector<32x16xbf16>
    %c192_223 = arith.constant 192 : index
    %c0_224 = arith.constant 0 : index
    %298 = vector.load %arg41[%c192_223, %c0_224] : memref<288x324xbf16, #tpu.memory_space<vmem>>, vector<32x16xbf16>
    tpu.vector_store %arg41[%c192_223, %c0_224], %297 {strides = array<i32>} : memref<288x324xbf16, #tpu.memory_space<vmem>>, vector<32x16xbf16>,
    %299 = vector.extract_strided_slice %277 {offsets = [0, 9], sizes = [32, 16], strides = [1, 1]} : vector<32x26xf32> to vector<32x16xf32>
    %300 = arith.truncf %299 : vector<32x16xf32> to vector<32x16xbf16>
    %c224_225 = arith.constant 224 : index
    %c0_226 = arith.constant 0 : index
    %301 = vector.load %arg41[%c224_225, %c0_226] : memref<288x324xbf16, #tpu.memory_space<vmem>>, vector<32x16xbf16>
    tpu.vector_store %arg41[%c224_225, %c0_226], %300 {strides = array<i32>} : memref<288x324xbf16, #tpu.memory_space<vmem>>, vector<32x16xbf16>,
    %302 = vector.extract_strided_slice %277 {offsets = [0, 10], sizes = [32, 16], strides = [1, 1]} : vector<32x26xf32> to vector<32x16xf32>
    %303 = arith.truncf %302 : vector<32x16xf32> to vector<32x16xbf16>
    %c256_227 = arith.constant 256 : index
    %c0_228 = arith.constant 0 : index
    %304 = vector.load %arg41[%c256_227, %c0_228] : memref<288x324xbf16, #tpu.memory_space<vmem>>, vector<32x16xbf16>
    tpu.vector_store %arg41[%c256_227, %c0_228], %303 {strides = array<i32>} : memref<288x324xbf16, #tpu.memory_space<vmem>>, vector<32x16xbf16>,
    %c0_229 = arith.constant 0 : index
    %c0_230 = arith.constant 0 : index
    %305 = vector.load %arg17[%c0_229, %c0_230] : memref<32x288xbf16, #tpu.memory_space<vmem>>, vector<32x288xbf16>
    %c0_231 = arith.constant 0 : index
    %c0_232 = arith.constant 0 : index
    %306 = vector.load %arg41[%c0_231, %c0_232] : memref<288x324xbf16, #tpu.memory_space<vmem>>, vector<288x16xbf16>
    %cst_233 = arith.constant dense<0.000000e+00> : vector<32x16xf32>
    %307 = tpu.matmul %305, %306, %cst_233 {dimension_numbers = #tpu.dot_dimension_numbers<[1], [0], [0], [1], [0, 0, 1, 1], [], []>} : vector<32x288xbf16>, vector<288x16xbf16>, vector<32x16xf32> -> vector<32x16xf32>
    %c0_234 = arith.constant 0 : index
    %c0_235 = arith.constant 0 : index
    %308 = vector.load %arg18[%c0_234, %c0_235] : memref<32x1xf32, #tpu.memory_space<vmem>>, vector<32x1xf32>
    %309 = vector.broadcast %308 : vector<32x1xf32> to vector<32x16xf32>
    %310 = arith.addf %307, %309 : vector<32x16xf32>
    %c0_236 = arith.constant 0 : index
    %c0_237 = arith.constant 0 : index
    %311 = vector.load %arg34[%c0_236, %c0_237] : memref<16x4xf32, #tpu.memory_space<vmem>>, vector<16x4xf32>
    %cst_238 = arith.constant dense<0.000000e+00> : vector<32x4xf32>
    %312 = tpu.matmul %310, %311, %cst_238 {dimension_numbers = #tpu.dot_dimension_numbers<[1], [0], [0], [1], [0, 0, 1, 1], [], []>} : vector<32x16xf32>, vector<16x4xf32>, vector<32x4xf32> -> vector<32x4xf32>
    %c0_239 = arith.constant 0 : index
    %c0_240 = arith.constant 0 : index
    %c0_241 = arith.constant 0 : index
    %313 = vector.load %arg39[%c0_239, %c0_240, %c0_241] : memref<1x32x4xf32, #tpu.memory_space<vmem>>, vector<1x32x4xf32>
    %314 = vector.shape_cast %313 : vector<1x32x4xf32> to vector<32x4xf32>
    %315 = vector.shape_cast %312 : vector<32x4xf32> to vector<1x32x4xf32>
    tpu.vector_store %arg39[%c0_239, %c0_240, %c0_241], %315 {strides = array<i32>} : memref<1x32x4xf32, #tpu.memory_space<vmem>>, vector<1x32x4xf32>,
    %c0_242 = arith.constant 0 : index
    %c0_243 = arith.constant 0 : index
    %316 = vector.load %arg26[%c0_242, %c0_243] : memref<16x26xf32, #tpu.memory_space<vmem>>, vector<16x26xf32>
    %cst_244 = arith.constant dense<0.000000e+00> : vector<32x26xf32>
    %317 = tpu.matmul %310, %316, %cst_244 {dimension_numbers = #tpu.dot_dimension_numbers<[1], [0], [0], [1], [0, 0, 1, 1], [], []>} : vector<32x16xf32>, vector<16x26xf32>, vector<32x26xf32> -> vector<32x26xf32>
    %cst_245 = arith.constant 0.000000e+00 : f32
    %318 = vector.broadcast %cst_245 : f32 to vector<32x26xf32>
    %319 = arith.maximumf %317, %318 : vector<32x26xf32>
    %320 = vector.extract_strided_slice %319 {offsets = [0, 0], sizes = [32, 16], strides = [1, 1]} : vector<32x26xf32> to vector<32x16xf32>
    %321 = arith.truncf %320 : vector<32x16xf32> to vector<32x16xbf16>
    %c0_246 = arith.constant 0 : index
    %c0_247 = arith.constant 0 : index
    %322 = vector.load %arg41[%c0_246, %c0_247] : memref<288x324xbf16, #tpu.memory_space<vmem>>, vector<32x16xbf16>
    tpu.vector_store %arg41[%c0_246, %c0_247], %321 {strides = array<i32>} : memref<288x324xbf16, #tpu.memory_space<vmem>>, vector<32x16xbf16>,
    %323 = vector.extract_strided_slice %319 {offsets = [0, 1], sizes = [32, 16], strides = [1, 1]} : vector<32x26xf32> to vector<32x16xf32>
    %324 = arith.truncf %323 : vector<32x16xf32> to vector<32x16xbf16>
    %c32_248 = arith.constant 32 : index
    %c0_249 = arith.constant 0 : index
    %325 = vector.load %arg41[%c32_248, %c0_249] : memref<288x324xbf16, #tpu.memory_space<vmem>>, vector<32x16xbf16>
    tpu.vector_store %arg41[%c32_248, %c0_249], %324 {strides = array<i32>} : memref<288x324xbf16, #tpu.memory_space<vmem>>, vector<32x16xbf16>,
    %326 = vector.extract_strided_slice %319 {offsets = [0, 2], sizes = [32, 16], strides = [1, 1]} : vector<32x26xf32> to vector<32x16xf32>
    %327 = arith.truncf %326 : vector<32x16xf32> to vector<32x16xbf16>
    %c64_250 = arith.constant 64 : index
    %c0_251 = arith.constant 0 : index
    %328 = vector.load %arg41[%c64_250, %c0_251] : memref<288x324xbf16, #tpu.memory_space<vmem>>, vector<32x16xbf16>
    tpu.vector_store %arg41[%c64_250, %c0_251], %327 {strides = array<i32>} : memref<288x324xbf16, #tpu.memory_space<vmem>>, vector<32x16xbf16>,
    %329 = vector.extract_strided_slice %319 {offsets = [0, 4], sizes = [32, 16], strides = [1, 1]} : vector<32x26xf32> to vector<32x16xf32>
    %330 = arith.truncf %329 : vector<32x16xf32> to vector<32x16xbf16>
    %c96_252 = arith.constant 96 : index
    %c0_253 = arith.constant 0 : index
    %331 = vector.load %arg41[%c96_252, %c0_253] : memref<288x324xbf16, #tpu.memory_space<vmem>>, vector<32x16xbf16>
    tpu.vector_store %arg41[%c96_252, %c0_253], %330 {strides = array<i32>} : memref<288x324xbf16, #tpu.memory_space<vmem>>, vector<32x16xbf16>,
    %332 = vector.extract_strided_slice %319 {offsets = [0, 5], sizes = [32, 16], strides = [1, 1]} : vector<32x26xf32> to vector<32x16xf32>
    %333 = arith.truncf %332 : vector<32x16xf32> to vector<32x16xbf16>
    %c128_254 = arith.constant 128 : index
    %c0_255 = arith.constant 0 : index
    %334 = vector.load %arg41[%c128_254, %c0_255] : memref<288x324xbf16, #tpu.memory_space<vmem>>, vector<32x16xbf16>
    tpu.vector_store %arg41[%c128_254, %c0_255], %333 {strides = array<i32>} : memref<288x324xbf16, #tpu.memory_space<vmem>>, vector<32x16xbf16>,
    %335 = vector.extract_strided_slice %319 {offsets = [0, 6], sizes = [32, 16], strides = [1, 1]} : vector<32x26xf32> to vector<32x16xf32>
    %336 = arith.truncf %335 : vector<32x16xf32> to vector<32x16xbf16>
    %c160_256 = arith.constant 160 : index
    %c0_257 = arith.constant 0 : index
    %337 = vector.load %arg41[%c160_256, %c0_257] : memref<288x324xbf16, #tpu.memory_space<vmem>>, vector<32x16xbf16>
    tpu.vector_store %arg41[%c160_256, %c0_257], %336 {strides = array<i32>} : memref<288x324xbf16, #tpu.memory_space<vmem>>, vector<32x16xbf16>,
    %338 = vector.extract_strided_slice %319 {offsets = [0, 8], sizes = [32, 16], strides = [1, 1]} : vector<32x26xf32> to vector<32x16xf32>
    %339 = arith.truncf %338 : vector<32x16xf32> to vector<32x16xbf16>
    %c192_258 = arith.constant 192 : index
    %c0_259 = arith.constant 0 : index
    %340 = vector.load %arg41[%c192_258, %c0_259] : memref<288x324xbf16, #tpu.memory_space<vmem>>, vector<32x16xbf16>
    tpu.vector_store %arg41[%c192_258, %c0_259], %339 {strides = array<i32>} : memref<288x324xbf16, #tpu.memory_space<vmem>>, vector<32x16xbf16>,
    %341 = vector.extract_strided_slice %319 {offsets = [0, 9], sizes = [32, 16], strides = [1, 1]} : vector<32x26xf32> to vector<32x16xf32>
    %342 = arith.truncf %341 : vector<32x16xf32> to vector<32x16xbf16>
    %c224_260 = arith.constant 224 : index
    %c0_261 = arith.constant 0 : index
    %343 = vector.load %arg41[%c224_260, %c0_261] : memref<288x324xbf16, #tpu.memory_space<vmem>>, vector<32x16xbf16>
    tpu.vector_store %arg41[%c224_260, %c0_261], %342 {strides = array<i32>} : memref<288x324xbf16, #tpu.memory_space<vmem>>, vector<32x16xbf16>,
    %344 = vector.extract_strided_slice %319 {offsets = [0, 10], sizes = [32, 16], strides = [1, 1]} : vector<32x26xf32> to vector<32x16xf32>
    %345 = arith.truncf %344 : vector<32x16xf32> to vector<32x16xbf16>
    %c256_262 = arith.constant 256 : index
    %c0_263 = arith.constant 0 : index
    %346 = vector.load %arg41[%c256_262, %c0_263] : memref<288x324xbf16, #tpu.memory_space<vmem>>, vector<32x16xbf16>
    tpu.vector_store %arg41[%c256_262, %c0_263], %345 {strides = array<i32>} : memref<288x324xbf16, #tpu.memory_space<vmem>>, vector<32x16xbf16>,
    %c0_264 = arith.constant 0 : index
    %c0_265 = arith.constant 0 : index
    %347 = vector.load %arg19[%c0_264, %c0_265] : memref<32x288xbf16, #tpu.memory_space<vmem>>, vector<32x288xbf16>
    %c0_266 = arith.constant 0 : index
    %c0_267 = arith.constant 0 : index
    %348 = vector.load %arg41[%c0_266, %c0_267] : memref<288x324xbf16, #tpu.memory_space<vmem>>, vector<288x16xbf16>
    %cst_268 = arith.constant dense<0.000000e+00> : vector<32x16xf32>
    %349 = tpu.matmul %347, %348, %cst_268 {dimension_numbers = #tpu.dot_dimension_numbers<[1], [0], [0], [1], [0, 0, 1, 1], [], []>} : vector<32x288xbf16>, vector<288x16xbf16>, vector<32x16xf32> -> vector<32x16xf32>
    %c0_269 = arith.constant 0 : index
    %c0_270 = arith.constant 0 : index
    %350 = vector.load %arg20[%c0_269, %c0_270] : memref<32x1xf32, #tpu.memory_space<vmem>>, vector<32x1xf32>
    %351 = vector.broadcast %350 : vector<32x1xf32> to vector<32x16xf32>
    %352 = arith.addf %349, %351 : vector<32x16xf32>
    %c0_271 = arith.constant 0 : index
    %c0_272 = arith.constant 0 : index
    %353 = vector.load %arg30[%c0_271, %c0_272] : memref<16x17xf32, #tpu.memory_space<vmem>>, vector<16x17xf32>
    %cst_273 = arith.constant dense<0.000000e+00> : vector<32x17xf32>
    %354 = tpu.matmul %352, %353, %cst_273 {dimension_numbers = #tpu.dot_dimension_numbers<[1], [0], [0], [1], [0, 0, 1, 1], [], []>} : vector<32x16xf32>, vector<16x17xf32>, vector<32x17xf32> -> vector<32x17xf32>
    %cst_274 = arith.constant 0.000000e+00 : f32
    %355 = vector.broadcast %cst_274 : f32 to vector<32x17xf32>
    %356 = arith.maximumf %354, %355 : vector<32x17xf32>
    %357 = vector.extract_strided_slice %356 {offsets = [0, 0], sizes = [32, 9], strides = [1, 1]} : vector<32x17xf32> to vector<32x9xf32>
    %358 = arith.truncf %357 : vector<32x9xf32> to vector<32x9xbf16>
    %c0_275 = arith.constant 0 : index
    %c0_276 = arith.constant 0 : index
    %359 = vector.load %arg41[%c0_275, %c0_276] : memref<288x324xbf16, #tpu.memory_space<vmem>>, vector<32x9xbf16>
    tpu.vector_store %arg41[%c0_275, %c0_276], %358 {strides = array<i32>} : memref<288x324xbf16, #tpu.memory_space<vmem>>, vector<32x9xbf16>,
    %360 = vector.extract_strided_slice %356 {offsets = [0, 1], sizes = [32, 9], strides = [1, 1]} : vector<32x17xf32> to vector<32x9xf32>
    %361 = arith.truncf %360 : vector<32x9xf32> to vector<32x9xbf16>
    %c32_277 = arith.constant 32 : index
    %c0_278 = arith.constant 0 : index
    %362 = vector.load %arg41[%c32_277, %c0_278] : memref<288x324xbf16, #tpu.memory_space<vmem>>, vector<32x9xbf16>
    tpu.vector_store %arg41[%c32_277, %c0_278], %361 {strides = array<i32>} : memref<288x324xbf16, #tpu.memory_space<vmem>>, vector<32x9xbf16>,
    %363 = vector.extract_strided_slice %356 {offsets = [0, 2], sizes = [32, 9], strides = [1, 1]} : vector<32x17xf32> to vector<32x9xf32>
    %364 = arith.truncf %363 : vector<32x9xf32> to vector<32x9xbf16>
    %c64_279 = arith.constant 64 : index
    %c0_280 = arith.constant 0 : index
    %365 = vector.load %arg41[%c64_279, %c0_280] : memref<288x324xbf16, #tpu.memory_space<vmem>>, vector<32x9xbf16>
    tpu.vector_store %arg41[%c64_279, %c0_280], %364 {strides = array<i32>} : memref<288x324xbf16, #tpu.memory_space<vmem>>, vector<32x9xbf16>,
    %366 = vector.extract_strided_slice %356 {offsets = [0, 3], sizes = [32, 9], strides = [1, 1]} : vector<32x17xf32> to vector<32x9xf32>
    %367 = arith.truncf %366 : vector<32x9xf32> to vector<32x9xbf16>
    %c96_281 = arith.constant 96 : index
    %c0_282 = arith.constant 0 : index
    %368 = vector.load %arg41[%c96_281, %c0_282] : memref<288x324xbf16, #tpu.memory_space<vmem>>, vector<32x9xbf16>
    tpu.vector_store %arg41[%c96_281, %c0_282], %367 {strides = array<i32>} : memref<288x324xbf16, #tpu.memory_space<vmem>>, vector<32x9xbf16>,
    %369 = vector.extract_strided_slice %356 {offsets = [0, 4], sizes = [32, 9], strides = [1, 1]} : vector<32x17xf32> to vector<32x9xf32>
    %370 = arith.truncf %369 : vector<32x9xf32> to vector<32x9xbf16>
    %c128_283 = arith.constant 128 : index
    %c0_284 = arith.constant 0 : index
    %371 = vector.load %arg41[%c128_283, %c0_284] : memref<288x324xbf16, #tpu.memory_space<vmem>>, vector<32x9xbf16>
    tpu.vector_store %arg41[%c128_283, %c0_284], %370 {strides = array<i32>} : memref<288x324xbf16, #tpu.memory_space<vmem>>, vector<32x9xbf16>,
    %372 = vector.extract_strided_slice %356 {offsets = [0, 5], sizes = [32, 9], strides = [1, 1]} : vector<32x17xf32> to vector<32x9xf32>
    %373 = arith.truncf %372 : vector<32x9xf32> to vector<32x9xbf16>
    %c160_285 = arith.constant 160 : index
    %c0_286 = arith.constant 0 : index
    %374 = vector.load %arg41[%c160_285, %c0_286] : memref<288x324xbf16, #tpu.memory_space<vmem>>, vector<32x9xbf16>
    tpu.vector_store %arg41[%c160_285, %c0_286], %373 {strides = array<i32>} : memref<288x324xbf16, #tpu.memory_space<vmem>>, vector<32x9xbf16>,
    %375 = vector.extract_strided_slice %356 {offsets = [0, 6], sizes = [32, 9], strides = [1, 1]} : vector<32x17xf32> to vector<32x9xf32>
    %376 = arith.truncf %375 : vector<32x9xf32> to vector<32x9xbf16>
    %c192_287 = arith.constant 192 : index
    %c0_288 = arith.constant 0 : index
    %377 = vector.load %arg41[%c192_287, %c0_288] : memref<288x324xbf16, #tpu.memory_space<vmem>>, vector<32x9xbf16>
    tpu.vector_store %arg41[%c192_287, %c0_288], %376 {strides = array<i32>} : memref<288x324xbf16, #tpu.memory_space<vmem>>, vector<32x9xbf16>,
    %378 = vector.extract_strided_slice %356 {offsets = [0, 7], sizes = [32, 9], strides = [1, 1]} : vector<32x17xf32> to vector<32x9xf32>
    %379 = arith.truncf %378 : vector<32x9xf32> to vector<32x9xbf16>
    %c224_289 = arith.constant 224 : index
    %c0_290 = arith.constant 0 : index
    %380 = vector.load %arg41[%c224_289, %c0_290] : memref<288x324xbf16, #tpu.memory_space<vmem>>, vector<32x9xbf16>
    tpu.vector_store %arg41[%c224_289, %c0_290], %379 {strides = array<i32>} : memref<288x324xbf16, #tpu.memory_space<vmem>>, vector<32x9xbf16>,
    %381 = vector.extract_strided_slice %356 {offsets = [0, 8], sizes = [32, 9], strides = [1, 1]} : vector<32x17xf32> to vector<32x9xf32>
    %382 = arith.truncf %381 : vector<32x9xf32> to vector<32x9xbf16>
    %c256_291 = arith.constant 256 : index
    %c0_292 = arith.constant 0 : index
    %383 = vector.load %arg41[%c256_291, %c0_292] : memref<288x324xbf16, #tpu.memory_space<vmem>>, vector<32x9xbf16>
    tpu.vector_store %arg41[%c256_291, %c0_292], %382 {strides = array<i32>} : memref<288x324xbf16, #tpu.memory_space<vmem>>, vector<32x9xbf16>,
    %c0_293 = arith.constant 0 : index
    %c0_294 = arith.constant 0 : index
    %384 = vector.load %arg21[%c0_293, %c0_294] : memref<32x288xbf16, #tpu.memory_space<vmem>>, vector<32x288xbf16>
    %c0_295 = arith.constant 0 : index
    %c0_296 = arith.constant 0 : index
    %385 = vector.load %arg41[%c0_295, %c0_296] : memref<288x324xbf16, #tpu.memory_space<vmem>>, vector<288x9xbf16>
    %cst_297 = arith.constant dense<0.000000e+00> : vector<32x9xf32>
    %386 = tpu.matmul %384, %385, %cst_297 {dimension_numbers = #tpu.dot_dimension_numbers<[1], [0], [0], [1], [0, 0, 1, 1], [], []>} : vector<32x288xbf16>, vector<288x9xbf16>, vector<32x9xf32> -> vector<32x9xf32>
    %c0_298 = arith.constant 0 : index
    %c0_299 = arith.constant 0 : index
    %387 = vector.load %arg22[%c0_298, %c0_299] : memref<32x1xf32, #tpu.memory_space<vmem>>, vector<32x1xf32>
    %388 = vector.broadcast %387 : vector<32x1xf32> to vector<32x9xf32>
    %389 = arith.addf %386, %388 : vector<32x9xf32>
    %c0_300 = arith.constant 0 : index
    %c0_301 = arith.constant 0 : index
    %390 = vector.load %arg35[%c0_300, %c0_301] : memref<9x1xf32, #tpu.memory_space<vmem>>, vector<9x1xf32>
    %cst_302 = arith.constant dense<0.000000e+00> : vector<32x1xf32>
    %391 = tpu.matmul %389, %390, %cst_302 {dimension_numbers = #tpu.dot_dimension_numbers<[1], [0], [0], [1], [0, 0, 1, 1], [], []>} : vector<32x9xf32>, vector<9x1xf32>, vector<32x1xf32> -> vector<32x1xf32>
    %c0_303 = arith.constant 0 : index
    %c0_304 = arith.constant 0 : index
    %c0_305 = arith.constant 0 : index
    %392 = vector.load %arg40[%c0_303, %c0_304, %c0_305] : memref<1x32x1xf32, #tpu.memory_space<vmem>>, vector<1x32x1xf32>
    %393 = vector.shape_cast %392 : vector<1x32x1xf32> to vector<32x1xf32>
    %394 = vector.shape_cast %391 : vector<32x1xf32> to vector<1x32x1xf32>
    tpu.vector_store %arg40[%c0_303, %c0_304, %c0_305], %394 {strides = array<i32>} : memref<1x32x1xf32, #tpu.memory_space<vmem>>, vector<1x32x1xf32>,
    return
  }
  func.func @transform_0(%arg0: i32) -> (i32, i32, i32) {
    %c0_i32 = arith.constant 0 : i32
    %c0_i32_0 = arith.constant 0 : i32
    %c0_i32_1 = arith.constant 0 : i32
    return %arg0, %c0_i32, %c0_i32_0 : i32, i32, i32
  }
  func.func @transform_1(%arg0: i32) -> (i32, i32) {
    %c0_i32 = arith.constant 0 : i32
    %c0_i32_0 = arith.constant 0 : i32
    %c0_i32_1 = arith.constant 0 : i32
    return %c0_i32, %c0_i32_0 : i32, i32
  }
  func.func @transform_2(%arg0: i32) -> (i32, i32) {
    %c0_i32 = arith.constant 0 : i32
    %c0_i32_0 = arith.constant 0 : i32
    %c0_i32_1 = arith.constant 0 : i32
    return %c0_i32, %c0_i32_0 : i32, i32
  }
  func.func @transform_3(%arg0: i32) -> (i32, i32) {
    %c0_i32 = arith.constant 0 : i32
    %c0_i32_0 = arith.constant 0 : i32
    %c0_i32_1 = arith.constant 0 : i32
    return %c0_i32, %c0_i32_0 : i32, i32
  }
  func.func @transform_4(%arg0: i32) -> (i32, i32) {
    %c0_i32 = arith.constant 0 : i32
    %c0_i32_0 = arith.constant 0 : i32
    %c0_i32_1 = arith.constant 0 : i32
    return %c0_i32, %c0_i32_0 : i32, i32
  }
  func.func @transform_5(%arg0: i32) -> (i32, i32) {
    %c0_i32 = arith.constant 0 : i32
    %c0_i32_0 = arith.constant 0 : i32
    %c0_i32_1 = arith.constant 0 : i32
    return %c0_i32, %c0_i32_0 : i32, i32
  }
  func.func @transform_6(%arg0: i32) -> (i32, i32) {
    %c0_i32 = arith.constant 0 : i32
    %c0_i32_0 = arith.constant 0 : i32
    %c0_i32_1 = arith.constant 0 : i32
    return %c0_i32, %c0_i32_0 : i32, i32
  }
  func.func @transform_7(%arg0: i32) -> (i32, i32) {
    %c0_i32 = arith.constant 0 : i32
    %c0_i32_0 = arith.constant 0 : i32
    %c0_i32_1 = arith.constant 0 : i32
    return %c0_i32, %c0_i32_0 : i32, i32
  }
  func.func @transform_8(%arg0: i32) -> (i32, i32) {
    %c0_i32 = arith.constant 0 : i32
    %c0_i32_0 = arith.constant 0 : i32
    %c0_i32_1 = arith.constant 0 : i32
    return %c0_i32, %c0_i32_0 : i32, i32
  }
  func.func @transform_9(%arg0: i32) -> (i32, i32) {
    %c0_i32 = arith.constant 0 : i32
    %c0_i32_0 = arith.constant 0 : i32
    %c0_i32_1 = arith.constant 0 : i32
    return %c0_i32, %c0_i32_0 : i32, i32
  }
  func.func @transform_10(%arg0: i32) -> (i32, i32) {
    %c0_i32 = arith.constant 0 : i32
    %c0_i32_0 = arith.constant 0 : i32
    %c0_i32_1 = arith.constant 0 : i32
    return %c0_i32, %c0_i32_0 : i32, i32
  }
  func.func @transform_11(%arg0: i32) -> (i32, i32) {
    %c0_i32 = arith.constant 0 : i32
    %c0_i32_0 = arith.constant 0 : i32
    %c0_i32_1 = arith.constant 0 : i32
    return %c0_i32, %c0_i32_0 : i32, i32
  }
  func.func @transform_12(%arg0: i32) -> (i32, i32) {
    %c0_i32 = arith.constant 0 : i32
    %c0_i32_0 = arith.constant 0 : i32
    %c0_i32_1 = arith.constant 0 : i32
    return %c0_i32, %c0_i32_0 : i32, i32
  }
  func.func @transform_13(%arg0: i32) -> (i32, i32) {
    %c0_i32 = arith.constant 0 : i32
    %c0_i32_0 = arith.constant 0 : i32
    %c0_i32_1 = arith.constant 0 : i32
    return %c0_i32, %c0_i32_0 : i32, i32
  }
  func.func @transform_14(%arg0: i32) -> (i32, i32) {
    %c0_i32 = arith.constant 0 : i32
    %c0_i32_0 = arith.constant 0 : i32
    %c0_i32_1 = arith.constant 0 : i32
    return %c0_i32, %c0_i32_0 : i32, i32
  }
  func.func @transform_15(%arg0: i32) -> (i32, i32) {
    %c0_i32 = arith.constant 0 : i32
    %c0_i32_0 = arith.constant 0 : i32
    %c0_i32_1 = arith.constant 0 : i32
    return %c0_i32, %c0_i32_0 : i32, i32
  }
  func.func @transform_16(%arg0: i32) -> (i32, i32) {
    %c0_i32 = arith.constant 0 : i32
    %c0_i32_0 = arith.constant 0 : i32
    %c0_i32_1 = arith.constant 0 : i32
    return %c0_i32, %c0_i32_0 : i32, i32
  }
  func.func @transform_17(%arg0: i32) -> (i32, i32) {
    %c0_i32 = arith.constant 0 : i32
    %c0_i32_0 = arith.constant 0 : i32
    %c0_i32_1 = arith.constant 0 : i32
    return %c0_i32, %c0_i32_0 : i32, i32
  }
  func.func @transform_18(%arg0: i32) -> (i32, i32) {
    %c0_i32 = arith.constant 0 : i32
    %c0_i32_0 = arith.constant 0 : i32
    %c0_i32_1 = arith.constant 0 : i32
    return %c0_i32, %c0_i32_0 : i32, i32
  }
  func.func @transform_19(%arg0: i32) -> (i32, i32) {
    %c0_i32 = arith.constant 0 : i32
    %c0_i32_0 = arith.constant 0 : i32
    %c0_i32_1 = arith.constant 0 : i32
    return %c0_i32, %c0_i32_0 : i32, i32
  }
  func.func @transform_20(%arg0: i32) -> (i32, i32) {
    %c0_i32 = arith.constant 0 : i32
    %c0_i32_0 = arith.constant 0 : i32
    %c0_i32_1 = arith.constant 0 : i32
    return %c0_i32, %c0_i32_0 : i32, i32
  }
  func.func @transform_21(%arg0: i32) -> (i32, i32) {
    %c0_i32 = arith.constant 0 : i32
    %c0_i32_0 = arith.constant 0 : i32
    %c0_i32_1 = arith.constant 0 : i32
    return %c0_i32, %c0_i32_0 : i32, i32
  }
  func.func @transform_22(%arg0: i32) -> (i32, i32) {
    %c0_i32 = arith.constant 0 : i32
    %c0_i32_0 = arith.constant 0 : i32
    %c0_i32_1 = arith.constant 0 : i32
    return %c0_i32, %c0_i32_0 : i32, i32
  }
  func.func @transform_23(%arg0: i32) -> (i32, i32) {
    %c0_i32 = arith.constant 0 : i32
    %c0_i32_0 = arith.constant 0 : i32
    %c0_i32_1 = arith.constant 0 : i32
    return %c0_i32, %c0_i32_0 : i32, i32
  }
  func.func @transform_24(%arg0: i32) -> (i32, i32) {
    %c0_i32 = arith.constant 0 : i32
    %c0_i32_0 = arith.constant 0 : i32
    %c0_i32_1 = arith.constant 0 : i32
    return %c0_i32, %c0_i32_0 : i32, i32
  }
  func.func @transform_25(%arg0: i32) -> (i32, i32) {
    %c0_i32 = arith.constant 0 : i32
    %c0_i32_0 = arith.constant 0 : i32
    %c0_i32_1 = arith.constant 0 : i32
    return %c0_i32, %c0_i32_0 : i32, i32
  }
  func.func @transform_26(%arg0: i32) -> (i32, i32) {
    %c0_i32 = arith.constant 0 : i32
    %c0_i32_0 = arith.constant 0 : i32
    %c0_i32_1 = arith.constant 0 : i32
    return %c0_i32, %c0_i32_0 : i32, i32
  }
  func.func @transform_27(%arg0: i32) -> (i32, i32) {
    %c0_i32 = arith.constant 0 : i32
    %c0_i32_0 = arith.constant 0 : i32
    %c0_i32_1 = arith.constant 0 : i32
    return %c0_i32, %c0_i32_0 : i32, i32
  }
  func.func @transform_28(%arg0: i32) -> (i32, i32) {
    %c0_i32 = arith.constant 0 : i32
    %c0_i32_0 = arith.constant 0 : i32
    %c0_i32_1 = arith.constant 0 : i32
    return %c0_i32, %c0_i32_0 : i32, i32
  }
  func.func @transform_29(%arg0: i32) -> (i32, i32) {
    %c0_i32 = arith.constant 0 : i32
    %c0_i32_0 = arith.constant 0 : i32
    %c0_i32_1 = arith.constant 0 : i32
    return %c0_i32, %c0_i32_0 : i32, i32
  }
  func.func @transform_30(%arg0: i32) -> (i32, i32) {
    %c0_i32 = arith.constant 0 : i32
    %c0_i32_0 = arith.constant 0 : i32
    %c0_i32_1 = arith.constant 0 : i32
    return %c0_i32, %c0_i32_0 : i32, i32
  }
  func.func @transform_31(%arg0: i32) -> (i32, i32) {
    %c0_i32 = arith.constant 0 : i32
    %c0_i32_0 = arith.constant 0 : i32
    %c0_i32_1 = arith.constant 0 : i32
    return %c0_i32, %c0_i32_0 : i32, i32
  }
  func.func @transform_32(%arg0: i32) -> (i32, i32) {
    %c0_i32 = arith.constant 0 : i32
    %c0_i32_0 = arith.constant 0 : i32
    %c0_i32_1 = arith.constant 0 : i32
    return %c0_i32, %c0_i32_0 : i32, i32
  }
  func.func @transform_33(%arg0: i32) -> (i32, i32) {
    %c0_i32 = arith.constant 0 : i32
    %c0_i32_0 = arith.constant 0 : i32
    %c0_i32_1 = arith.constant 0 : i32
    return %c0_i32, %c0_i32_0 : i32, i32
  }
  func.func @transform_34(%arg0: i32) -> (i32, i32) {
    %c0_i32 = arith.constant 0 : i32
    %c0_i32_0 = arith.constant 0 : i32
    %c0_i32_1 = arith.constant 0 : i32
    return %c0_i32, %c0_i32_0 : i32, i32
  }
  func.func @transform_35(%arg0: i32) -> (i32, i32, i32) {
    %c0_i32 = arith.constant 0 : i32
    %c0_i32_0 = arith.constant 0 : i32
    %c0_i32_1 = arith.constant 0 : i32
    return %arg0, %c0_i32, %c0_i32_0 : i32, i32, i32
  }
  func.func @transform_36(%arg0: i32) -> (i32, i32, i32) {
    %c0_i32 = arith.constant 0 : i32
    %c0_i32_0 = arith.constant 0 : i32
    %c0_i32_1 = arith.constant 0 : i32
    return %arg0, %c0_i32, %c0_i32_0 : i32, i32, i32
  }
  func.func @transform_37(%arg0: i32) -> (i32, i32, i32) {
    %c0_i32 = arith.constant 0 : i32
    %c0_i32_0 = arith.constant 0 : i32
    %c0_i32_1 = arith.constant 0 : i32
    return %arg0, %c0_i32, %c0_i32_0 : i32, i32, i32
  }
  func.func @transform_38(%arg0: i32) -> (i32, i32, i32) {
    %c0_i32 = arith.constant 0 : i32
    %c0_i32_0 = arith.constant 0 : i32
    %c0_i32_1 = arith.constant 0 : i32
    return %arg0, %c0_i32, %c0_i32_0 : i32, i32, i32
  }
  func.func @transform_39(%arg0: i32) -> (i32, i32, i32) {
    %c0_i32 = arith.constant 0 : i32
    %c0_i32_0 = arith.constant 0 : i32
    %c0_i32_1 = arith.constant 0 : i32
    return %arg0, %c0_i32, %c0_i32_0 : i32, i32, i32
  }
}

</mosaic_0001>

<bundles_post_ra>
// kernel: rgb_encoder_forward.1
= control target key start
LH: loop header
LB: loop body
LE: loop exit
PB: predicated region body
PF: predicated region fallthrough
CT: control target
= control target key end

     0   :  { %s11788_s6 = smov 1   ;;  %s11789_s10 = smov 2   ;;  %s14479_s0 = inlined_call_operand.smem [shape: u32[40], index: -1, kind: input, shape index: {}] }
   0x1   :  { %s11859_s5 = sld [smem:[%s14479_s0]]   ;;  %s11790_s14 = smov 3  }
   0x2   :  { %s11864_s9 = sld [smem:[%s14479_s0 + %s11788_s6]]   ;;  %s11791_s18 = smov 4  }
   0x3   :  { %s11869_s13 = sld [smem:[%s14479_s0 + %s11789_s10]]   ;;  %s11792_s22 = smov 5  }
   0x4   :  { %s11874_s17 = sld [smem:[%s14479_s0 + %s11790_s14]]   ;;  %s11793_s26 = smov 6  }
   0x5   :  { %s11879_s21 = sld [smem:[%s14479_s0 + %s11791_s18]]   ;;  %s11794_s30 = smov 7  }
   0x6   :  { %s11884_s25 = sld [smem:[%s14479_s0 + %s11792_s22]]   ;;  %s11795_s4 = smov 8  }
   0x7   :  { %14542 = sst [smem:[#allocation3_spill]] %s11859_s5  ;;  %s11796_s10 = smov 9  }
   0x8   :  { %14543 = sst [smem:[#allocation4_spill]] %s11864_s9  ;;  %s11797_s15 = smov 10  }
   0x9   :  { %s11889_s29 = sld [smem:[%s14479_s0 + %s11793_s26]]   ;;  %s11798_s20 = smov 11  }
   0xa   :  { %s11894_s3 = sld [smem:[%s14479_s0 + %s11794_s30]]   ;;  %s11799_s26 = smov 12  }
   0xb   :  { %s11899_s8 = sld [smem:[%s14479_s0 + %s11795_s4]]   ;;  %s11800_s1 = smov 13  }
   0xc   :  { %s11904_s14 = sld [smem:[%s14479_s0 + %s11796_s10]]   ;;  %s11801_s7 = smov 14  }
   0xd   :  { %s11909_s19 = sld [smem:[%s14479_s0 + %s11797_s15]]   ;;  %s11802_s15 = smov 15  }
   0xe   :  { %s11914_s24 = sld [smem:[%s14479_s0 + %s11798_s20]]   ;;  %s11803_s22 = smov 16  }
   0xf   :  { %s11919_s30 = sld [smem:[%s14479_s0 + %s11799_s26]]   ;;  %s11804_s28 = smov 17  }
  0x10   :  { %14544 = sst [smem:[#allocation5_spill]] %s11894_s3 }
  0x11   :  { %14545 = sst [smem:[#allocation6_spill]] %s11899_s8 }
  0x12   :  { %s11924_s6 = sld [smem:[%s14479_s0 + %s11800_s1]]  }
  0x13   :  { %14546 = sst [smem:[#allocation7_spill]] %s11909_s19 }
  0x14   :  { %14547 = sst [smem:[#allocation8_spill]] %s11914_s24 }
  0x15   :  { %14548 = sst [smem:[#allocation9_spill]] %s11919_s30 }
  0x16   :  { %s11929_s12 = sld [smem:[%s14479_s0 + %s11801_s7]]   ;;  %s11805_s7 = smov 18  }
  0x17   :  { %s11934_s20 = sld [smem:[%s14479_s0 + %s11802_s15]]   ;;  %s11806_s15 = smov 19  }
  0x18   :  { %14549 = sst [smem:[#allocation10_spill]] %s11924_s6 }
  0x19   :  { %s11939_s27 = sld [smem:[%s14479_s0 + %s11803_s22]]   ;;  %s11807_s22 = smov 20  }
  0x1a   :  { %s11944_s4 = sld [smem:[%s14479_s0 + %s11804_s28]]   ;;  %s11808_s28 = smov 21  }
  0x1c   :  { %14550 = sst [smem:[#allocation11_spill]] %s11929_s12 }
  0x1d   :  { %14551 = sst [smem:[#allocation12_spill]] %s11934_s20 }
  0x1e   :  { %s11949_s12 = sld [smem:[%s14479_s0 + %s11805_s7]]   ;;  %s11809_s7 = smov 22  }
  0x1f   :  { %14552 = sst [smem:[#allocation13_spill]] %s11939_s27 }
  0x20   :  { %14553 = sst [smem:[#allocation14_spill]] %s11944_s4 }
  0x21   :  { %s11954_s20 = sld [smem:[%s14479_s0 + %s11806_s15]]   ;;  %s11810_s15 = smov 23  }
  0x22   :  { %s11959_s27 = sld [smem:[%s14479_s0 + %s11807_s22]]   ;;  %s11811_s22 = smov 24  }
  0x23   :  { %s11964_s4 = sld [smem:[%s14479_s0 + %s11808_s28]]   ;;  %s11812_s28 = smov 25  }
  0x24   :  { %14554 = sst [smem:[#allocation15_spill]] %s11949_s12 }
  0x25   :  { %s11969_s12 = sld [smem:[%s14479_s0 + %s11809_s7]]   ;;  %s11813_s7 = smov 26  }
  0x26   :  { %s11989_s6 = sld [smem:[%s14479_s0 + %s11813_s7]]   ;;  %s11817_s7 = smov 30  }
  0x27   :  { %14555 = sst [smem:[#allocation16_spill]] %s11954_s20 }
  0x28   :  { %14556 = sst [smem:[#allocation17_spill]] %s11959_s27 }
  0x29   :  { %14557 = sst [smem:[#allocation18_spill]] %s11964_s4 }
  0x2a   :  { %s11974_s20 = sld [smem:[%s14479_s0 + %s11810_s15]]   ;;  %s11814_s15 = smov 27  }
  0x2b   :  { %s11979_s27 = sld [smem:[%s14479_s0 + %s11811_s22]]   ;;  %s11815_s22 = smov 28  }
  0x2c   :  { %s11984_s4 = sld [smem:[%s14479_s0 + %s11812_s28]]   ;;  %s11816_s28 = smov 29  }
  0x2d   :  { %14561 = sst [smem:[#allocation22_spill]] %s11989_s6 }
  0x2e   :  { %s11994_s30 = sld [smem:[%s14479_s0 + %s11814_s15]]   ;;  %s11818_s15 = smov 31  }
  0x2f   :  { %s12009_s24 = sld [smem:[%s14479_s0 + %s11817_s7]]   ;;  %s11821_s7 = smov 34  }
  0x30   :  { %14558 = sst [smem:[#allocation19_spill]] %s11974_s20 }
  0x31   :  { %14559 = sst [smem:[#allocation20_spill]] %s11979_s27 }
  0x32   :  { %14560 = sst [smem:[#allocation21_spill]] %s11984_s4 }
  0x33   :  { %s11999_s27 = sld [smem:[%s14479_s0 + %s11815_s22]]   ;;  %s11819_s22 = smov 32  }
  0x34   :  { %14562 = sst [smem:[#allocation23_spill]] %s11994_s30 }
  0x35   :  { %s12004_s4 = sld [smem:[%s14479_s0 + %s11816_s28]]   ;;  %s11820_s28 = smov 33  }
  0x36   :  { %s12014_s30 = sld [smem:[%s14479_s0 + %s11818_s15]]   ;;  %s11822_s15 = smov 35  }
  0x37   :  { %s12029_s19 = sld [smem:[%s14479_s0 + %s11821_s7]]   ;;  %s11825_s7 = smov 38  }
  0x39   :  { %14563 = sst [smem:[#allocation24_spill]] %s11999_s27 }
  0x3a   :  { %s12019_s27 = sld [smem:[%s14479_s0 + %s11819_s22]]   ;;  %s11823_s22 = smov 36  }
  0x3b   :  { %14564 = sst [smem:[#allocation25_spill]] %s12004_s4 }
  0x3c   :  { %14565 = sst [smem:[#allocation26_spill]] %s12014_s30 }
  0x3d   :  { %s12024_s4 = sld [smem:[%s14479_s0 + %s11820_s28]]   ;;  %s11824_s28 = smov 37  }
  0x3e   :  { %14568 = sst [smem:[#allocation29_spill]] %s12029_s19 }
  0x3f   :  { %s12034_s30 = sld [smem:[%s14479_s0 + %s11822_s15]]   ;;  %s11826_s15 = smov 39  }
  0x40   :  { %14566 = sst [smem:[#allocation27_spill]] %s12019_s27 }
  0x41   :  { %s12039_s27 = sld [smem:[%s14479_s0 + %s11823_s22]]   ;;  %s12056_s22 = smov 0  }
  0x42   :  { %s12049_s19 = sld [smem:[%s14479_s0 + %s11825_s7]]  }
  0x43   :  { %14567 = sst [smem:[#allocation28_spill]] %s12024_s4 }
  0x44   :  { %s12044_s4 = sld [smem:[%s14479_s0 + %s11824_s28]]  }
  0x45   :  { %s12054_s20 = sld [smem:[%s14479_s0 + %s11826_s15]]  }
  0x4a   :  { %14569 = sst [smem:[#allocation30_spill]] %s12044_s4 }
  0x4b LB: > { %s14570_s9 = sld [smem:[#allocation4_spill]]  ;;  %s9983_s23 = sadd.s32 4294967295, %s11786_s22   ;;  %s11786_s22 = sphi %s12056_s22, %s90_s22  }
  0x4c   : > { %s14571_s8 = sld [smem:[#allocation6_spill]]  ;;  %p9987_p0 = scmp.ge.s32.totalorder %s11786_s22, 1 }
  0x4d   : > { %s14572_s6 = sld [smem:[#allocation22_spill]]  ;;  %p1086_p1 = scmp.lt.s32.totalorder %s11786_s22, 3 }
  0x4e   : > { %s14573_s3 = sld [smem:[#allocation5_spill]] }
  0x4f   : > { %p1087_p2 = pnand %p9987_p0, %p1086_p1 }
  0x50   : > { %p12104_p3 = scmp.lt.s32.totalorder (!%p1087_p2), %s9983_s23, 1  ;;  %s14575_s5 = sld [smem:[#allocation3_spill]] (!%p1087_p2) }
  0x51   : > { %1090 = sbr.rel (%p1087_p2) target bundleno = 6470 (0x1946), region = 160  ;;  %s11827_s1 = smov (!%p1087_p2), 92  }
  0x52   : > { %s11828_s2 = smov (!%p1087_p2), 90   ;;  %s11829_s7 = smov (!%p1087_p2), 91  }
  0x53   : > { %s11830_s10 = smov (!%p1087_p2), 109   ;;  %s11831_s11 = smov (!%p1087_p2), 108  }
  0x54   : > { %s14518_s15 = smov (!%p1087_p2), 126   ;;  %s11833_s16 = smov (!%p1087_p2), 110  }
  0x55   : > { %s14506_s18 = smov (!%p1087_p2), 127   ;;  %s14587_s4 = sld [smem:[#allocation30_spill]] (!%p1087_p2) }
  0x56   : > { %v1281_v0 = vld [vmem:[%s14570_s9 + $0x170] sm:$0xff]  ;;  %v1280_v1 = vld [vmem:[%s14570_s9 + $0x168] sm:$0xff]  ;;  %v1278_v2 = vld [vmem:[%s14570_s9 + $0x158] sm:$0xff]  ;;  %s14612_s23 = smov (!%p12104_p3, %s9983_s23), 1  ;;  %vm1486_vm0 = vcmask 551936   ;;  %vm1494_vm1 = vcmask 1043456  }
  0x57   : > { %1331 = vmatprep.subr.mxu0 %v1281_v0  ;;  %v1277_v3 = vld [vmem:[%s14570_s9 + $0x150] sm:$0xff]  ;;  %v1275_v4 = vld [vmem:[%s14570_s9 + $0x140] sm:$0xff]  ;;  %v1274_v5 = vld [vmem:[%s14570_s9 + $0x138] sm:$0xff]  ;;  %s10460_s26 = sshll.u32 %s14612_s23, 4  ;;  %vm1587_vm2 = vcmask 736256   ;;  %vm1561_vm3 = vcmask 752640  }
  0x58   : > { %1332 = vmatpush1.msra.mxu0 %v1280_v1  ;;  %v1272_v6 = vld [vmem:[%s14570_s9 + $0x128] sm:$0xff]  ;;  %v1330_v7 = vld [vmem:[%s14570_s9 + $0x2f8] sm:$0xff]  ;;  %v1271_v8 = vld [vmem:[%s14570_s9 + $0x120] sm:$0xff]  ;;  %s1206_s28 = scalar_lea.vmem %s14575_s5, %s10460_s26  ;;  %vm1574_vm4 = vcmask 744448   ;;  %vm1535_vm5 = vcmask 891904   ;;  %vm1548_vm6 = vcmask 883712  }
  0x59   : > { %1333 = vmatprep.subr.mxu0 %v1278_v2  ;;  %10512 = vmatprep.subr.mxu1 %v1330_v7  ;;  %v1282_v9 = vld [vmem:[%s14570_s9 + $0x178] sm:$0xff]  ;;  %v1327_v10 = vld [vmem:[%s14570_s9 + $0x2e0] sm:$0xff]  ;;  %v1269_v11 = vld [vmem:[%s14570_s9 + $0x110] sm:$0xff]  ;;  %vm1509_vm7 = vcmask 1031168   ;;  %vm1522_vm8 = vcmask 900096   ;;  %vm1496_vm9 = vcmask 1039360  }
  0x5a   : > { %1334 = vmatpush1.msra.mxu0 %v1277_v3  ;;  %10513 = vmatpush3.msra.mxu1 %v1282_v9  ;;  %v1279_v12 = vld [vmem:[%s14570_s9 + $0x160] sm:$0xff]  ;;  %v1268_v13 = vld [vmem:[%s14570_s9 + $0x108] sm:$0xff]  ;;  %v1266_v16 = vld [vmem:[%s14570_s9 + $0xf8] sm:$0xff]  ;;  %vm1721_vm10 = vcmask 588800   ;;  %vm1975_vm11 = vcmask 556032   ;;  %vm3199_vm12 = vcmask 261120  }
  0x5b   : > { %1335 = vmatprep.subr.mxu0 %v1275_v4  ;;  %10514 = vmatprep.subr.mxu1 %v1327_v10  ;;  %v1324_v14 = vld [vmem:[%s14570_s9 + $0x2c8] sm:$0xff]  ;;  %v1321_v17 = vld [vmem:[%s14570_s9 + $0x2b0] sm:$0xff]  ;;  %v1263_v20 = vld [vmem:[%s14570_s9 + $0xe0] sm:$0xff]  ;;  %s10461_s0 = sshll.u32 %s14612_s23, 6  ;;  %vm5498_vm13 = vcmask 814080   ;;  %vm5954_vm14 = vcmask 818176  }
  0x5c   : > { %1336 = vmatpush1.msra.mxu0 %v1274_v5  ;;  %v1276_v15 = vld [vmem:[%s14570_s9 + $0x148] sm:$0xff]  ;;  %10515 = vmatpush3.msra.mxu1 %v1279_v12  ;;  %v1265_v18 = vld [vmem:[%s14570_s9 + $0xf0] sm:$0xff]  ;;  %v1318_v21 = vld [vmem:[%s14570_s9 + $0x298] sm:$0xff]  ;;  %s1211_s26 = scalar_lea.vmem %s12034_s30, %s10461_s0  ;;  %s14577_s0 = sld [smem:[#allocation26_spill]]  ;;  %vm6055_vm15 = vcmask 523264  }
  0x5d   : > { %1337 = vmatprep.subr.mxu0 %v1272_v6  ;;  %10516 = vmatprep.subr.mxu1 %v1324_v14  ;;  %v1273_v19 = vld [vmem:[%s14570_s9 + $0x130] sm:$0xff]  ;;  %v1262_v22 = vld [vmem:[%s14570_s9 + $0xd8] sm:$0xff]  ;;  %v1260_v24 = vld [vmem:[%s14570_s9 + $0xc8] sm:$0xff]  ;;  %s14597_s5 = sld [smem:[#allocation13_spill]] }
  0x5e   : > { %1338 = vmatpush1.msra.mxu0 %v1271_v8  ;;  %10517 = vmatpush3.msra.mxu1 %v1276_v15  ;;  %v1270_v23 = vld [vmem:[%s14570_s9 + $0x118] sm:$0xff]  ;;  %v1315_v25 = vld [vmem:[%s14570_s9 + $0x280] sm:$0xff]  ;;  %v1257_v28 = vld [vmem:[%s14570_s9 + $0xb0] sm:$0xff] }
  0x5f   : > { %1339 = vmatprep.subr.mxu0 %v1269_v11  ;;  %10518 = vmatprep.subr.mxu1 %v1321_v17  ;;  %v1259_v26 = vld [vmem:[%s14570_s9 + $0xc0] sm:$0xff]  ;;  %v1312_v29 = vld [vmem:[%s14570_s9 + $0x268] sm:$0xff]  ;;  %v1254_v32 = vld [vmem:[%s14570_s9 + $0x98] sm:$0xff] }
  0x60   : > { %1340 = vmatpush1.msra.mxu0 %v1268_v13  ;;  %10519 = vmatpush3.msra.mxu1 %v1273_v19  ;;  %v1267_v27 = vld [vmem:[%s14570_s9 + $0x100] sm:$0xff]  ;;  %v1256_v30 = vld [vmem:[%s14570_s9 + $0xa8] sm:$0xff]  ;;  %v1309_v33 = vld [vmem:[%s14570_s9 + $0x250] sm:$0xff] }
  0x61   : > { %1341 = vmatprep.subr.mxu0 %v1266_v16  ;;  %10520 = vmatprep.subr.mxu1 %v1318_v21  ;;  %v1264_v31 = vld [vmem:[%s14570_s9 + $0xe8] sm:$0xff]  ;;  %v1253_v34 = vld [vmem:[%s14570_s9 + $0x90] sm:$0xff]  ;;  %v1251_v36 = vld [vmem:[%s14570_s9 + $0x80] sm:$0xff] }
  0x62   : > { %1342 = vmatpush1.msra.mxu0 %v1265_v18  ;;  %10521 = vmatpush3.msra.mxu1 %v1270_v23  ;;  %v1261_v35 = vld [vmem:[%s14570_s9 + $0xd0] sm:$0xff]  ;;  %v1306_v37 = vld [vmem:[%s14570_s9 + $0x238] sm:$0xff]  ;;  %v1248_v40 = vld [vmem:[%s14570_s9 + $0x68] sm:$0xff] }
  0x63   : > { %1343 = vmatprep.subr.mxu0 %v1263_v20  ;;  %10522 = vmatprep.subr.mxu1 %v1315_v25  ;;  %v1250_v38 = vld [vmem:[%s14570_s9 + $0x78] sm:$0xff]  ;;  %v1303_v41 = vld [vmem:[%s14570_s9 + $0x220] sm:$0xff]  ;;  %v1245_v44 = vld [vmem:[%s14570_s9 + $0x50] sm:$0xff] }
  0x64   : > { %1344 = vmatpush1.msra.mxu0 %v1262_v22  ;;  %10523 = vmatpush3.msra.mxu1 %v1267_v27  ;;  %v1258_v39 = vld [vmem:[%s14570_s9 + $0xb8] sm:$0xff]  ;;  %v1247_v42 = vld [vmem:[%s14570_s9 + $0x60] sm:$0xff]  ;;  %v1300_v45 = vld [vmem:[%s14570_s9 + $0x208] sm:$0xff] }
  0x65   : > { %1345 = vmatprep.subr.mxu0 %v1260_v24  ;;  %10524 = vmatprep.subr.mxu1 %v1312_v29  ;;  %v1255_v43 = vld [vmem:[%s14570_s9 + $0xa0] sm:$0xff]  ;;  %v1244_v46 = vld [vmem:[%s14570_s9 + $0x48] sm:$0xff]  ;;  %v1242_v48 = vld [vmem:[%s14570_s9 + $0x38] sm:$0xff] }
  0x66   : > { %1346 = vmatpush1.msra.mxu0 %v1259_v26  ;;  %10525 = vmatpush3.msra.mxu1 %v1264_v31  ;;  %v1252_v47 = vld [vmem:[%s14570_s9 + $0x88] sm:$0xff]  ;;  %v1297_v49 = vld [vmem:[%s14570_s9 + $0x1f0] sm:$0xff]  ;;  %v1239_v52 = vld [vmem:[%s14570_s9 + $0x20] sm:$0xff] }
  0x67   : > { %1347 = vmatprep.subr.mxu0 %v1257_v28  ;;  %10526 = vmatprep.subr.mxu1 %v1309_v33  ;;  %v1241_v50 = vld [vmem:[%s14570_s9 + $0x30] sm:$0xff]  ;;  %v1294_v53 = vld [vmem:[%s14570_s9 + $0x1d8] sm:$0xff]  ;;  %v1236_v56 = vld [vmem:[%s14570_s9 + $0x8] sm:$0xff] }
  0x68   : > { %1348 = vmatpush1.msra.mxu0 %v1256_v30  ;;  %10527 = vmatpush3.msra.mxu1 %v1261_v35  ;;  %v1249_v51 = vld [vmem:[%s14570_s9 + $0x70] sm:$0xff]  ;;  %v1238_v54 = vld [vmem:[%s14570_s9 + $0x18] sm:$0xff]  ;;  %v1291_v57 = vld [vmem:[%s14570_s9 + $0x1c0] sm:$0xff] }
  0x69   : > { %1349 = vmatprep.subr.mxu0 %v1254_v32  ;;  %10528 = vmatprep.subr.mxu1 %v1306_v37  ;;  %v1246_v55 = vld [vmem:[%s14570_s9 + $0x58] sm:$0xff]  ;;  %v1235_v58 = vld [vmem:[%s14570_s9] sm:$0xff]  ;;  %v1329_v59 = vld [vmem:[%s14570_s9 + $0x2f0] sm:$0xff] }
  0x6a   : > { %1350 = vmatpush1.msra.mxu0 %v1253_v34  ;;  %10529 = vmatpush3.msra.mxu1 %v1258_v39  ;;  %v1243_v60 = vld [vmem:[%s14570_s9 + $0x40] sm:$0xff]  ;;  %v1328_v61 = vld [vmem:[%s14570_s9 + $0x2e8] sm:$0xff]  ;;  %v1326_v62 = vld [vmem:[%s14570_s9 + $0x2d8] sm:$0xff] }
  0x6b   : > { %1351 = vmatprep.subr.mxu0 %v1251_v36  ;;  %10530 = vmatprep.subr.mxu1 %v1303_v41  ;;  %v1288_v63 = vld [vmem:[%s14570_s9 + $0x1a8] sm:$0xff]  ;;  %v1325_v0 = vld [vmem:[%s14570_s9 + $0x2d0] sm:$0xff]  ;;  %v1323_v3 = vld [vmem:[%s14570_s9 + $0x2c0] sm:$0xff]  ;;  %v11835_v41 = vmov 0  }
  0x6c   : > { %1352 = vmatpush1.msra.mxu0 %v1250_v38  ;;  %10531 = vmatpush3.msra.mxu1 %v1255_v43  ;;  %v1240_v1 = vld [vmem:[%s14570_s9 + $0x28] sm:$0xff]  ;;  %v1285_v2 = vld [vmem:[%s14570_s9 + $0x190] sm:$0xff]  ;;  %v1322_v6 = vld [vmem:[%s14570_s9 + $0x2b8] sm:$0xff] }
  0x6d   : > { %1353 = vmatprep.subr.mxu0 %v1248_v40  ;;  %10532 = vmatprep.subr.mxu1 %v1300_v45  ;;  %v1237_v4 = vld [vmem:[%s14570_s9 + $0x10] sm:$0xff]  ;;  %v1234_v5 = vld [vmem:[%s1206_s28 + $0x8] sm:$0xff]  ;;  %v12148_v7 = vld [vmem:[%s1206_s28] sm:$0xff]  ;;  %s11837_s28 = smov 107  }
  0x6e   : > { %1354 = vmatpush1.msra.mxu0 %v1247_v42  ;;  %10533 = vmatpush3.msra.mxu1 %v1252_v47  ;;  %v1320_v8 = vld [vmem:[%s14570_s9 + $0x2a8] sm:$0xff]  ;;  %v1319_v9 = vld [vmem:[%s14570_s9 + $0x2a0] sm:$0xff]  ;;  %v1317_v10 = vld [vmem:[%s14570_s9 + $0x290] sm:$0xff] }
  0x6f   : > { %1355 = vmatprep.subr.mxu0 %v1245_v44  ;;  %10534 = vmatprep.subr.mxu1 %v1297_v49  ;;  %v1316_v11 = vld [vmem:[%s14570_s9 + $0x288] sm:$0xff]  ;;  %v1314_v12 = vld [vmem:[%s14570_s9 + $0x278] sm:$0xff]  ;;  %v1313_v13 = vld [vmem:[%s14570_s9 + $0x270] sm:$0xff] }
  0x70   : > { %1356 = vmatpush1.msra.mxu0 %v1244_v46  ;;  %10535 = vmatpush3.msra.mxu1 %v1249_v51  ;;  %v1311_v14 = vld [vmem:[%s14570_s9 + $0x260] sm:$0xff]  ;;  %v1310_v15 = vld [vmem:[%s14570_s9 + $0x258] sm:$0xff]  ;;  %v1308_v16 = vld [vmem:[%s14570_s9 + $0x248] sm:$0xff] }
  0x71   : > { %1357 = vmatprep.subr.mxu0 %v1242_v48  ;;  %10536 = vmatprep.subr.mxu1 %v1294_v53  ;;  %v1307_v17 = vld [vmem:[%s14570_s9 + $0x240] sm:$0xff]  ;;  %v1305_v18 = vld [vmem:[%s14570_s9 + $0x230] sm:$0xff]  ;;  %v1304_v19 = vld [vmem:[%s14570_s9 + $0x228] sm:$0xff] }
  0x72   : > { %1358 = vmatpush1.msra.mxu0 %v1241_v50  ;;  %10537 = vmatpush3.msra.mxu1 %v1246_v55  ;;  %v1302_v20 = vld [vmem:[%s14570_s9 + $0x218] sm:$0xff]  ;;  %v1301_v21 = vld [vmem:[%s14570_s9 + $0x210] sm:$0xff]  ;;  %v1299_v22 = vld [vmem:[%s14570_s9 + $0x200] sm:$0xff] }
  0x73   : > { %1359 = vmatprep.subr.mxu0 %v1239_v52  ;;  %10538 = vmatprep.subr.mxu1 %v1291_v57  ;;  %v1298_v23 = vld [vmem:[%s14570_s9 + $0x1f8] sm:$0xff]  ;;  %v1296_v24 = vld [vmem:[%s14570_s9 + $0x1e8] sm:$0xff]  ;;  %v1295_v25 = vld [vmem:[%s14570_s9 + $0x1e0] sm:$0xff] }
  0x74   : > { %1360 = vmatpush1.msra.mxu0 %v1238_v54  ;;  %10539 = vmatpush3.msra.mxu1 %v1243_v60  ;;  %v1293_v26 = vld [vmem:[%s14570_s9 + $0x1d0] sm:$0xff]  ;;  %v1292_v27 = vld [vmem:[%s14570_s9 + $0x1c8] sm:$0xff]  ;;  %v1290_v28 = vld [vmem:[%s14570_s9 + $0x1b8] sm:$0xff] }
  0x75   : > { %1361 = vmatprep.subr.mxu0 %v1236_v56  ;;  %10540 = vmatprep.subr.mxu1 %v1288_v63  ;;  %v1289_v29 = vld [vmem:[%s14570_s9 + $0x1b0] sm:$0xff]  ;;  %v1287_v30 = vld [vmem:[%s14570_s9 + $0x1a0] sm:$0xff]  ;;  %v1286_v31 = vld [vmem:[%s14570_s9 + $0x198] sm:$0xff] }
  0x76   : > { %1362 = vmatpush1.msra.mxu0 %v1235_v58  ;;  %10541 = vmatpush3.msra.mxu1 %v1240_v1  ;;  %v1284_v32 = vld [vmem:[%s14570_s9 + $0x188] sm:$0xff]  ;;  %v1283_v33 = vld [vmem:[%s14570_s9 + $0x180] sm:$0xff]  ;;  %v1898_v44 = vld [vmem:[%s11969_s12 + $0x170] sm:$0xff]  ;;  %s14609_s9 = sld [smem:[#allocation18_spill]] }
  0x77   : > { %1363 = vmatprep.subr.mxu0 %v1329_v59  ;;  %10542 = vmatprep.subr.mxu1 %v1285_v2  ;;  %v1615_v42 = vld [vmem:[%s11874_s17] sm:$0xff]  ;;  %v1616_v43 = vld [vmem:[%s11874_s17 + $0x8] sm:$0xff]  ;;  %v1617_v46 = vld [vmem:[%s11874_s17 + $0x10] sm:$0xff] }
  0x78   : > { %1364 = vmatpush2.msra.mxu0 %v1328_v61  ;;  %10543 = vmatpush3.msra.mxu1 %v1237_v4  ;;  %v1897_v45 = vld [vmem:[%s11969_s12 + $0x168] sm:$0xff]  ;;  %v1618_v47 = vld [vmem:[%s11874_s17 + $0x18] sm:$0xff]  ;;  %v1894_v49 = vld [vmem:[%s11969_s12 + $0x150] sm:$0xff] }
  0x79   : > { %1365 = vmatprep.subr.mxu0 %v1326_v62  ;;  %1466 = vmatprep.mubr.f32.mxu1 %v1234_v5  ;;  %v1895_v48 = vld [vmem:[%s11969_s12 + $0x158] sm:$0xff]  ;;  %v1892_v50 = vld [vmem:[%s11969_s12 + $0x140] sm:$0xff]  ;;  %v1889_v52 = vld [vmem:[%s11969_s12 + $0x128] sm:$0xff] }
  0x7a   : > { %1366 = vmatpush2.msra.mxu0 %v1325_v0  ;;  %1467 = vmatmul.mubr.f32.vlgmr.msra.gmra.mxu1 %v12148_v7  ;;  %v1891_v51 = vld [vmem:[%s11969_s12 + $0x138] sm:$0xff]  ;;  %v1888_v53 = vld [vmem:[%s11969_s12 + $0x120] sm:$0xff]  ;;  %v1886_v54 = vld [vmem:[%s11969_s12 + $0x110] sm:$0xff] }
  0x7b   : > { %1367 = vmatprep.subr.mxu0 %v1323_v3  ;;  %1395 = vmatprep.mubr.f32.mxu0 %v1234_v5  ;;  %v1885_v55 = vld [vmem:[%s11969_s12 + $0x108] sm:$0xff]  ;;  %v1883_v56 = vld [vmem:[%s11969_s12 + $0xf8] sm:$0xff]  ;;  %v1882_v57 = vld [vmem:[%s11969_s12 + $0xf0] sm:$0xff] }
  0x7c   : > { %1368 = vmatpush2.msra.mxu0 %v1322_v6  ;;  %1770 = vmatprep.mubr.bf16.mxu1 %v11835_v41  ;;  %v1880_v58 = vld [vmem:[%s11969_s12 + $0xe0] sm:$0xff]  ;;  %v1879_v59 = vld [vmem:[%s11969_s12 + $0xd8] sm:$0xff]  ;;  %v1877_v60 = vld [vmem:[%s11969_s12 + $0xc8] sm:$0xff] }
  0x7d   : > { %1369 = vmatprep.subr.mxu0 %v1320_v8  ;;  %11529 = vset.pattern.permute.xlu0 %v11835_v41  ;;  %v1876_v61 = vld [vmem:[%s11969_s12 + $0xc0] sm:$0xff]  ;;  %v1874_v62 = vld [vmem:[%s11969_s12 + $0xb0] sm:$0xff]  ;;  %v1873_v63 = vld [vmem:[%s11969_s12 + $0xa8] sm:$0xff] }
  0x7e   : > { %1370 = vmatpush2.msra.mxu0 %v1319_v9  ;;  %11530 = vset.pattern.permute.xlu1 %v11835_v41  ;;  %v1871_v0 = vld [vmem:[%s11969_s12 + $0x98] sm:$0xff]  ;;  %v1870_v1 = vld [vmem:[%s11969_s12 + $0x90] sm:$0xff]  ;;  %v1868_v2 = vld [vmem:[%s11969_s12 + $0x80] sm:$0xff] }
  0x7f   : > { %1371 = vmatprep.subr.mxu0 %v1317_v10  ;;  %v1867_v3 = vld [vmem:[%s11969_s12 + $0x78] sm:$0xff]  ;;  %v1865_v4 = vld [vmem:[%s11969_s12 + $0x68] sm:$0xff]  ;;  %v1864_v5 = vld [vmem:[%s11969_s12 + $0x60] sm:$0xff] }
  0x80   : > { %1372 = vmatpush2.msra.mxu0 %v1316_v11  ;;  %v1862_v6 = vld [vmem:[%s11969_s12 + $0x50] sm:$0xff]  ;;  %v1859_v8 = vld [vmem:[%s11969_s12 + $0x38] sm:$0xff]  ;;  %v1856_v10 = vld [vmem:[%s11969_s12 + $0x20] sm:$0xff] }
  0x81   : > { %1373 = vmatprep.subr.mxu0 %v1314_v12  ;;  %v1858_v9 = vld [vmem:[%s11969_s12 + $0x30] sm:$0xff]  ;;  %v1855_v11 = vld [vmem:[%s11969_s12 + $0x18] sm:$0xff]  ;;  %v1853_v12 = vld [vmem:[%s11969_s12 + $0x8] sm:$0xff] }
  0x82   : > { %1374 = vmatpush2.msra.mxu0 %v1313_v13  ;;  %v1852_v13 = vld [vmem:[%s11969_s12] sm:$0xff] }
  0x83   : > { %1375 = vmatprep.subr.mxu0 %v1311_v14  ;;  %v1946_v14 = vld [vmem:[%s11969_s12 + $0x2f0] sm:$0xff] }
  0x84   : > { %1376 = vmatpush2.msra.mxu0 %v1310_v15  ;;  %v1945_v15 = vld [vmem:[%s11969_s12 + $0x2e8] sm:$0xff] }
  0x85   : > { %1377 = vmatprep.subr.mxu0 %v1308_v16  ;;  %v1943_v16 = vld [vmem:[%s11969_s12 + $0x2d8] sm:$0xff] }
  0x86   : > { %1378 = vmatpush2.msra.mxu0 %v1307_v17  ;;  %v1942_v17 = vld [vmem:[%s11969_s12 + $0x2d0] sm:$0xff] }
  0x87   : > { %1379 = vmatprep.subr.mxu0 %v1305_v18  ;;  %v1940_v18 = vld [vmem:[%s11969_s12 + $0x2c0] sm:$0xff] }
  0x88   : > { %1380 = vmatpush2.msra.mxu0 %v1304_v19  ;;  %v1939_v19 = vld [vmem:[%s11969_s12 + $0x2b8] sm:$0xff] }
  0x89   : > { %1381 = vmatprep.subr.mxu0 %v1302_v20  ;;  %v1937_v20 = vld [vmem:[%s11969_s12 + $0x2a8] sm:$0xff] }
  0x8a   : > { %1382 = vmatpush2.msra.mxu0 %v1301_v21  ;;  %v1936_v21 = vld [vmem:[%s11969_s12 + $0x2a0] sm:$0xff] }
  0x8b   : > { %1383 = vmatprep.subr.mxu0 %v1299_v22  ;;  %v1934_v22 = vld [vmem:[%s11969_s12 + $0x290] sm:$0xff] }
  0x8c   : > { %1384 = vmatpush2.msra.mxu0 %v1298_v23  ;;  %v1933_v23 = vld [vmem:[%s11969_s12 + $0x288] sm:$0xff] }
  0x8d   : > { %1385 = vmatprep.subr.mxu0 %v1296_v24  ;;  %v1931_v24 = vld [vmem:[%s11969_s12 + $0x278] sm:$0xff] }
  0x8e   : > { %1386 = vmatpush2.msra.mxu0 %v1295_v25  ;;  %v1930_v25 = vld [vmem:[%s11969_s12 + $0x270] sm:$0xff] }
  0x8f   : > { %1387 = vmatprep.subr.mxu0 %v1293_v26  ;;  %v1928_v26 = vld [vmem:[%s11969_s12 + $0x260] sm:$0xff] }
  0x90   : > { %1388 = vmatpush2.msra.mxu0 %v1292_v27  ;;  %v1927_v27 = vld [vmem:[%s11969_s12 + $0x258] sm:$0xff] }
  0x91   : > { %1389 = vmatprep.subr.mxu0 %v1290_v28  ;;  %v1925_v28 = vld [vmem:[%s11969_s12 + $0x248] sm:$0xff] }
  0x92   : > { %1390 = vmatpush2.msra.mxu0 %v1289_v29  ;;  %v1924_v29 = vld [vmem:[%s11969_s12 + $0x240] sm:$0xff] }
  0x93   : > { %1391 = vmatprep.subr.mxu0 %v1287_v30 }
  0x94   : > { %1392 = vmatpush2.msra.mxu0 %v1286_v31 }
  0x95   : > { %1393 = vmatprep.subr.mxu0 %v1284_v32  ;;  %v1922_v32 = vld [vmem:[%s11969_s12 + $0x230] sm:$0xff] }
  0x96   : > { %1394 = vmatpush2.msra.mxu0 %v1283_v33  ;;  %v1921_v33 = vld [vmem:[%s11969_s12 + $0x228] sm:$0xff] }
  0x97   : > { %1396 = vmatmul.mubr.f32.vlgmr.msra.gmra.mxu0 %v12148_v7  ;;  %1997 = vmatprep.subr.mxu0 %v1898_v44  ;;  %v1861_v7 = vld [vmem:[%s11969_s12 + $0x48] sm:$0xff] }
  0x98   : > { %1998 = vmatpush1.msra.mxu0 %v1897_v45 }
  0x99   : > { %1999 = vmatprep.subr.mxu0 %v1895_v48 }
  0x9a   : > { %2000 = vmatpush1.msra.mxu0 %v1894_v49 }
  0x9b   : > { %2001 = vmatprep.subr.mxu0 %v1892_v50 }
  0x9c   : > { %2002 = vmatpush1.msra.mxu0 %v1891_v51 }
  0x9d   : > { %2003 = vmatprep.subr.mxu0 %v1889_v52 }
  0x9e   : > { %2004 = vmatpush1.msra.mxu0 %v1888_v53 }
  0x9f   : > { %2005 = vmatprep.subr.mxu0 %v1886_v54 }
  0xa0   : > { %2006 = vmatpush1.msra.mxu0 %v1885_v55 }
  0xa1   : > { %2007 = vmatprep.subr.mxu0 %v1883_v56 }
  0xa2   : > { %2008 = vmatpush1.msra.mxu0 %v1882_v57 }
  0xa3   : > { %2009 = vmatprep.subr.mxu0 %v1880_v58 }
  0xa4   : > { %2010 = vmatpush1.msra.mxu0 %v1879_v59 }
  0xa5   : > { %2011 = vmatprep.subr.mxu0 %v1877_v60 }
  0xa6   : > { %2012 = vmatpush1.msra.mxu0 %v1876_v61 }
  0xa7   : > { %2013 = vmatprep.subr.mxu0 %v1874_v62 }
  0xa8   : > { %2014 = vmatpush1.msra.mxu0 %v1873_v63 }
  0xa9   : > { %2015 = vmatprep.subr.mxu0 %v1871_v0 }
  0xaa   : > { %2016 = vmatpush1.msra.mxu0 %v1870_v1 }
  0xab   : > { %2017 = vmatprep.subr.mxu0 %v1868_v2 }
  0xac   : > { %2018 = vmatpush1.msra.mxu0 %v1867_v3 }
  0xad   : > { %2019 = vmatprep.subr.mxu0 %v1865_v4 }
  0xae   : > { %2020 = vmatpush1.msra.mxu0 %v1864_v5 }
  0xaf   : > { %2021 = vmatprep.subr.mxu0 %v1862_v6 }
  0xb0   : > { %2022 = vmatpush1.msra.mxu0 %v1861_v7 }
  0xb1   : > { %2023 = vmatprep.subr.mxu0 %v1859_v8 }
  0xb2   : > { %2024 = vmatpush1.msra.mxu0 %v1858_v9 }
  0xb3   : > { %2025 = vmatprep.subr.mxu0 %v1856_v10 }
  0xb4   : > { %2026 = vmatpush1.msra.mxu0 %v1855_v11 }
  0xb5   : > { %2027 = vmatprep.subr.mxu0 %v1853_v12 }
  0xb6   : > { %2028 = vmatpush1.msra.mxu0 %v1852_v13 }
  0xb7   : > { %2029 = vmatprep.subr.mxu0 %v1946_v14 }
  0xb8   : > { %2030 = vmatpush2.msra.mxu0 %v1945_v15 }
  0xb9   : > { %2031 = vmatprep.subr.mxu0 %v1943_v16 }
  0xba   : > { %2032 = vmatpush2.msra.mxu0 %v1942_v17 }
  0xbb   : > { %2033 = vmatprep.subr.mxu0 %v1940_v18 }
  0xbc   : > { %2034 = vmatpush2.msra.mxu0 %v1939_v19 }
  0xbd   : > { %2035 = vmatprep.subr.mxu0 %v1937_v20 }
  0xbe   : > { %2036 = vmatpush2.msra.mxu0 %v1936_v21 }
  0xbf   : > { %2037 = vmatprep.subr.mxu0 %v1934_v22 }
  0xc0   : > { %2038 = vmatpush2.msra.mxu0 %v1933_v23 }
  0xc1   : > { %2039 = vmatprep.subr.mxu0 %v1931_v24 }
  0xc2   : > { %2040 = vmatpush2.msra.mxu0 %v1930_v25 }
  0xc3   : > { %2041 = vmatprep.subr.mxu0 %v1928_v26 }
  0xc4   : > { %2042 = vmatpush2.msra.mxu0 %v1927_v27 }
  0xc5   : > { %2043 = vmatprep.subr.mxu0 %v1925_v28 }
  0xc6   : > { %2044 = vmatpush2.msra.mxu0 %v1924_v29 }
  0xc7   : > { %2045 = vmatprep.subr.mxu0 %v1922_v32 }
  0xc8   : > { %2046 = vmatpush2.msra.mxu0 %v1921_v33 }
 0x13a   : > { %v10544_v34 = vpop.f32.mrf.mxu1 }
 0x13c   : > { %v10545_v35 = vpop.f32.mrf.mxu1 }
 0x13d   : > { %v10546_v36 = vadd.f32 %v10545_v35, %v10544_v34  ;;  %v1919_v34 = vld [vmem:[%s11969_s12 + $0x218] sm:$0xff]  ;;  %v1918_v35 = vld [vmem:[%s11969_s12 + $0x210] sm:$0xff] }
 0x13e   : > { %2047 = vmatprep.subr.mxu0 %v1919_v34 }
 0x13f   : > { %v10467_v37 = vpack.c.bf16 %v10546_v36, %v10546_v36  ;;  %2048 = vmatpush2.msra.mxu0 %v1918_v35 }
 0x141   : > { %1556 = vrot.lane.b32.xlu1 %v10467_v37, %s11827_s1  ;;  %1582 = vrot.lane.b32.xlu0 %v10467_v37, %s11828_s2  ;;  %1487 = vst.msk [vmem:[#allocation2 + $0x8] sm:$0xf] %vm1486_vm0, %v10467_v37 }
 0x145   : > { %1569 = vrot.lane.b32.xlu1 %v10467_v37, %s11829_s7 }
 0x149   : > { %1530 = vrot.lane.b32.xlu1 %v10467_v37, %s11830_s10 }
 0x14d   : > { %1543 = vrot.lane.b32.xlu1 %v10467_v37, %s11831_s11 }
 0x157   : > { %v1397_v38 = vpop.f32.mrf.mxu0 }
 0x159   : > { %v1399_v39 = vpop.f32.mrf.mxu0 }
 0x15a   : > { %v12184_v40 = vpack.c.bf16 %v1399_v39, %v1397_v38  ;;  %v1915_v38 = vld [vmem:[%s11969_s12 + $0x1f8] sm:$0xff]  ;;  %v1913_v39 = vld [vmem:[%s11969_s12 + $0x1e8] sm:$0xff] }
 0x15c   : > { %1554 = vrot.lane.b32.xlu1 %v12184_v40, %s11827_s1  ;;  %1580 = vrot.lane.b32.xlu0 %v12184_v40, %s11828_s2 }
 0x160   : > { %1504 = vrot.lane.b32.xlu1 %v10467_v37, %s14518_s15  ;;  %1567 = vrot.lane.b32.xlu0 %v12184_v40, %s11829_s7 }
 0x164   : > { %1517 = vrot.lane.b32.xlu1 %v10467_v37, %s11833_s16  ;;  %1528 = vrot.lane.b32.xlu0 %v12184_v40, %s11830_s10 }
 0x168   : > { %1490 = vrot.lane.b32.xlu1 %v10467_v37, %s14506_s18  ;;  %1541 = vrot.lane.b32.xlu0 %v12184_v40, %s11831_s11  ;;  %v1916_v37 = vld [vmem:[%s11969_s12 + $0x200] sm:$0xff] }
 0x169   : > { %2049 = vmatprep.subr.mxu0 %v1916_v37 }
 0x16a   : > { %2050 = vmatpush2.msra.mxu0 %v1915_v38 }
 0x16b   : > { %2051 = vmatprep.subr.mxu0 %v1913_v39 }
 0x16c   : > { %1502 = vrot.lane.b32.xlu0 %v12184_v40, %s14518_s15  ;;  %1626 = vperm.xlu1 %11530, %v1616_v43  }
 0x170   : > { %1515 = vrot.lane.b32.xlu0 %v12184_v40, %s11833_s16  ;;  %1631 = vperm.xlu1 %11530, %v1617_v46  }
 0x174   : > { %1488 = vrot.lane.b32.xlu0 %v12184_v40, %s14506_s18 }
 0x178   : > { %1621 = vperm.xlu0 %11529, %v1615_v42   ;;  %v1912_v42 = vld [vmem:[%s11969_s12 + $0x1e0] sm:$0xff] }
 0x179   : > { %2052 = vmatpush2.msra.mxu0 %v1912_v42 }
 0x17c   : > { %1636 = vperm.xlu0 %11529, %v1618_v47  }
 0x1b3   : > { %v1557_v30 = vpop.permute.xlu1 %1556  ;;  %v1583_v31 = vpop.permute.xlu0 %1582 }
 0x1b4   : > { %1566 = vst.msk [vmem:[#allocation2 + $0x50] sm:$0xf] %vm1486_vm0, %v1557_v30  ;;  %1592 = vst.msk [vmem:[#allocation2 + $0x68] sm:$0xf] %vm1486_vm0, %v1583_v31  ;;  %v1585_v47 = vrot.slane %v1583_v31, 4  ;;  %v1559_v50 = vrot.slane %v1557_v30, 4 }
 0x1b7   : > { %v1570_v36 = vpop.permute.xlu1 %1569 }
 0x1b8   : > { %1579 = vst.msk [vmem:[#allocation2 + $0x5c] sm:$0xf] %vm1486_vm0, %v1570_v36  ;;  %v1572_v52 = vrot.slane %v1570_v36, 4  ;;  %v11532_v36 = vld [vmem:[%s11869_s13] sm:$0xff]  }
 0x1bb   : > { %v1531_v43 = vpop.permute.xlu1 %1530  ;;  %v11531_v35 = vld [vmem:[#allocation2 + $0x68] ss:$0 sps:$4 sm:$0xff]  }
 0x1bc   : > { %1540 = vst.msk [vmem:[#allocation2 + $0x38] sm:$0xf] %vm1486_vm0, %v1531_v43  ;;  %v1533_v5 = vrot.slane %v1531_v43, 4  ;;  %v1736_v37 = vsel %vm1494_vm1, %v11531_v35, 0 }
 0x1bf   : > { %v1544_v44 = vpop.permute.xlu1 %1543  ;;  %v11533_v38 = vld [vmem:[#allocation2 + $0x50] ss:$12 sps:$4 sm:$0xff]  }
 0x1c0   : > { %1553 = vst.msk [vmem:[#allocation2 + $0x44] sm:$0xf] %vm1486_vm0, %v1544_v44  ;;  %v1546_v8 = vrot.slane %v1544_v44, 4  ;;  %v1910_v44 = vld [vmem:[%s11969_s12 + $0x1d0] sm:$0xff] }
 0x1c1   : > { %2053 = vmatprep.subr.mxu0 %v1910_v44  ;;  %v1944_v44 = vld [vmem:[%s11969_s12 + $0x2e0] sm:$0xff] }
 0x1c7   : > { %v11534_v39 = vld [vmem:[#allocation2 + $0x38] ss:$12 sps:$4 sm:$0xff]  }
 0x1ce   : > { %v1555_v45 = vpop.permute.xlu1 %1554  ;;  %v1581_v46 = vpop.permute.xlu0 %1580 }
 0x1cf   : > { %v1558_v48 = vrot.slane %v1555_v45, 4  ;;  %v1584_v49 = vrot.slane %v1581_v46, 4 }
 0x1d1   : > { %v1586_v51 = vsel %vm1494_vm1, %v1584_v49, %v1585_v47  ;;  %v1560_v56 = vsel %vm1494_vm1, %v1558_v48, %v1559_v50  ;;  %v1906_v47 = vld [vmem:[%s11969_s12 + $0x1b0] sm:$0xff]  ;;  %v1904_v48 = vld [vmem:[%s11969_s12 + $0x1a0] sm:$0xff]  ;;  %v1903_v49 = vld [vmem:[%s11969_s12 + $0x198] sm:$0xff] }
 0x1d2   : > { %v1588_v53 = vsel %vm1587_vm2, %v1581_v46, %v1586_v51  ;;  %v1505_v54 = vpop.permute.xlu1 %1504  ;;  %v1568_v55 = vpop.permute.xlu0 %1567  ;;  %v1562_v62 = vsel %vm1561_vm3, %v1555_v45, %v1560_v56  ;;  %v1909_v45 = vld [vmem:[%s11969_s12 + $0x1c8] sm:$0xff]  ;;  %v1907_v46 = vld [vmem:[%s11969_s12 + $0x1b8] sm:$0xff]  ;;  %v1900_v51 = vld [vmem:[%s11969_s12 + $0x180] sm:$0xff] }
 0x1d3   : > { %1514 = vst.msk [vmem:[#allocation2 + $0x20] sm:$0xf] %vm1486_vm0, %v1505_v54  ;;  %v1571_v57 = vrot.slane %v1568_v55, 4  ;;  %v10017_v58 = vcombine.high %v1588_v53, %v1588_v53  ;;  %v10016_v59 = vcombine.low %v1588_v53, %v1588_v53  ;;  %v1507_v18 = vrot.slane %v1505_v54, 4  ;;  %2054 = vmatpush2.msra.mxu0 %v1909_v45  ;;  %v1901_v50 = vld [vmem:[%s11969_s12 + $0x188] sm:$0xff]  ;;  %v1970_v54 = vld [vmem:[%s11969_s12 + $0x3b0] sm:$0xff] }
 0x1d4   : > { %2055 = vmatprep.subr.mxu0 %v1907_v46  ;;  %v1972_v53 = vld [vmem:[%s11969_s12 + $0x3c0] sm:$0xf]  ;;  %v1967_v56 = vld [vmem:[%s11969_s12 + $0x398] sm:$0xff] }
 0x1d5   : > { %v1573_v60 = vsel %vm1494_vm1, %v1571_v57, %v1572_v52  ;;  %10019 = vmatprep.subr.msk.bf16.mxu1 %vm1494_vm1, %v10017_v58  ;;  %v1730_v61 = vsel %vm1494_vm1, %v10016_v59, 0  ;;  %2056 = vmatpush2.msra.mxu0 %v1906_v47  ;;  %v1973_v52 = vld [vmem:[%s11969_s12 + $0x3c8] sm:$0xf]  ;;  %v1966_v57 = vld [vmem:[%s11969_s12 + $0x390] sm:$0xff]  ;;  %v1964_v58 = vld [vmem:[%s11969_s12 + $0x380] sm:$0xff] }
 0x1d6   : > { %v1575_v63 = vsel %vm1574_vm4, %v1568_v55, %v1573_v60  ;;  %v1518_v0 = vpop.permute.xlu1 %1517  ;;  %v1529_v1 = vpop.permute.xlu0 %1528  ;;  %1745 = vmatpush1.bf16.msra.mxu1 %v1730_v61  ;;  %2057 = vmatprep.subr.mxu0 %v1904_v48  ;;  %v1969_v55 = vld [vmem:[%s11969_s12 + $0x3a8] sm:$0xff]  ;;  %v1963_v59 = vld [vmem:[%s11969_s12 + $0x378] sm:$0xff]  ;;  %v1960_v61 = vld [vmem:[%s11969_s12 + $0x360] sm:$0xff] }
 0x1d7   : > { %1527 = vst.msk [vmem:[#allocation2 + $0x2c] sm:$0xf] %vm1486_vm0, %v1518_v0  ;;  %v1532_v2 = vrot.slane %v1529_v1, 4  ;;  %v10014_v3 = vcombine.high %v1562_v62, %v1575_v63  ;;  %v10013_v4 = vcombine.low %v1562_v62, %v1575_v63  ;;  %v1520_v20 = vrot.slane %v1518_v0, 4  ;;  %2058 = vmatpush2.msra.mxu0 %v1903_v49  ;;  %v1961_v60 = vld [vmem:[%s11969_s12 + $0x368] sm:$0xff]  ;;  %v1958_v62 = vld [vmem:[%s11969_s12 + $0x350] sm:$0xff] }
 0x1d8   : > { %2059 = vmatprep.subr.mxu0 %v1901_v50  ;;  %v1957_v63 = vld [vmem:[%s11969_s12 + $0x348] sm:$0xff]  ;;  %v1955_v0 = vld [vmem:[%s11969_s12 + $0x338] sm:$0xff]  ;;  %v1896_v46 = vld [vmem:[%s11969_s12 + $0x160] sm:$0xff] }
 0x1d9   : > { %1746 = vmatprep.subr.bf16.mxu1 %v10014_v3  ;;  %v1534_v9 = vsel %vm1494_vm1, %v1532_v2, %v1533_v5  ;;  %2060 = vmatpush2.msra.mxu0 %v1900_v51  ;;  %v1952_v2 = vld [vmem:[%s11969_s12 + $0x320] sm:$0xff]  ;;  %v1951_v3 = vld [vmem:[%s11969_s12 + $0x318] sm:$0xff]  ;;  %v1941_v47 = vld [vmem:[%s11969_s12 + $0x2c8] sm:$0xff] }
 0x1da   : > { %v1491_v6 = vpop.permute.xlu1 %1490  ;;  %v1542_v7 = vpop.permute.xlu0 %1541  ;;  %1747 = vmatpush1.bf16.msra.mxu1 %v10013_v4  ;;  %v1536_v12 = vsel %vm1535_vm5, %v1529_v1, %v1534_v9  ;;  %v1954_v1 = vld [vmem:[%s11969_s12 + $0x330] sm:$0xff]  ;;  %v1949_v4 = vld [vmem:[%s11969_s12 + $0x308] sm:$0xff]  ;;  %v1948_v5 = vld [vmem:[%s11969_s12 + $0x300] sm:$0xff] }
 0x1db   : > { %1501 = vst.msk [vmem:[#allocation2 + $0x14] sm:$0xf] %vm1486_vm0, %v1491_v6  ;;  %v1545_v10 = vrot.slane %v1542_v7, 4  ;;  %v1493_v27 = vrot.slane %v1491_v6, 4  ;;  %v1947_v6 = vld [vmem:[%s11969_s12 + $0x2f8] sm:$0xff]  ;;  %v1893_v50 = vld [vmem:[%s11969_s12 + $0x148] sm:$0xff] }
 0x1dc   : > { %v1938_v51 = vld [vmem:[%s11969_s12 + $0x2b0] sm:$0xff] }
 0x1dd   : > { %v1547_v11 = vsel %vm1494_vm1, %v1545_v10, %v1546_v8 }
 0x1de   : > { %v1549_v13 = vsel %vm1548_vm6, %v1542_v7, %v1547_v11  ;;  %v1503_v14 = vpop.permute.xlu0 %1502  ;;  %v11536_v42 = vld [vmem:[#allocation2 + $0x20] ss:$12 sps:$4 sm:$0xff]   ;;  %v11836_v7 = vmov 0.0  }
 0x1df   : > { %v1506_v15 = vrot.slane %v1503_v14, 4  ;;  %v10011_v16 = vcombine.high %v1536_v12, %v1549_v13  ;;  %v10010_v17 = vcombine.low %v1536_v12, %v1549_v13 }
 0x1e1   : > { %1748 = vmatprep.subr.bf16.mxu1 %v10011_v16  ;;  %v1508_v21 = vsel %vm1494_vm1, %v1506_v15, %v1507_v18 }
 0x1e2   : > { %v1516_v19 = vpop.permute.xlu0 %1515  ;;  %1749 = vmatpush1.bf16.msra.mxu1 %v10010_v17  ;;  %v1510_v24 = vsel %vm1509_vm7, %v1503_v14, %v1508_v21  ;;  %v11537_v43 = vld [vmem:[#allocation2 + $0x8] ss:$12 sps:$4 sm:$0xff]  }
 0x1e3   : > { %v1519_v22 = vrot.slane %v1516_v19, 4 }
 0x1e5   : > { %v1521_v23 = vsel %vm1494_vm1, %v1519_v22, %v1520_v20 }
 0x1e6   : > { %v1523_v25 = vsel %vm1522_vm8, %v1516_v19, %v1521_v23  ;;  %v1489_v26 = vpop.permute.xlu0 %1488 }
 0x1e7   : > { %v1492_v28 = vrot.slane %v1489_v26, 4  ;;  %v10008_v29 = vcombine.high %v1510_v24, %v1523_v25  ;;  %v10007_v30 = vcombine.low %v1510_v24, %v1523_v25  ;;  %v1627_v12 = vpop.permute.xlu1 %1626 }
 0x1e9   : > { %v1495_v31 = vsel %vm1494_vm1, %v1492_v28, %v1493_v27  ;;  %1750 = vmatprep.subr.bf16.mxu1 %v10008_v29 }
 0x1ea   : > { %v1497_v32 = vsel %vm1496_vm9, %v1489_v26, %v1495_v31  ;;  %1751 = vmatpush1.bf16.msra.mxu1 %v10007_v30 }
 0x1eb   : > { %v10005_v33 = vcombine.high %v12184_v40, %v1497_v32  ;;  %v10004_v34 = vcombine.low %v12184_v40, %v1497_v32  ;;  %v11535_v40 = vld [vmem:[%s11869_s13 + $0x8] sm:$0xff]   ;;  %v1632_v19 = vpop.permute.xlu1 %1631 }
 0x1ed   : > { %1752 = vmatprep.subr.bf16.mxu1 %v10005_v33 }
 0x1ee   : > { %1753 = vmatpush1.bf16.msra.mxu1 %v10004_v34 }
 0x1ef   : > { %11457 = vmatprep.subr.msk.bf16.mxu1 %vm1494_vm1, %v11531_v35 }
 0x1f1   : > { %10020 = vmatmul.mubr.msk.bf16.vlgmr.msra.gmra.mxu1 %vm1721_vm10, %v11532_v36 }
 0x1f2   : > { %11116 = vmatpush3.bf16.msra.mxu1 %v1736_v37  ;;  %1780 = vmatprep.mubr.bf16.mxu1 %v11835_v41 }
 0x1f3   : > { %11117 = vmatprep.subr.bf16.mxu1 %v11533_v38  ;;  %v1622_v8 = vpop.permute.xlu0 %1621 }
 0x1f6   : > { %11118 = vmatpush3.bf16.msra.mxu1 %v11533_v38 }
 0x1f7   : > { %11119 = vmatprep.subr.bf16.mxu1 %v11534_v39  ;;  %v1637_v27 = vpop.permute.xlu0 %1636 }
 0x1f9   : > { %10021 = vmatmul.mubr.msk.bf16.gmra.mxu1 %vm1721_vm10, %v11535_v40 }
 0x1fa   : > { %11120 = vmatpush3.bf16.msra.mxu1 %v11534_v39  ;;  %11125 = vmatprep.mubr.msk.bf16.mxu1 %vm1721_vm10, %v11532_v36 }
 0x1fb   : > { %11121 = vmatprep.subr.bf16.mxu1 %v11536_v42 }
 0x1fe   : > { %11122 = vmatpush3.bf16.msra.mxu1 %v11536_v42  ;;  %v1899_v42 = vld [vmem:[%s11969_s12 + $0x178] sm:$0xff] }
 0x1ff   : > { %11123 = vmatprep.subr.bf16.mxu1 %v11537_v43 }
 0x202   : > { %11124 = vmatpush3.bf16.msra.mxu1 %v11537_v43 }
 0x203   : > { %10024 = vmatprep.subr.msk.mxu1 %vm1494_vm1, %v1973_v52  ;;  %v1890_v52 = vld [vmem:[%s11969_s12 + $0x130] sm:$0xff] }
 0x205   : > { %11126 = vmatmul.mubr.msk.bf16.vlgmr.msra.gmra.mxu1 %vm1721_vm10, %v11535_v40 }
 0x206   : > { %10025 = vmatpush1.msk.msra.mxu1 %vm1494_vm1, %v1972_v53  ;;  %2150 = vmatprep.mubr.f32.mxu1 %v11836_v7  ;;  %v1935_v53 = vld [vmem:[%s11969_s12 + $0x298] sm:$0xff] }
 0x207   : > { %2102 = vmatprep.subr.mxu1 %v1970_v54 }
 0x208   : > { %2103 = vmatpush1.msra.mxu1 %v1969_v55 }
 0x209   : > { %2104 = vmatprep.subr.mxu1 %v1967_v56  ;;  %v1887_v56 = vld [vmem:[%s11969_s12 + $0x118] sm:$0xff] }
 0x20a   : > { %2105 = vmatpush1.msra.mxu1 %v1966_v57  ;;  %v1932_v57 = vld [vmem:[%s11969_s12 + $0x280] sm:$0xff] }
 0x20b   : > { %2106 = vmatprep.subr.mxu1 %v1964_v58  ;;  %v1884_v58 = vld [vmem:[%s11969_s12 + $0x100] sm:$0xff] }
 0x20c   : > { %2107 = vmatpush1.msra.mxu1 %v1963_v59  ;;  %v1929_v59 = vld [vmem:[%s11969_s12 + $0x268] sm:$0xff] }
 0x20d   : > { %2108 = vmatprep.subr.mxu1 %v1961_v60 }
 0x20e   : > { %2109 = vmatpush1.msra.mxu1 %v1960_v61  ;;  %v1881_v61 = vld [vmem:[%s11969_s12 + $0xe8] sm:$0xff] }
 0x20f   : > { %2110 = vmatprep.subr.mxu1 %v1958_v62  ;;  %v1926_v62 = vld [vmem:[%s11969_s12 + $0x250] sm:$0xff] }
 0x210   : > { %2111 = vmatpush1.msra.mxu1 %v1957_v63  ;;  %v1878_v63 = vld [vmem:[%s11969_s12 + $0xd0] sm:$0xff] }
 0x211   : > { %2112 = vmatprep.subr.mxu1 %v1955_v0  ;;  %v1923_v0 = vld [vmem:[%s11969_s12 + $0x238] sm:$0xff] }
 0x212   : > { %2113 = vmatpush1.msra.mxu1 %v1954_v1  ;;  %v1875_v1 = vld [vmem:[%s11969_s12 + $0xb8] sm:$0xff] }
 0x213   : > { %2114 = vmatprep.subr.mxu1 %v1952_v2  ;;  %v1920_v2 = vld [vmem:[%s11969_s12 + $0x220] sm:$0xff] }
 0x214   : > { %2115 = vmatpush1.msra.mxu1 %v1951_v3  ;;  %v1872_v3 = vld [vmem:[%s11969_s12 + $0xa0] sm:$0xff] }
 0x215   : > { %2116 = vmatprep.subr.mxu1 %v1949_v4  ;;  %v1917_v4 = vld [vmem:[%s11969_s12 + $0x208] sm:$0xff] }
 0x216   : > { %2117 = vmatpush1.msra.mxu1 %v1948_v5  ;;  %v1869_v5 = vld [vmem:[%s11969_s12 + $0x88] sm:$0xff] }
 0x217   : > { %10554 = vmatprep.subr.mxu1 %v1947_v6  ;;  %v1914_v6 = vld [vmem:[%s11969_s12 + $0x1f0] sm:$0xff] }
 0x2b1   : > { %v1772_v9 = vpop.f32.mrf.mxu1 }
 0x2b2   : > { %v12335_v10 = vadd.f32 %v1772_v9, %v1622_v8  ;;  %v1911_v9 = vld [vmem:[%s11969_s12 + $0x1d8] sm:$0xff] }
 0x2b3   : > { %v1774_v11 = vpop.f32.mrf.mxu1 }
 0x2b4   : > { %v12337_v13 = vadd.f32 %v1774_v11, %v1622_v8  ;;  %v1840_v16 = vmax.f32 %v12335_v10, 0.0  ;;  %v1863_v11 = vld [vmem:[%s11969_s12 + $0x58] sm:$0xff]  ;;  %v1962_v10 = vld [vmem:[%s11969_s12 + $0x370] sm:$0xff] }
 0x2b5   : > { %v1776_v14 = vpop.f32.mrf.mxu1 }
 0x2b6   : > { %v1841_v15 = vmax.f32 %v12337_v13, 0.0  ;;  %v12341_v17 = vadd.f32 %v1776_v14, %v1627_v12  ;;  %v1860_v13 = vld [vmem:[%s11969_s12 + $0x40] sm:$0xff]  ;;  %v1905_v14 = vld [vmem:[%s11969_s12 + $0x1a8] sm:$0xff] }
 0x2b7   : > { %v1778_v18 = vpop.f32.mrf.mxu1 }
 0x2b8   : > { %v12343_v20 = vadd.f32 %v1778_v18, %v1627_v12  ;;  %2061 = vmatprep.mubr.f32.mxu0 %v1841_v15  ;;  %v1843_v24 = vmax.f32 %v12341_v17, 0.0  ;;  %v1902_v18 = vld [vmem:[%s11969_s12 + $0x190] sm:$0xff]  ;;  %v1956_v17 = vld [vmem:[%s11969_s12 + $0x340] sm:$0xff] }
 0x2b9   : > { %v1782_v21 = vpop.f32.mrf.mxu1  ;;  %2062 = vmatmul.mubr.f32.vlgmr.msra.gmra.mxu0 %v1840_v16 }
 0x2ba   : > { %v1844_v22 = vmax.f32 %v12343_v20, 0.0  ;;  %v12350_v23 = vadd.f32 %v1782_v21, %v1632_v19  ;;  %v1974_v21 = vld [vmem:[%s11969_s12 + $0x3d0] sm:$0xf]  ;;  %v1953_v20 = vld [vmem:[%s11969_s12 + $0x328] sm:$0xff] }
 0x2bb   : > { %v1784_v25 = vpop.f32.mrf.mxu1 }
 0x2bc   : > { %v12353_v26 = vadd.f32 %v1784_v25, %v1632_v19  ;;  %2067 = vmatprep.mubr.f32.mxu0 %v1844_v22  ;;  %v1846_v29 = vmax.f32 %v12350_v23, 0.0  ;;  %v1971_v25 = vld [vmem:[%s11969_s12 + $0x3b8] sm:$0xff] }
 0x2bd   : > { %v1786_v28 = vpop.f32.mrf.mxu1  ;;  %2068 = vmatmul.mubr.f32.gmra.mxu0 %v1843_v24 }
 0x2be   : > { %v1847_v30 = vmax.f32 %v12353_v26, 0.0  ;;  %v12361_v31 = vadd.f32 %v1786_v28, %v1637_v27  ;;  %v1965_v28 = vld [vmem:[%s11969_s12 + $0x388] sm:$0xff] }
 0x2bf   : > { %v1788_v32 = vpop.f32.mrf.mxu1 }
 0x2c0   : > { %v12363_v33 = vadd.f32 %v1788_v32, %v1637_v27  ;;  %2073 = vmatprep.mubr.f32.mxu0 %v1847_v30  ;;  %v1849_v35 = vmax.f32 %v12361_v31, 0.0 }
 0x2c1   : > { %2074 = vmatmul.mubr.f32.gmra.mxu0 %v1846_v29 }
 0x2c2   : > { %v1850_v34 = vmax.f32 %v12363_v33, 0.0 }
 0x2c4   : > { %2079 = vmatprep.mubr.f32.mxu0 %v1850_v34 }
 0x2c5   : > { %v11127_v36 = vpop.f32.mrf.mxu1  ;;  %2080 = vmatmul.mubr.f32.gmra.mxu0 %v1849_v35 }
 0x2c6   : > { %v12388_v48 = vadd.f32 %v11127_v36, %v1632_v19  ;;  %v1854_v19 = vld [vmem:[%s11969_s12 + $0x10] sm:$0xff] }
 0x2c7   : > { %v1825_v37 = vpop.f32.mrf.mxu1 }
 0x2c8   : > { %v12375_v38 = vadd.f32 %v1825_v37, %v1622_v8  ;;  %v1848_v54 = vmax.f32 %v12388_v48, 0.0  ;;  %v1866_v8 = vld [vmem:[%s11969_s12 + $0x70] sm:$0xff] }
 0x2c9   : > { %v11128_v39 = vpop.f32.mrf.mxu1 }
 0x2ca   : > { %v1842_v40 = vmax.f32 %v12375_v38, 0.0  ;;  %v12400_v55 = vadd.f32 %v11128_v39, %v1637_v27  ;;  %v1968_v27 = vld [vmem:[%s11969_s12 + $0x3a0] sm:$0xff] }
 0x2cb   : > { %v1828_v43 = vpop.f32.mrf.mxu1 }
 0x2cc   : > { %v12380_v45 = vadd.f32 %v1828_v43, %v1627_v12  ;;  %10026 = vmatmul.mubr.msk.f32.vlgmr.msra.gmra.mxu1 %vm1975_vm11, %v1842_v40  ;;  %v1851_v60 = vmax.f32 %v12400_v55, 0.0  ;;  %v1908_v12 = vld [vmem:[%s11969_s12 + $0x1c0] sm:$0xff] }
 0x2cd   : > { %10555 = vmatpush3.msra.mxu1 %v1899_v42  ;;  %2156 = vmatprep.mubr.f32.mxu1 %v11836_v7 }
 0x2ce   : > { %v1845_v49 = vmax.f32 %v12380_v45, 0.0  ;;  %10556 = vmatprep.subr.mxu1 %v1944_v44 }
 0x2cf   : > { %10557 = vmatpush3.msra.mxu1 %v1896_v46 }
 0x2d0   : > { %10558 = vmatprep.subr.mxu1 %v1941_v47  ;;  %10027 = vmatmul.mubr.msk.f32.gmra.mxu1 %vm1975_vm11, %v1845_v49 }
 0x2d1   : > { %10559 = vmatpush3.msra.mxu1 %v1893_v50  ;;  %2162 = vmatprep.mubr.f32.mxu1 %v11836_v7 }
 0x2d2   : > { %10560 = vmatprep.subr.mxu1 %v1938_v51 }
 0x2d3   : > { %10561 = vmatpush3.msra.mxu1 %v1890_v52 }
 0x2d4   : > { %10562 = vmatprep.subr.mxu1 %v1935_v53  ;;  %10028 = vmatmul.mubr.msk.f32.gmra.mxu1 %vm1975_vm11, %v1848_v54 }
 0x2d5   : > { %10563 = vmatpush3.msra.mxu1 %v1887_v56  ;;  %2168 = vmatprep.mubr.f32.mxu1 %v11836_v7 }
 0x2d6   : > { %10564 = vmatprep.subr.mxu1 %v1932_v57 }
 0x2d7   : > { %10565 = vmatpush3.msra.mxu1 %v1884_v58 }
 0x2d8   : > { %10566 = vmatprep.subr.mxu1 %v1929_v59  ;;  %10029 = vmatmul.mubr.msk.f32.gmra.mxu1 %vm1975_vm11, %v1851_v60 }
 0x2d9   : > { %10567 = vmatpush3.msra.mxu1 %v1881_v61  ;;  %2239 = vmatprep.mubr.f32.mxu1 %v1841_v15  ;;  %v1857_v15 = vld [vmem:[%s11969_s12 + $0x28] sm:$0xff] }
 0x2da   : > { %10568 = vmatprep.subr.mxu1 %v1926_v62 }
 0x2db   : > { %10569 = vmatpush3.msra.mxu1 %v1878_v63 }
 0x2dc   : > { %10570 = vmatprep.subr.mxu1 %v1923_v0 }
 0x2dd   : > { %10571 = vmatpush3.msra.mxu1 %v1875_v1 }
 0x2de   : > { %10572 = vmatprep.subr.mxu1 %v1920_v2 }
 0x2df   : > { %10573 = vmatpush3.msra.mxu1 %v1872_v3 }
 0x2e0   : > { %10574 = vmatprep.subr.mxu1 %v1917_v4 }
 0x2e1   : > { %10575 = vmatpush3.msra.mxu1 %v1869_v5 }
 0x2e2   : > { %10576 = vmatprep.subr.mxu1 %v1914_v6 }
 0x2e3   : > { %10577 = vmatpush3.msra.mxu1 %v1866_v8 }
 0x2e4   : > { %10578 = vmatprep.subr.mxu1 %v1911_v9 }
 0x2e5   : > { %10579 = vmatpush3.msra.mxu1 %v1863_v11 }
 0x2e6   : > { %10580 = vmatprep.subr.mxu1 %v1908_v12 }
 0x2e7   : > { %10581 = vmatpush3.msra.mxu1 %v1860_v13 }
 0x2e8   : > { %10582 = vmatprep.subr.mxu1 %v1905_v14 }
 0x2e9   : > { %10583 = vmatpush3.msra.mxu1 %v1857_v15 }
 0x2ea   : > { %10584 = vmatprep.subr.mxu1 %v1902_v18 }
 0x2eb   : > { %10585 = vmatpush3.msra.mxu1 %v1854_v19 }
 0x2ec   : > { %2240 = vmatmul.mubr.f32.vlgmr.msra.gmra.mxu1 %v1840_v16  ;;  %11129 = vmatprep.subr.msk.mxu1 %vm1494_vm1, %v1974_v21  ;;  %v1959_v16 = vld [vmem:[%s11969_s12 + $0x358] sm:$0xff] }
 0x2ed   : > { %2244 = vmatprep.mubr.f32.mxu1 %v1844_v22  ;;  %11130 = vmatpush3.msk.msra.mxu1 %vm1494_vm1, %v1974_v21  ;;  %v1950_v22 = vld [vmem:[%s11969_s12 + $0x310] sm:$0xff] }
 0x2ee   : > { %11131 = vmatprep.subr.mxu1 %v1971_v25 }
 0x2ef   : > { %11132 = vmatpush3.msra.mxu1 %v1971_v25 }
 0x2f0   : > { %2245 = vmatmul.mubr.f32.gmra.mxu1 %v1843_v24  ;;  %11133 = vmatprep.subr.mxu1 %v1968_v27 }
 0x2f1   : > { %2249 = vmatprep.mubr.f32.mxu1 %v1847_v30  ;;  %11134 = vmatpush3.msra.mxu1 %v1968_v27  ;;  %v2857_v27 = vld [vmem:[%s11884_s25] sm:$0xff] }
 0x2f2   : > { %11135 = vmatprep.subr.mxu1 %v1965_v28 }
 0x2f3   : > { %11136 = vmatpush3.msra.mxu1 %v1965_v28 }
 0x2f4   : > { %2250 = vmatmul.mubr.f32.gmra.mxu1 %v1846_v29  ;;  %11137 = vmatprep.subr.mxu1 %v1962_v10 }
 0x2f5   : > { %2254 = vmatprep.mubr.f32.mxu1 %v1850_v34  ;;  %11138 = vmatpush3.msra.mxu1 %v1962_v10  ;;  %v2859_v10 = vld [vmem:[%s11884_s25 + $0x10] sm:$0xff] }
 0x2f6   : > { %11139 = vmatprep.subr.mxu1 %v1959_v16 }
 0x2f7   : > { %11140 = vmatpush3.msra.mxu1 %v1959_v16 }
 0x2f8   : > { %2255 = vmatmul.mubr.f32.gmra.mxu1 %v1849_v35  ;;  %11141 = vmatprep.subr.mxu1 %v1956_v17 }
 0x2f9   : > { %11142 = vmatpush3.msra.mxu1 %v1956_v17  ;;  %11147 = vmatprep.mubr.msk.f32.mxu1 %vm1975_vm11, %v1842_v40 }
 0x2fa   : > { %11143 = vmatprep.subr.mxu1 %v1953_v20 }
 0x2fb   : > { %11144 = vmatpush3.msra.mxu1 %v1953_v20  ;;  %v12613_v20 = vld [vmem:[%s11879_s21 + $0x4] ss:$12 sps:$4 sm:$0xff]  }
 0x2fc   : > { %11145 = vmatprep.subr.mxu1 %v1950_v22  ;;  %3238 = vmatprep.mubr.bf16.mxu0 %v12613_v20 }
 0x2fd   : > { %11146 = vmatpush3.msra.mxu1 %v1950_v22 }
 0x2fe   : > { %11148 = vmatmul.mubr.msk.f32.vlgmr.msra.gmra.mxu1 %vm1975_vm11, %v1845_v49 }
 0x2ff   : > { %11150 = vmatprep.mubr.msk.f32.mxu1 %vm1975_vm11, %v1848_v54 }
 0x302   : > { %11151 = vmatmul.mubr.msk.f32.gmra.mxu1 %vm1975_vm11, %v1851_v60 }
 0x303   : > { %3291 = vmatprep.mubr.bf16.mxu1 %v11835_v41 }
 0x379   : > { %v2063_v23 = vpop.f32.mrf.mxu0 }
 0x37b   : > { %v2065_v26 = vpop.f32.mrf.mxu0 }
 0x37d   : > { %v2069_v34 = vpop.f32.mrf.mxu0 }
 0x37f   : > { %v2071_v36 = vpop.f32.mrf.mxu0 }
 0x381   : > { %v2075_v42 = vpop.f32.mrf.mxu0 }
 0x383   : > { %v2077_v44 = vpop.f32.mrf.mxu0 }
 0x385   : > { %v2081_v52 = vpop.f32.mrf.mxu0 }
 0x387   : > { %v2083_v55 = vpop.f32.mrf.mxu0 }
 0x38c   : > { %v2152_v24 = vpop.f32.mrf.mxu1 }
 0x38d   : > { %v12473_v30 = vadd.f32 %v2152_v24, %v2063_v23 }
 0x38e   : > { %v2154_v29 = vpop.f32.mrf.mxu1 }
 0x38f   : > { %v12475_v31 = vadd.f32 %v2154_v29, %v2065_v26 }
 0x390   : > { %v2158_v33 = vpop.f32.mrf.mxu1 }
 0x391   : > { %v12479_v32 = vpack.c.bf16 %v12475_v31, %v12473_v30  ;;  %v12487_v38 = vadd.f32 %v2158_v33, %v2069_v34 }
 0x392   : > { %v2160_v35 = vpop.f32.mrf.mxu1 }
 0x393   : > { %2729 = vrot.lane.b32.xlu1 %v12479_v32, %s11828_s2  ;;  %v12485_v37 = vadd.f32 %v2160_v35, %v2071_v36 }
 0x394   : > { %v2164_v40 = vpop.f32.mrf.mxu1 }
 0x395   : > { %v12493_v39 = vpack.c.bf16 %v12485_v37, %v12487_v38  ;;  %v12501_v47 = vadd.f32 %v2164_v40, %v2075_v42 }
 0x396   : > { %v2166_v43 = vpop.f32.mrf.mxu1 }
 0x397   : > { %2489 = vrot.lane.b32.xlu1 %v12479_v32, %s11833_s16  ;;  %v12499_v45 = vadd.f32 %v2166_v43, %v2077_v44  ;;  %v2858_v43 = vld [vmem:[%s11884_s25 + $0x8] sm:$0xff] }
 0x398   : > { %v2170_v46 = vpop.f32.mrf.mxu1 }
 0x399   : > { %v12507_v48 = vpack.c.bf16 %v12499_v45, %v12501_v47  ;;  %v12517_v59 = vadd.f32 %v2170_v46, %v2081_v52 }
 0x39a   : > { %v2172_v49 = vpop.f32.mrf.mxu1 }
 0x39b   : > { %2441 = vrot.lane.b32.xlu1 %v12479_v32, %s14518_s15  ;;  %v12515_v57 = vadd.f32 %v2172_v49, %v2083_v55 }
 0x39d   : > { %v12523_v61 = vpack.c.bf16 %v12515_v57, %v12517_v59 }
 0x39f   : > { %2733 = vrot.lane.b32.xlu1 %v12493_v39, %s11828_s2 }
 0x3a3   : > { %2493 = vrot.lane.b32.xlu1 %v12493_v39, %s11833_s16 }
 0x3a7   : > { %2445 = vrot.lane.b32.xlu1 %v12493_v39, %s14518_s15 }
 0x3ab   : > { %2737 = vrot.lane.b32.xlu1 %v12507_v48, %s11828_s2 }
 0x3ac   : > { %v10586_v50 = vpop.f32.mrf.mxu1 }
 0x3ae   : > { %v10587_v51 = vpop.f32.mrf.mxu1 }
 0x3af   : > { %2497 = vrot.lane.b32.xlu1 %v12507_v48, %s11833_s16  ;;  %v10588_v1 = vadd.f32 %v10587_v51, %v10586_v50 }
 0x3b0   : > { %v10589_v53 = vpop.f32.mrf.mxu1 }
 0x3b2   : > { %v10590_v54 = vpop.f32.mrf.mxu1 }
 0x3b3   : > { %2449 = vrot.lane.b32.xlu1 %v12507_v48, %s14518_s15  ;;  %v10591_v63 = vadd.f32 %v10590_v54, %v10589_v53 }
 0x3b4   : > { %v10592_v56 = vpop.f32.mrf.mxu1 }
 0x3b6   : > { %v10593_v58 = vpop.f32.mrf.mxu1 }
 0x3b7   : > { %2401 = vrot.lane.b32.xlu1 %v12507_v48, %s14506_s18  ;;  %v10594_v9 = vadd.f32 %v10593_v58, %v10592_v56 }
 0x3b8   : > { %v10595_v60 = vpop.f32.mrf.mxu1 }
 0x3ba   : > { %v10596_v62 = vpop.f32.mrf.mxu1 }
 0x3bb   : > { %2741 = vrot.lane.b32.xlu1 %v12523_v61, %s11828_s2  ;;  %v10597_v4 = vadd.f32 %v10596_v62, %v10595_v60 }
 0x3be   : > { %v11149_v0 = vpop.f32.mrf.mxu1 }
 0x3bf   : > { %v2332_v2 = vadd.f32 %v11149_v0, %v10591_v63  ;;  %2501 = vrot.lane.b32.xlu1 %v12523_v61, %s11833_s16 }
 0x3c0   : > { %v2326_v3 = vpop.f32.mrf.mxu1 }
 0x3c1   : > { %v12529_v5 = vpack.c.bf16 %v2332_v2, %v2332_v2  ;;  %v2327_v6 = vadd.f32 %v10588_v1, %v2326_v3 }
 0x3c2   : > { %v11152_v8 = vpop.f32.mrf.mxu1 }
 0x3c3   : > { %2388 = vst.msk [vmem:[#allocation2 + $0x14] sm:$0xf] %vm1486_vm0, %v12529_v5  ;;  %v10469_v11 = vpack.c.bf16 %v2327_v6, %v2327_v6  ;;  %v2342_v12 = vadd.f32 %v11152_v8, %v10597_v4  ;;  %2735 = vrot.lane.b32.xlu0 %v12529_v5, %s11828_s2  ;;  %2453 = vrot.lane.b32.xlu1 %v12523_v61, %s14518_s15 }
 0x3c4   : > { %v2336_v13 = vpop.f32.mrf.mxu1 }
 0x3c5   : > { %2386 = vst.msk [vmem:[#allocation2 + $0x8] sm:$0xf] %vm1486_vm0, %v10469_v11  ;;  %v10475_v14 = vpack.c.bf16 %v2342_v12, %v2342_v12  ;;  %v2337_v15 = vadd.f32 %v10594_v9, %v2336_v13 }
 0x3c7   : > { %2392 = vst.msk [vmem:[#allocation2 + $0x2c] sm:$0xf] %vm1486_vm0, %v10475_v14  ;;  %v10473_v18 = vpack.c.bf16 %v2337_v15, %v2337_v15  ;;  %2495 = vrot.lane.b32.xlu0 %v12529_v5, %s11833_s16  ;;  %2405 = vrot.lane.b32.xlu1 %v12523_v61, %s14506_s18 }
 0x3c9   : > { %2390 = vst.msk [vmem:[#allocation2 + $0x20] sm:$0xf] %vm1486_vm0, %v10473_v18 }
 0x3cb   : > { %2687 = vrot.lane.b32.xlu0 %v12529_v5, %s11829_s7  ;;  %2683 = vrot.lane.b32.xlu1 %v10469_v11, %s11829_s7 }
 0x3cf   : > { %2447 = vrot.lane.b32.xlu0 %v12529_v5, %s14518_s15  ;;  %2635 = vrot.lane.b32.xlu1 %v10469_v11, %s11827_s1 }
 0x3d3   : > { %2639 = vrot.lane.b32.xlu0 %v12529_v5, %s11827_s1  ;;  %2691 = vrot.lane.b32.xlu1 %v10473_v18, %s11829_s7 }
 0x3d7   : > { %2731 = vrot.lane.b32.xlu0 %v10469_v11, %s11828_s2  ;;  %2393 = vrot.lane.b32.xlu1 %v12479_v32, %s14506_s18 }
 0x3db   : > { %2491 = vrot.lane.b32.xlu0 %v10469_v11, %s11833_s16  ;;  %2643 = vrot.lane.b32.xlu1 %v10473_v18, %s11827_s1 }
 0x3df   : > { %2443 = vrot.lane.b32.xlu0 %v10469_v11, %s14518_s15  ;;  %2397 = vrot.lane.b32.xlu1 %v12493_v39, %s14506_s18 }
 0x3e3   : > { %2743 = vrot.lane.b32.xlu0 %v10475_v14, %s11828_s2  ;;  %2595 = vrot.lane.b32.xlu1 %v10473_v18, %s11831_s11 }
 0x3e7   : > { %2503 = vrot.lane.b32.xlu0 %v10475_v14, %s11833_s16  ;;  %2587 = vrot.lane.b32.xlu1 %v10469_v11, %s11831_s11 }
 0x3eb   : > { %2695 = vrot.lane.b32.xlu0 %v10475_v14, %s11829_s7  ;;  %2547 = vrot.lane.b32.xlu1 %v10473_v18, %s11830_s10 }
 0x3ef   : > { %2455 = vrot.lane.b32.xlu0 %v10475_v14, %s14518_s15  ;;  %2539 = vrot.lane.b32.xlu1 %v10469_v11, %s11830_s10 }
 0x3f3   : > { %2647 = vrot.lane.b32.xlu0 %v10475_v14, %s11827_s1  ;;  %2689 = vrot.lane.b32.xlu1 %v12507_v48, %s11829_s7 }
 0x3f7   : > { %2739 = vrot.lane.b32.xlu0 %v10473_v18, %s11828_s2  ;;  %2681 = vrot.lane.b32.xlu1 %v12479_v32, %s11829_s7 }
 0x3fb   : > { %2407 = vrot.lane.b32.xlu0 %v10475_v14, %s14506_s18  ;;  %2641 = vrot.lane.b32.xlu1 %v12507_v48, %s11827_s1 }
 0x3ff   : > { %2599 = vrot.lane.b32.xlu0 %v10475_v14, %s11831_s11  ;;  %2633 = vrot.lane.b32.xlu1 %v12479_v32, %s11827_s1 }
 0x403   : > { %2499 = vrot.lane.b32.xlu0 %v10473_v18, %s11833_s16  ;;  %2593 = vrot.lane.b32.xlu1 %v12507_v48, %s11831_s11 }
 0x405   : > { %v12584_v19 = vpop.permute.xlu1 %2729 }
 0x407   : > { %2395 = vrot.lane.b32.xlu0 %v10469_v11, %s14506_s18  ;;  %2585 = vrot.lane.b32.xlu1 %v12479_v32, %s11831_s11 }
 0x409   : > { %v12589_v21 = vpop.permute.xlu1 %2489 }
 0x40b   : > { %2451 = vrot.lane.b32.xlu0 %v10473_v18, %s14518_s15  ;;  %2545 = vrot.lane.b32.xlu1 %v12507_v48, %s11830_s10  ;;  %v2860_v48 = vld [vmem:[%s11884_s25 + $0x18] sm:$0xff] }
 0x40d   : > { %v12594_v25 = vpop.permute.xlu1 %2441 }
 0x40f   : > { %2399 = vrot.lane.b32.xlu0 %v12529_v5, %s14506_s18  ;;  %2537 = vrot.lane.b32.xlu1 %v12479_v32, %s11830_s10 }
 0x411   : > { %v12601_v28 = vpop.permute.xlu1 %2733 }
 0x412   : > { %v2747_v9 = vrot.slane %v12601_v28, 4 }
 0x413   : > { %2403 = vrot.lane.b32.xlu0 %v10473_v18, %s14506_s18  ;;  %2863 = vperm.xlu1 %11530, %v2857_v27  }
 0x415   : > { %v12605_v16 = vpop.permute.xlu1 %2493 }
 0x417   : > { %2591 = vrot.lane.b32.xlu0 %v12529_v5, %s11831_s11  ;;  %2873 = vperm.xlu1 %11530, %v2859_v10  }
 0x419   : > { %v12609_v17 = vpop.permute.xlu1 %2445 }
 0x41b   : > { %2551 = vrot.lane.b32.xlu0 %v10475_v14, %s11830_s10 }
 0x41d   : > { %v12615_v22 = vpop.permute.xlu1 %2737 }
 0x41e   : > { %v2749_v12 = vrot.slane %v12615_v22, 4 }
 0x41f   : > { %2543 = vrot.lane.b32.xlu0 %v12529_v5, %s11830_s10  ;;  %v2745_v5 = vrot.slane %v12584_v19, 4 }
 0x421   : > { %v12620_v23 = vpop.permute.xlu1 %2497 }
 0x423   : > { %2693 = vrot.lane.b32.xlu0 %v12523_v61, %s11829_s7 }
 0x425   : > { %v12624_v24 = vpop.permute.xlu1 %2449 }
 0x427   : > { %2685 = vrot.lane.b32.xlu0 %v12493_v39, %s11829_s7 }
 0x429   : > { %v12628_v26 = vpop.permute.xlu1 %2401 }
 0x42b   : > { %2645 = vrot.lane.b32.xlu0 %v12523_v61, %s11827_s1 }
 0x42d   : > { %v12632_v29 = vpop.permute.xlu1 %2741 }
 0x42e   : > { %v2751_v6 = vrot.slane %v12632_v29, 4 }
 0x42f   : > { %2637 = vrot.lane.b32.xlu0 %v12493_v39, %s11827_s1 }
 0x431   : > { %v12636_v32 = vpop.permute.xlu1 %2501 }
 0x433   : > { %2597 = vrot.lane.b32.xlu0 %v12523_v61, %s11831_s11 }
 0x435   : > { %v12640_v33 = vpop.permute.xlu0 %2735  ;;  %v12642_v34 = vpop.permute.xlu1 %2453 }
 0x436   : > { %2772 = vst.msk [vmem:[#allocation2 + $0x194] sm:$0xf] %vm1486_vm0, %v12640_v33  ;;  %v2748_v8 = vrot.slane %v12640_v33, 4 }
 0x437   : > { %2589 = vrot.lane.b32.xlu0 %v12493_v39, %s11831_s11 }
 0x438   : > { %v2755_v18 = vsel %vm1494_vm1, %v2747_v9, %v2748_v8  ;;  %v2505_v8 = vrot.slane %v12589_v21, 4  ;;  %v2511_v9 = vrot.slane %v12636_v32, 4 }
 0x439   : > { %v12648_v35 = vpop.permute.xlu0 %2495  ;;  %v12650_v36 = vpop.permute.xlu1 %2405 }
 0x43a   : > { %2532 = vst.msk [vmem:[#allocation2 + $0xa4] sm:$0xf] %vm1486_vm0, %v12648_v35 }
 0x43b   : > { %2549 = vrot.lane.b32.xlu0 %v12523_v61, %s11830_s10 }
 0x43d   : > { %v12656_v40 = vpop.permute.xlu0 %2687  ;;  %v12658_v42 = vpop.permute.xlu1 %2683 }
 0x43e   : > { %2724 = vst.msk [vmem:[#allocation2 + $0x164] sm:$0xf] %vm1486_vm0, %v12656_v40  ;;  %2722 = vst.msk [vmem:[#allocation2 + $0x158] sm:$0xf] %vm1486_vm0, %v12658_v42 }
 0x43f   : > { %2541 = vrot.lane.b32.xlu0 %v12493_v39, %s11830_s10 }
 0x441   : > { %v12667_v44 = vpop.permute.xlu0 %2447  ;;  %v12669_v46 = vpop.permute.xlu1 %2635 }
 0x442   : > { %2484 = vst.msk [vmem:[#allocation2 + $0x74] sm:$0xf] %vm1486_vm0, %v12667_v44  ;;  %2674 = vst.msk [vmem:[#allocation2 + $0x128] sm:$0xf] %vm1486_vm0, %v12669_v46 }
 0x443   : > { %2868 = vperm.xlu0 %11529, %v2858_v43  }
 0x445   : > { %v12676_v49 = vpop.permute.xlu0 %2639  ;;  %v12678_v50 = vpop.permute.xlu1 %2691 }
 0x446   : > { %2676 = vst.msk [vmem:[#allocation2 + $0x134] sm:$0xf] %vm1486_vm0, %v12676_v49  ;;  %2726 = vst.msk [vmem:[#allocation2 + $0x170] sm:$0xf] %vm1486_vm0, %v12678_v50 }
 0x447   : > { %2878 = vperm.xlu0 %11529, %v2860_v48  }
 0x449   : > { %v2732_v39 = vpop.permute.xlu0 %2731  ;;  %v12684_v51 = vpop.permute.xlu1 %2393 }
 0x44a   : > { %2770 = vst.msk [vmem:[#allocation2 + $0x188] sm:$0xf] %vm1486_vm0, %v2732_v39  ;;  %v2746_v3 = vrot.slane %v2732_v39, 4 }
 0x44c   : > { %v2753_v13 = vsel %vm1494_vm1, %v2745_v5, %v2746_v3  ;;  %v2756_v3 = vsel %vm1587_vm2, %v12601_v28, %v2755_v18  ;;  %v2508_v28 = vrot.slane %v12648_v35, 4 }
 0x44d   : > { %v12687_v52 = vpop.permute.xlu0 %2491  ;;  %v12689_v53 = vpop.permute.xlu1 %2643  ;;  %v2754_v10 = vsel %vm1587_vm2, %v12584_v19, %v2753_v13 }
 0x44e   : > { %2530 = vst.msk [vmem:[#allocation2 + $0x98] sm:$0xf] %vm1486_vm0, %v12687_v52  ;;  %2678 = vst.msk [vmem:[#allocation2 + $0x140] sm:$0xf] %vm1486_vm0, %v12689_v53 }
 0x451   : > { %v12695_v54 = vpop.permute.xlu0 %2443  ;;  %v12697_v55 = vpop.permute.xlu1 %2397 }
 0x452   : > { %2482 = vst.msk [vmem:[#allocation2 + $0x68] sm:$0xf] %vm1486_vm0, %v12695_v54 }
 0x455   : > { %v2744_v56 = vpop.permute.xlu0 %2743  ;;  %v12701_v58 = vpop.permute.xlu1 %2595 }
 0x456   : > { %2776 = vst.msk [vmem:[#allocation2 + $0x1ac] sm:$0xf] %vm1486_vm0, %v2744_v56  ;;  %2630 = vst.msk [vmem:[#allocation2 + $0x110] sm:$0xf] %vm1486_vm0, %v12701_v58  ;;  %v2752_v4 = vrot.slane %v2744_v56, 4 }
 0x458   : > { %v2759_v14 = vsel %vm1494_vm1, %v2751_v6, %v2752_v4  ;;  %v10098_v4 = vcombine.high %v2754_v10, %v2756_v3  ;;  %v12759_v6 = vld [vmem:[%s11879_s21 + $0x8] ss:$12 sps:$4 sm:$0xff]  }
 0x459   : > { %v2504_v60 = vpop.permute.xlu0 %2503  ;;  %v12706_v61 = vpop.permute.xlu1 %2587  ;;  %v2760_v33 = vsel %vm1587_vm2, %v12632_v29, %v2759_v14  ;;  %v2506_v29 = vrot.slane %v12687_v52, 4  ;;  %v2509_v52 = vrot.slane %v12620_v23, 4 }
 0x45a   : > { %2536 = vst.msk [vmem:[#allocation2 + $0xbc] sm:$0xf] %vm1486_vm0, %v2504_v60  ;;  %2626 = vst.msk [vmem:[#allocation2 + $0xf8] sm:$0xf] %vm1486_vm0, %v12706_v61  ;;  %v2512_v5 = vrot.slane %v2504_v60, 4 }
 0x45b   : > { %v2513_v60 = vsel %vm1494_vm1, %v2505_v8, %v2506_v29  ;;  %v2460_v29 = vrot.slane %v12667_v44, 4 }
 0x45c   : > { %v2519_v14 = vsel %vm1494_vm1, %v2511_v9, %v2512_v5  ;;  %v2461_v9 = vrot.slane %v12624_v24, 4 }
 0x45d   : > { %v12711_v62 = vpop.permute.xlu0 %2695  ;;  %v12713_v63 = vpop.permute.xlu1 %2547 }
 0x45e   : > { %2728 = vst.msk [vmem:[#allocation2 + $0x17c] sm:$0xf] %vm1486_vm0, %v12711_v62  ;;  %2582 = vst.msk [vmem:[#allocation2 + $0xe0] sm:$0xf] %vm1486_vm0, %v12713_v63 }
 0x461   : > { %v12719_v0 = vpop.permute.xlu0 %2455  ;;  %v12721_v1 = vpop.permute.xlu1 %2539 }
 0x462   : > { %2488 = vst.msk [vmem:[#allocation2 + $0x8c] sm:$0xf] %vm1486_vm0, %v12719_v0  ;;  %2578 = vst.msk [vmem:[#allocation2 + $0xc8] sm:$0xf] %vm1486_vm0, %v12721_v1 }
 0x465   : > { %v12727_v2 = vpop.permute.xlu0 %2647 }
 0x466   : > { %2680 = vst.msk [vmem:[#allocation2 + $0x14c] sm:$0xf] %vm1486_vm0, %v12727_v2 }
 0x469   : > { %v2740_v11 = vpop.permute.xlu0 %2739 }
 0x46a   : > { %v2750_v15 = vrot.slane %v2740_v11, 4  ;;  %2774 = vst.msk [vmem:[#allocation2 + $0x1a0] sm:$0xf] %vm1486_vm0, %v2740_v11  ;;  %v11538_v11 = vld [vmem:[#allocation2 + $0x170] ss:$12 sps:$4 sm:$0xff]  }
 0x46c   : > { %v2757_v27 = vsel %vm1494_vm1, %v2749_v12, %v2750_v15  ;;  %v2507_v12 = vrot.slane %v12605_v16, 4 }
 0x46d   : > { %v2758_v43 = vsel %vm1587_vm2, %v12615_v22, %v2757_v27  ;;  %v12747_v48 = vpop.permute.xlu0 %2407  ;;  %v10097_v22 = vcombine.low %v2754_v10, %v2756_v3  ;;  %v2514_v27 = vsel %vm1522_vm8, %v12589_v21, %v2513_v60  ;;  %v2520_v10 = vsel %vm1522_vm8, %v12636_v32, %v2519_v14 }
 0x46e   : > { %2440 = vst.msk [vmem:[#allocation2 + $0x5c] sm:$0xf] %vm1486_vm0, %v12747_v48  ;;  %v10101_v39 = vcombine.high %v2758_v43, %v2760_v33  ;;  %v10100_v56 = vcombine.low %v2758_v43, %v2760_v33  ;;  %v2515_v18 = vsel %vm1494_vm1, %v2507_v12, %v2508_v28  ;;  %v2457_v32 = vrot.slane %v12594_v25, 4  ;;  %v11541_v12 = vld [vmem:[#allocation2 + $0x158] ss:$12 sps:$4 sm:$0xff]  }
 0x470   : > { %3271 = vmatprep.subr.bf16.mxu1 %v10101_v39  ;;  %v2458_v39 = vrot.slane %v12695_v54, 4  ;;  %v2459_v54 = vrot.slane %v12609_v17, 4 }
 0x471   : > { %v12753_v19 = vpop.permute.xlu0 %2599  ;;  %3272 = vmatpush1.bf16.msra.mxu1 %v10100_v56  ;;  %v2464_v56 = vrot.slane %v12719_v0, 4 }
 0x472   : > { %2632 = vst.msk [vmem:[#allocation2 + $0x11c] sm:$0xf] %vm1486_vm0, %v12753_v19  ;;  %3273 = vmatprep.subr.bf16.mxu1 %v10098_v4  ;;  %v2516_v4 = vsel %vm1522_vm8, %v12605_v16, %v2515_v18  ;;  %v2465_v28 = vsel %vm1494_vm1, %v2457_v32, %v2458_v39  ;;  %v11543_v39 = vld [vmem:[#allocation2 + $0x140] ss:$12 sps:$4 sm:$0xff]  }
 0x473   : > { %v10068_v5 = vcombine.high %v2514_v27, %v2516_v4  ;;  %v10067_v44 = vcombine.low %v2514_v27, %v2516_v4  ;;  %v2466_v14 = vsel %vm1509_vm7, %v12594_v25, %v2465_v28  ;;  %v11542_v27 = vld [vmem:[#allocation2 + $0x98] ss:$12 sps:$4 sm:$0xff]  }
 0x475   : > { %v2500_v13 = vpop.permute.xlu0 %2499  ;;  %3274 = vmatpush1.bf16.msra.mxu1 %v10097_v22  ;;  %v12792_v22 = vld [vmem:[%s11879_s21 + $0x20] ss:$12 sps:$4 sm:$0xff]  }
 0x476   : > { %v2510_v15 = vrot.slane %v2500_v13, 4  ;;  %2534 = vst.msk [vmem:[#allocation2 + $0xb0] sm:$0xf] %vm1486_vm0, %v2500_v13  ;;  %10611 = vmatprep.subr.bf16.mxu1 %v11538_v11  ;;  %v2467_v13 = vsel %vm1494_vm1, %v2459_v54, %v2460_v29 }
 0x477   : > { %v2468_v25 = vsel %vm1509_vm7, %v12609_v17, %v2467_v13 }
 0x478   : > { %v2517_v35 = vsel %vm1494_vm1, %v2509_v52, %v2510_v15  ;;  %10103 = vmatmul.mubr.msk.bf16.vlgmr.msra.gmra.mxu1 %vm3199_vm12, %v12759_v6  ;;  %v12800_v52 = vpop.permute.xlu1 %2689 }
 0x479   : > { %v2518_v33 = vsel %vm1522_vm8, %v12620_v23, %v2517_v35  ;;  %v12779_v43 = vpop.permute.xlu0 %2395  ;;  %3301 = vmatprep.mubr.bf16.mxu1 %v11835_v41  ;;  %v2463_v23 = vrot.slane %v12642_v34, 4  ;;  %v11547_v13 = vld [vmem:[#allocation2 + $0x110] ss:$12 sps:$4 sm:$0xff]  }
 0x47a   : > { %2434 = vst.msk [vmem:[#allocation2 + $0x38] sm:$0xf] %vm1486_vm0, %v12779_v43  ;;  %v10071_v3 = vcombine.high %v2518_v33, %v2520_v10  ;;  %v10070_v21 = vcombine.low %v2518_v33, %v2520_v10  ;;  %v2416_v10 = vrot.slane %v12747_v48, 4  ;;  %v2413_v48 = vrot.slane %v12628_v26, 4 }
 0x47b   : > { %v2471_v16 = vsel %vm1494_vm1, %v2463_v23, %v2464_v56  ;;  %v2409_v23 = vrot.slane %v12684_v51, 4 }
 0x47c   : > { %3206 = vmatprep.subr.bf16.mxu0 %v10071_v3  ;;  %v2472_v15 = vsel %vm1509_vm7, %v12642_v34, %v2471_v16  ;;  %v2415_v34 = vrot.slane %v12650_v36, 4  ;;  %v12821_v29 = vpop.permute.xlu1 %2681 }
 0x47d   : > { %v2452_v0 = vpop.permute.xlu0 %2451  ;;  %v11540_v8 = vld [vmem:[#allocation2 + $0xb0] ss:$12 sps:$4 sm:$0xff]   ;;  %3207 = vmatpush1.bf16.msra.mxu0 %v10070_v21  ;;  %v2410_v21 = vrot.slane %v12779_v43, 4  ;;  %v11545_v43 = vld [vmem:[#allocation2 + $0x128] ss:$12 sps:$4 sm:$0xff]  }
 0x47e   : > { %v2462_v11 = vrot.slane %v2452_v0, 4  ;;  %2486 = vst.msk [vmem:[#allocation2 + $0x80] sm:$0xf] %vm1486_vm0, %v2452_v0  ;;  %3208 = vmatprep.subr.bf16.mxu0 %v10068_v5  ;;  %10612 = vmatpush3.bf16.msra.mxu1 %v11540_v8  ;;  %v2423_v17 = vsel %vm1494_vm1, %v2415_v34, %v2416_v10  ;;  %v10061_v0 = vcombine.low %v2466_v14, %v2468_v25 }
 0x47f   : > { %10613 = vmatprep.subr.bf16.mxu1 %v11541_v12  ;;  %v2417_v8 = vsel %vm1494_vm1, %v2409_v23, %v2410_v21  ;;  %v2424_v28 = vsel %vm1496_vm9, %v12650_v36, %v2423_v17  ;;  %v2704_v21 = vrot.slane %v12711_v62, 4 }
 0x480   : > { %v2469_v60 = vsel %vm1494_vm1, %v2461_v9, %v2462_v11  ;;  %10104 = vmatmul.mubr.msk.bf16.gmra.mxu1 %vm3199_vm12, %v12792_v22  ;;  %v12840_v36 = vpop.permute.xlu1 %2641 }
 0x481   : > { %v2470_v18 = vsel %vm1509_vm7, %v12624_v24, %v2469_v60  ;;  %v2400_v35 = vpop.permute.xlu0 %2399  ;;  %3209 = vmatpush1.bf16.msra.mxu0 %v10067_v44  ;;  %3344 = vmatprep.mubr.bf16.mxu1 %v12613_v20  ;;  %v2411_v24 = vrot.slane %v12697_v55, 4  ;;  %v10062_v20 = vcombine.high %v2466_v14, %v2468_v25  ;;  %v11546_v44 = vld [vmem:[#allocation2 + $0x68] ss:$12 sps:$4 sm:$0xff]   ;;  %v2702_v25 = vrot.slane %v12678_v50, 4 }
 0x482   : > { %v2412_v33 = vrot.slane %v2400_v35, 4  ;;  %2436 = vst.msk [vmem:[#allocation2 + $0x44] sm:$0xf] %vm1486_vm0, %v2400_v35  ;;  %v10065_v56 = vcombine.high %v2470_v18, %v2472_v15  ;;  %v10064_v3 = vcombine.low %v2470_v18, %v2472_v15  ;;  %10614 = vmatpush3.bf16.msra.mxu1 %v11542_v27  ;;  %v2418_v15 = vsel %vm1496_vm9, %v12684_v51, %v2417_v8 }
 0x483   : > { %10615 = vmatprep.subr.bf16.mxu1 %v11543_v39  ;;  %v11772_v27 = vpack.c.bf16 %v12515_v57, %v12499_v45  ;;  %v11774_v45 = vpack.c.bf16 %v12485_v37, %v12475_v31  ;;  %v2697_v57 = vrot.slane %v12821_v29, 4  ;;  %v2700_v37 = vrot.slane %v12656_v40, 4  ;;  %v12876_v40 = vld [vmem:[%s11879_s21] ss:$12 sps:$4 sm:$0xff]  }
 0x484   : > { %3210 = vmatprep.subr.bf16.mxu0 %v10065_v56  ;;  %v2419_v5 = vsel %vm1494_vm1, %v2411_v24, %v2412_v33  ;;  %v2701_v33 = vrot.slane %v12800_v52, 4  ;;  %v12851_v39 = vpop.permute.xlu1 %2633 }
 0x485   : > { %v2404_v4 = vpop.permute.xlu0 %2403  ;;  %v11544_v32 = vld [vmem:[#allocation2 + $0x80] ss:$12 sps:$4 sm:$0xff]   ;;  %3211 = vmatpush1.bf16.msra.mxu0 %v10064_v3  ;;  %v2420_v16 = vsel %vm1496_vm9, %v12697_v55, %v2419_v5  ;;  %v11773_v3 = vpack.c.bf16 %v12517_v59, %v12501_v47  ;;  %v2698_v47 = vrot.slane %v12658_v42, 4  ;;  %v11775_v59 = vpack.c.bf16 %v12487_v38, %v12473_v30  ;;  %v11555_v5 = vld [vmem:[#allocation2 + $0x8] ss:$12 sps:$4 sm:$0xff]  }
 0x486   : > { %v2414_v54 = vrot.slane %v2404_v4, 4  ;;  %2438 = vst.msk [vmem:[#allocation2 + $0x50] sm:$0xf] %vm1486_vm0, %v2404_v4  ;;  %3212 = vmatprep.subr.bf16.mxu0 %v10062_v20  ;;  %10616 = vmatpush3.bf16.msra.mxu1 %v11544_v32  ;;  %v10056_v55 = vcombine.high %v2418_v15, %v2420_v16  ;;  %v10055_v35 = vcombine.low %v2418_v15, %v2420_v16  ;;  %v11553_v4 = vld [vmem:[#allocation2 + $0x20] ss:$12 sps:$4 sm:$0xff]   ;;  %v2653_v30 = vrot.slane %v12840_v36, 4 }
 0x487   : > { %10617 = vmatprep.subr.bf16.mxu1 %v11545_v43  ;;  %v2709_v20 = vsel %vm1494_vm1, %v2701_v33, %v2702_v25  ;;  %v2705_v32 = vsel %vm1494_vm1, %v2697_v57, %v2698_v47  ;;  %v12900_v57 = vld [vmem:[%s11879_s21 + $0x18] ss:$12 sps:$4 sm:$0xff]  }
 0x488   : > { %v2421_v9 = vsel %vm1494_vm1, %v2413_v48, %v2414_v54  ;;  %v12866_v50 = vpop.permute.xlu1 %2593  ;;  %v2710_v62 = vsel %vm1574_vm4, %v12800_v52, %v2709_v20  ;;  %v2654_v52 = vrot.slane %v12689_v53, 4  ;;  %v2706_v16 = vsel %vm1574_vm4, %v12821_v29, %v2705_v32 }
 0x489   : > { %v2422_v11 = vsel %vm1496_vm9, %v12628_v26, %v2421_v9  ;;  %v12834_v12 = vpop.permute.xlu0 %2591  ;;  %3213 = vmatpush1.bf16.msra.mxu0 %v10061_v0  ;;  %v11551_v56 = vld [vmem:[#allocation2 + $0x38] ss:$12 sps:$4 sm:$0xff]   ;;  %v11556_v0 = vld [vmem:[#allocation2 + $0x1a0] ss:$12 sps:$4 sm:$0xff]   ;;  %v12881_v9 = vld [vmem:[%s11879_s21 + $0x1c] ss:$12 sps:$4 sm:$0xff]  }
 0x48a   : > { %2628 = vst.msk [vmem:[#allocation2 + $0x104] sm:$0xf] %vm1486_vm0, %v12834_v12  ;;  %v10059_v60 = vcombine.high %v2422_v11, %v2424_v28  ;;  %v10058_v14 = vcombine.low %v2422_v11, %v2424_v28  ;;  %10618 = vmatpush3.bf16.msra.mxu1 %v11546_v44  ;;  %v2656_v28 = vrot.slane %v12727_v2, 4  ;;  %v2649_v11 = vrot.slane %v12851_v39, 4  ;;  %v11560_v2 = vld [vmem:[#allocation2 + $0x188] ss:$12 sps:$4 sm:$0xff]  }
 0x48b   : > { %10619 = vmatprep.subr.bf16.mxu1 %v11547_v13  ;;  %v2661_v53 = vsel %vm1494_vm1, %v2653_v30, %v2654_v52 }
 0x48c   : > { %3214 = vmatprep.subr.bf16.mxu0 %v10059_v60  ;;  %v2586_v60 = vpop.permute.xlu1 %2585 }
 0x48d   : > { %v12842_v26 = vpop.permute.xlu0 %2551  ;;  %v11548_v18 = vld [vmem:[#allocation2 + $0x50] ss:$12 sps:$4 sm:$0xff]   ;;  %3215 = vmatpush1.bf16.msra.mxu0 %v10058_v14  ;;  %v2601_v20 = vrot.slane %v2586_v60, 4 }
 0x48e   : > { %2584 = vst.msk [vmem:[#allocation2 + $0xec] sm:$0xf] %vm1486_vm0, %v12842_v26  ;;  %3216 = vmatprep.subr.bf16.mxu0 %v10056_v55  ;;  %10620 = vmatpush3.bf16.msra.mxu1 %v11548_v18  ;;  %v2650_v18 = vrot.slane %v12669_v46, 4  ;;  %v2605_v46 = vrot.slane %v12866_v50, 4 }
 0x491   : > { %v12848_v51 = vpop.permute.xlu0 %2543  ;;  %v11550_v10 = vld [vmem:[#allocation2 + $0xf8] ss:$12 sps:$4 sm:$0xff]   ;;  %3217 = vmatpush1.bf16.msra.mxu0 %v10055_v35  ;;  %v2652_v35 = vrot.slane %v12676_v49, 4  ;;  %v2606_v49 = vrot.slane %v12701_v58, 4 }
 0x492   : > { %2580 = vst.msk [vmem:[#allocation2 + $0xd4] sm:$0xf] %vm1486_vm0, %v12848_v51  ;;  %3218 = vmatprep.subr.bf16.mxu0 %v11772_v27  ;;  %10621 = vmatprep.subr.bf16.mxu1 %v11550_v10  ;;  %v2662_v27 = vsel %vm1561_vm3, %v12840_v36, %v2661_v53  ;;  %v2657_v10 = vsel %vm1494_vm1, %v2649_v11, %v2650_v18 }
 0x493   : > { %10622 = vmatpush3.bf16.msra.mxu1 %v11551_v56  ;;  %v2613_v47 = vsel %vm1494_vm1, %v2605_v46, %v2606_v49  ;;  %v3436_v46 = vld [vmem:[%s12009_s24 + $0xd0] sm:$0xff]  ;;  %v3430_v49 = vld [vmem:[%s12009_s24 + $0xa0] sm:$0xff] }
 0x495   : > { %v2694_v34 = vpop.permute.xlu0 %2693  ;;  %v11552_v24 = vld [vmem:[#allocation2 + $0xe0] ss:$12 sps:$4 sm:$0xff]   ;;  %3219 = vmatpush1.bf16.msra.mxu0 %v11773_v3 }
 0x496   : > { %v2703_v48 = vrot.slane %v2694_v34, 4  ;;  %3220 = vmatprep.subr.bf16.mxu0 %v11774_v45  ;;  %10623 = vmatprep.subr.bf16.mxu1 %v11552_v24  ;;  %v2608_v24 = vrot.slane %v12753_v19, 4  ;;  %v2614_v19 = vsel %vm1548_vm6, %v12866_v50, %v2613_v47  ;;  %v3421_v47 = vld [vmem:[%s12009_s24 + $0x58] sm:$0xff] }
 0x497   : > { %10624 = vmatpush3.bf16.msra.mxu1 %v11553_v4 }
 0x498   : > { %v2711_v31 = vsel %vm1494_vm1, %v2703_v48, %v2704_v21  ;;  %v2658_v21 = vsel %vm1561_vm3, %v12851_v39, %v2657_v10  ;;  %v3439_v10 = vld [vmem:[%s12009_s24 + $0xe8] sm:$0xff] }
 0x499   : > { %v2712_v23 = vsel %vm1574_vm4, %v2694_v34, %v2711_v31  ;;  %v2686_v42 = vpop.permute.xlu0 %2685  ;;  %v11554_v17 = vld [vmem:[#allocation2 + $0xc8] ss:$12 sps:$4 sm:$0xff]   ;;  %3221 = vmatpush1.bf16.msra.mxu0 %v11775_v59  ;;  %v2546_v34 = vpop.permute.xlu1 %2545 }
 0x49a   : > { %v2699_v38 = vrot.slane %v2686_v42, 4  ;;  %v10095_v54 = vcombine.high %v2710_v62, %v2712_v23  ;;  %v10094_v43 = vcombine.low %v2710_v62, %v2712_v23  ;;  %10625 = vmatprep.subr.bf16.mxu1 %v11554_v17  ;;  %v2557_v32 = vrot.slane %v2546_v34, 4 }
 0x49b   : > { %10626 = vmatpush3.bf16.msra.mxu1 %v11555_v5 }
 0x49c   : > { %v2707_v8 = vsel %vm1494_vm1, %v2699_v38, %v2700_v37  ;;  %3222 = vmatprep.subr.bf16.mxu0 %v10095_v54  ;;  %11153 = vmatprep.subr.bf16.mxu1 %v11556_v0  ;;  %v2602_v37 = vrot.slane %v12706_v61, 4  ;;  %v2604_v61 = vrot.slane %v12834_v12, 4  ;;  %v2558_v54 = vrot.slane %v12713_v63, 4 }
 0x49d   : > { %v2708_v44 = vsel %vm1574_vm4, %v2686_v42, %v2707_v8  ;;  %v2646_v13 = vpop.permute.xlu0 %2645  ;;  %3223 = vmatpush2.bf16.msra.mxu0 %v10094_v43  ;;  %v2538_v17 = vpop.permute.xlu1 %2537 }
 0x49e   : > { %v2655_v14 = vrot.slane %v2646_v13, 4  ;;  %v10092_v15 = vcombine.high %v2706_v16, %v2708_v44  ;;  %v10091_v55 = vcombine.low %v2706_v16, %v2708_v44  ;;  %3345 = vmatmul.mubr.bf16.vlgmr.msra.gmra.mxu1 %v12876_v40  ;;  %v2609_v39 = vsel %vm1494_vm1, %v2601_v20, %v2602_v37  ;;  %v3424_v20 = vld [vmem:[%s12009_s24 + $0x70] sm:$0xff]  ;;  %v3417_v37 = vld [vmem:[%s12009_s24 + $0x38] sm:$0xff] }
 0x49f   : > { %11154 = vmatpush3.bf16.msra.mxu1 %v11556_v0  ;;  %3352 = vmatprep.mubr.bf16.mxu1 %v12881_v9  ;;  %v2610_v50 = vsel %vm1548_vm6, %v2586_v60, %v2609_v39  ;;  %v2565_v43 = vsel %vm1494_vm1, %v2557_v32, %v2558_v54  ;;  %v2553_v0 = vrot.slane %v2538_v17, 4  ;;  %v2554_v44 = vrot.slane %v12721_v1, 4  ;;  %v3414_v39 = vld [vmem:[%s12009_s24 + $0x20] sm:$0xff]  ;;  %v3413_v32 = vld [vmem:[%s12009_s24 + $0x18] sm:$0xff] }
 0x4a0   : > { %v2663_v29 = vsel %vm1494_vm1, %v2655_v14, %v2656_v28  ;;  %11155 = vmatprep.subr.bf16.mxu1 %v11560_v2  ;;  %3224 = vmatprep.subr.bf16.mxu0 %v10092_v15  ;;  %v2560_v28 = vrot.slane %v12842_v26, 4  ;;  %v2556_v14 = vrot.slane %v12848_v51, 4  ;;  %v3473_v54 = vld [vmem:[%s12009_s24 + $0x1f8] sm:$0xff] }
 0x4a1   : > { %v2664_v33 = vsel %vm1561_vm3, %v2646_v13, %v2663_v29  ;;  %v2638_v56 = vpop.permute.xlu0 %2637  ;;  %3225 = vmatpush2.bf16.msra.mxu0 %v10091_v55  ;;  %v2566_v13 = vsel %vm1535_vm5, %v2546_v34, %v2565_v43  ;;  %v2561_v53 = vsel %vm1494_vm1, %v2553_v0, %v2554_v44  ;;  %v3429_v34 = vld [vmem:[%s12009_s24 + $0x98] sm:$0xff]  ;;  %v3471_v43 = vld [vmem:[%s12009_s24 + $0x1e8] sm:$0xff]  ;;  %v3486_v0 = vld [vmem:[%s12009_s24 + $0x260] sm:$0xff] }
 0x4a2   : > { %v2651_v3 = vrot.slane %v2638_v56, 4  ;;  %v10089_v25 = vcombine.high %v2662_v27, %v2664_v33  ;;  %v10088_v45 = vcombine.low %v2662_v27, %v2664_v33  ;;  %v2562_v18 = vsel %vm1535_vm5, %v2538_v17, %v2561_v53  ;;  %v3440_v27 = vld [vmem:[%s12009_s24 + $0xf0] sm:$0xff]  ;;  %v3438_v33 = vld [vmem:[%s12009_s24 + $0xe0] sm:$0xff]  ;;  %v3411_v17 = vld [vmem:[%s12009_s24 + $0x8] sm:$0xff] }
 0x4a3   : > { %11156 = vmatpush3.bf16.msra.mxu1 %v11560_v2  ;;  %v3467_v44 = vld [vmem:[%s12009_s24 + $0x1c8] sm:$0xff]  ;;  %v3481_v53 = vld [vmem:[%s12009_s24 + $0x238] sm:$0xff] }
 0x4a4   : > { %v2659_v36 = vsel %vm1494_vm1, %v2651_v3, %v2652_v35  ;;  %3226 = vmatprep.subr.bf16.mxu0 %v10089_v25  ;;  %v3441_v35 = vld [vmem:[%s12009_s24 + $0xf8] sm:$0xff]  ;;  %v3435_v3 = vld [vmem:[%s12009_s24 + $0xc8] sm:$0xff]  ;;  %v3432_v25 = vld [vmem:[%s12009_s24 + $0xb0] sm:$0xff] }
 0x4a5   : > { %v2660_v48 = vsel %vm1561_vm3, %v2638_v56, %v2659_v36  ;;  %v2598_v4 = vpop.permute.xlu0 %2597  ;;  %3227 = vmatpush2.bf16.msra.mxu0 %v10088_v45  ;;  %v3437_v56 = vld [vmem:[%s12009_s24 + $0xd8] sm:$0xff]  ;;  %v3431_v45 = vld [vmem:[%s12009_s24 + $0xa8] sm:$0xff]  ;;  %v3428_v36 = vld [vmem:[%s12009_s24 + $0x90] sm:$0xff] }
 0x4a6   : > { %v2607_v59 = vrot.slane %v2598_v4, 4  ;;  %v10086_v31 = vcombine.high %v2658_v21, %v2660_v48  ;;  %v10085_v58 = vcombine.low %v2658_v21, %v2660_v48  ;;  %3353 = vmatmul.mubr.bf16.gmra.mxu1 %v12900_v57  ;;  %v3425_v21 = vld [vmem:[%s12009_s24 + $0x78] sm:$0xff]  ;;  %v3423_v48 = vld [vmem:[%s12009_s24 + $0x68] sm:$0xff] }
 0x4a7   : > { %11157 = vmatprep.mubr.msk.bf16.mxu1 %vm3199_vm12, %v12759_v6 }
 0x4a8   : > { %v2615_v62 = vsel %vm1494_vm1, %v2607_v59, %v2608_v24  ;;  %3228 = vmatprep.subr.bf16.mxu0 %v10086_v31  ;;  %v3427_v24 = vld [vmem:[%s12009_s24 + $0x88] sm:$0xff]  ;;  %v3420_v59 = vld [vmem:[%s12009_s24 + $0x50] sm:$0xff] }
 0x4a9   : > { %v2616_v23 = vsel %vm1548_vm6, %v2598_v4, %v2615_v62  ;;  %v2590_v42 = vpop.permute.xlu0 %2589  ;;  %3229 = vmatpush2.bf16.msra.mxu0 %v10085_v58  ;;  %v3422_v4 = vld [vmem:[%s12009_s24 + $0x60] sm:$0xff]  ;;  %v3419_v31 = vld [vmem:[%s12009_s24 + $0x48] sm:$0xff]  ;;  %v3416_v62 = vld [vmem:[%s12009_s24 + $0x30] sm:$0xff] }
 0x4aa   : > { %v2603_v30 = vrot.slane %v2590_v42, 4  ;;  %v10083_v38 = vcombine.high %v2614_v19, %v2616_v23  ;;  %v10082_v5 = vcombine.low %v2614_v19, %v2616_v23  ;;  %v3418_v58 = vld [vmem:[%s12009_s24 + $0x40] sm:$0xff]  ;;  %v3415_v19 = vld [vmem:[%s12009_s24 + $0x28] sm:$0xff]  ;;  %v3412_v23 = vld [vmem:[%s12009_s24 + $0x10] sm:$0xff] }
 0x4ac   : > { %v2611_v6 = vsel %vm1494_vm1, %v2603_v30, %v2604_v61  ;;  %3230 = vmatprep.subr.bf16.mxu0 %v10083_v38  ;;  %v3490_v61 = vld [vmem:[%s12009_s24 + $0x280] sm:$0xf]  ;;  %v3489_v38 = vld [vmem:[%s12009_s24 + $0x278] sm:$0xff] }
 0x4ad   : > { %v2612_v52 = vsel %vm1548_vm6, %v2590_v42, %v2611_v6  ;;  %v2550_v8 = vpop.permute.xlu0 %2549  ;;  %3231 = vmatpush2.bf16.msra.mxu0 %v10082_v5  ;;  %v3491_v42 = vld [vmem:[%s12009_s24 + $0x288] sm:$0xf]  ;;  %v3410_v30 = vld [vmem:[%s12009_s24] sm:$0xff]  ;;  %v3488_v5 = vld [vmem:[%s12009_s24 + $0x270] sm:$0xff] }
 0x4ae   : > { %v2559_v12 = vrot.slane %v2550_v8, 4  ;;  %v10080_v16 = vcombine.high %v2610_v50, %v2612_v52  ;;  %v10079_v11 = vcombine.low %v2610_v50, %v2612_v52  ;;  %11158 = vmatmul.mubr.msk.bf16.vlgmr.msra.gmra.mxu1 %vm3199_vm12, %v12792_v22  ;;  %10107 = vmatprep.subr.msk.mxu1 %vm1494_vm1, %v3491_v42  ;;  %v3472_v6 = vld [vmem:[%s12009_s24 + $0x1f0] sm:$0xff]  ;;  %v3487_v50 = vld [vmem:[%s12009_s24 + $0x268] sm:$0xff]  ;;  %v3470_v52 = vld [vmem:[%s12009_s24 + $0x1e0] sm:$0xff] }
 0x4af   : > { %3663 = vmatprep.mubr.f32.mxu1 %v11836_v7  ;;  %10108 = vmatpush1.msk.msra.mxu1 %vm1494_vm1, %v3490_v61 }
 0x4b0   : > { %v2567_v63 = vsel %vm1494_vm1, %v2559_v12, %v2560_v28  ;;  %3232 = vmatprep.subr.bf16.mxu0 %v10080_v16  ;;  %3615 = vmatprep.subr.mxu1 %v3489_v38  ;;  %v3484_v28 = vld [vmem:[%s12009_s24 + $0x250] sm:$0xff]  ;;  %v3469_v12 = vld [vmem:[%s12009_s24 + $0x1d8] sm:$0xff] }
 0x4b1   : > { %v2568_v26 = vsel %vm1535_vm5, %v2550_v8, %v2567_v63  ;;  %v2542_v60 = vpop.permute.xlu0 %2541  ;;  %3233 = vmatpush2.bf16.msra.mxu0 %v10079_v11  ;;  %3616 = vmatpush1.msra.mxu1 %v3488_v5  ;;  %v3485_v8 = vld [vmem:[%s12009_s24 + $0x258] sm:$0xff]  ;;  %v3468_v16 = vld [vmem:[%s12009_s24 + $0x1d0] sm:$0xff]  ;;  %v3483_v11 = vld [vmem:[%s12009_s24 + $0x248] sm:$0xff] }
 0x4b2   : > { %v2555_v15 = vrot.slane %v2542_v60, 4  ;;  %v10077_v1 = vcombine.high %v2566_v13, %v2568_v26  ;;  %v10076_v22 = vcombine.low %v2566_v13, %v2568_v26  ;;  %3617 = vmatprep.subr.mxu1 %v3487_v50  ;;  %v3482_v63 = vld [vmem:[%s12009_s24 + $0x240] sm:$0xff]  ;;  %v3480_v26 = vld [vmem:[%s12009_s24 + $0x230] sm:$0xff] }
 0x4b3   : > { %3618 = vmatpush1.msra.mxu1 %v3486_v0  ;;  %v3466_v13 = vld [vmem:[%s12009_s24 + $0x1c0] sm:$0xff] }
 0x4b4   : > { %v2563_v55 = vsel %vm1494_vm1, %v2555_v15, %v2556_v14  ;;  %3234 = vmatprep.subr.bf16.mxu0 %v10077_v1  ;;  %3619 = vmatprep.subr.mxu1 %v3485_v8  ;;  %v3464_v14 = vld [vmem:[%s12009_s24 + $0x1b0] sm:$0xff]  ;;  %v3479_v15 = vld [vmem:[%s12009_s24 + $0x228] sm:$0xff] }
 0x4b5   : > { %v2564_v2 = vsel %vm1535_vm5, %v2542_v60, %v2563_v55  ;;  %3235 = vmatpush2.bf16.msra.mxu0 %v10076_v22  ;;  %3620 = vmatpush1.msra.mxu1 %v3484_v28  ;;  %v3465_v60 = vld [vmem:[%s12009_s24 + $0x1b8] sm:$0xff]  ;;  %v3463_v1 = vld [vmem:[%s12009_s24 + $0x1a8] sm:$0xff]  ;;  %v3478_v22 = vld [vmem:[%s12009_s24 + $0x220] sm:$0xff] }
 0x4b6   : > { %v10074_v29 = vcombine.high %v2562_v18, %v2564_v2  ;;  %v10073_v51 = vcombine.low %v2562_v18, %v2564_v2  ;;  %3621 = vmatprep.subr.mxu1 %v3483_v11  ;;  %v3462_v55 = vld [vmem:[%s12009_s24 + $0x1a0] sm:$0xff]  ;;  %v3477_v18 = vld [vmem:[%s12009_s24 + $0x218] sm:$0xff] }
 0x4b7   : > { %3622 = vmatpush1.msra.mxu1 %v3482_v63  ;;  %v3461_v2 = vld [vmem:[%s12009_s24 + $0x198] sm:$0xff] }
 0x4b8   : > { %3236 = vmatprep.subr.bf16.mxu0 %v10074_v29  ;;  %3623 = vmatprep.subr.mxu1 %v3481_v53  ;;  %v3476_v29 = vld [vmem:[%s12009_s24 + $0x210] sm:$0xff]  ;;  %v3739_v63 = vld [vmem:[%s11969_s12 + $0x158] sm:$0xff] }
 0x4b9   : > { %3237 = vmatpush2.bf16.msra.mxu0 %v10073_v51  ;;  %3624 = vmatpush1.msra.mxu1 %v3480_v26  ;;  %v3460_v51 = vld [vmem:[%s12009_s24 + $0x190] sm:$0xff] }
 0x4ba   : > { %3510 = vmatprep.subr.mxu0 %v3441_v35  ;;  %3625 = vmatprep.subr.mxu1 %v3479_v15  ;;  %v3475_v35 = vld [vmem:[%s12009_s24 + $0x208] sm:$0xff]  ;;  %v3738_v26 = vld [vmem:[%s11969_s12 + $0x150] sm:$0xff] }
 0x4bb   : > { %3626 = vmatpush1.msra.mxu1 %v3478_v22 }
 0x4bc   : > { %3239 = vmatmul.mubr.bf16.vlgmr.msra.gmra.mxu0 %v12876_v40  ;;  %v3434_v40 = vld [vmem:[%s12009_s24 + $0xc0] sm:$0xff]  ;;  %3627 = vmatprep.subr.mxu1 %v3477_v18 }
 0x4bd   : > { %3248 = vmatprep.mubr.bf16.mxu0 %v12881_v9  ;;  %3511 = vmatpush1.msra.mxu0 %v3440_v27  ;;  %v3433_v9 = vld [vmem:[%s12009_s24 + $0xb8] sm:$0xff]  ;;  %v3459_v27 = vld [vmem:[%s12009_s24 + $0x188] sm:$0xff] }
 0x4be   : > { %3512 = vmatprep.subr.mxu0 %v3439_v10  ;;  %3628 = vmatpush1.msra.mxu1 %v3476_v29  ;;  %v3474_v10 = vld [vmem:[%s12009_s24 + $0x200] sm:$0xff]  ;;  %v13046_v11 = vpop.permute.xlu0 %2868 }
 0x4bf   : > { %3513 = vmatpush1.msra.mxu0 %v3438_v33  ;;  %3629 = vmatprep.subr.mxu1 %v3475_v35  ;;  %v3458_v33 = vld [vmem:[%s12009_s24 + $0x180] sm:$0xff] }
 0x4c0   : > { %3514 = vmatprep.subr.mxu0 %v3437_v56  ;;  %3630 = vmatpush1.msra.mxu1 %v3474_v10  ;;  %v3742_v56 = vld [vmem:[%s11969_s12 + $0x170] sm:$0xff]  ;;  %v3732_v29 = vld [vmem:[%s11969_s12 + $0x120] sm:$0xff] }
 0x4c1   : > { %3515 = vmatpush1.msra.mxu0 %v3436_v46  ;;  %v3457_v46 = vld [vmem:[%s12009_s24 + $0x178] sm:$0xff]  ;;  %3828 = vmatprep.subr.mxu1 %v3742_v56 }
 0x4c2   : > { %3516 = vmatprep.subr.mxu0 %v3435_v3  ;;  %v3456_v3 = vld [vmem:[%s12009_s24 + $0x170] sm:$0xff]  ;;  %v13070_v10 = vpop.permute.xlu0 %2878 }
 0x4c3   : > { %3517 = vmatpush1.msra.mxu0 %v3434_v40  ;;  %v3455_v40 = vld [vmem:[%s12009_s24 + $0x168] sm:$0xff] }
 0x4c4   : > { %3249 = vmatmul.mubr.bf16.gmra.mxu0 %v12900_v57  ;;  %3518 = vmatprep.subr.mxu0 %v3433_v9  ;;  %v3426_v57 = vld [vmem:[%s12009_s24 + $0x80] sm:$0xff] }
 0x4c5   : > { %3519 = vmatpush1.msra.mxu0 %v3432_v25  ;;  %v3454_v9 = vld [vmem:[%s12009_s24 + $0x160] sm:$0xff]  ;;  %v3453_v25 = vld [vmem:[%s12009_s24 + $0x158] sm:$0xff] }
 0x4c6   : > { %3520 = vmatprep.subr.mxu0 %v3431_v45  ;;  %v3452_v45 = vld [vmem:[%s12009_s24 + $0x150] sm:$0xff] }
 0x4c7   : > { %3521 = vmatpush1.msra.mxu0 %v3430_v49  ;;  %v3451_v49 = vld [vmem:[%s12009_s24 + $0x148] sm:$0xff] }
 0x4c8   : > { %3522 = vmatprep.subr.mxu0 %v3429_v34  ;;  %v3450_v34 = vld [vmem:[%s12009_s24 + $0x140] sm:$0xff] }
 0x4c9   : > { %3523 = vmatpush1.msra.mxu0 %v3428_v36  ;;  %v3449_v36 = vld [vmem:[%s12009_s24 + $0x138] sm:$0xff] }
 0x4ca   : > { %3524 = vmatprep.subr.mxu0 %v3427_v24  ;;  %v3448_v24 = vld [vmem:[%s12009_s24 + $0x130] sm:$0xff] }
 0x4cb   : > { %3525 = vmatpush1.msra.mxu0 %v3426_v57  ;;  %v3447_v57 = vld [vmem:[%s12009_s24 + $0x128] sm:$0xff] }
 0x4cc   : > { %3526 = vmatprep.subr.mxu0 %v3425_v21  ;;  %v3446_v21 = vld [vmem:[%s12009_s24 + $0x120] sm:$0xff] }
 0x4cd   : > { %3527 = vmatpush1.msra.mxu0 %v3424_v20  ;;  %v3445_v20 = vld [vmem:[%s12009_s24 + $0x118] sm:$0xff] }
 0x4ce   : > { %3528 = vmatprep.subr.mxu0 %v3423_v48  ;;  %v3444_v48 = vld [vmem:[%s12009_s24 + $0x110] sm:$0xff] }
 0x4cf   : > { %3529 = vmatpush1.msra.mxu0 %v3422_v4  ;;  %v3443_v4 = vld [vmem:[%s12009_s24 + $0x108] sm:$0xff] }
 0x4d0   : > { %3530 = vmatprep.subr.mxu0 %v3421_v47  ;;  %v3442_v47 = vld [vmem:[%s12009_s24 + $0x100] sm:$0xff] }
 0x4d1   : > { %3531 = vmatpush1.msra.mxu0 %v3420_v59  ;;  %v3817_v59 = vld [vmem:[%s11969_s12 + $0x3c8] sm:$0xf] }
 0x4d2   : > { %3532 = vmatprep.subr.mxu0 %v3419_v31 }
 0x4d3   : > { %3533 = vmatpush1.msra.mxu0 %v3418_v58 }
 0x4d4   : > { %3534 = vmatprep.subr.mxu0 %v3417_v37 }
 0x4d5   : > { %3535 = vmatpush1.msra.mxu0 %v3416_v62 }
 0x4d6   : > { %3536 = vmatprep.subr.mxu0 %v3415_v19 }
 0x4d7   : > { %3537 = vmatpush1.msra.mxu0 %v3414_v39 }
 0x4d8   : > { %3538 = vmatprep.subr.mxu0 %v3413_v32 }
 0x4d9   : > { %3539 = vmatpush1.msra.mxu0 %v3412_v23 }
 0x4da   : > { %3540 = vmatprep.subr.mxu0 %v3411_v17 }
 0x4db   : > { %3541 = vmatpush1.msra.mxu0 %v3410_v30 }
 0x4dc   : > { %3542 = vmatprep.subr.mxu0 %v3473_v54 }
 0x4dd   : > { %3543 = vmatpush2.msra.mxu0 %v3472_v6 }
 0x4de   : > { %3544 = vmatprep.subr.mxu0 %v3471_v43  ;;  %v2864_v43 = vpop.permute.xlu1 %2863 }
 0x4df   : > { %3545 = vmatpush2.msra.mxu0 %v3470_v52 }
 0x4e0   : > { %3546 = vmatprep.subr.mxu0 %v3469_v12 }
 0x4e1   : > { %3547 = vmatpush2.msra.mxu0 %v3468_v16  ;;  %v3741_v16 = vld [vmem:[%s11969_s12 + $0x168] sm:$0xff] }
 0x4e2   : > { %3548 = vmatprep.subr.mxu0 %v3467_v44  ;;  %v13058_v22 = vpop.permute.xlu1 %2873 }
 0x4e3   : > { %3549 = vmatpush2.msra.mxu0 %v3466_v13 }
 0x4e4   : > { %3550 = vmatprep.subr.mxu0 %v3465_v60 }
 0x4e5   : > { %3551 = vmatpush2.msra.mxu0 %v3464_v14  ;;  %v3736_v14 = vld [vmem:[%s11969_s12 + $0x140] sm:$0xff] }
 0x4e6   : > { %3552 = vmatprep.subr.mxu0 %v3463_v1  ;;  %v3735_v1 = vld [vmem:[%s11969_s12 + $0x138] sm:$0xff] }
 0x4e7   : > { %3553 = vmatpush2.msra.mxu0 %v3462_v55  ;;  %v3733_v55 = vld [vmem:[%s11969_s12 + $0x128] sm:$0xff] }
 0x4e8   : > { %3554 = vmatprep.subr.mxu0 %v3461_v2 }
 0x4e9   : > { %3555 = vmatpush2.msra.mxu0 %v3460_v51  ;;  %v3730_v51 = vld [vmem:[%s11969_s12 + $0x110] sm:$0xff] }
 0x4ea   : > { %3556 = vmatprep.subr.mxu0 %v3459_v27  ;;  %v3729_v27 = vld [vmem:[%s11969_s12 + $0x108] sm:$0xff] }
 0x4eb   : > { %3557 = vmatpush2.msra.mxu0 %v3458_v33  ;;  %v3727_v33 = vld [vmem:[%s11969_s12 + $0xf8] sm:$0xff] }
 0x4ec   : > { %3558 = vmatprep.subr.mxu0 %v3457_v46  ;;  %v3726_v46 = vld [vmem:[%s11969_s12 + $0xf0] sm:$0xff] }
 0x4ed   : > { %3559 = vmatpush2.msra.mxu0 %v3456_v3  ;;  %v3724_v3 = vld [vmem:[%s11969_s12 + $0xe0] sm:$0xff] }
 0x4ee   : > { %3560 = vmatprep.subr.mxu0 %v3455_v40 }
 0x4ef   : > { %3561 = vmatpush2.msra.mxu0 %v3454_v9 }
 0x4f0   : > { %3562 = vmatprep.subr.mxu0 %v3453_v25  ;;  %v3723_v25 = vld [vmem:[%s11969_s12 + $0xd8] sm:$0xff] }
 0x4f1   : > { %3563 = vmatpush2.msra.mxu0 %v3452_v45  ;;  %v3721_v45 = vld [vmem:[%s11969_s12 + $0xc8] sm:$0xff] }
 0x4f2   : > { %3564 = vmatprep.subr.mxu0 %v3451_v49 }
 0x4f3   : > { %3565 = vmatpush2.msra.mxu0 %v3450_v34  ;;  %v3720_v34 = vld [vmem:[%s11969_s12 + $0xc0] sm:$0xff] }
 0x4f4   : > { %3566 = vmatprep.subr.mxu0 %v3449_v36 }
 0x4f5   : > { %3567 = vmatpush2.msra.mxu0 %v3448_v24 }
 0x4f6   : > { %3568 = vmatprep.subr.mxu0 %v3447_v57  ;;  %v3718_v57 = vld [vmem:[%s11969_s12 + $0xb0] sm:$0xff] }
 0x4f7   : > { %3569 = vmatpush2.msra.mxu0 %v3446_v21 }
 0x4f8   : > { %3570 = vmatprep.subr.mxu0 %v3445_v20  ;;  %v3717_v20 = vld [vmem:[%s11969_s12 + $0xa8] sm:$0xff] }
 0x4f9   : > { %3571 = vmatpush2.msra.mxu0 %v3444_v48 }
 0x4fa   : > { %3572 = vmatprep.subr.mxu0 %v3443_v4  ;;  %v3715_v4 = vld [vmem:[%s11969_s12 + $0x98] sm:$0xff] }
 0x4fb   : > { %3573 = vmatpush2.msra.mxu0 %v3442_v47 }
 0x4fc   : > { %10113 = vmatprep.subr.msk.mxu0 %vm1494_vm1, %v3817_v59 }
 0x538   : > { %v13027_v31 = vpop.f32.mrf.mxu1 }
 0x53a   : > { %v13029_v58 = vpop.f32.mrf.mxu1 }
 0x53c   : > { %v13031_v37 = vpop.f32.mrf.mxu1 }
 0x53e   : > { %v13033_v62 = vpop.f32.mrf.mxu1 }
 0x540   : > { %v13035_v19 = vpop.f32.mrf.mxu1 }
 0x542   : > { %v13037_v39 = vpop.f32.mrf.mxu1 }
 0x544   : > { %v13039_v32 = vpop.f32.mrf.mxu1 }
 0x546   : > { %v13041_v23 = vpop.f32.mrf.mxu1 }
 0x55e   : > { %v10627_v42 = vpop.f32.mrf.mxu1 }
 0x560   : > { %v10628_v17 = vpop.f32.mrf.mxu1 }
 0x561   : > { %v10629_v6 = vadd.f32 %v10628_v17, %v10627_v42  ;;  %v3714_v42 = vld [vmem:[%s11969_s12 + $0x90] sm:$0xff] }
 0x562   : > { %v10630_v61 = vpop.f32.mrf.mxu1 }
 0x563   : > { %v3347_v8 = vadd.f32 %v10629_v6, %v2864_v43  ;;  %v3813_v6 = vld [vmem:[%s11969_s12 + $0x3a8] sm:$0xff] }
 0x564   : > { %v10631_v30 = vpop.f32.mrf.mxu1 }
 0x565   : > { %v10632_v52 = vadd.f32 %v10631_v30, %v10630_v61  ;;  %v3816_v61 = vld [vmem:[%s11969_s12 + $0x3c0] sm:$0xf] }
 0x566   : > { %v10633_v38 = vpop.f32.mrf.mxu1 }
 0x567   : > { %v3350_v53 = vadd.f32 %v10632_v52, %v13046_v11 }
 0x568   : > { %v10634_v5 = vpop.f32.mrf.mxu1 }
 0x569   : > { %v10635_v13 = vadd.f32 %v10634_v5, %v10633_v38  ;;  %v3814_v38 = vld [vmem:[%s11969_s12 + $0x3b0] sm:$0xff]  ;;  %v3711_v5 = vld [vmem:[%s11969_s12 + $0x78] sm:$0xff] }
 0x56a   : > { %v10636_v54 = vpop.f32.mrf.mxu1 }
 0x56b   : > { %v3355_v2 = vadd.f32 %v10635_v13, %v13058_v22  ;;  %v3808_v13 = vld [vmem:[%s11969_s12 + $0x380] sm:$0xff] }
 0x56c   : > { %v10637_v50 = vpop.f32.mrf.mxu1 }
 0x56d   : > { %v10638_v18 = vadd.f32 %v10637_v50, %v10636_v54  ;;  %v3709_v50 = vld [vmem:[%s11969_s12 + $0x68] sm:$0xff] }
 0x56e   : > { %v11159_v0 = vpop.f32.mrf.mxu1 }
 0x56f   : > { %v13067_v35 = vadd.f32 %v11159_v0, %v3355_v2  ;;  %v3358_v56 = vadd.f32 %v10638_v18, %v13070_v10  ;;  %v3708_v0 = vld [vmem:[%s11969_s12 + $0x60] sm:$0xff]  ;;  %v3805_v18 = vld [vmem:[%s11969_s12 + $0x368] sm:$0xff] }
 0x570   : > { %v3395_v28 = vpop.f32.mrf.mxu1 }
 0x571   : > { %v13043_v12 = vadd.f32 %v3395_v28, %v3347_v8  ;;  %v3811_v8 = vld [vmem:[%s11969_s12 + $0x398] sm:$0xff] }
 0x572   : > { %v11160_v44 = vpop.f32.mrf.mxu1 }
 0x573   : > { %10109 = vmatmul.mubr.msk.f32.vlgmr.msra.gmra.mxu1 %vm1975_vm11, %v13043_v12  ;;  %v13079_v9 = vadd.f32 %v11160_v44, %v3358_v56  ;;  %v3810_v44 = vld [vmem:[%s11969_s12 + $0x390] sm:$0xff] }
 0x574   : > { %3829 = vmatpush1.msra.mxu1 %v3741_v16  ;;  %v3398_v60 = vpop.f32.mrf.mxu1  ;;  %3669 = vmatprep.mubr.f32.mxu1 %v11836_v7 }
 0x575   : > { %v13055_v15 = vadd.f32 %v3398_v60, %v3350_v53  ;;  %3830 = vmatprep.subr.mxu1 %v3739_v63  ;;  %v3703_v63 = vld [vmem:[%s11969_s12 + $0x38] sm:$0xff]  ;;  %v3702_v60 = vld [vmem:[%s11969_s12 + $0x30] sm:$0xff] }
 0x576   : > { %3831 = vmatpush1.msra.mxu1 %v3738_v26 }
 0x577   : > { %3832 = vmatprep.subr.mxu1 %v3736_v14  ;;  %10110 = vmatmul.mubr.msk.f32.gmra.mxu1 %vm1975_vm11, %v13055_v15  ;;  %v3807_v14 = vld [vmem:[%s11969_s12 + $0x378] sm:$0xff] }
 0x578   : > { %3833 = vmatpush1.msra.mxu1 %v3735_v1  ;;  %3675 = vmatprep.mubr.f32.mxu1 %v11836_v7  ;;  %v3700_v1 = vld [vmem:[%s11969_s12 + $0x20] sm:$0xff] }
 0x579   : > { %3834 = vmatprep.subr.mxu1 %v3733_v55  ;;  %v3699_v55 = vld [vmem:[%s11969_s12 + $0x18] sm:$0xff] }
 0x57a   : > { %3835 = vmatpush1.msra.mxu1 %v3732_v29  ;;  %v3696_v29 = vld [vmem:[%s11969_s12] sm:$0xff] }
 0x57b   : > { %3836 = vmatprep.subr.mxu1 %v3730_v51  ;;  %10111 = vmatmul.mubr.msk.f32.gmra.mxu1 %vm1975_vm11, %v13067_v35  ;;  %v3804_v51 = vld [vmem:[%s11969_s12 + $0x360] sm:$0xff] }
 0x57c   : > { %3837 = vmatpush1.msra.mxu1 %v3729_v27  ;;  %3681 = vmatprep.mubr.f32.mxu1 %v11836_v7  ;;  %v3240_v40 = vpop.f32.mrf.mxu0  ;;  %v3790_v27 = vld [vmem:[%s11969_s12 + $0x2f0] sm:$0xff] }
 0x57d   : > { %3838 = vmatprep.subr.mxu1 %v3727_v33  ;;  %v3241_v36 = vadd.f32 %v3240_v40, %v2864_v43  ;;  %v3802_v33 = vld [vmem:[%s11969_s12 + $0x350] sm:$0xff]  ;;  %v3787_v40 = vld [vmem:[%s11969_s12 + $0x2d8] sm:$0xff] }
 0x57e   : > { %3839 = vmatpush1.msra.mxu1 %v3726_v46  ;;  %v3242_v49 = vpop.f32.mrf.mxu0 }
 0x57f   : > { %3840 = vmatprep.subr.mxu1 %v3724_v3  ;;  %10112 = vmatmul.mubr.msk.f32.gmra.mxu1 %vm1975_vm11, %v13079_v9  ;;  %v3243_v24 = vadd.f32 %v3242_v49, %v2864_v43  ;;  %v13093_v59 = vadd.f32 %v13027_v31, %v3241_v36  ;;  %v3801_v3 = vld [vmem:[%s11969_s12 + $0x348] sm:$0xff]  ;;  %v3798_v49 = vld [vmem:[%s11969_s12 + $0x330] sm:$0xff]  ;;  %v3796_v36 = vld [vmem:[%s11969_s12 + $0x320] sm:$0xff] }
 0x580   : > { %3841 = vmatpush1.msra.mxu1 %v3723_v25  ;;  %v3244_v21 = vpop.f32.mrf.mxu0  ;;  %v3786_v25 = vld [vmem:[%s11969_s12 + $0x2d0] sm:$0xff] }
 0x581   : > { %3842 = vmatprep.subr.mxu1 %v3721_v45  ;;  %v13089_v48 = vadd.f32 %v13029_v58, %v3243_v24  ;;  %v3712_v58 = vld [vmem:[%s11969_s12 + $0x80] sm:$0xff]  ;;  %v3245_v31 = vadd.f32 %v3244_v21, %v13046_v11  ;;  %v3781_v24 = vld [vmem:[%s11969_s12 + $0x2a8] sm:$0xff] }
 0x582   : > { %3843 = vmatpush1.msra.mxu1 %v3720_v34  ;;  %v3246_v47 = vpop.f32.mrf.mxu0  ;;  %v3783_v34 = vld [vmem:[%s11969_s12 + $0x2b8] sm:$0xff]  ;;  %v3793_v21 = vld [vmem:[%s11969_s12 + $0x308] sm:$0xff] }
 0x583   : > { %3844 = vmatprep.subr.mxu1 %v3718_v57  ;;  %v3247_v17 = vadd.f32 %v3246_v47, %v13046_v11  ;;  %3574 = vmatprep.mubr.f32.mxu0 %v13089_v48  ;;  %v13116_v16 = vadd.f32 %v13031_v37, %v3245_v31  ;;  %v3705_v11 = vld [vmem:[%s11969_s12 + $0x48] sm:$0xff]  ;;  %v3795_v57 = vld [vmem:[%s11969_s12 + $0x318] sm:$0xff]  ;;  %v3740_v31 = vld [vmem:[%s11969_s12 + $0x160] sm:$0xff] }
 0x584   : > { %3845 = vmatpush1.msra.mxu1 %v3717_v20  ;;  %3892 = vmatprep.mubr.f32.mxu1 %v13089_v48  ;;  %v3250_v30 = vpop.f32.mrf.mxu0  ;;  %v3778_v20 = vld [vmem:[%s11969_s12 + $0x290] sm:$0xff]  ;;  %v3777_v47 = vld [vmem:[%s11969_s12 + $0x288] sm:$0xff] }
 0x585   : > { %3846 = vmatprep.subr.mxu1 %v3715_v4  ;;  %v13105_v54 = vadd.f32 %v13033_v62, %v3247_v17  ;;  %3575 = vmatmul.mubr.f32.vlgmr.msra.gmra.mxu0 %v13093_v59  ;;  %v3706_v62 = vld [vmem:[%s11969_s12 + $0x50] sm:$0xff]  ;;  %v3251_v26 = vadd.f32 %v3250_v30, %v13058_v22  ;;  %v3792_v4 = vld [vmem:[%s11969_s12 + $0x300] sm:$0xff]  ;;  %v3775_v17 = vld [vmem:[%s11969_s12 + $0x278] sm:$0xff] }
 0x586   : > { %3847 = vmatpush1.msra.mxu1 %v3714_v42  ;;  %10114 = vmatpush1.msk.msra.mxu0 %vm1494_vm1, %v3816_v61  ;;  %v3252_v43 = vpop.f32.mrf.mxu0  ;;  %v3791_v42 = vld [vmem:[%s11969_s12 + $0x2f8] sm:$0xff]  ;;  %v3788_v30 = vld [vmem:[%s11969_s12 + $0x2e0] sm:$0xff] }
 0x587   : > { %3848 = vmatprep.subr.mxu1 %v3712_v58  ;;  %3933 = vmatprep.subr.mxu0 %v3814_v38  ;;  %v3253_v52 = vadd.f32 %v3252_v43, %v13058_v22  ;;  %v13136_v2 = vadd.f32 %v13035_v19, %v3251_v26  ;;  %v3789_v19 = vld [vmem:[%s11969_s12 + $0x2e8] sm:$0xff]  ;;  %v3743_v61 = vld [vmem:[%s11969_s12 + $0x178] sm:$0xff]  ;;  %v3774_v58 = vld [vmem:[%s11969_s12 + $0x270] sm:$0xff] }
 0x588   : > { %3849 = vmatpush1.msra.mxu1 %v3711_v5  ;;  %3934 = vmatpush1.msra.mxu0 %v3813_v6  ;;  %v3254_v28 = vpop.f32.mrf.mxu0  ;;  %v3772_v38 = vld [vmem:[%s11969_s12 + $0x260] sm:$0xff]  ;;  %v3771_v5 = vld [vmem:[%s11969_s12 + $0x258] sm:$0xff]  ;;  %v3785_v6 = vld [vmem:[%s11969_s12 + $0x2c8] sm:$0xff] }
 0x589   : > { %3850 = vmatprep.subr.mxu1 %v3709_v50  ;;  %3580 = vmatprep.mubr.f32.mxu0 %v13105_v54  ;;  %v13125_v37 = vadd.f32 %v13037_v39, %v3253_v52  ;;  %v3697_v39 = vld [vmem:[%s11969_s12 + $0x8] sm:$0xff]  ;;  %v3255_v56 = vadd.f32 %v3254_v28, %v13070_v10  ;;  %v3782_v52 = vld [vmem:[%s11969_s12 + $0x2b0] sm:$0xff]  ;;  %v3760_v26 = vld [vmem:[%s11969_s12 + $0x200] sm:$0xff] }
 0x58a   : > { %3851 = vmatpush1.msra.mxu1 %v3708_v0  ;;  %3935 = vmatprep.subr.mxu0 %v3811_v8  ;;  %v3256_v53 = vpop.f32.mrf.mxu0  ;;  %v3769_v50 = vld [vmem:[%s11969_s12 + $0x248] sm:$0xff]  ;;  %v3768_v0 = vld [vmem:[%s11969_s12 + $0x240] sm:$0xff]  ;;  %v3766_v8 = vld [vmem:[%s11969_s12 + $0x230] sm:$0xff] }
 0x58b   : > { %3852 = vmatprep.subr.mxu1 %v3706_v62  ;;  %3581 = vmatmul.mubr.f32.gmra.mxu0 %v13116_v16  ;;  %v3257_v22 = vadd.f32 %v3256_v53, %v13070_v10  ;;  %v3799_v10 = vld [vmem:[%s11969_s12 + $0x338] sm:$0xff]  ;;  %v13155_v45 = vadd.f32 %v13039_v32, %v3255_v56  ;;  %v3780_v32 = vld [vmem:[%s11969_s12 + $0x2a0] sm:$0xff]  ;;  %v3737_v43 = vld [vmem:[%s11969_s12 + $0x148] sm:$0xff] }
 0x58c   : > { %3853 = vmatpush1.msra.mxu1 %v3705_v11  ;;  %3936 = vmatpush1.msra.mxu0 %v3810_v44  ;;  %v3734_v62 = vld [vmem:[%s11969_s12 + $0x130] sm:$0xff]  ;;  %v3765_v28 = vld [vmem:[%s11969_s12 + $0x228] sm:$0xff]  ;;  %v3779_v11 = vld [vmem:[%s11969_s12 + $0x298] sm:$0xff] }
 0x58d   : > { %3854 = vmatprep.subr.mxu1 %v3703_v63  ;;  %3937 = vmatprep.subr.mxu0 %v3808_v13  ;;  %v13145_v46 = vadd.f32 %v13041_v23, %v3257_v22  ;;  %v3784_v23 = vld [vmem:[%s11969_s12 + $0x2c0] sm:$0xff]  ;;  %v3763_v44 = vld [vmem:[%s11969_s12 + $0x218] sm:$0xff]  ;;  %v3762_v13 = vld [vmem:[%s11969_s12 + $0x210] sm:$0xff] }
 0x58e   : > { %3855 = vmatpush1.msra.mxu1 %v3702_v60  ;;  %3938 = vmatpush1.msra.mxu0 %v3807_v14  ;;  %v3731_v63 = vld [vmem:[%s11969_s12 + $0x118] sm:$0xff]  ;;  %v3776_v53 = vld [vmem:[%s11969_s12 + $0x280] sm:$0xff]  ;;  %v3725_v22 = vld [vmem:[%s11969_s12 + $0xe8] sm:$0xff] }
 0x58f   : > { %3856 = vmatprep.subr.mxu1 %v3700_v1  ;;  %3586 = vmatprep.mubr.f32.mxu0 %v13125_v37  ;;  %v3728_v60 = vld [vmem:[%s11969_s12 + $0x100] sm:$0xff]  ;;  %v3759_v14 = vld [vmem:[%s11969_s12 + $0x1f8] sm:$0xff]  ;;  %v3773_v1 = vld [vmem:[%s11969_s12 + $0x268] sm:$0xff] }
 0x590   : > { %3857 = vmatpush1.msra.mxu1 %v3699_v55  ;;  %3939 = vmatprep.subr.mxu0 %v3805_v18  ;;  %v3757_v55 = vld [vmem:[%s11969_s12 + $0x1e8] sm:$0xff]  ;;  %v3756_v18 = vld [vmem:[%s11969_s12 + $0x1e0] sm:$0xff]  ;;  %v3719_v56 = vld [vmem:[%s11969_s12 + $0xb8] sm:$0xff] }
 0x591   : > { %3858 = vmatprep.subr.mxu1 %v3697_v39  ;;  %3587 = vmatmul.mubr.f32.gmra.mxu0 %v13136_v2  ;;  %v3770_v39 = vld [vmem:[%s11969_s12 + $0x250] sm:$0xff] }
 0x592   : > { %3859 = vmatpush1.msra.mxu1 %v3696_v29  ;;  %3940 = vmatpush1.msra.mxu0 %v3804_v51  ;;  %v3754_v29 = vld [vmem:[%s11969_s12 + $0x1d0] sm:$0xff] }
 0x593   : > { %3860 = vmatprep.subr.mxu1 %v3790_v27  ;;  %3941 = vmatprep.subr.mxu0 %v3802_v33  ;;  %v3722_v51 = vld [vmem:[%s11969_s12 + $0xd0] sm:$0xff]  ;;  %v3767_v27 = vld [vmem:[%s11969_s12 + $0x238] sm:$0xff] }
 0x594   : > { %3861 = vmatpush2.msra.mxu1 %v3789_v19  ;;  %3942 = vmatpush1.msra.mxu0 %v3801_v3  ;;  %v3751_v33 = vld [vmem:[%s11969_s12 + $0x1b8] sm:$0xff]  ;;  %v3750_v19 = vld [vmem:[%s11969_s12 + $0x1b0] sm:$0xff]  ;;  %v3764_v3 = vld [vmem:[%s11969_s12 + $0x220] sm:$0xff] }
 0x595   : > { %3862 = vmatprep.subr.mxu1 %v3787_v40  ;;  %3592 = vmatprep.mubr.f32.mxu0 %v13145_v46  ;;  %v3748_v40 = vld [vmem:[%s11969_s12 + $0x1a0] sm:$0xff] }
 0x596   : > { %3863 = vmatpush2.msra.mxu1 %v3786_v25  ;;  %3943 = vmatprep.subr.mxu0 %v3799_v10  ;;  %v3747_v25 = vld [vmem:[%s11969_s12 + $0x198] sm:$0xff]  ;;  %v3761_v10 = vld [vmem:[%s11969_s12 + $0x208] sm:$0xff] }
 0x597   : > { %3593 = vmatmul.mubr.f32.gmra.mxu0 %v13155_v45  ;;  %3864 = vmatprep.subr.mxu1 %v3784_v23  ;;  %v3745_v23 = vld [vmem:[%s11969_s12 + $0x188] sm:$0xff] }
 0x598   : > { %3944 = vmatpush1.msra.mxu0 %v3798_v49  ;;  %3865 = vmatpush2.msra.mxu1 %v3783_v34  ;;  %v3713_v49 = vld [vmem:[%s11969_s12 + $0x88] sm:$0xff]  ;;  %v3744_v34 = vld [vmem:[%s11969_s12 + $0x180] sm:$0xff] }
 0x599   : > { %3945 = vmatprep.subr.mxu0 %v3796_v36  ;;  %3866 = vmatprep.subr.mxu1 %v3781_v24  ;;  %v3758_v36 = vld [vmem:[%s11969_s12 + $0x1f0] sm:$0xff] }
 0x59a   : > { %3946 = vmatpush1.msra.mxu0 %v3795_v57  ;;  %3867 = vmatpush2.msra.mxu1 %v3780_v32  ;;  %v3710_v24 = vld [vmem:[%s11969_s12 + $0x70] sm:$0xff]  ;;  %v3755_v32 = vld [vmem:[%s11969_s12 + $0x1d8] sm:$0xff] }
 0x59b   : > { %3947 = vmatprep.subr.mxu0 %v3793_v21  ;;  %3868 = vmatprep.subr.mxu1 %v3778_v20  ;;  %v3818_v57 = vld [vmem:[%s11969_s12 + $0x3d0] sm:$0xf]  ;;  %v3707_v21 = vld [vmem:[%s11969_s12 + $0x58] sm:$0xff] }
 0x59c   : > { %3948 = vmatpush1.msra.mxu0 %v3792_v4  ;;  %3981 = vmatprep.mubr.f32.mxu0 %v11836_v7  ;;  %v3815_v20 = vld [vmem:[%s11969_s12 + $0x3b8] sm:$0xff]  ;;  %v3752_v4 = vld [vmem:[%s11969_s12 + $0x1c0] sm:$0xff] }
 0x59d   : > { %3869 = vmatpush2.msra.mxu1 %v3777_v47  ;;  %10115 = vmatmul.mubr.msk.f32.vlgmr.msra.gmra.mxu0 %vm1975_vm11, %v13043_v12  ;;  %v3704_v47 = vld [vmem:[%s11969_s12 + $0x40] sm:$0xff] }
 0x59e   : > { %10643 = vmatprep.subr.mxu0 %v3791_v42  ;;  %3870 = vmatprep.subr.mxu1 %v3775_v17  ;;  %v3812_v42 = vld [vmem:[%s11969_s12 + $0x3a0] sm:$0xff]  ;;  %v3749_v17 = vld [vmem:[%s11969_s12 + $0x1a8] sm:$0xff] }
 0x59f   : > { %10644 = vmatpush3.msra.mxu0 %v3743_v61  ;;  %3871 = vmatpush2.msra.mxu1 %v3774_v58  ;;  %v3701_v61 = vld [vmem:[%s11969_s12 + $0x28] sm:$0xff] }
 0x5a0   : > { %10645 = vmatprep.subr.mxu0 %v3788_v30  ;;  %3872 = vmatprep.subr.mxu1 %v3772_v38  ;;  %v3809_v58 = vld [vmem:[%s11969_s12 + $0x388] sm:$0xff]  ;;  %v3746_v30 = vld [vmem:[%s11969_s12 + $0x190] sm:$0xff] }
 0x5a1   : > { %3987 = vmatprep.mubr.f32.mxu0 %v11836_v7  ;;  %10646 = vmatpush3.msra.mxu0 %v3740_v31  ;;  %v3698_v38 = vld [vmem:[%s11969_s12 + $0x10] sm:$0xff] }
 0x5a2   : > { %3873 = vmatpush2.msra.mxu1 %v3771_v5  ;;  %10116 = vmatmul.mubr.msk.f32.gmra.mxu0 %vm1975_vm11, %v13055_v15  ;;  %v3806_v31 = vld [vmem:[%s11969_s12 + $0x370] sm:$0xff]  ;;  %v3803_v5 = vld [vmem:[%s11969_s12 + $0x358] sm:$0xff] }
 0x5a3   : > { %10647 = vmatprep.subr.mxu0 %v3785_v6  ;;  %3874 = vmatprep.subr.mxu1 %v3769_v50  ;;  %v3800_v6 = vld [vmem:[%s11969_s12 + $0x340] sm:$0xff]  ;;  %v3797_v50 = vld [vmem:[%s11969_s12 + $0x328] sm:$0xff] }
 0x5a4   : > { %10648 = vmatpush3.msra.mxu0 %v3737_v43  ;;  %3875 = vmatpush2.msra.mxu1 %v3768_v0 }
 0x5a5   : > { %10649 = vmatprep.subr.mxu0 %v3782_v52  ;;  %3876 = vmatprep.subr.mxu1 %v3766_v8 }
 0x5a6   : > { %3993 = vmatprep.mubr.f32.mxu0 %v11836_v7  ;;  %10650 = vmatpush3.msra.mxu0 %v3734_v62 }
 0x5a7   : > { %3877 = vmatpush2.msra.mxu1 %v3765_v28  ;;  %10117 = vmatmul.mubr.msk.f32.gmra.mxu0 %vm1975_vm11, %v13067_v35 }
 0x5a8   : > { %10651 = vmatprep.subr.mxu0 %v3779_v11  ;;  %3878 = vmatprep.subr.mxu1 %v3763_v44 }
 0x5a9   : > { %10652 = vmatpush3.msra.mxu0 %v3731_v63  ;;  %3879 = vmatpush2.msra.mxu1 %v3762_v13 }
 0x5aa   : > { %10653 = vmatprep.subr.mxu0 %v3776_v53  ;;  %3880 = vmatprep.subr.mxu1 %v3760_v26 }
 0x5ab   : > { %3999 = vmatprep.mubr.f32.mxu0 %v11836_v7  ;;  %10654 = vmatpush3.msra.mxu0 %v3728_v60  ;;  %v3753_v7 = vld [vmem:[%s11969_s12 + $0x1c8] sm:$0xff] }
 0x5ac   : > { %3881 = vmatpush2.msra.mxu1 %v3759_v14  ;;  %10118 = vmatmul.mubr.msk.f32.gmra.mxu0 %vm1975_vm11, %v13079_v9 }
 0x5ad   : > { %10655 = vmatprep.subr.mxu0 %v3773_v1  ;;  %3882 = vmatprep.subr.mxu1 %v3757_v55 }
 0x5ae   : > { %10656 = vmatpush3.msra.mxu0 %v3725_v22  ;;  %4070 = vmatprep.mubr.f32.mxu0 %v13089_v48  ;;  %v3716_v48 = vld [vmem:[%s11969_s12 + $0xa0] sm:$0xff] }
 0x5af   : > { %3883 = vmatpush2.msra.mxu1 %v3756_v18  ;;  %10657 = vmatprep.subr.mxu0 %v3770_v39 }
 0x5b0   : > { %3884 = vmatprep.subr.mxu1 %v3754_v29  ;;  %10658 = vmatpush3.msra.mxu0 %v3722_v51 }
 0x5b1   : > { %3885 = vmatpush2.msra.mxu1 %v3753_v7  ;;  %10659 = vmatprep.subr.mxu0 %v3767_v27 }
 0x5b2   : > { %3886 = vmatprep.subr.mxu1 %v3751_v33  ;;  %10660 = vmatpush3.msra.mxu0 %v3719_v56 }
 0x5b3   : > { %3887 = vmatpush2.msra.mxu1 %v3750_v19  ;;  %10661 = vmatprep.subr.mxu0 %v3764_v3 }
 0x5b4   : > { %3888 = vmatprep.subr.mxu1 %v3748_v40  ;;  %10662 = vmatpush3.msra.mxu0 %v3716_v48 }
 0x5b5   : > { %3889 = vmatpush2.msra.mxu1 %v3747_v25  ;;  %10663 = vmatprep.subr.mxu0 %v3761_v10 }
 0x5b6   : > { %3890 = vmatprep.subr.mxu1 %v3745_v23  ;;  %10664 = vmatpush3.msra.mxu0 %v3713_v49 }
 0x5b7   : > { %3891 = vmatpush2.msra.mxu1 %v3744_v34  ;;  %10665 = vmatprep.subr.mxu0 %v3758_v36 }
 0x5b8   : > { %3893 = vmatmul.mubr.f32.vlgmr.msra.gmra.mxu1 %v13093_v59  ;;  %10666 = vmatpush3.msra.mxu0 %v3710_v24 }
 0x5b9   : > { %11161 = vmatprep.subr.msk.mxu1 %vm1494_vm1, %v3818_v57  ;;  %3898 = vmatprep.mubr.f32.mxu1 %v13105_v54 }
 0x5ba   : > { %10667 = vmatprep.subr.mxu0 %v3755_v32  ;;  %11162 = vmatpush3.msk.msra.mxu1 %vm1494_vm1, %v3818_v57 }
 0x5bb   : > { %10668 = vmatpush3.msra.mxu0 %v3707_v21  ;;  %11163 = vmatprep.subr.mxu1 %v3815_v20 }
 0x5bc   : > { %10669 = vmatprep.subr.mxu0 %v3752_v4  ;;  %11164 = vmatpush3.msra.mxu1 %v3815_v20 }
 0x5bd   : > { %3899 = vmatmul.mubr.f32.gmra.mxu1 %v13116_v16  ;;  %10670 = vmatpush3.msra.mxu0 %v3704_v47 }
 0x5be   : > { %11165 = vmatprep.subr.mxu1 %v3812_v42  ;;  %3904 = vmatprep.mubr.f32.mxu1 %v13125_v37 }
 0x5bf   : > { %10671 = vmatprep.subr.mxu0 %v3749_v17  ;;  %11166 = vmatpush3.msra.mxu1 %v3812_v42 }
 0x5c0   : > { %10672 = vmatpush3.msra.mxu0 %v3701_v61  ;;  %11167 = vmatprep.subr.mxu1 %v3809_v58 }
 0x5c1   : > { %10673 = vmatprep.subr.mxu0 %v3746_v30  ;;  %11168 = vmatpush3.msra.mxu1 %v3809_v58 }
 0x5c2   : > { %3905 = vmatmul.mubr.f32.gmra.mxu1 %v13136_v2  ;;  %10674 = vmatpush3.msra.mxu0 %v3698_v38 }
 0x5c3   : > { %11169 = vmatprep.subr.mxu1 %v3806_v31  ;;  %3910 = vmatprep.mubr.f32.mxu1 %v13145_v46 }
 0x5c4   : > { %4071 = vmatmul.mubr.f32.vlgmr.msra.gmra.mxu0 %v13093_v59  ;;  %11170 = vmatpush3.msra.mxu1 %v3806_v31  ;;  %v3794_v59 = vld [vmem:[%s11969_s12 + $0x310] sm:$0xff] }
 0x5c5   : > { %4075 = vmatprep.mubr.f32.mxu0 %v13105_v54  ;;  %11171 = vmatprep.subr.mxu1 %v3803_v5 }
 0x5c6   : > { %11172 = vmatpush3.msra.mxu1 %v3803_v5 }
 0x5c7   : > { %3911 = vmatmul.mubr.f32.gmra.mxu1 %v13155_v45  ;;  %11173 = vmatprep.subr.mxu1 %v3800_v6 }
 0x5c8   : > { %4076 = vmatmul.mubr.f32.gmra.mxu0 %v13116_v16  ;;  %11174 = vmatpush3.msra.mxu1 %v3800_v6 }
 0x5c9   : > { %11179 = vmatprep.mubr.msk.f32.mxu1 %vm1975_vm11, %v13043_v12  ;;  %4080 = vmatprep.mubr.f32.mxu0 %v13125_v37 }
 0x5ca   : > { %11175 = vmatprep.subr.mxu1 %v3797_v50 }
 0x5cb   : > { %11176 = vmatpush3.msra.mxu1 %v3797_v50 }
 0x5cc   : > { %11177 = vmatprep.subr.mxu1 %v3794_v59  ;;  %4081 = vmatmul.mubr.f32.gmra.mxu0 %v13136_v2 }
 0x5cd   : > { %11178 = vmatpush3.msra.mxu1 %v3794_v59  ;;  %4085 = vmatprep.mubr.f32.mxu0 %v13145_v46 }
 0x5ce   : > { %11180 = vmatmul.mubr.msk.f32.vlgmr.msra.gmra.mxu1 %vm1975_vm11, %v13055_v15 }
 0x5cf   : > { %11182 = vmatprep.mubr.msk.f32.mxu1 %vm1975_vm11, %v13067_v35 }
 0x5d0   : > { %4086 = vmatmul.mubr.f32.gmra.mxu0 %v13155_v45 }
 0x5d1   : > { %5133 = vmatprep.mubr.bf16.mxu0 %v11835_v41 }
 0x5d2   : > { %11183 = vmatmul.mubr.msk.f32.gmra.mxu1 %vm1975_vm11, %v13079_v9 }
 0x633   : > { %v3665_v12 = vpop.f32.mrf.mxu1 }
 0x635   : > { %v3667_v54 = vpop.f32.mrf.mxu1 }
 0x637   : > { %v3671_v16 = vpop.f32.mrf.mxu1 }
 0x639   : > { %v3673_v43 = vpop.f32.mrf.mxu1 }
 0x63b   : > { %v3677_v45 = vpop.f32.mrf.mxu1 }
 0x63d   : > { %v3679_v9 = vpop.f32.mrf.mxu1 }
 0x63f   : > { %v3683_v63 = vpop.f32.mrf.mxu1 }
 0x641   : > { %v3685_v26 = vpop.f32.mrf.mxu1 }
 0x645   : > { %v3576_v37 = vpop.f32.mrf.mxu0 }
 0x646   : > { %v3666_v2 = vadd.f32 %v3665_v12, %v3576_v37 }
 0x647   : > { %v3578_v46 = vpop.f32.mrf.mxu0 }
 0x648   : > { %3688 = vst [vmem:[%s1211_s26] sm:$0xff] %v3666_v2  ;;  %v3668_v15 = vadd.f32 %v3667_v54, %v3578_v46 }
 0x64a   : > { %3689 = vst [vmem:[%s1211_s26 + $0x8] sm:$0xff] %v3668_v15 }
 0x64b   : > { %v3582_v35 = vpop.f32.mrf.mxu0 }
 0x64c   : > { %v3672_v0 = vadd.f32 %v3671_v16, %v3582_v35 }
 0x64d   : > { %v3584_v52 = vpop.f32.mrf.mxu0 }
 0x64e   : > { %3690 = vst [vmem:[%s1211_s26 + $0x10] sm:$0xff] %v3672_v0  ;;  %v3674_v8 = vadd.f32 %v3673_v43, %v3584_v52 }
 0x650   : > { %3691 = vst [vmem:[%s1211_s26 + $0x18] sm:$0xff] %v3674_v8 }
 0x651   : > { %v3588_v62 = vpop.f32.mrf.mxu0 }
 0x652   : > { %v3678_v28 = vadd.f32 %v3677_v45, %v3588_v62 }
 0x653   : > { %v3590_v11 = vpop.f32.mrf.mxu0 }
 0x654   : > { %3692 = vst [vmem:[%s1211_s26 + $0x20] sm:$0xff] %v3678_v28  ;;  %v3680_v44 = vadd.f32 %v3679_v9, %v3590_v11 }
 0x656   : > { %3693 = vst [vmem:[%s1211_s26 + $0x28] sm:$0xff] %v3680_v44 }
 0x657   : > { %v3594_v13 = vpop.f32.mrf.mxu0 }
 0x658   : > { %v3684_v53 = vadd.f32 %v3683_v63, %v3594_v13 }
 0x659   : > { %v3596_v60 = vpop.f32.mrf.mxu0 }
 0x65a   : > { %3694 = vst [vmem:[%s1211_s26 + $0x30] sm:$0xff] %v3684_v53  ;;  %v3686_v14 = vadd.f32 %v3685_v26, %v3596_v60 }
 0x65c   : > { %3695 = vst [vmem:[%s1211_s26 + $0x38] sm:$0xff] %v3686_v14  ;;  %s13906_s26 = sshll.u32 %s14612_s23, 5  ;;  %s14578_s23 = sld [smem:[#allocation7_spill]] }
 0x65d   : > { %v3983_v1 = vpop.f32.mrf.mxu0 }
 0x65f   : > { %v3985_v55 = vpop.f32.mrf.mxu0 }
 0x662   : > { %v3989_v22 = vpop.f32.mrf.mxu0 }
 0x664   : > { %v3991_v18 = vpop.f32.mrf.mxu0 }
 0x667   : > { %v3995_v39 = vpop.f32.mrf.mxu0 }
 0x669   : > { %v3997_v7 = vpop.f32.mrf.mxu0 }
 0x66c   : > { %v4001_v40 = vpop.f32.mrf.mxu0 }
 0x66e   : > { %v4003_v49 = vpop.f32.mrf.mxu0 }
 0x678   : > { %v3894_v29 = vpop.f32.mrf.mxu1 }
 0x679   : > { %v13272_v51 = vadd.f32 %v3983_v1, %v3894_v29  ;;  %v4700_v29 = vld [vmem:[%s14573_s3] sm:$0xff] }
 0x67a   : > { %v3896_v27 = vpop.f32.mrf.mxu1 }
 0x67b   : > { %v13274_v33 = vadd.f32 %v3985_v55, %v3896_v27  ;;  %v4176_v56 = vmax.f32 %v13272_v51, 0.0 }
 0x67d   : > { %v4177_v19 = vmax.f32 %v13274_v33, 0.0  ;;  %v3900_v3 = vpop.f32.mrf.mxu1 }
 0x67e   : > { %v13278_v48 = vadd.f32 %v3989_v22, %v3900_v3  ;;  %v4702_v3 = vld [vmem:[%s14573_s3 + $0x10] sm:$0xff] }
 0x67f   : > { %v13284_v25 = vpack.c.bf16 %v4177_v19, %v4176_v56  ;;  %v3902_v10 = vpop.f32.mrf.mxu1 }
 0x680   : > { %v13286_v23 = vadd.f32 %v3991_v18, %v3902_v10  ;;  %v4179_v34 = vmax.f32 %v13278_v48, 0.0  ;;  %v13446_v10 = vld [vmem:[%s11889_s29 + $0x4] ss:$12 sps:$4 sm:$0xff]  }
 0x681   : > { %4228 = vst [vmem:[#allocation2] sm:$0xff] %v13284_v25  ;;  %4332 = vrot.lane.b32.xlu1 %v13284_v25, %s11833_s16  ;;  %5080 = vmatprep.mubr.bf16.mxu1 %v13446_v10 }
 0x682   : > { %v4180_v36 = vmax.f32 %v13286_v23, 0.0  ;;  %v3906_v24 = vpop.f32.mrf.mxu1 }
 0x683   : > { %v13293_v57 = vadd.f32 %v3995_v39, %v3906_v24 }
 0x684   : > { %v13299_v32 = vpack.c.bf16 %v4180_v36, %v4179_v34  ;;  %v10675_v21 = vpop.f32.mrf.mxu0  ;;  %v3908_v20 = vpop.f32.mrf.mxu1 }
 0x685   : > { %v13301_v4 = vadd.f32 %v3997_v7, %v3908_v20  ;;  %4284 = vrot.lane.b32.xlu1 %v13284_v25, %s14518_s15  ;;  %v4182_v42 = vmax.f32 %v13293_v57, 0.0 }
 0x686   : > { %4230 = vst [vmem:[#allocation2 + $0xc] sm:$0xff] %v13299_v32  ;;  %v10676_v47 = vpop.f32.mrf.mxu0  ;;  %4528 = vrot.lane.b32.xlu0 %v13299_v32, %s11829_s7 }
 0x687   : > { %v4183_v17 = vmax.f32 %v13301_v4, 0.0  ;;  %v3912_v61 = vpop.f32.mrf.mxu1  ;;  %v10677_v46 = vadd.f32 %v10676_v47, %v10675_v21  ;;  %v4701_v47 = vld [vmem:[%s14573_s3 + $0x8] sm:$0xff] }
 0x688   : > { %v13310_v58 = vadd.f32 %v4001_v40, %v3912_v61  ;;  %v10678_v30 = vpop.f32.mrf.mxu0 }
 0x689   : > { %v13316_v38 = vpack.c.bf16 %v4183_v17, %v4182_v42  ;;  %v3914_v31 = vpop.f32.mrf.mxu1  ;;  %4236 = vrot.lane.b32.xlu1 %v13284_v25, %s14506_s18 }
 0x68a   : > { %v13320_v5 = vadd.f32 %v4003_v49, %v3914_v31  ;;  %v10679_v6 = vpop.f32.mrf.mxu0  ;;  %v4185_v50 = vmax.f32 %v13310_v58, 0.0 }
 0x68b   : > { %4232 = vst [vmem:[#allocation2 + $0x18] sm:$0xff] %v13316_v38  ;;  %v10680_v54 = vadd.f32 %v10679_v6, %v10678_v30 }
 0x68c   : > { %v4186_v59 = vmax.f32 %v13320_v5, 0.0  ;;  %v10681_v12 = vpop.f32.mrf.mxu0  ;;  %v11777_v4 = vpack.c.bf16 %v4185_v50, %v4182_v42 }
 0x68d   : > { %4572 = vrot.lane.b32.xlu1 %v13284_v25, %s11828_s2 }
 0x68e   : > { %v13331_v16 = vpack.c.bf16 %v4186_v59, %v4185_v50  ;;  %v11181_v37 = vpop.f32.mrf.mxu1  ;;  %v10682_v2 = vpop.f32.mrf.mxu0 }
 0x68f   : > { %v4163_v15 = vadd.f32 %v11181_v37, %v10680_v54  ;;  %v10683_v62 = vadd.f32 %v10682_v2, %v10681_v12  ;;  %v4703_v54 = vld [vmem:[%s14573_s3 + $0x18] sm:$0xff]  ;;  %s14584_s3 = sld [smem:[#allocation10_spill]] }
 0x690   : > { %4234 = vst [vmem:[#allocation2 + $0x24] sm:$0xff] %v13331_v16  ;;  %v4157_v43 = vpop.f32.mrf.mxu1  ;;  %v10684_v35 = vpop.f32.mrf.mxu0  ;;  %4536 = vrot.lane.b32.xlu0 %v13331_v16, %s11829_s7 }
 0x691   : > { %v4181_v0 = vmax.f32 %v4163_v15, 0.0  ;;  %v4158_v45 = vadd.f32 %v10677_v46, %v4157_v43  ;;  %4524 = vrot.lane.b32.xlu1 %v13284_v25, %s11829_s7 }
 0x692   : > { %v11184_v52 = vpop.f32.mrf.mxu1  ;;  %v10685_v8 = vpop.f32.mrf.mxu0 }
 0x693   : > { %v13338_v9 = vpack.c.bf16 %v4181_v0, %v4181_v0  ;;  %v4178_v28 = vmax.f32 %v4158_v45, 0.0  ;;  %v10686_v11 = vadd.f32 %v10685_v8, %v10684_v35 }
 0x694   : > { %v4167_v44 = vpop.f32.mrf.mxu1 }
 0x695   : > { %4231 = vst.msk [vmem:[#allocation2 + $0x14] sm:$0xf] %vm1486_vm0, %v13338_v9  ;;  %v10477_v63 = vpack.c.bf16 %v4178_v28, %v4178_v28  ;;  %v4173_v13 = vadd.f32 %v11184_v52, %v10686_v11  ;;  %v4168_v53 = vadd.f32 %v10683_v62, %v4167_v44  ;;  %4338 = vrot.lane.b32.xlu0 %v13338_v9, %s11833_s16 }
 0x696   : > { %4336 = vrot.lane.b32.xlu1 %v13299_v32, %s11833_s16 }
 0x697   : > { %4229 = vst.msk [vmem:[#allocation2 + $0x8] sm:$0xf] %vm1486_vm0, %v10477_v63  ;;  %v4187_v26 = vmax.f32 %v4173_v13, 0.0  ;;  %v4184_v60 = vmax.f32 %v4168_v53, 0.0 }
 0x699   : > { %v10483_v14 = vpack.c.bf16 %v4187_v26, %v4187_v26  ;;  %v10481_v1 = vpack.c.bf16 %v4184_v60, %v4184_v60  ;;  %4290 = vrot.lane.b32.xlu0 %v13338_v9, %s14518_s15 }
 0x69a   : > { %4288 = vrot.lane.b32.xlu1 %v13299_v32, %s14518_s15 }
 0x69b   : > { %4235 = vst.msk [vmem:[#allocation2 + $0x2c] sm:$0xf] %vm1486_vm0, %v10483_v14  ;;  %4233 = vst.msk [vmem:[#allocation2 + $0x20] sm:$0xf] %vm1486_vm0, %v10481_v1 }
 0x69d   : > { %4242 = vrot.lane.b32.xlu0 %v13338_v9, %s14506_s18 }
 0x69e   : > { %4240 = vrot.lane.b32.xlu1 %v13299_v32, %s14506_s18 }
 0x6a1   : > { %4578 = vrot.lane.b32.xlu0 %v13338_v9, %s11828_s2 }
 0x6a2   : > { %4576 = vrot.lane.b32.xlu1 %v13299_v32, %s11828_s2 }
 0x6a5   : > { %4530 = vrot.lane.b32.xlu0 %v13338_v9, %s11829_s7 }
 0x6a6   : > { %4340 = vrot.lane.b32.xlu1 %v13316_v38, %s11833_s16 }
 0x6a9   : > { %4334 = vrot.lane.b32.xlu0 %v10477_v63, %s11833_s16 }
 0x6aa   : > { %4292 = vrot.lane.b32.xlu1 %v13316_v38, %s14518_s15 }
 0x6ad   : > { %4286 = vrot.lane.b32.xlu0 %v10477_v63, %s14518_s15 }
 0x6ae   : > { %4244 = vrot.lane.b32.xlu1 %v13316_v38, %s14506_s18 }
 0x6b1   : > { %4238 = vrot.lane.b32.xlu0 %v10477_v63, %s14506_s18 }
 0x6b2   : > { %4580 = vrot.lane.b32.xlu1 %v13316_v38, %s11828_s2 }
 0x6b5   : > { %4574 = vrot.lane.b32.xlu0 %v10477_v63, %s11828_s2 }
 0x6b6   : > { %4532 = vrot.lane.b32.xlu1 %v13316_v38, %s11829_s7 }
 0x6b9   : > { %4346 = vrot.lane.b32.xlu0 %v10483_v14, %s11833_s16 }
 0x6ba   : > { %4344 = vrot.lane.b32.xlu1 %v13331_v16, %s11833_s16 }
 0x6bd   : > { %4298 = vrot.lane.b32.xlu0 %v10483_v14, %s14518_s15 }
 0x6be   : > { %4296 = vrot.lane.b32.xlu1 %v13331_v16, %s14518_s15 }
 0x6c1   : > { %4250 = vrot.lane.b32.xlu0 %v10483_v14, %s14506_s18 }
 0x6c2   : > { %4248 = vrot.lane.b32.xlu1 %v13331_v16, %s14506_s18 }
 0x6c5   : > { %4586 = vrot.lane.b32.xlu0 %v10483_v14, %s11828_s2 }
 0x6c6   : > { %4584 = vrot.lane.b32.xlu1 %v13331_v16, %s11828_s2 }
 0x6c9   : > { %4538 = vrot.lane.b32.xlu0 %v10483_v14, %s11829_s7 }
 0x6ca   : > { %4526 = vrot.lane.b32.xlu1 %v10477_v63, %s11829_s7 }
 0x6cd   : > { %4342 = vrot.lane.b32.xlu0 %v10481_v1, %s11833_s16  ;;  %s14576_s16 = sld [smem:[#allocation19_spill]] }
 0x6ce   : > { %4484 = vrot.lane.b32.xlu1 %v13316_v38, %s11827_s1 }
 0x6d1   : > { %4490 = vrot.lane.b32.xlu0 %v10483_v14, %s11827_s1 }
 0x6d2   : > { %4478 = vrot.lane.b32.xlu1 %v10477_v63, %s11827_s1 }
 0x6d5   : > { %4294 = vrot.lane.b32.xlu0 %v10481_v1, %s14518_s15 }
 0x6d6   : > { %4476 = vrot.lane.b32.xlu1 %v13284_v25, %s11827_s1 }
 0x6d9   : > { %4246 = vrot.lane.b32.xlu0 %v10481_v1, %s14506_s18 }
 0x6da   : > { %4436 = vrot.lane.b32.xlu1 %v13316_v38, %s11831_s11 }
 0x6dd   : > { %4582 = vrot.lane.b32.xlu0 %v10481_v1, %s11828_s2  ;;  %s14510_s2 = smov 116  }
 0x6de   : > { %4534 = vrot.lane.b32.xlu1 %v10481_v1, %s11829_s7  ;;  %s11840_s7 = smov 117  }
 0x6e1   : > { %4488 = vrot.lane.b32.xlu0 %v13331_v16, %s11827_s1 }
 0x6e2   : > { %4430 = vrot.lane.b32.xlu1 %v10477_v63, %s11831_s11 }
 0x6e5   : > { %4482 = vrot.lane.b32.xlu0 %v13338_v9, %s11827_s1 }
 0x6e6   : > { %4486 = vrot.lane.b32.xlu1 %v10481_v1, %s11827_s1 }
 0x6e9   : > { %4480 = vrot.lane.b32.xlu0 %v13299_v32, %s11827_s1  ;;  %s14504_s1 = smov 118  }
 0x6ea   : > { %4428 = vrot.lane.b32.xlu1 %v13284_v25, %s11831_s11 }
 0x6ed   : > { %4442 = vrot.lane.b32.xlu0 %v10483_v14, %s11831_s11 }
 0x6ee   : > { %4438 = vrot.lane.b32.xlu1 %v10481_v1, %s11831_s11 }
 0x6f1   : > { %4440 = vrot.lane.b32.xlu0 %v13331_v16, %s11831_s11 }
 0x6f2   : > { %4388 = vrot.lane.b32.xlu1 %v13316_v38, %s11830_s10 }
 0x6f3   : > { %v13420_v55 = vpop.permute.xlu1 %4332 }
 0x6f4   : > { %v4348_v60 = vrot.slane %v13420_v55, 4 }
 0x6f5   : > { %4434 = vrot.lane.b32.xlu0 %v13338_v9, %s11831_s11 }
 0x6f6   : > { %4390 = vrot.lane.b32.xlu1 %v10481_v1, %s11830_s10 }
 0x6f7   : > { %v13425_v22 = vpop.permute.xlu1 %4284 }
 0x6f8   : > { %v4529_v39 = vpop.permute.xlu0 %4528 }
 0x6f9   : > { %4432 = vrot.lane.b32.xlu0 %v13299_v32, %s11831_s11  ;;  %v4542_v11 = vrot.slane %v4529_v39, 4 }
 0x6fa   : > { %4382 = vrot.lane.b32.xlu1 %v10477_v63, %s11830_s10 }
 0x6fb   : > { %v13430_v18 = vpop.permute.xlu1 %4236 }
 0x6fd   : > { %4394 = vrot.lane.b32.xlu0 %v10483_v14, %s11830_s10 }
 0x6fe   : > { %4380 = vrot.lane.b32.xlu1 %v13284_v25, %s11830_s10 }
 0x6ff   : > { %v13436_v7 = vpop.permute.xlu1 %4572 }
 0x701   : > { %4392 = vrot.lane.b32.xlu0 %v13331_v16, %s11830_s10 }
 0x702   : > { %4706 = vperm.xlu1 %11530, %v4700_v29   ;;  %v13440_v27 = vpop.permute.xlu0 %4536 }
 0x703   : > { %v13443_v40 = vpop.permute.xlu1 %4524 }
 0x705   : > { %4386 = vrot.lane.b32.xlu0 %v13338_v9, %s11830_s10 }
 0x706   : > { %4716 = vperm.xlu1 %11530, %v4702_v3  }
 0x707   : > { %v4339_v25 = vpop.permute.xlu0 %4338 }
 0x708   : > { %v4337_v49 = vpop.permute.xlu1 %4336  ;;  %v4351_v24 = vrot.slane %v4339_v25, 4  ;;  %4375 = vst.msk [vmem:[#allocation2 + $0xa4] sm:$0xf] %vm1486_vm0, %v4339_v25 }
 0x709   : > { %v4350_v21 = vrot.slane %v4337_v49, 4  ;;  %4384 = vrot.lane.b32.xlu0 %v13299_v32, %s11830_s10  ;;  %s14502_s10 = smov 106  }
 0x70b   : > { %v4358_v20 = vsel %vm1494_vm1, %v4350_v21, %v4351_v24  ;;  %v4291_v61 = vpop.permute.xlu0 %4290 }
 0x70c   : > { %v13457_v30 = vsel %vm1522_vm8, %v4337_v49, %v4358_v20  ;;  %v4289_v38 = vpop.permute.xlu1 %4288  ;;  %v4303_v31 = vrot.slane %v4291_v61, 4  ;;  %4327 = vst.msk [vmem:[#allocation2 + $0x74] sm:$0xf] %vm1486_vm0, %v4291_v61 }
 0x70d   : > { %4374 = vst [vmem:[#allocation2 + $0x9c] sm:$0xff] %v13457_v30  ;;  %v4302_v6 = vrot.slane %v4289_v38, 4  ;;  %4711 = vperm.xlu0 %11529, %v4701_v47  }
 0x70f   : > { %v4310_v12 = vsel %vm1494_vm1, %v4302_v6, %v4303_v31  ;;  %v4243_v16 = vpop.permute.xlu0 %4242 }
 0x710   : > { %v13464_v32 = vsel %vm1509_vm7, %v4289_v38, %v4310_v12  ;;  %v4241_v37 = vpop.permute.xlu1 %4240  ;;  %v4255_v2 = vrot.slane %v4243_v16, 4  ;;  %4279 = vst.msk [vmem:[#allocation2 + $0x44] sm:$0xf] %vm1486_vm0, %v4243_v16 }
 0x711   : > { %4326 = vst [vmem:[#allocation2 + $0x6c] sm:$0xff] %v13464_v32  ;;  %v4254_v46 = vrot.slane %v4241_v37, 4  ;;  %4721 = vperm.xlu0 %11529, %v4703_v54  }
 0x713   : > { %v4262_v15 = vsel %vm1494_vm1, %v4254_v46, %v4255_v2  ;;  %v4579_v43 = vpop.permute.xlu0 %4578 }
 0x714   : > { %v13470_v35 = vsel %vm1496_vm9, %v4241_v37, %v4262_v15  ;;  %v4577_v0 = vpop.permute.xlu1 %4576  ;;  %v4591_v45 = vrot.slane %v4579_v43, 4  ;;  %4615 = vst.msk [vmem:[#allocation2 + $0x194] sm:$0xf] %vm1486_vm0, %v4579_v43 }
 0x715   : > { %4278 = vst [vmem:[#allocation2 + $0x3c] sm:$0xff] %v13470_v35  ;;  %v4590_v52 = vrot.slane %v4577_v0, 4 }
 0x717   : > { %v4598_v8 = vsel %vm1494_vm1, %v4590_v52, %v4591_v45  ;;  %v4531_v9 = vpop.permute.xlu0 %4530 }
 0x718   : > { %v13476_v62 = vsel %vm1587_vm2, %v4577_v0, %v4598_v8  ;;  %v13478_v28 = vpop.permute.xlu1 %4340  ;;  %v4543_v44 = vrot.slane %v4531_v9, 4  ;;  %4567 = vst.msk [vmem:[#allocation2 + $0x164] sm:$0xf] %vm1486_vm0, %v4531_v9 }
 0x719   : > { %4614 = vst [vmem:[#allocation2 + $0x18c] sm:$0xff] %v13476_v62 }
 0x71a   : > { %v4550_v63 = vsel %vm1494_vm1, %v4542_v11, %v4543_v44 }
 0x71b   : > { %v13484_v13 = vsel %vm1574_vm4, %v4529_v39, %v4550_v63  ;;  %v4335_v53 = vpop.permute.xlu0 %4334  ;;  %v4300_v39 = vrot.slane %v13425_v22, 4 }
 0x71c   : > { %v13486_v26 = vpop.permute.xlu1 %4292  ;;  %4566 = vst [vmem:[#allocation2 + $0x15c] sm:$0xff] %v13484_v13  ;;  %v4349_v14 = vrot.slane %v4335_v53, 4  ;;  %4373 = vst.msk [vmem:[#allocation2 + $0x98] sm:$0xf] %vm1486_vm0, %v4335_v53 }
 0x71e   : > { %v4356_v1 = vsel %vm1494_vm1, %v4348_v60, %v4349_v14 }
 0x71f   : > { %v13494_v29 = vsel %vm1522_vm8, %v13420_v55, %v4356_v1  ;;  %v4287_v3 = vpop.permute.xlu0 %4286  ;;  %v4252_v55 = vrot.slane %v13430_v18, 4 }
 0x720   : > { %v13496_v25 = vpop.permute.xlu1 %4244  ;;  %4372 = vst [vmem:[#allocation2 + $0x90] sm:$0xff] %v13494_v29  ;;  %v4301_v49 = vrot.slane %v4287_v3, 4  ;;  %4325 = vst.msk [vmem:[#allocation2 + $0x68] sm:$0xf] %vm1486_vm0, %v4287_v3 }
 0x722   : > { %v4308_v24 = vsel %vm1494_vm1, %v4300_v39, %v4301_v49 }
 0x723   : > { %v13504_v21 = vsel %vm1509_vm7, %v13425_v22, %v4308_v24  ;;  %v4239_v20 = vpop.permute.xlu0 %4238  ;;  %v4588_v22 = vrot.slane %v13436_v7, 4  ;;  %v11568_v23 = vld [vmem:[#allocation2 + $0x98] ss:$12 sps:$4 sm:$0xff]  }
 0x724   : > { %v13506_v47 = vpop.permute.xlu1 %4580  ;;  %4324 = vst [vmem:[#allocation2 + $0x60] sm:$0xff] %v13504_v21  ;;  %v4253_v61 = vrot.slane %v4239_v20, 4  ;;  %4277 = vst.msk [vmem:[#allocation2 + $0x38] sm:$0xf] %vm1486_vm0, %v4239_v20 }
 0x726   : > { %v4260_v38 = vsel %vm1494_vm1, %v4252_v55, %v4253_v61 }
 0x727   : > { %v13514_v31 = vsel %vm1496_vm9, %v13430_v18, %v4260_v38  ;;  %v4575_v6 = vpop.permute.xlu0 %4574 }
 0x728   : > { %v13516_v12 = vpop.permute.xlu1 %4532  ;;  %4276 = vst [vmem:[#allocation2 + $0x30] sm:$0xff] %v13514_v31  ;;  %v4589_v54 = vrot.slane %v4575_v6, 4  ;;  %4613 = vst.msk [vmem:[#allocation2 + $0x188] sm:$0xf] %vm1486_vm0, %v4575_v6  ;;  %v4546_v6 = vrot.slane %v13440_v27, 4 }
 0x72a   : > { %v4596_v16 = vsel %vm1494_vm1, %v4588_v22, %v4589_v54  ;;  %v4540_v22 = vrot.slane %v13443_v40, 4 }
 0x72b   : > { %v13524_v37 = vsel %vm1587_vm2, %v13436_v7, %v4596_v16  ;;  %v4347_v2 = vpop.permute.xlu0 %4346 }
 0x72c   : > { %v4345_v46 = vpop.permute.xlu1 %4344  ;;  %4612 = vst [vmem:[#allocation2 + $0x180] sm:$0xff] %v13524_v37  ;;  %v4355_v18 = vrot.slane %v4347_v2, 4  ;;  %4379 = vst.msk [vmem:[#allocation2 + $0xbc] sm:$0xf] %vm1486_vm0, %v4347_v2 }
 0x72d   : > { %v4354_v15 = vrot.slane %v4345_v46, 4 }
 0x72f   : > { %v4362_v43 = vsel %vm1494_vm1, %v4354_v15, %v4355_v18  ;;  %v4299_v0 = vpop.permute.xlu0 %4298 }
 0x730   : > { %v4363_v45 = vsel %vm1522_vm8, %v4345_v46, %v4362_v43  ;;  %v4297_v52 = vpop.permute.xlu1 %4296  ;;  %v4307_v8 = vrot.slane %v4299_v0, 4  ;;  %4331 = vst.msk [vmem:[#allocation2 + $0x8c] sm:$0xf] %vm1486_vm0, %v4299_v0 }
 0x731   : > { %4378 = vst [vmem:[#allocation2 + $0xb4] sm:$0xff] %v4363_v45  ;;  %v4306_v7 = vrot.slane %v4297_v52, 4 }
 0x733   : > { %v4314_v9 = vsel %vm1494_vm1, %v4306_v7, %v4307_v8  ;;  %v4251_v11 = vpop.permute.xlu0 %4250 }
 0x734   : > { %v13533_v44 = vsel %vm1509_vm7, %v4297_v52, %v4314_v9  ;;  %v4249_v63 = vpop.permute.xlu1 %4248  ;;  %v4259_v53 = vrot.slane %v4251_v11, 4  ;;  %4283 = vst.msk [vmem:[#allocation2 + $0x5c] sm:$0xf] %vm1486_vm0, %v4251_v11  ;;  %v4352_v52 = vrot.slane %v13478_v28, 4 }
 0x735   : > { %4330 = vst [vmem:[#allocation2 + $0x84] sm:$0xff] %v13533_v44  ;;  %v4258_v60 = vrot.slane %v4249_v63, 4 }
 0x737   : > { %v4266_v14 = vsel %vm1494_vm1, %v4258_v60, %v4259_v53  ;;  %v4587_v1 = vpop.permute.xlu0 %4586  ;;  %v10157_v53 = vcombine.high %v13494_v29, %v13457_v30 }
 0x738   : > { %v13539_v3 = vsel %vm1496_vm9, %v4249_v63, %v4266_v14  ;;  %v4585_v39 = vpop.permute.xlu1 %4584  ;;  %v4595_v49 = vrot.slane %v4587_v1, 4  ;;  %4619 = vst.msk [vmem:[#allocation2 + $0x1ac] sm:$0xf] %vm1486_vm0, %v4587_v1 }
 0x739   : > { %4282 = vst [vmem:[#allocation2 + $0x54] sm:$0xff] %v13539_v3  ;;  %v4594_v24 = vrot.slane %v4585_v39, 4 }
 0x73b   : > { %v4602_v20 = vsel %vm1494_vm1, %v4594_v24, %v4595_v49  ;;  %v4539_v55 = vpop.permute.xlu0 %4538  ;;  %v10156_v24 = vcombine.low %v13494_v29, %v13457_v30 }
 0x73c   : > { %v13545_v61 = vsel %vm1587_vm2, %v4585_v39, %v4602_v20  ;;  %v4527_v38 = vpop.permute.xlu1 %4526  ;;  %v4547_v54 = vrot.slane %v4539_v55, 4  ;;  %4571 = vst.msk [vmem:[#allocation2 + $0x17c] sm:$0xf] %vm1486_vm0, %v4539_v55 }
 0x73d   : > { %4618 = vst [vmem:[#allocation2 + $0x1a4] sm:$0xff] %v13545_v61  ;;  %v4541_v16 = vrot.slane %v4527_v38, 4  ;;  %4565 = vst.msk [vmem:[#allocation2 + $0x158] sm:$0xf] %vm1486_vm0, %v4527_v38 }
 0x73e   : > { %v4554_v2 = vsel %vm1494_vm1, %v4546_v6, %v4547_v54  ;;  %v4256_v54 = vrot.slane %v13496_v25, 4 }
 0x73f   : > { %v4548_v46 = vsel %vm1494_vm1, %v4540_v22, %v4541_v16  ;;  %v13556_v18 = vsel %vm1574_vm4, %v13440_v27, %v4554_v2  ;;  %v4343_v15 = vpop.permute.xlu0 %4342  ;;  %v10151_v2 = vcombine.high %v13504_v21, %v13464_v32 }
 0x740   : > { %v13560_v43 = vsel %vm1574_vm4, %v13443_v40, %v4548_v46  ;;  %v13562_v0 = vpop.permute.xlu1 %4484  ;;  %4570 = vst [vmem:[#allocation2 + $0x174] sm:$0xff] %v13556_v18  ;;  %v4353_v8 = vrot.slane %v4343_v15, 4  ;;  %4377 = vst.msk [vmem:[#allocation2 + $0xb0] sm:$0xf] %vm1486_vm0, %v4343_v15 }
 0x741   : > { %4564 = vst [vmem:[#allocation2 + $0x150] sm:$0xff] %v13560_v43 }
 0x742   : > { %v4360_v7 = vsel %vm1494_vm1, %v4352_v52, %v4353_v8  ;;  %v4592_v8 = vrot.slane %v13506_v47, 4 }
 0x743   : > { %v4361_v27 = vsel %vm1522_vm8, %v13478_v28, %v4360_v7  ;;  %v13571_v9 = vpop.permute.xlu0 %4490  ;;  %v4304_v28 = vrot.slane %v13486_v26, 4  ;;  %v4544_v7 = vrot.slane %v13516_v12, 4  ;;  %vm9752_vm8 = vcmask 7168  }
 0x744   : > { %v4479_v40 = vpop.permute.xlu1 %4478  ;;  %4376 = vst [vmem:[#allocation2 + $0xa8] sm:$0xff] %v4361_v27  ;;  %4523 = vst.msk [vmem:[#allocation2 + $0x14c] sm:$0xf] %vm1486_vm0, %v13571_v9  ;;  %v10160_v11 = vcombine.high %v4361_v27, %v4363_v45  ;;  %v10159_v63 = vcombine.low %v4361_v27, %v4363_v45 }
 0x745   : > { %4517 = vst.msk [vmem:[#allocation2 + $0x128] sm:$0xf] %vm1486_vm0, %v4479_v40  ;;  %v4493_v39 = vrot.slane %v4479_v40, 4  ;;  %v10150_v40 = vcombine.low %v13504_v21, %v13464_v32 }
 0x746   : > { %5048 = vmatprep.subr.bf16.mxu1 %v10160_v11 }
 0x747   : > { %v4295_v60 = vpop.permute.xlu0 %4294  ;;  %5049 = vmatpush1.bf16.msra.mxu1 %v10159_v63 }
 0x748   : > { %v4477_v14 = vpop.permute.xlu1 %4476  ;;  %v4305_v1 = vrot.slane %v4295_v60, 4  ;;  %4329 = vst.msk [vmem:[#allocation2 + $0x80] sm:$0xf] %vm1486_vm0, %v4295_v60  ;;  %5050 = vmatprep.subr.bf16.mxu1 %v10157_v53 }
 0x749   : > { %v4492_v49 = vrot.slane %v4477_v14, 4 }
 0x74a   : > { %v4312_v45 = vsel %vm1494_vm1, %v4304_v28, %v4305_v1  ;;  %v4499_v1 = vrot.slane %v13571_v9, 4  ;;  %v10187_v9 = vcombine.high %v13524_v37, %v13476_v62 }
 0x74b   : > { %v4500_v20 = vsel %vm1494_vm1, %v4492_v49, %v4493_v39  ;;  %v4313_v55 = vsel %vm1509_vm7, %v13486_v26, %v4312_v45  ;;  %v4247_v38 = vpop.permute.xlu0 %4246  ;;  %5051 = vmatpush1.bf16.msra.mxu1 %v10156_v24  ;;  %v10145_v49 = vcombine.high %v13514_v31, %v13470_v35  ;;  %vm9650_vm7 = vcmask 72704  }
 0x74c   : > { %v13587_v6 = vsel %vm1561_vm3, %v4477_v14, %v4500_v20  ;;  %v13589_v22 = vpop.permute.xlu1 %4436  ;;  %4328 = vst [vmem:[#allocation2 + $0x78] sm:$0xff] %v4313_v55  ;;  %v4257_v16 = vrot.slane %v4247_v38, 4  ;;  %4281 = vst.msk [vmem:[#allocation2 + $0x50] sm:$0xf] %vm1486_vm0, %v4247_v38  ;;  %v10154_v30 = vcombine.high %v4313_v55, %v13533_v44  ;;  %v10153_v29 = vcombine.low %v4313_v55, %v13533_v44 }
 0x74d   : > { %4516 = vst [vmem:[#allocation2 + $0x120] sm:$0xff] %v13587_v6  ;;  %v10144_v38 = vcombine.low %v13514_v31, %v13470_v35  ;;  %v4448_v50 = vrot.slane %v13589_v22, 4 }
 0x74e   : > { %v4264_v26 = vsel %vm1494_vm1, %v4256_v54, %v4257_v16  ;;  %5052 = vmatprep.subr.bf16.mxu1 %v10154_v30  ;;  %v10186_v54 = vcombine.low %v13524_v37, %v13476_v62  ;;  %v11776_v30 = vpack.c.bf16 %v4186_v59, %v4183_v17  ;;  %v11566_v17 = vld [vmem:[#allocation2 + $0xb0] ss:$12 sps:$4 sm:$0xff]  }
 0x74f   : > { %v4265_v46 = vsel %vm1496_vm9, %v13496_v25, %v4264_v26  ;;  %v4583_v15 = vpop.permute.xlu0 %4582  ;;  %5053 = vmatpush1.bf16.msra.mxu1 %v10153_v29  ;;  %v13644_v29 = vld [vmem:[%s11889_s29 + $0x8] ss:$12 sps:$4 sm:$0xff]  }
 0x750   : > { %v4535_v52 = vpop.permute.xlu1 %4534  ;;  %4280 = vst [vmem:[#allocation2 + $0x48] sm:$0xff] %v4265_v46  ;;  %v4593_v27 = vrot.slane %v4583_v15, 4  ;;  %4617 = vst.msk [vmem:[#allocation2 + $0x1a0] sm:$0xf] %vm1486_vm0, %v4583_v15  ;;  %5054 = vmatprep.subr.bf16.mxu1 %v10151_v2  ;;  %v10148_v63 = vcombine.high %v4265_v46, %v13539_v3  ;;  %v10147_v39 = vcombine.low %v4265_v46, %v13539_v3  ;;  %v11567_v15 = vld [vmem:[#allocation2 + $0x158] ss:$12 sps:$4 sm:$0xff]  }
 0x751   : > { %v4545_v44 = vrot.slane %v4535_v52, 4  ;;  %4569 = vst.msk [vmem:[#allocation2 + $0x170] sm:$0xf] %vm1486_vm0, %v4535_v52 }
 0x752   : > { %v4600_v25 = vsel %vm1494_vm1, %v4592_v8, %v4593_v27  ;;  %v13683_v27 = vld [vmem:[%s11889_s29 + $0x20] ss:$12 sps:$4 sm:$0xff]  }
 0x753   : > { %v4552_v11 = vsel %vm1494_vm1, %v4544_v7, %v4545_v44  ;;  %v4601_v53 = vsel %vm1587_vm2, %v13506_v47, %v4600_v25  ;;  %v4489_v60 = vpop.permute.xlu0 %4488  ;;  %5055 = vmatpush1.bf16.msra.mxu1 %v10150_v40  ;;  %vm7204_vm2 = vcmask 293888  }
 0x754   : > { %v13614_v14 = vsel %vm1574_vm4, %v13516_v12, %v4552_v11  ;;  %v4431_v28 = vpop.permute.xlu1 %4430  ;;  %4616 = vst [vmem:[#allocation2 + $0x198] sm:$0xff] %v4601_v53  ;;  %v4498_v32 = vrot.slane %v4489_v60, 4  ;;  %5056 = vmatprep.subr.bf16.mxu1 %v10148_v63  ;;  %v10190_v21 = vcombine.high %v4601_v53, %v13545_v61  ;;  %v10189_v47 = vcombine.low %v4601_v53, %v13545_v61 }
 0x755   : > { %4568 = vst [vmem:[#allocation2 + $0x168] sm:$0xff] %v13614_v14  ;;  %4469 = vst.msk [vmem:[#allocation2 + $0xf8] sm:$0xf] %vm1486_vm0, %v4431_v28  ;;  %v4496_v61 = vrot.slane %v13562_v0, 4  ;;  %v4445_v31 = vrot.slane %v4431_v28, 4  ;;  %v10184_v7 = vcombine.high %v13614_v14, %v13556_v18  ;;  %v10181_v11 = vcombine.high %v13560_v43, %v13484_v13 }
 0x756   : > { %v4506_v12 = vsel %vm1494_vm1, %v4498_v32, %v4499_v1  ;;  %5113 = vmatprep.subr.bf16.mxu0 %v10190_v21  ;;  %v11572_v1 = vld [vmem:[#allocation2 + $0x68] ss:$12 sps:$4 sm:$0xff]   ;;  %v10180_v32 = vcombine.low %v13560_v43, %v13484_v13  ;;  %v11574_v13 = vld [vmem:[#allocation2 + $0x50] ss:$12 sps:$4 sm:$0xff]   ;;  %vm8532_vm4 = vcmask 31744  }
 0x757   : > { %v13628_v24 = vsel %vm1561_vm3, %v4489_v60, %v4506_v12  ;;  %v4483_v45 = vpop.permute.xlu0 %4482  ;;  %5057 = vmatpush1.bf16.msra.mxu1 %v10147_v39  ;;  %5114 = vmatpush1.bf16.msra.mxu0 %v10189_v47 }
 0x758   : > { %v4487_v20 = vpop.permute.xlu1 %4486  ;;  %4522 = vst [vmem:[#allocation2 + $0x144] sm:$0xff] %v13628_v24  ;;  %4519 = vst.msk [vmem:[#allocation2 + $0x134] sm:$0xf] %vm1486_vm0, %v4483_v45  ;;  %5058 = vmatprep.subr.bf16.mxu1 %v10145_v49  ;;  %5115 = vmatprep.subr.bf16.mxu0 %v10187_v9  ;;  %v11564_v55 = vld [vmem:[#allocation2 + $0x170] ss:$12 sps:$4 sm:$0xff]   ;;  %v4495_v35 = vrot.slane %v4483_v45, 4 }
 0x759   : > { %v4497_v3 = vrot.slane %v4487_v20, 4  ;;  %4521 = vst.msk [vmem:[#allocation2 + $0x140] sm:$0xf] %vm1486_vm0, %v4487_v20 }
 0x75b   : > { %v4504_v16 = vsel %vm1494_vm1, %v4496_v61, %v4497_v3  ;;  %v4481_v26 = vpop.permute.xlu0 %4480  ;;  %5059 = vmatpush1.bf16.msra.mxu1 %v10144_v38  ;;  %5116 = vmatpush1.bf16.msra.mxu0 %v10186_v54 }
 0x75c   : > { %v13648_v2 = vsel %vm1561_vm3, %v13562_v0, %v4504_v16  ;;  %v4429_v46 = vpop.permute.xlu1 %4428  ;;  %v4494_v62 = vrot.slane %v4481_v26, 4  ;;  %5060 = vmatprep.subr.bf16.mxu1 %v11776_v30  ;;  %10700 = vmatprep.subr.bf16.mxu0 %v11564_v55  ;;  %v11778_v0 = vpack.c.bf16 %v4180_v36, %v4177_v19  ;;  %v11779_v36 = vpack.c.bf16 %v4179_v34, %v4176_v56  ;;  %v11577_v30 = vld [vmem:[#allocation2 + $0x38] ss:$12 sps:$4 sm:$0xff]  }
 0x75d   : > { %4520 = vst [vmem:[#allocation2 + $0x138] sm:$0xff] %v13648_v2  ;;  %v4444_v37 = vrot.slane %v4429_v46, 4  ;;  %v10183_v56 = vcombine.low %v13614_v14, %v13556_v18  ;;  %v10178_v47 = vcombine.high %v13648_v2, %v13628_v24 }
 0x75e   : > { %v4502_v5 = vsel %vm1494_vm1, %v4494_v62, %v4495_v35  ;;  %10192 = vmatmul.mubr.msk.bf16.vlgmr.msra.gmra.mxu0 %vm3199_vm12, %v13644_v29 }
 0x75f   : > { %v4452_v59 = vsel %vm1494_vm1, %v4444_v37, %v4445_v31  ;;  %v13664_v52 = vsel %vm1561_vm3, %v4481_v26, %v4502_v5  ;;  %v4443_v57 = vpop.permute.xlu0 %4442  ;;  %5061 = vmatpush1.bf16.msra.mxu1 %v11777_v4  ;;  %10701 = vmatpush3.bf16.msra.mxu0 %v11566_v17  ;;  %vm7305_vm3 = vcmask 130048  }
 0x760   : > { %v13667_v42 = vsel %vm1548_vm6, %v4429_v46, %v4452_v59  ;;  %v4439_v58 = vpop.permute.xlu1 %4438  ;;  %4518 = vst [vmem:[#allocation2 + $0x12c] sm:$0xff] %v13664_v52  ;;  %4475 = vst.msk [vmem:[#allocation2 + $0x11c] sm:$0xf] %vm1486_vm0, %v4443_v57  ;;  %5062 = vmatprep.subr.bf16.mxu1 %v11778_v0  ;;  %10702 = vmatprep.subr.bf16.mxu0 %v11567_v15  ;;  %v11569_v19 = vld [vmem:[#allocation2 + $0x140] ss:$12 sps:$4 sm:$0xff]   ;;  %v4451_v51 = vrot.slane %v4443_v57, 4  ;;  %v10175_v20 = vcombine.high %v13587_v6, %v13664_v52 }
 0x761   : > { %4468 = vst [vmem:[#allocation2 + $0xf0] sm:$0xff] %v13667_v42  ;;  %v4449_v33 = vrot.slane %v4439_v58, 4  ;;  %4473 = vst.msk [vmem:[#allocation2 + $0x110] sm:$0xf] %vm1486_vm0, %v4439_v58  ;;  %5143 = vmatprep.mubr.bf16.mxu0 %v11835_v41  ;;  %v11570_v41 = vld [vmem:[#allocation2 + $0x80] ss:$12 sps:$4 sm:$0xff]  }
 0x762   : > { %v11579_v0 = vld [vmem:[#allocation2 + $0x20] ss:$12 sps:$4 sm:$0xff]  }
 0x763   : > { %v4456_v8 = vsel %vm1494_vm1, %v4448_v50, %v4449_v33  ;;  %v4441_v44 = vpop.permute.xlu0 %4440  ;;  %10703 = vmatpush3.bf16.msra.mxu0 %v11568_v23  ;;  %5063 = vmatpush1.bf16.msra.mxu1 %v11779_v36 }
 0x764   : > { %v13687_v40 = vsel %vm1548_vm6, %v13589_v22, %v4456_v8  ;;  %v4389_v25 = vpop.permute.xlu1 %4388  ;;  %v4450_v48 = vrot.slane %v4441_v44, 4  ;;  %5064 = vmatprep.subr.bf16.mxu1 %v10184_v7  ;;  %10704 = vmatprep.subr.bf16.mxu0 %v11569_v19  ;;  %v11571_v22 = vld [vmem:[#allocation2 + $0x128] ss:$12 sps:$4 sm:$0xff]  }
 0x765   : > { %4472 = vst [vmem:[#allocation2 + $0x108] sm:$0xff] %v13687_v40  ;;  %v4400_v18 = vrot.slane %v4389_v25, 4  ;;  %v11581_v8 = vld [vmem:[#allocation2 + $0x8] ss:$12 sps:$4 sm:$0xff]  }
 0x766   : > { %v4458_v34 = vsel %vm1494_vm1, %v4450_v48, %v4451_v51  ;;  %10193 = vmatmul.mubr.msk.bf16.gmra.mxu0 %vm3199_vm12, %v13683_v27  ;;  %v11586_v51 = vld [vmem:[#allocation2 + $0x188] ss:$12 sps:$4 sm:$0xff]   ;;  %v11589_v48 = vld [vmem:[%s11889_s29 + $0x18] ss:$12 sps:$4 sm:$0xff]  }
 0x767   : > { %v13698_v63 = vsel %vm1548_vm6, %v4441_v44, %v4458_v34  ;;  %v4435_v53 = vpop.permute.xlu0 %4434  ;;  %10705 = vmatpush3.bf16.msra.mxu0 %v11570_v41  ;;  %5065 = vmatpush2.bf16.msra.mxu1 %v10183_v56  ;;  %v11582_v44 = vld [vmem:[#allocation2 + $0x1a0] ss:$12 sps:$4 sm:$0xff]   ;;  %v5283_v41 = vld [vmem:[%s14572_s6 + $0xf8] sm:$0xff]  ;;  %v5282_v34 = vld [vmem:[%s14572_s6 + $0xf0] sm:$0xff] }
 0x768   : > { %v4391_v60 = vpop.permute.xlu1 %4390  ;;  %4474 = vst [vmem:[#allocation2 + $0x114] sm:$0xff] %v13698_v63  ;;  %4471 = vst.msk [vmem:[#allocation2 + $0x104] sm:$0xf] %vm1486_vm0, %v4435_v53  ;;  %5066 = vmatprep.subr.bf16.mxu1 %v10181_v11  ;;  %10706 = vmatprep.subr.bf16.mxu0 %v11571_v22  ;;  %v11573_v28 = vld [vmem:[#allocation2 + $0x110] ss:$12 sps:$4 sm:$0xff]   ;;  %v4447_v9 = vrot.slane %v4435_v53, 4  ;;  %v10171_v37 = vcombine.low %v13687_v40, %v13698_v63 }
 0x769   : > { %v4401_v14 = vrot.slane %v4391_v60, 4  ;;  %4425 = vst.msk [vmem:[#allocation2 + $0xe0] sm:$0xf] %vm1486_vm0, %v4391_v60  ;;  %5186 = vmatprep.mubr.bf16.mxu0 %v13446_v10  ;;  %v10177_v10 = vcombine.low %v13648_v2, %v13628_v24  ;;  %v10174_v24 = vcombine.low %v13587_v6, %v13664_v52  ;;  %v10172_v2 = vcombine.high %v13687_v40, %v13698_v63  ;;  %v11583_v40 = vld [vmem:[%s11889_s29] ss:$12 sps:$4 sm:$0xff]   ;;  %v5267_v56 = vld [vmem:[%s14572_s6 + $0x78] sm:$0xff] }
 0x76a   : > { %v5266_v11 = vld [vmem:[%s14572_s6 + $0x70] sm:$0xff]  ;;  %v5281_v22 = vld [vmem:[%s14572_s6 + $0xe8] sm:$0xff]  ;;  %v5264_v63 = vld [vmem:[%s14572_s6 + $0x60] sm:$0xff] }
 0x76b   : > { %v4408_v21 = vsel %vm1494_vm1, %v4400_v18, %v4401_v14  ;;  %v4433_v39 = vpop.permute.xlu0 %4432  ;;  %10707 = vmatpush3.bf16.msra.mxu0 %v11572_v1  ;;  %5067 = vmatpush2.bf16.msra.mxu1 %v10180_v32  ;;  %v5279_v53 = vld [vmem:[%s14572_s6 + $0xd8] sm:$0xff]  ;;  %v5278_v18 = vld [vmem:[%s14572_s6 + $0xd0] sm:$0xff]  ;;  %v5261_v1 = vld [vmem:[%s14572_s6 + $0x48] sm:$0xff] }
 0x76c   : > { %v4409_v12 = vsel %vm1535_vm5, %v4389_v25, %v4408_v21  ;;  %v4383_v49 = vpop.permute.xlu1 %4382  ;;  %v4446_v45 = vrot.slane %v4433_v39, 4  ;;  %5068 = vmatprep.subr.bf16.mxu1 %v10178_v47  ;;  %10708 = vmatprep.subr.bf16.mxu0 %v11573_v28  ;;  %v11587_v25 = vld [vmem:[%s11889_s29 + $0x1c] ss:$12 sps:$4 sm:$0xff]   ;;  %v5262_v14 = vld [vmem:[%s14572_s6 + $0x50] sm:$0xff]  ;;  %v5276_v32 = vld [vmem:[%s14572_s6 + $0xc0] sm:$0xff] }
 0x76d   : > { %4424 = vst [vmem:[#allocation2 + $0xd8] sm:$0xff] %v4409_v12  ;;  %4421 = vst.msk [vmem:[#allocation2 + $0xc8] sm:$0xf] %vm1486_vm0, %v4383_v49  ;;  %v4397_v54 = vrot.slane %v4383_v49, 4  ;;  %v5263_v60 = vld [vmem:[%s14572_s6 + $0x58] sm:$0xff]  ;;  %v5277_v28 = vld [vmem:[%s14572_s6 + $0xc8] sm:$0xff] }
 0x76e   : > { %v4454_v43 = vsel %vm1494_vm1, %v4446_v45, %v4447_v9  ;;  %v5260_v21 = vld [vmem:[%s14572_s6 + $0x40] sm:$0xff]  ;;  %v5275_v47 = vld [vmem:[%s14572_s6 + $0xb8] sm:$0xff]  ;;  %v5258_v49 = vld [vmem:[%s14572_s6 + $0x30] sm:$0xff] }
 0x76f   : > { %v4455_v61 = vsel %vm1548_vm6, %v4433_v39, %v4454_v43  ;;  %v4395_v3 = vpop.permute.xlu0 %4394  ;;  %5069 = vmatpush2.bf16.msra.mxu1 %v10177_v10  ;;  %10709 = vmatpush3.bf16.msra.mxu0 %v11574_v13  ;;  %v11576_v38 = vld [vmem:[#allocation2 + $0xf8] ss:$12 sps:$4 sm:$0xff]   ;;  %v5273_v9 = vld [vmem:[%s14572_s6 + $0xa8] sm:$0xff]  ;;  %vm9663_vm6 = vcmask 1040384  }
 0x770   : > { %v4381_v55 = vpop.permute.xlu1 %4380  ;;  %4470 = vst [vmem:[#allocation2 + $0xfc] sm:$0xff] %v4455_v61  ;;  %4427 = vst.msk [vmem:[#allocation2 + $0xec] sm:$0xf] %vm1486_vm0, %v4395_v3  ;;  %5070 = vmatprep.subr.bf16.mxu1 %v10175_v20  ;;  %10710 = vmatprep.subr.bf16.mxu0 %v11576_v38  ;;  %v4403_v31 = vrot.slane %v4395_v3, 4  ;;  %v10169_v4 = vcombine.high %v13667_v42, %v4455_v61  ;;  %v10168_v15 = vcombine.low %v13667_v42, %v4455_v61  ;;  %v5259_v39 = vld [vmem:[%s14572_s6 + $0x38] sm:$0xff]  ;;  %v5257_v45 = vld [vmem:[%s14572_s6 + $0x28] sm:$0xff] }
 0x771   : > { %v4396_v16 = vrot.slane %v4381_v55, 4  ;;  %v5272_v10 = vld [vmem:[%s14572_s6 + $0xa0] sm:$0xff]  ;;  %v5271_v43 = vld [vmem:[%s14572_s6 + $0x98] sm:$0xff]  ;;  %v5254_v38 = vld [vmem:[%s14572_s6 + $0x10] sm:$0xff] }
 0x772   : > { %v5256_v13 = vld [vmem:[%s14572_s6 + $0x20] sm:$0xff]  ;;  %v5255_v61 = vld [vmem:[%s14572_s6 + $0x18] sm:$0xff] }
 0x773   : > { %v4404_v26 = vsel %vm1494_vm1, %v4396_v16, %v4397_v54  ;;  %v4393_v46 = vpop.permute.xlu0 %4392  ;;  %5071 = vmatpush2.bf16.msra.mxu1 %v10174_v24  ;;  %10711 = vmatpush3.bf16.msra.mxu0 %v11577_v30  ;;  %v5292_v20 = vld [vmem:[%s14572_s6 + $0x140] sm:$0xf]  ;;  %v5291_v3 = vld [vmem:[%s14572_s6 + $0x138] sm:$0xff]  ;;  %v5269_v54 = vld [vmem:[%s14572_s6 + $0x88] sm:$0xff] }
 0x774   : > { %v4405_v35 = vsel %vm1535_vm5, %v4381_v55, %v4404_v26  ;;  %v4402_v62 = vrot.slane %v4393_v46, 4  ;;  %5072 = vmatprep.subr.bf16.mxu1 %v10172_v2  ;;  %v5270_v55 = vld [vmem:[%s14572_s6 + $0x90] sm:$0xff]  ;;  %v5253_v24 = vld [vmem:[%s14572_s6 + $0x8] sm:$0xff]  ;;  %v5268_v26 = vld [vmem:[%s14572_s6 + $0x80] sm:$0xff] }
 0x775   : > { %4420 = vst [vmem:[#allocation2 + $0xc0] sm:$0xff] %v4405_v35  ;;  %v5290_v16 = vld [vmem:[%s14572_s6 + $0x130] sm:$0xff]  ;;  %v5289_v30 = vld [vmem:[%s14572_s6 + $0x128] sm:$0xff]  ;;  %v5252_v2 = vld [vmem:[%s14572_s6] sm:$0xff] }
 0x776   : > { %v4410_v6 = vsel %vm1494_vm1, %v4402_v62, %v4403_v31  ;;  %v5286_v31 = vld [vmem:[%s14572_s6 + $0x110] sm:$0xff]  ;;  %v5285_v62 = vld [vmem:[%s14572_s6 + $0x108] sm:$0xff] }
 0x777   : > { %v4411_v17 = vsel %vm1535_vm5, %v4393_v46, %v4410_v6  ;;  %v4387_v5 = vpop.permute.xlu0 %4386  ;;  %v11578_v59 = vld [vmem:[#allocation2 + $0xe0] ss:$12 sps:$4 sm:$0xff]   ;;  %5073 = vmatpush2.bf16.msra.mxu1 %v10171_v37 }
 0x778   : > { %4426 = vst [vmem:[#allocation2 + $0xe4] sm:$0xff] %v4411_v17  ;;  %4423 = vst.msk [vmem:[#allocation2 + $0xd4] sm:$0xf] %vm1486_vm0, %v4387_v5  ;;  %5074 = vmatprep.subr.bf16.mxu1 %v10169_v4  ;;  %10712 = vmatprep.subr.bf16.mxu0 %v11578_v59  ;;  %v10166_v52 = vcombine.high %v4409_v12, %v4411_v17  ;;  %v4399_v58 = vrot.slane %v4387_v5, 4  ;;  %v10165_v33 = vcombine.low %v4409_v12, %v4411_v17  ;;  %v5274_v12 = vld [vmem:[%s14572_s6 + $0xb0] sm:$0xff]  ;;  %v5288_v46 = vld [vmem:[%s14572_s6 + $0x120] sm:$0xff] }
 0x779   : > { %10713 = vmatpush3.bf16.msra.mxu0 %v11579_v0  ;;  %v5284_v37 = vld [vmem:[%s14572_s6 + $0x100] sm:$0xff]  ;;  %vm6756_vm0 = vcmask 289792  }
 0x77b   : > { %v4385_v57 = vpop.permute.xlu0 %4384  ;;  %5075 = vmatpush2.bf16.msra.mxu1 %v10168_v15 }
 0x77c   : > { %v4398_v50 = vrot.slane %v4385_v57, 4  ;;  %5076 = vmatprep.subr.bf16.mxu1 %v10166_v52 }
 0x77e   : > { %v4406_v19 = vsel %vm1494_vm1, %v4398_v50, %v4399_v58 }
 0x77f   : > { %v4407_v23 = vsel %vm1535_vm5, %v4385_v57, %v4406_v19  ;;  %v11580_v36 = vld [vmem:[#allocation2 + $0xc8] ss:$12 sps:$4 sm:$0xff]   ;;  %5077 = vmatpush2.bf16.msra.mxu1 %v10165_v33  ;;  %v4707_v33 = vpop.permute.xlu1 %4706  ;;  %vm9205_vm5 = vcmask 68608  }
 0x780   : > { %4422 = vst [vmem:[#allocation2 + $0xcc] sm:$0xff] %v4407_v23  ;;  %v10163_v7 = vcombine.high %v4405_v35, %v4407_v23  ;;  %v10162_v42 = vcombine.low %v4405_v35, %v4407_v23  ;;  %10714 = vmatprep.subr.bf16.mxu0 %v11580_v36  ;;  %v5287_v35 = vld [vmem:[%s14572_s6 + $0x118] sm:$0xff] }
 0x781   : > { %10715 = vmatpush3.bf16.msra.mxu0 %v11581_v8 }
 0x782   : > { %5078 = vmatprep.subr.bf16.mxu1 %v10163_v7  ;;  %11185 = vmatprep.subr.bf16.mxu0 %v11582_v44 }
 0x783   : > { %5079 = vmatpush2.bf16.msra.mxu1 %v10162_v42 }
 0x784   : > { %5187 = vmatmul.mubr.bf16.vlgmr.msra.gmra.mxu0 %v11583_v40  ;;  %10732 = vmatprep.subr.mxu1 %v5283_v41 }
 0x785   : > { %11186 = vmatpush3.bf16.msra.mxu0 %v11582_v44  ;;  %5194 = vmatprep.mubr.bf16.mxu0 %v11587_v25 }
 0x786   : > { %11187 = vmatprep.subr.bf16.mxu0 %v11586_v51  ;;  %5081 = vmatmul.mubr.bf16.vlgmr.msra.gmra.mxu1 %v11583_v40 }
 0x787   : > { %5090 = vmatprep.mubr.bf16.mxu1 %v11587_v25  ;;  %10733 = vmatpush3.msra.mxu1 %v5267_v56 }
 0x788   : > { %10734 = vmatprep.subr.mxu1 %v5282_v34  ;;  %v4712_v44 = vpop.permute.xlu0 %4711 }
 0x789   : > { %11188 = vmatpush3.bf16.msra.mxu0 %v11586_v51  ;;  %10735 = vmatpush3.msra.mxu1 %v5266_v11 }
 0x78a   : > { %10736 = vmatprep.subr.mxu1 %v5281_v22  ;;  %11193 = vmatprep.subr.msk.mxu0 %vm1494_vm1, %v5292_v20  ;;  %v4717_v22 = vpop.permute.xlu1 %4716 }
 0x78c   : > { %5195 = vmatmul.mubr.bf16.gmra.mxu0 %v11589_v48 }
 0x78d   : > { %11189 = vmatprep.mubr.msk.bf16.mxu0 %vm3199_vm12, %v13644_v29  ;;  %v5265_v29 = vld [vmem:[%s14572_s6 + $0x68] sm:$0xff] }
 0x78e   : > { %5091 = vmatmul.mubr.bf16.gmra.mxu1 %v11589_v48 }
 0x78f   : > { %10737 = vmatpush3.msra.mxu1 %v5265_v29 }
 0x794   : > { %11190 = vmatmul.mubr.msk.bf16.vlgmr.msra.gmra.mxu0 %vm3199_vm12, %v13683_v27  ;;  %v5280_v27 = vld [vmem:[%s14572_s6 + $0xe0] sm:$0xff]  ;;  %s14598_s6 = sld [smem:[#allocation14_spill]] }
 0x795   : > { %10738 = vmatprep.subr.mxu1 %v5280_v27  ;;  %11194 = vmatpush3.msk.msra.mxu0 %vm1494_vm1, %v5292_v20 }
 0x796   : > { %10739 = vmatpush3.msra.mxu1 %v5264_v63  ;;  %11195 = vmatprep.subr.mxu0 %v5291_v3 }
 0x797   : > { %10740 = vmatprep.subr.mxu1 %v5279_v53  ;;  %11196 = vmatpush3.msra.mxu0 %v5291_v3 }
 0x798   : > { %10741 = vmatpush3.msra.mxu1 %v5263_v60  ;;  %11197 = vmatprep.subr.mxu0 %v5290_v16 }
 0x799   : > { %10742 = vmatprep.subr.mxu1 %v5278_v18  ;;  %11198 = vmatpush3.msra.mxu0 %v5290_v16 }
 0x79a   : > { %10743 = vmatpush3.msra.mxu1 %v5262_v14  ;;  %11199 = vmatprep.subr.mxu0 %v5289_v30 }
 0x79b   : > { %10744 = vmatprep.subr.mxu1 %v5277_v28  ;;  %11200 = vmatpush3.msra.mxu0 %v5289_v30 }
 0x79c   : > { %10745 = vmatpush3.msra.mxu1 %v5261_v1  ;;  %11201 = vmatprep.subr.mxu0 %v5288_v46 }
 0x79d   : > { %10746 = vmatprep.subr.mxu1 %v5276_v32  ;;  %11202 = vmatpush3.msra.mxu0 %v5288_v46  ;;  %v4722_v32 = vpop.permute.xlu0 %4721 }
 0x79e   : > { %10747 = vmatpush3.msra.mxu1 %v5260_v21  ;;  %11203 = vmatprep.subr.mxu0 %v5287_v35 }
 0x79f   : > { %10748 = vmatprep.subr.mxu1 %v5275_v47  ;;  %11204 = vmatpush3.msra.mxu0 %v5287_v35 }
 0x7a0   : > { %10749 = vmatpush3.msra.mxu1 %v5259_v39  ;;  %11205 = vmatprep.subr.mxu0 %v5286_v31 }
 0x7a1   : > { %10750 = vmatprep.subr.mxu1 %v5274_v12  ;;  %11206 = vmatpush3.msra.mxu0 %v5286_v31 }
 0x7a2   : > { %10751 = vmatpush3.msra.mxu1 %v5258_v49  ;;  %11207 = vmatprep.subr.mxu0 %v5285_v62 }
 0x7a3   : > { %10752 = vmatprep.subr.mxu1 %v5273_v9  ;;  %11208 = vmatpush3.msra.mxu0 %v5285_v62 }
 0x7a4   : > { %10753 = vmatpush3.msra.mxu1 %v5257_v45  ;;  %11209 = vmatprep.subr.mxu0 %v5284_v37 }
 0x7a5   : > { %10754 = vmatprep.subr.mxu1 %v5272_v10  ;;  %11210 = vmatpush3.msra.mxu0 %v5284_v37 }
 0x7a6   : > { %10755 = vmatpush3.msra.mxu1 %v5256_v13 }
 0x7a7   : > { %10756 = vmatprep.subr.mxu1 %v5271_v43 }
 0x7a8   : > { %10757 = vmatpush3.msra.mxu1 %v5255_v61 }
 0x7a9   : > { %10758 = vmatprep.subr.mxu1 %v5270_v55 }
 0x7aa   : > { %10759 = vmatpush3.msra.mxu1 %v5254_v38 }
 0x7ab   : > { %10760 = vmatprep.subr.mxu1 %v5269_v54 }
 0x7ac   : > { %10761 = vmatpush3.msra.mxu1 %v5253_v24 }
 0x7ad   : > { %10762 = vmatprep.subr.mxu1 %v5268_v26 }
 0x7ae   : > { %10763 = vmatpush3.msra.mxu1 %v5252_v2 }
 0x81e   : > { %v5135_v6 = vpop.f32.mrf.mxu0 }
 0x820   : > { %v5137_v4 = vpop.f32.mrf.mxu0 }
 0x822   : > { %v5139_v17 = vpop.f32.mrf.mxu0 }
 0x824   : > { %v5141_v5 = vpop.f32.mrf.mxu0 }
 0x826   : > { %v5145_v59 = vpop.f32.mrf.mxu0 }
 0x828   : > { %v5147_v0 = vpop.f32.mrf.mxu0 }
 0x82a   : > { %v5149_v15 = vpop.f32.mrf.mxu0 }
 0x82c   : > { %v5151_v52 = vpop.f32.mrf.mxu0 }
 0x844   : > { %v10716_v57 = vpop.f32.mrf.mxu0 }
 0x846   : > { %v10717_v58 = vpop.f32.mrf.mxu0  ;;  %v5082_v50 = vpop.f32.mrf.mxu1 }
 0x847   : > { %v5083_v23 = vadd.f32 %v5082_v50, %v4707_v33  ;;  %v10718_v18 = vadd.f32 %v10717_v58, %v10716_v57 }
 0x848   : > { %v10719_v19 = vpop.f32.mrf.mxu0  ;;  %v5084_v36 = vpop.f32.mrf.mxu1 }
 0x849   : > { %v5085_v8 = vadd.f32 %v5084_v36, %v4707_v33  ;;  %v5136_v25 = vadd.f32 %v5135_v6, %v5083_v23  ;;  %v5189_v45 = vadd.f32 %v10718_v18, %v4707_v33 }
 0x84a   : > { %v10720_v7 = vpop.f32.mrf.mxu0  ;;  %v5086_v42 = vpop.f32.mrf.mxu1 }
 0x84b   : > { %v5138_v40 = vadd.f32 %v5137_v4, %v5085_v8  ;;  %v5087_v48 = vadd.f32 %v5086_v42, %v4712_v44  ;;  %v10721_v9 = vadd.f32 %v10720_v7, %v10719_v19 }
 0x84c   : > { %v10722_v51 = vpop.f32.mrf.mxu0  ;;  %v5088_v41 = vpop.f32.mrf.mxu1 }
 0x84d   : > { %v5089_v56 = vadd.f32 %v5088_v41, %v4712_v44  ;;  %5372 = vmatprep.mubr.f32.mxu1 %v5138_v40  ;;  %v5140_v27 = vadd.f32 %v5139_v17, %v5087_v48  ;;  %v5192_v54 = vadd.f32 %v10721_v9, %v4712_v44 }
 0x84e   : > { %v10723_v34 = vpop.f32.mrf.mxu0  ;;  %v5092_v11 = vpop.f32.mrf.mxu1  ;;  %5373 = vmatmul.mubr.f32.vlgmr.msra.gmra.mxu1 %v5136_v25 }
 0x84f   : > { %v5142_v29 = vadd.f32 %v5141_v5, %v5089_v56  ;;  %v5093_v53 = vadd.f32 %v5092_v11, %v4717_v22  ;;  %v10724_v13 = vadd.f32 %v10723_v34, %v10722_v51  ;;  %v11608_v56 = vld [vmem:[%s14571_s8 + $0x4] ss:$12 sps:$4 sm:$0xff]   ;;  %v5676_v34 = vld [vmem:[%s11904_s14 + $0x8] sm:$0xff] }
 0x850   : > { %v10725_v63 = vpop.f32.mrf.mxu0  ;;  %v5094_v60 = vpop.f32.mrf.mxu1  ;;  %v11613_v11 = vld [vmem:[%s14571_s8 + $0x8] ss:$12 sps:$4 sm:$0xff]  }
 0x851   : > { %v5095_v14 = vadd.f32 %v5094_v60, %v4717_v22  ;;  %5377 = vmatprep.mubr.f32.mxu1 %v5142_v29  ;;  %v5146_v47 = vadd.f32 %v5145_v59, %v5093_v53  ;;  %v5197_v16 = vadd.f32 %v10724_v13, %v4717_v22  ;;  %v5675_v22 = vld [vmem:[%s11904_s14] sm:$0xff]  ;;  %v5678_v29 = vld [vmem:[%s11904_s14 + $0x18] sm:$0xff] }
 0x852   : > { %v10726_v28 = vpop.f32.mrf.mxu0  ;;  %v5096_v1 = vpop.f32.mrf.mxu1  ;;  %5378 = vmatmul.mubr.f32.gmra.mxu1 %v5140_v27  ;;  %v5677_v27 = vld [vmem:[%s11904_s14 + $0x10] sm:$0xff] }
 0x853   : > { %v5148_v21 = vadd.f32 %v5147_v0, %v5095_v14  ;;  %v5097_v12 = vadd.f32 %v5096_v1, %v4722_v32  ;;  %v10727_v38 = vadd.f32 %v10726_v28, %v10725_v63 }
 0x854   : > { %v11191_v39 = vpop.f32.mrf.mxu0  ;;  %v5098_v49 = vpop.f32.mrf.mxu1 }
 0x855   : > { %v5099_v10 = vadd.f32 %v5098_v49, %v4722_v32  ;;  %5382 = vmatprep.mubr.f32.mxu1 %v5148_v21  ;;  %v5150_v3 = vadd.f32 %v5149_v15, %v5097_v12  ;;  %v5246_v26 = vadd.f32 %v11191_v39, %v5197_v16  ;;  %v5200_v2 = vadd.f32 %v10727_v38, %v4722_v32 }
 0x856   : > { %v5237_v43 = vpop.f32.mrf.mxu0  ;;  %5383 = vmatmul.mubr.f32.gmra.mxu1 %v5146_v47 }
 0x857   : > { %v5238_v20 = vadd.f32 %v5237_v43, %v5189_v45  ;;  %v5152_v61 = vadd.f32 %v5151_v52, %v5099_v10 }
 0x858   : > { %v11192_v55 = vpop.f32.mrf.mxu0 }
 0x859   : > { %11211 = vmatprep.mubr.msk.f32.mxu0 %vm1975_vm11, %v5238_v20  ;;  %5387 = vmatprep.mubr.f32.mxu1 %v5152_v61  ;;  %v5249_v46 = vadd.f32 %v11192_v55, %v5200_v2 }
 0x85a   : > { %v5240_v24 = vpop.f32.mrf.mxu0  ;;  %5388 = vmatmul.mubr.f32.gmra.mxu1 %v5150_v3 }
 0x85b   : > { %v5241_v30 = vadd.f32 %v5240_v24, %v5192_v54  ;;  %11221 = vmatprep.mubr.msk.bf16.mxu1 %vm3199_vm12, %v11613_v11  ;;  %v6068_v11 = vld [vmem:[%s14576_s16 + $0x40] sm:$0xff] }
 0x85d   : > { %11212 = vmatmul.mubr.msk.f32.vlgmr.msra.gmra.mxu0 %vm1975_vm11, %v5241_v30 }
 0x85e   : > { %11214 = vmatprep.mubr.msk.f32.mxu0 %vm1975_vm11, %v5246_v26 }
 0x861   : > { %11215 = vmatmul.mubr.msk.f32.gmra.mxu0 %vm1975_vm11, %v5249_v46 }
 0x862   : > { %5875 = vmatprep.mubr.bf16.mxu0 %v11608_v56  ;;  %v6069_v56 = vld [vmem:[%s14576_s16 + $0x48] sm:$0xff] }
 0x90e   : > { %v10764_v35 = vpop.f32.mrf.mxu1 }
 0x910   : > { %v10765_v31 = vpop.f32.mrf.mxu1 }
 0x911   : > { %v10766_v15 = vadd.f32 %v10765_v31, %v10764_v35 }
 0x912   : > { %v10767_v62 = vpop.f32.mrf.mxu1 }
 0x914   : > { %v10768_v37 = vpop.f32.mrf.mxu1 }
 0x915   : > { %v10769_v5 = vadd.f32 %v10768_v37, %v10767_v62 }
 0x916   : > { %v10770_v6 = vpop.f32.mrf.mxu1 }
 0x918   : > { %v10771_v4 = vpop.f32.mrf.mxu1 }
 0x919   : > { %v10772_v36 = vadd.f32 %v10771_v4, %v10770_v6 }
 0x91a   : > { %v10773_v17 = vpop.f32.mrf.mxu1 }
 0x91c   : > { %v10774_v0 = vpop.f32.mrf.mxu1 }
 0x91d   : > { %v11213_v59 = vpop.f32.mrf.mxu0  ;;  %v10775_v33 = vadd.f32 %v10774_v0, %v10773_v17 }
 0x91e   : > { %v5465_v52 = vadd.f32 %v11213_v59, %v10769_v5 }
 0x91f   : > { %v5459_v57 = vpop.f32.mrf.mxu0 }
 0x920   : > { %v5479_v58 = vmax.f32 %v5465_v52, 0.0  ;;  %v5460_v50 = vadd.f32 %v10766_v15, %v5459_v57 }
 0x921   : > { %v11216_v19 = vpop.f32.mrf.mxu0 }
 0x922   : > { %v10485_v23 = vpack.c.bf16 %v5479_v58, %v5479_v58  ;;  %v5478_v8 = vmax.f32 %v5460_v50, 0.0  ;;  %v5475_v7 = vadd.f32 %v11216_v19, %v10775_v33 }
 0x923   : > { %v5469_v42 = vpop.f32.mrf.mxu0 }
 0x924   : > { %5500 = vst.msk [vmem:[#allocation2 + $0xc] sm:$0xf] %vm5498_vm13, %v10485_v23  ;;  %v10484_v44 = vpack.c.bf16 %v5478_v8, %v5478_v8  ;;  %v5481_v40 = vmax.f32 %v5475_v7, 0.0  ;;  %v5470_v25 = vadd.f32 %v10772_v36, %v5469_v42  ;;  %5601 = vrot.lane.b32.xlu0 %v10485_v23, %s11837_s28  ;;  %v6072_v36 = vld [vmem:[%s14576_s16 + $0x60] sm:$0xf] }
 0x925   : > { %v11606_v8 = vld [vmem:[%s14571_s8] ss:$12 sps:$4 sm:$0xff]   ;;  %v11611_v7 = vld [vmem:[%s14571_s8 + $0x1c] ss:$12 sps:$4 sm:$0xff]  }
 0x926   : > { %5499 = vst.msk [vmem:[#allocation2] sm:$0xf] %vm5498_vm13, %v10484_v44  ;;  %v10487_v51 = vpack.c.bf16 %v5481_v40, %v5481_v40  ;;  %v5480_v48 = vmax.f32 %v5470_v25, 0.0  ;;  %5599 = vrot.lane.b32.xlu1 %v10484_v44, %s11837_s28  ;;  %v6070_v25 = vld [vmem:[%s14576_s16 + $0x50] sm:$0xff] }
 0x928   : > { %5502 = vst.msk [vmem:[#allocation2 + $0x24] sm:$0xf] %vm5498_vm13, %v10487_v51  ;;  %v10486_v41 = vpack.c.bf16 %v5480_v48, %v5480_v48  ;;  %5537 = vrot.lane.b32.xlu0 %v10485_v23, %s14504_s1  ;;  %v11614_v48 = vld [vmem:[%s14571_s8 + $0x18] ss:$12 sps:$4 sm:$0xff]  }
 0x92a   : > { %5501 = vst.msk [vmem:[#allocation2 + $0x18] sm:$0xf] %vm5498_vm13, %v10486_v41  ;;  %5535 = vrot.lane.b32.xlu1 %v10484_v44, %s14504_s1 }
 0x92c   : > { %5585 = vrot.lane.b32.xlu0 %v10485_v23, %s11831_s11 }
 0x92e   : > { %5583 = vrot.lane.b32.xlu1 %v10484_v44, %s11831_s11 }
 0x930   : > { %5521 = vrot.lane.b32.xlu0 %v10485_v23, %s14518_s15 }
 0x931   : > { %v11603_v58 = vld [vmem:[#allocation2 + $0x18] ss:$12 sps:$4 sm:$0xff]  }
 0x932   : > { %5519 = vrot.lane.b32.xlu1 %v10484_v44, %s14518_s15 }
 0x934   : > { %5569 = vrot.lane.b32.xlu0 %v10485_v23, %s14510_s2 }
 0x936   : > { %5567 = vrot.lane.b32.xlu1 %v10484_v44, %s14510_s2 }
 0x938   : > { %5605 = vrot.lane.b32.xlu0 %v10487_v51, %s11837_s28 }
 0x93a   : > { %5603 = vrot.lane.b32.xlu1 %v10486_v41, %s11837_s28 }
 0x93c   : > { %5541 = vrot.lane.b32.xlu0 %v10487_v51, %s14504_s1 }
 0x93e   : > { %5539 = vrot.lane.b32.xlu1 %v10486_v41, %s14504_s1 }
 0x940   : > { %5589 = vrot.lane.b32.xlu0 %v10487_v51, %s11831_s11 }
 0x942   : > { %5587 = vrot.lane.b32.xlu1 %v10486_v41, %s11831_s11 }
 0x944   : > { %5525 = vrot.lane.b32.xlu0 %v10487_v51, %s14518_s15 }
 0x946   : > { %5523 = vrot.lane.b32.xlu1 %v10486_v41, %s14518_s15 }
 0x948   : > { %5573 = vrot.lane.b32.xlu0 %v10487_v51, %s14510_s2 }
 0x94a   : > { %5571 = vrot.lane.b32.xlu1 %v10486_v41, %s14510_s2 }
 0x94c   : > { %5509 = vrot.lane.b32.xlu0 %v10487_v51, %s14506_s18 }
 0x94e   : > { %5507 = vrot.lane.b32.xlu1 %v10486_v41, %s14506_s18 }
 0x950   : > { %5505 = vrot.lane.b32.xlu0 %v10485_v23, %s14506_s18 }
 0x952   : > { %5503 = vrot.lane.b32.xlu1 %v10484_v44, %s14506_s18 }
 0x954   : > { %5557 = vrot.lane.b32.xlu0 %v10487_v51, %s11840_s7 }
 0x956   : > { %5555 = vrot.lane.b32.xlu1 %v10486_v41, %s11840_s7 }
 0x958   : > { %5553 = vrot.lane.b32.xlu0 %v10485_v23, %s11840_s7 }
 0x95a   : > { %5551 = vrot.lane.b32.xlu1 %v10484_v44, %s11840_s7 }
 0x95c   : > { %5621 = vrot.lane.b32.xlu0 %v10487_v51, %s14502_s10  ;;  %v5953_v51 = vld [vmem:[%s14577_s0 + $0x60] sm:$0xf] }
 0x95e   : > { %5619 = vrot.lane.b32.xlu1 %v10486_v41, %s14502_s10  ;;  %v11615_v41 = vld [vmem:[%s14571_s8 + $0x20] ss:$12 sps:$4 sm:$0xff]   ;;  %s14605_s8 = sld [smem:[#allocation16_spill]] }
 0x960   : > { %5617 = vrot.lane.b32.xlu0 %v10485_v23, %s14502_s10  ;;  %v11605_v23 = vld [vmem:[#allocation2] ss:$12 sps:$4 sm:$0xff]  }
 0x962   : > { %5615 = vrot.lane.b32.xlu1 %v10484_v44, %s14502_s10  ;;  %v6071_v44 = vld [vmem:[%s14576_s16 + $0x58] sm:$0xff]  ;;  %s1216_s10 = scalar_lea.vmem %s12039_s27, %s13906_s26 }
 0x964   : > { %5686 = vperm.xlu0 %11529, %v5676_v34   ;;  %v5952_v34 = vld [vmem:[%s14577_s0 + $0x58] sm:$0xff] }
 0x966   : > { %5681 = vperm.xlu1 %11530, %v5675_v22   ;;  %v5951_v22 = vld [vmem:[%s14577_s0 + $0x50] sm:$0xff] }
 0x968   : > { %5696 = vperm.xlu0 %11529, %v5678_v29   ;;  %v5950_v29 = vld [vmem:[%s14577_s0 + $0x48] sm:$0xff] }
 0x96a   : > { %5691 = vperm.xlu1 %11530, %v5677_v27   ;;  %v5949_v27 = vld [vmem:[%s14577_s0 + $0x40] sm:$0xff] }
 0x996   : > { %v5602_v63 = vpop.permute.xlu0 %5601 }
 0x997   : > { %5612 = vst.msk [vmem:[#allocation2 + $0x15c] sm:$0xf] %vm5498_vm13, %v5602_v63  ;;  %v5948_v63 = vld [vmem:[%s14577_s0 + $0x38] sm:$0xff] }
 0x998   : > { %v5600_v53 = vpop.permute.xlu1 %5599 }
 0x999   : > { %5611 = vst.msk [vmem:[#allocation2 + $0x150] sm:$0xf] %vm5498_vm13, %v5600_v53  ;;  %v6067_v53 = vld [vmem:[%s14576_s16 + $0x38] sm:$0xff] }
 0x99a   : > { %v5538_v60 = vpop.permute.xlu0 %5537 }
 0x99b   : > { %5548 = vst.msk [vmem:[#allocation2 + $0x9c] sm:$0xf] %vm5498_vm13, %v5538_v60  ;;  %v5947_v60 = vld [vmem:[%s14577_s0 + $0x30] sm:$0xff] }
 0x99c   : > { %v5536_v18 = vpop.permute.xlu1 %5535 }
 0x99d   : > { %5547 = vst.msk [vmem:[#allocation2 + $0x90] sm:$0xf] %vm5498_vm13, %v5536_v18  ;;  %v6066_v18 = vld [vmem:[%s14576_s16 + $0x30] sm:$0xff] }
 0x99e   : > { %v5586_v14 = vpop.permute.xlu0 %5585 }
 0x99f   : > { %5596 = vst.msk [vmem:[#allocation2 + $0x12c] sm:$0xf] %vm5498_vm13, %v5586_v14  ;;  %v5946_v14 = vld [vmem:[%s14577_s0 + $0x28] sm:$0xff] }
 0x9a0   : > { %v5584_v28 = vpop.permute.xlu1 %5583  ;;  %v11592_v3 = vld [vmem:[#allocation2 + $0x150] ss:$12 sps:$4 sm:$0xff]  }
 0x9a1   : > { %5595 = vst.msk [vmem:[#allocation2 + $0x120] sm:$0xf] %vm5498_vm13, %v5584_v28  ;;  %v6065_v28 = vld [vmem:[%s14576_s16 + $0x28] sm:$0xff] }
 0x9a2   : > { %v5522_v1 = vpop.permute.xlu0 %5521 }
 0x9a3   : > { %5532 = vst.msk [vmem:[#allocation2 + $0x6c] sm:$0xf] %vm5498_vm13, %v5522_v1  ;;  %v5945_v1 = vld [vmem:[%s14577_s0 + $0x20] sm:$0xff] }
 0x9a4   : > { %v5520_v32 = vpop.permute.xlu1 %5519  ;;  %v11593_v54 = vld [vmem:[#allocation2 + $0x90] ss:$12 sps:$4 sm:$0xff]  }
 0x9a5   : > { %5531 = vst.msk [vmem:[#allocation2 + $0x60] sm:$0xf] %vm5498_vm13, %v5520_v32  ;;  %v6064_v32 = vld [vmem:[%s14576_s16 + $0x20] sm:$0xff] }
 0x9a6   : > { %v5570_v21 = vpop.permute.xlu0 %5569 }
 0x9a7   : > { %5580 = vst.msk [vmem:[#allocation2 + $0xfc] sm:$0xf] %vm5498_vm13, %v5570_v21  ;;  %v5944_v21 = vld [vmem:[%s14577_s0 + $0x18] sm:$0xff] }
 0x9a8   : > { %v5568_v47 = vpop.permute.xlu1 %5567  ;;  %v11596_v2 = vld [vmem:[#allocation2 + $0x120] ss:$12 sps:$4 sm:$0xff]  }
 0x9a9   : > { %5579 = vst.msk [vmem:[#allocation2 + $0xf0] sm:$0xf] %vm5498_vm13, %v5568_v47  ;;  %v6063_v47 = vld [vmem:[%s14576_s16 + $0x18] sm:$0xff] }
 0x9aa   : > { %v5606_v39 = vpop.permute.xlu0 %5605 }
 0x9ab   : > { %5614 = vst.msk [vmem:[#allocation2 + $0x174] sm:$0xf] %vm5498_vm13, %v5606_v39  ;;  %v5943_v39 = vld [vmem:[%s14577_s0 + $0x10] sm:$0xff] }
 0x9ac   : > { %v5604_v12 = vpop.permute.xlu1 %5603  ;;  %v11597_v31 = vld [vmem:[#allocation2 + $0x60] ss:$12 sps:$4 sm:$0xff]  }
 0x9ad   : > { %5613 = vst.msk [vmem:[#allocation2 + $0x168] sm:$0xf] %vm5498_vm13, %v5604_v12  ;;  %v6062_v12 = vld [vmem:[%s14576_s16 + $0x10] sm:$0xff] }
 0x9ae   : > { %v5542_v49 = vpop.permute.xlu0 %5541 }
 0x9af   : > { %5550 = vst.msk [vmem:[#allocation2 + $0xb4] sm:$0xf] %vm5498_vm13, %v5542_v49  ;;  %v5942_v49 = vld [vmem:[%s14577_s0 + $0x8] sm:$0xff] }
 0x9b0   : > { %v5540_v9 = vpop.permute.xlu1 %5539  ;;  %v11600_v17 = vld [vmem:[#allocation2 + $0xf0] ss:$12 sps:$4 sm:$0xff]  }
 0x9b1   : > { %5549 = vst.msk [vmem:[#allocation2 + $0xa8] sm:$0xf] %vm5498_vm13, %v5540_v9  ;;  %v6061_v9 = vld [vmem:[%s14576_s16 + $0x8] sm:$0xff] }
 0x9b2   : > { %v5590_v45 = vpop.permute.xlu0 %5589 }
 0x9b3   : > { %5598 = vst.msk [vmem:[#allocation2 + $0x144] sm:$0xf] %vm5498_vm13, %v5590_v45  ;;  %v5941_v45 = vld [vmem:[%s14577_s0] sm:$0xff]  ;;  %s14583_s0 = smov 127  }
 0x9b4   : > { %v5588_v10 = vpop.permute.xlu1 %5587  ;;  %v11590_v13 = vld [vmem:[#allocation2 + $0x168] ss:$12 sps:$4 sm:$0xff]  }
 0x9b5   : > { %5597 = vst.msk [vmem:[#allocation2 + $0x138] sm:$0xf] %vm5498_vm13, %v5588_v10  ;;  %10789 = vmatprep.subr.bf16.mxu0 %v11590_v13  ;;  %v6060_v10 = vld [vmem:[%s14576_s16] sm:$0xff] }
 0x9b6   : > { %v5526_v43 = vpop.permute.xlu0 %5525 }
 0x9b7   : > { %5534 = vst.msk [vmem:[#allocation2 + $0x84] sm:$0xf] %vm5498_vm13, %v5526_v43 }
 0x9b8   : > { %v5524_v20 = vpop.permute.xlu1 %5523  ;;  %v11591_v61 = vld [vmem:[#allocation2 + $0xa8] ss:$12 sps:$4 sm:$0xff]  }
 0x9b9   : > { %5533 = vst.msk [vmem:[#allocation2 + $0x78] sm:$0xf] %vm5498_vm13, %v5524_v20  ;;  %10790 = vmatpush3.bf16.msra.mxu0 %v11591_v61 }
 0x9ba   : > { %v5574_v55 = vpop.permute.xlu0 %5573  ;;  %10791 = vmatprep.subr.bf16.mxu0 %v11592_v3 }
 0x9bb   : > { %5582 = vst.msk [vmem:[#allocation2 + $0x114] sm:$0xf] %vm5498_vm13, %v5574_v55 }
 0x9bc   : > { %v5572_v38 = vpop.permute.xlu1 %5571  ;;  %v11594_v16 = vld [vmem:[#allocation2 + $0x138] ss:$12 sps:$4 sm:$0xff]  }
 0x9bd   : > { %5581 = vst.msk [vmem:[#allocation2 + $0x108] sm:$0xf] %vm5498_vm13, %v5572_v38  ;;  %10792 = vmatpush3.bf16.msra.mxu0 %v11593_v54 }
 0x9be   : > { %v5510_v24 = vpop.permute.xlu0 %5509  ;;  %10793 = vmatprep.subr.bf16.mxu0 %v11594_v16 }
 0x9bf   : > { %5518 = vst.msk [vmem:[#allocation2 + $0x54] sm:$0xf] %vm5498_vm13, %v5510_v24 }
 0x9c0   : > { %v5508_v30 = vpop.permute.xlu1 %5507  ;;  %v11595_v26 = vld [vmem:[#allocation2 + $0x78] ss:$12 sps:$4 sm:$0xff]  }
 0x9c1   : > { %5517 = vst.msk [vmem:[#allocation2 + $0x48] sm:$0xf] %vm5498_vm13, %v5508_v30  ;;  %10794 = vmatpush3.bf16.msra.mxu0 %v11595_v26 }
 0x9c2   : > { %v5506_v46 = vpop.permute.xlu0 %5505  ;;  %10795 = vmatprep.subr.bf16.mxu0 %v11596_v2 }
 0x9c3   : > { %5516 = vst.msk [vmem:[#allocation2 + $0x3c] sm:$0xf] %vm5498_vm13, %v5506_v46 }
 0x9c4   : > { %v5504_v35 = vpop.permute.xlu1 %5503  ;;  %v11598_v62 = vld [vmem:[#allocation2 + $0x108] ss:$12 sps:$4 sm:$0xff]  }
 0x9c5   : > { %5515 = vst.msk [vmem:[#allocation2 + $0x30] sm:$0xf] %vm5498_vm13, %v5504_v35  ;;  %10796 = vmatpush3.bf16.msra.mxu0 %v11597_v31 }
 0x9c6   : > { %v5558_v37 = vpop.permute.xlu0 %5557  ;;  %10797 = vmatprep.subr.bf16.mxu0 %v11598_v62 }
 0x9c7   : > { %5566 = vst.msk [vmem:[#allocation2 + $0xe4] sm:$0xf] %vm5498_vm13, %v5558_v37 }
 0x9c8   : > { %v5556_v6 = vpop.permute.xlu1 %5555  ;;  %v11599_v4 = vld [vmem:[#allocation2 + $0x48] ss:$12 sps:$4 sm:$0xff]  }
 0x9c9   : > { %5565 = vst.msk [vmem:[#allocation2 + $0xd8] sm:$0xf] %vm5498_vm13, %v5556_v6  ;;  %10798 = vmatpush3.bf16.msra.mxu0 %v11599_v4 }
 0x9ca   : > { %v5554_v5 = vpop.permute.xlu0 %5553  ;;  %10799 = vmatprep.subr.bf16.mxu0 %v11600_v17 }
 0x9cb   : > { %5564 = vst.msk [vmem:[#allocation2 + $0xcc] sm:$0xf] %vm5498_vm13, %v5554_v5 }
 0x9cc   : > { %v5552_v59 = vpop.permute.xlu1 %5551  ;;  %v11601_v0 = vld [vmem:[#allocation2 + $0x30] ss:$12 sps:$4 sm:$0xff]  }
 0x9cd   : > { %5563 = vst.msk [vmem:[#allocation2 + $0xc0] sm:$0xf] %vm5498_vm13, %v5552_v59  ;;  %10800 = vmatpush3.bf16.msra.mxu0 %v11601_v0 }
 0x9ce   : > { %v5622_v15 = vpop.permute.xlu0 %5621 }
 0x9cf   : > { %5630 = vst.msk [vmem:[#allocation2 + $0x1a4] sm:$0xf] %vm5498_vm13, %v5622_v15 }
 0x9d0   : > { %v5620_v52 = vpop.permute.xlu1 %5619  ;;  %v11602_v57 = vld [vmem:[#allocation2 + $0xd8] ss:$12 sps:$4 sm:$0xff]  }
 0x9d1   : > { %5629 = vst.msk [vmem:[#allocation2 + $0x198] sm:$0xf] %vm5498_vm13, %v5620_v52  ;;  %10801 = vmatprep.subr.bf16.mxu0 %v11602_v57 }
 0x9d2   : > { %v5618_v50 = vpop.permute.xlu0 %5617  ;;  %10802 = vmatpush3.bf16.msra.mxu0 %v11603_v58 }
 0x9d3   : > { %5628 = vst.msk [vmem:[#allocation2 + $0x18c] sm:$0xf] %vm5498_vm13, %v5618_v50 }
 0x9d4   : > { %v5616_v33 = vpop.permute.xlu1 %5615  ;;  %v11604_v19 = vld [vmem:[#allocation2 + $0xc0] ss:$12 sps:$4 sm:$0xff]  }
 0x9d5   : > { %5627 = vst.msk [vmem:[#allocation2 + $0x180] sm:$0xf] %vm5498_vm13, %v5616_v33  ;;  %10803 = vmatprep.subr.bf16.mxu0 %v11604_v19 }
 0x9d6   : > { %10804 = vmatpush3.bf16.msra.mxu0 %v11605_v23 }
 0x9d7   : > { %11257 = vmatprep.subr.msk.mxu0 %vm1494_vm1, %v6072_v36 }
 0x9d8   : > { %v11609_v42 = vld [vmem:[#allocation2 + $0x198] ss:$12 sps:$4 sm:$0xff]  }
 0x9d9   : > { %5876 = vmatmul.mubr.bf16.vlgmr.msra.gmra.mxu0 %v11606_v8  ;;  %11217 = vmatprep.subr.bf16.mxu1 %v11609_v42 }
 0x9da   : > { %11218 = vmatpush3.bf16.msra.mxu1 %v11609_v42  ;;  %5883 = vmatprep.mubr.bf16.mxu0 %v11611_v7 }
 0x9db   : > { %11258 = vmatpush3.msk.msra.mxu0 %vm1494_vm1, %v6072_v36 }
 0x9dc   : > { %v11610_v40 = vld [vmem:[#allocation2 + $0x180] ss:$12 sps:$4 sm:$0xff]   ;;  %11259 = vmatprep.subr.mxu0 %v6071_v44 }
 0x9dd   : > { %11219 = vmatprep.subr.bf16.mxu1 %v11610_v40  ;;  %11260 = vmatpush3.msra.mxu0 %v6071_v44 }
 0x9de   : > { %11220 = vmatpush3.bf16.msra.mxu1 %v11610_v40  ;;  %11261 = vmatprep.subr.mxu0 %v6070_v25 }
 0x9df   : > { %11225 = vmatprep.subr.msk.mxu1 %vm1494_vm1, %v5953_v51  ;;  %11262 = vmatpush3.msra.mxu0 %v6070_v25  ;;  %v5687_v16 = vpop.permute.xlu0 %5686 }
 0x9e0   : > { %11263 = vmatprep.subr.mxu0 %v6069_v56 }
 0x9e1   : > { %5884 = vmatmul.mubr.bf16.gmra.mxu0 %v11614_v48  ;;  %11222 = vmatmul.mubr.msk.bf16.vlgmr.msra.gmra.mxu1 %vm3199_vm12, %v11615_v41  ;;  %v5682_v61 = vpop.permute.xlu1 %5681 }
 0x9e2   : > { %11226 = vmatpush3.msk.msra.mxu1 %vm1494_vm1, %v5953_v51  ;;  %11264 = vmatpush3.msra.mxu0 %v6069_v56 }
 0x9e3   : > { %11227 = vmatprep.subr.mxu1 %v5952_v34  ;;  %11265 = vmatprep.subr.mxu0 %v6068_v11  ;;  %v5697_v52 = vpop.permute.xlu0 %5696 }
 0x9e4   : > { %11228 = vmatpush3.msra.mxu1 %v5952_v34  ;;  %11266 = vmatpush3.msra.mxu0 %v6068_v11  ;;  %v11634_v11 = vld [vmem:[%s14578_s23 + $0x4] ss:$12 sps:$4 sm:$0xff]  }
 0x9e5   : > { %11229 = vmatprep.subr.mxu1 %v5951_v22  ;;  %11267 = vmatprep.subr.mxu0 %v6067_v53  ;;  %v5692_v46 = vpop.permute.xlu1 %5691 }
 0x9e6   : > { %11230 = vmatpush3.msra.mxu1 %v5951_v22  ;;  %11268 = vmatpush3.msra.mxu0 %v6067_v53 }
 0x9e7   : > { %11231 = vmatprep.subr.mxu1 %v5950_v29  ;;  %11269 = vmatprep.subr.mxu0 %v6066_v18 }
 0x9e8   : > { %11232 = vmatpush3.msra.mxu1 %v5950_v29  ;;  %11270 = vmatpush3.msra.mxu0 %v6066_v18  ;;  %v11639_v29 = vld [vmem:[%s14578_s23 + $0x8] ss:$12 sps:$4 sm:$0xff]  }
 0x9e9   : > { %11233 = vmatprep.subr.mxu1 %v5949_v27  ;;  %11271 = vmatprep.subr.mxu0 %v6065_v28 }
 0x9ea   : > { %11234 = vmatpush3.msra.mxu1 %v5949_v27  ;;  %11272 = vmatpush3.msra.mxu0 %v6065_v28 }
 0x9eb   : > { %11235 = vmatprep.subr.mxu1 %v5948_v63  ;;  %11273 = vmatprep.subr.mxu0 %v6064_v32 }
 0x9ec   : > { %11236 = vmatpush3.msra.mxu1 %v5948_v63  ;;  %11274 = vmatpush3.msra.mxu0 %v6064_v32 }
 0x9ed   : > { %11237 = vmatprep.subr.mxu1 %v5947_v60  ;;  %11275 = vmatprep.subr.mxu0 %v6063_v47 }
 0x9ee   : > { %11238 = vmatpush3.msra.mxu1 %v5947_v60  ;;  %11276 = vmatpush3.msra.mxu0 %v6063_v47 }
 0x9ef   : > { %11239 = vmatprep.subr.mxu1 %v5946_v14  ;;  %11277 = vmatprep.subr.mxu0 %v6062_v12 }
 0x9f0   : > { %11240 = vmatpush3.msra.mxu1 %v5946_v14  ;;  %11278 = vmatpush3.msra.mxu0 %v6062_v12 }
 0x9f1   : > { %11241 = vmatprep.subr.mxu1 %v5945_v1  ;;  %11279 = vmatprep.subr.mxu0 %v6061_v9 }
 0x9f2   : > { %11242 = vmatpush3.msra.mxu1 %v5945_v1  ;;  %11280 = vmatpush3.msra.mxu0 %v6061_v9 }
 0x9f3   : > { %11243 = vmatprep.subr.mxu1 %v5944_v21  ;;  %11281 = vmatprep.subr.mxu0 %v6060_v10 }
 0x9f4   : > { %11244 = vmatpush3.msra.mxu1 %v5944_v21  ;;  %11282 = vmatpush3.msra.mxu0 %v6060_v10 }
 0x9f5   : > { %11245 = vmatprep.subr.mxu1 %v5943_v39 }
 0x9f6   : > { %11246 = vmatpush3.msra.mxu1 %v5943_v39 }
 0x9f7   : > { %11247 = vmatprep.subr.mxu1 %v5942_v49 }
 0x9f8   : > { %11248 = vmatpush3.msra.mxu1 %v5942_v49 }
 0x9f9   : > { %11249 = vmatprep.subr.mxu1 %v5941_v45 }
 0x9fa   : > { %11250 = vmatpush3.msra.mxu1 %v5941_v45 }
 0xa99   : > { %v10805_v13 = vpop.f32.mrf.mxu0 }
 0xa9b   : > { %v10806_v43 = vpop.f32.mrf.mxu0 }
 0xa9c   : > { %v10807_v3 = vadd.f32 %v10806_v43, %v10805_v13 }
 0xa9d   : > { %v10808_v20 = vpop.f32.mrf.mxu0 }
 0xa9e   : > { %v5878_v30 = vadd.f32 %v10807_v3, %v5682_v61 }
 0xa9f   : > { %v10809_v55 = vpop.f32.mrf.mxu0 }
 0xaa0   : > { %v10810_v24 = vadd.f32 %v10809_v55, %v10808_v20 }
 0xaa1   : > { %v10811_v38 = vpop.f32.mrf.mxu0  ;;  %v11223_v54 = vpop.f32.mrf.mxu1 }
 0xaa2   : > { %v5881_v4 = vadd.f32 %v10810_v24, %v5687_v16 }
 0xaa3   : > { %v10812_v26 = vpop.f32.mrf.mxu0  ;;  %v5926_v2 = vpop.f32.mrf.mxu1 }
 0xaa4   : > { %v10813_v35 = vadd.f32 %v10812_v26, %v10811_v38  ;;  %v5927_v31 = vadd.f32 %v5926_v2, %v5878_v30 }
 0xaa5   : > { %v10814_v62 = vpop.f32.mrf.mxu0  ;;  %v11224_v37 = vpop.f32.mrf.mxu1 }
 0xaa6   : > { %v5886_v6 = vadd.f32 %v10813_v35, %v5692_v46  ;;  %11251 = vmatprep.mubr.msk.f32.mxu1 %vm5954_vm14, %v5927_v31  ;;  %11283 = vmatprep.mubr.msk.f32.mxu0 %vm5954_vm14, %v5927_v31 }
 0xaa7   : > { %v10815_v17 = vpop.f32.mrf.mxu0  ;;  %v5929_v5 = vpop.f32.mrf.mxu1 }
 0xaa8   : > { %v5935_v59 = vadd.f32 %v11223_v54, %v5886_v6  ;;  %v10816_v0 = vadd.f32 %v10815_v17, %v10814_v62  ;;  %v5930_v15 = vadd.f32 %v5929_v5, %v5881_v4 }
 0xaaa   : > { %v5889_v57 = vadd.f32 %v10816_v0, %v5697_v52  ;;  %11252 = vmatmul.mubr.msk.f32.vlgmr.msra.gmra.mxu1 %vm5954_vm14, %v5930_v15  ;;  %11284 = vmatmul.mubr.msk.f32.vlgmr.msra.gmra.mxu0 %vm5954_vm14, %v5930_v15 }
 0xaab   : > { %11254 = vmatprep.mubr.msk.f32.mxu1 %vm5954_vm14, %v5935_v59  ;;  %11286 = vmatprep.mubr.msk.f32.mxu0 %vm5954_vm14, %v5935_v59 }
 0xaac   : > { %v5938_v58 = vadd.f32 %v11224_v37, %v5889_v57 }
 0xaae   : > { %11255 = vmatmul.mubr.msk.f32.gmra.mxu1 %vm5954_vm14, %v5938_v58  ;;  %11287 = vmatmul.mubr.msk.f32.gmra.mxu0 %vm5954_vm14, %v5938_v58 }
 0xaaf   : > { %6557 = vmatprep.mubr.bf16.mxu1 %v11634_v11  ;;  %11293 = vmatprep.mubr.msk.bf16.mxu0 %vm3199_vm12, %v11639_v29 }
 0xb6a   : > { %v11253_v50 = vpop.f32.mrf.mxu1  ;;  %v11285_v33 = vpop.f32.mrf.mxu0 }
 0xb6b   : > { %6057 = vst.msk [vmem:[%s1216_s10 + $0x8] sm:$0xff] %vm6055_vm15, %v11253_v50  ;;  %v6162_v19 = vmax.f32 %v11285_v33, 0.0 }
 0xb6c   : > { %v6036_v23 = vpop.f32.mrf.mxu1  ;;  %v6142_v36 = vpop.f32.mrf.mxu0 }
 0xb6d   : > { %v10489_v8 = vpack.c.bf16 %v6162_v19, %v6162_v19  ;;  %6056 = vst.msk [vmem:[%s1216_s10] sm:$0xff] %vm6055_vm15, %v6036_v23  ;;  %v6161_v7 = vmax.f32 %v6142_v36, 0.0 }
 0xb6e   : > { %v11256_v42 = vpop.f32.mrf.mxu1  ;;  %v11288_v44 = vpop.f32.mrf.mxu0 }
 0xb6f   : > { %6182 = vst.msk [vmem:[#allocation2 + $0xc] sm:$0xf] %vm5498_vm13, %v10489_v8  ;;  %v10488_v40 = vpack.c.bf16 %v6161_v7, %v6161_v7  ;;  %v6164_v25 = vmax.f32 %v11288_v44, 0.0  ;;  %6283 = vrot.lane.b32.xlu0 %v10489_v8, %s11837_s28  ;;  %v11632_v7 = vld [vmem:[%s14578_s23] ss:$12 sps:$4 sm:$0xff]  }
 0xb70   : > { %6059 = vst.msk [vmem:[%s1216_s10 + $0x18] sm:$0xff] %vm6055_vm15, %v11256_v42  ;;  %v6046_v51 = vpop.f32.mrf.mxu1  ;;  %v6152_v48 = vpop.f32.mrf.mxu0  ;;  %v11637_v42 = vld [vmem:[%s14578_s23 + $0x1c] ss:$12 sps:$4 sm:$0xff]  }
 0xb71   : > { %6181 = vst.msk [vmem:[#allocation2] sm:$0xf] %vm5498_vm13, %v10488_v40  ;;  %v10491_v41 = vpack.c.bf16 %v6164_v25, %v6164_v25  ;;  %v6163_v56 = vmax.f32 %v6152_v48, 0.0  ;;  %6281 = vrot.lane.b32.xlu1 %v10488_v40, %s11837_s28  ;;  %v11641_v48 = vld [vmem:[%s14578_s23 + $0x20] ss:$12 sps:$4 sm:$0xff]  }
 0xb72   : > { %6058 = vst.msk [vmem:[%s1216_s10 + $0x10] sm:$0xff] %vm6055_vm15, %v6046_v51  ;;  %s14579_s10 = sld [smem:[#allocation8_spill]]  ;;  %v11640_v51 = vld [vmem:[%s14578_s23 + $0x18] ss:$12 sps:$4 sm:$0xff]  }
 0xb73   : > { %6184 = vst.msk [vmem:[#allocation2 + $0x24] sm:$0xf] %vm5498_vm13, %v10491_v41  ;;  %v10490_v34 = vpack.c.bf16 %v6163_v56, %v6163_v56  ;;  %6219 = vrot.lane.b32.xlu0 %v10489_v8, %s14504_s1 }
 0xb75   : > { %6183 = vst.msk [vmem:[#allocation2 + $0x18] sm:$0xf] %vm5498_vm13, %v10490_v34  ;;  %6217 = vrot.lane.b32.xlu1 %v10488_v40, %s14504_s1 }
 0xb77   : > { %6267 = vrot.lane.b32.xlu0 %v10489_v8, %s11831_s11 }
 0xb78   : > { %v6358_v22 = vld [vmem:[%s14579_s10 + $0x8] sm:$0xff]  ;;  %v6357_v27 = vld [vmem:[%s14579_s10] sm:$0xff]  ;;  %v6360_v63 = vld [vmem:[%s14579_s10 + $0x18] sm:$0xff] }
 0xb79   : > { %6265 = vrot.lane.b32.xlu1 %v10488_v40, %s11831_s11  ;;  %v6359_v53 = vld [vmem:[%s14579_s10 + $0x10] sm:$0xff] }
 0xb7b   : > { %6203 = vrot.lane.b32.xlu0 %v10489_v8, %s14518_s15 }
 0xb7c   : > { %v11629_v33 = vld [vmem:[#allocation2 + $0x18] ss:$12 sps:$4 sm:$0xff]  }
 0xb7d   : > { %6201 = vrot.lane.b32.xlu1 %v10488_v40, %s14518_s15 }
 0xb7f   : > { %6251 = vrot.lane.b32.xlu0 %v10489_v8, %s14510_s2 }
 0xb81   : > { %6249 = vrot.lane.b32.xlu1 %v10488_v40, %s14510_s2 }
 0xb83   : > { %6287 = vrot.lane.b32.xlu0 %v10491_v41, %s11837_s28 }
 0xb85   : > { %6285 = vrot.lane.b32.xlu1 %v10490_v34, %s11837_s28  ;;  %s14581_s28 = sld [smem:[#allocation23_spill]] }
 0xb87   : > { %6223 = vrot.lane.b32.xlu0 %v10491_v41, %s14504_s1 }
 0xb89   : > { %6221 = vrot.lane.b32.xlu1 %v10490_v34, %s14504_s1  ;;  %s14512_s1 = smov 120  }
 0xb8b   : > { %6271 = vrot.lane.b32.xlu0 %v10491_v41, %s11831_s11  ;;  %v6635_v25 = vld [vmem:[%s14581_s28 + $0x60] sm:$0xf]  ;;  %v6633_v56 = vld [vmem:[%s14581_s28 + $0x50] sm:$0xff] }
 0xb8c   : > { %v6631_v11 = vld [vmem:[%s14581_s28 + $0x40] sm:$0xff]  ;;  %v6629_v29 = vld [vmem:[%s14581_s28 + $0x30] sm:$0xff] }
 0xb8d   : > { %6269 = vrot.lane.b32.xlu1 %v10490_v34, %s11831_s11  ;;  %s14580_s11 = smov 106  }
 0xb8f   : > { %6207 = vrot.lane.b32.xlu0 %v10491_v41, %s14518_s15 }
 0xb91   : > { %6205 = vrot.lane.b32.xlu1 %v10490_v34, %s14518_s15 }
 0xb93   : > { %6255 = vrot.lane.b32.xlu0 %v10491_v41, %s14510_s2 }
 0xb95   : > { %6253 = vrot.lane.b32.xlu1 %v10490_v34, %s14510_s2 }
 0xb97   : > { %6191 = vrot.lane.b32.xlu0 %v10491_v41, %s14506_s18 }
 0xb99   : > { %6189 = vrot.lane.b32.xlu1 %v10490_v34, %s14506_s18 }
 0xb9b   : > { %6187 = vrot.lane.b32.xlu0 %v10489_v8, %s14506_s18 }
 0xb9d   : > { %6185 = vrot.lane.b32.xlu1 %v10488_v40, %s14506_s18  ;;  %s14582_s18 = sld [smem:[#allocation9_spill]] }
 0xb9f   : > { %6239 = vrot.lane.b32.xlu0 %v10491_v41, %s11840_s7 }
 0xba1   : > { %6237 = vrot.lane.b32.xlu1 %v10490_v34, %s11840_s7 }
 0xba3   : > { %6235 = vrot.lane.b32.xlu0 %v10489_v8, %s11840_s7 }
 0xba5   : > { %6233 = vrot.lane.b32.xlu1 %v10488_v40, %s11840_s7  ;;  %s11842_s7 = smov 115  }
 0xba7   : > { %6303 = vrot.lane.b32.xlu0 %v10491_v41, %s14580_s11  ;;  %v6634_v41 = vld [vmem:[%s14581_s28 + $0x58] sm:$0xff] }
 0xba9   : > { %6301 = vrot.lane.b32.xlu1 %v10490_v34, %s14580_s11  ;;  %v6632_v34 = vld [vmem:[%s14581_s28 + $0x48] sm:$0xff] }
 0xbab   : > { %6299 = vrot.lane.b32.xlu0 %v10489_v8, %s14580_s11  ;;  %v11631_v8 = vld [vmem:[#allocation2] ss:$12 sps:$4 sm:$0xff]  }
 0xbad   : > { %6297 = vrot.lane.b32.xlu1 %v10488_v40, %s14580_s11  ;;  %s14523_s11 = smov 122  }
 0xbaf   : > { %6368 = vperm.xlu0 %11529, %v6358_v22   ;;  %v6630_v22 = vld [vmem:[%s14581_s28 + $0x38] sm:$0xff] }
 0xbb1   : > { %6363 = vperm.xlu1 %11530, %v6357_v27   ;;  %v6628_v27 = vld [vmem:[%s14581_s28 + $0x28] sm:$0xff] }
 0xbb3   : > { %6378 = vperm.xlu0 %11529, %v6360_v63   ;;  %v6627_v63 = vld [vmem:[%s14581_s28 + $0x20] sm:$0xff] }
 0xbb5   : > { %6373 = vperm.xlu1 %11530, %v6359_v53   ;;  %v6626_v53 = vld [vmem:[%s14581_s28 + $0x18] sm:$0xff] }
 0xbe1   : > { %v6284_v60 = vpop.permute.xlu0 %6283 }
 0xbe2   : > { %6294 = vst.msk [vmem:[#allocation2 + $0x15c] sm:$0xf] %vm5498_vm13, %v6284_v60  ;;  %v6625_v60 = vld [vmem:[%s14581_s28 + $0x10] sm:$0xff] }
 0xbe3   : > { %v6282_v18 = vpop.permute.xlu1 %6281 }
 0xbe4   : > { %6293 = vst.msk [vmem:[#allocation2 + $0x150] sm:$0xf] %vm5498_vm13, %v6282_v18  ;;  %v6624_v18 = vld [vmem:[%s14581_s28 + $0x8] sm:$0xff] }
 0xbe5   : > { %v6220_v14 = vpop.permute.xlu0 %6219 }
 0xbe6   : > { %6230 = vst.msk [vmem:[#allocation2 + $0x9c] sm:$0xf] %vm5498_vm13, %v6220_v14  ;;  %v6623_v14 = vld [vmem:[%s14581_s28] sm:$0xff] }
 0xbe7   : > { %v6218_v28 = vpop.permute.xlu1 %6217 }
 0xbe8   : > { %6229 = vst.msk [vmem:[#allocation2 + $0x90] sm:$0xf] %vm5498_vm13, %v6218_v28 }
 0xbe9   : > { %v6268_v1 = vpop.permute.xlu0 %6267 }
 0xbea   : > { %6278 = vst.msk [vmem:[#allocation2 + $0x12c] sm:$0xf] %vm5498_vm13, %v6268_v1 }
 0xbeb   : > { %v6266_v32 = vpop.permute.xlu1 %6265  ;;  %v11618_v38 = vld [vmem:[#allocation2 + $0x150] ss:$12 sps:$4 sm:$0xff]  }
 0xbec   : > { %6277 = vst.msk [vmem:[#allocation2 + $0x120] sm:$0xf] %vm5498_vm13, %v6266_v32 }
 0xbed   : > { %v6204_v21 = vpop.permute.xlu0 %6203 }
 0xbee   : > { %6214 = vst.msk [vmem:[#allocation2 + $0x6c] sm:$0xf] %vm5498_vm13, %v6204_v21 }
 0xbef   : > { %v6202_v47 = vpop.permute.xlu1 %6201  ;;  %v11619_v24 = vld [vmem:[#allocation2 + $0x90] ss:$12 sps:$4 sm:$0xff]  }
 0xbf0   : > { %6213 = vst.msk [vmem:[#allocation2 + $0x60] sm:$0xf] %vm5498_vm13, %v6202_v47 }
 0xbf1   : > { %v6252_v39 = vpop.permute.xlu0 %6251 }
 0xbf2   : > { %6262 = vst.msk [vmem:[#allocation2 + $0xfc] sm:$0xf] %vm5498_vm13, %v6252_v39 }
 0xbf3   : > { %v6250_v12 = vpop.permute.xlu1 %6249  ;;  %v11622_v35 = vld [vmem:[#allocation2 + $0x120] ss:$12 sps:$4 sm:$0xff]  }
 0xbf4   : > { %6261 = vst.msk [vmem:[#allocation2 + $0xf0] sm:$0xf] %vm5498_vm13, %v6250_v12 }
 0xbf5   : > { %v6288_v49 = vpop.permute.xlu0 %6287 }
 0xbf6   : > { %6296 = vst.msk [vmem:[#allocation2 + $0x174] sm:$0xf] %vm5498_vm13, %v6288_v49 }
 0xbf7   : > { %v6286_v9 = vpop.permute.xlu1 %6285  ;;  %v11623_v37 = vld [vmem:[#allocation2 + $0x60] ss:$12 sps:$4 sm:$0xff]  }
 0xbf8   : > { %6295 = vst.msk [vmem:[#allocation2 + $0x168] sm:$0xf] %vm5498_vm13, %v6286_v9 }
 0xbf9   : > { %v6224_v45 = vpop.permute.xlu0 %6223 }
 0xbfa   : > { %6232 = vst.msk [vmem:[#allocation2 + $0xb4] sm:$0xf] %vm5498_vm13, %v6224_v45 }
 0xbfb   : > { %v6222_v10 = vpop.permute.xlu1 %6221  ;;  %v11626_v59 = vld [vmem:[#allocation2 + $0xf0] ss:$12 sps:$4 sm:$0xff]  }
 0xbfc   : > { %6231 = vst.msk [vmem:[#allocation2 + $0xa8] sm:$0xf] %vm5498_vm13, %v6222_v10 }
 0xbfd   : > { %v6272_v13 = vpop.permute.xlu0 %6271 }
 0xbfe   : > { %6280 = vst.msk [vmem:[#allocation2 + $0x144] sm:$0xf] %vm5498_vm13, %v6272_v13 }
 0xbff   : > { %v6270_v43 = vpop.permute.xlu1 %6269  ;;  %v11616_v20 = vld [vmem:[#allocation2 + $0x168] ss:$12 sps:$4 sm:$0xff]  }
 0xc00   : > { %6279 = vst.msk [vmem:[#allocation2 + $0x138] sm:$0xf] %vm5498_vm13, %v6270_v43  ;;  %10855 = vmatprep.subr.bf16.mxu1 %v11616_v20 }
 0xc01   : > { %v6208_v61 = vpop.permute.xlu0 %6207 }
 0xc02   : > { %6216 = vst.msk [vmem:[#allocation2 + $0x84] sm:$0xf] %vm5498_vm13, %v6208_v61 }
 0xc03   : > { %v6206_v3 = vpop.permute.xlu1 %6205  ;;  %v11617_v55 = vld [vmem:[#allocation2 + $0xa8] ss:$12 sps:$4 sm:$0xff]  }
 0xc04   : > { %6215 = vst.msk [vmem:[#allocation2 + $0x78] sm:$0xf] %vm5498_vm13, %v6206_v3  ;;  %10856 = vmatpush3.bf16.msra.mxu1 %v11617_v55 }
 0xc05   : > { %v6256_v54 = vpop.permute.xlu0 %6255  ;;  %10857 = vmatprep.subr.bf16.mxu1 %v11618_v38 }
 0xc06   : > { %6264 = vst.msk [vmem:[#allocation2 + $0x114] sm:$0xf] %vm5498_vm13, %v6256_v54 }
 0xc07   : > { %v6254_v16 = vpop.permute.xlu1 %6253  ;;  %v11620_v30 = vld [vmem:[#allocation2 + $0x138] ss:$12 sps:$4 sm:$0xff]  }
 0xc08   : > { %6263 = vst.msk [vmem:[#allocation2 + $0x108] sm:$0xf] %vm5498_vm13, %v6254_v16  ;;  %10858 = vmatpush3.bf16.msra.mxu1 %v11619_v24 }
 0xc09   : > { %v6192_v26 = vpop.permute.xlu0 %6191  ;;  %10859 = vmatprep.subr.bf16.mxu1 %v11620_v30 }
 0xc0a   : > { %6200 = vst.msk [vmem:[#allocation2 + $0x54] sm:$0xf] %vm5498_vm13, %v6192_v26 }
 0xc0b   : > { %v6190_v2 = vpop.permute.xlu1 %6189  ;;  %v11621_v46 = vld [vmem:[#allocation2 + $0x78] ss:$12 sps:$4 sm:$0xff]  }
 0xc0c   : > { %6199 = vst.msk [vmem:[#allocation2 + $0x48] sm:$0xf] %vm5498_vm13, %v6190_v2  ;;  %10860 = vmatpush3.bf16.msra.mxu1 %v11621_v46 }
 0xc0d   : > { %v6188_v31 = vpop.permute.xlu0 %6187  ;;  %10861 = vmatprep.subr.bf16.mxu1 %v11622_v35 }
 0xc0e   : > { %6198 = vst.msk [vmem:[#allocation2 + $0x3c] sm:$0xf] %vm5498_vm13, %v6188_v31 }
 0xc0f   : > { %v6186_v62 = vpop.permute.xlu1 %6185  ;;  %v11624_v6 = vld [vmem:[#allocation2 + $0x108] ss:$12 sps:$4 sm:$0xff]  }
 0xc10   : > { %6197 = vst.msk [vmem:[#allocation2 + $0x30] sm:$0xf] %vm5498_vm13, %v6186_v62  ;;  %10862 = vmatpush3.bf16.msra.mxu1 %v11623_v37 }
 0xc11   : > { %v6240_v4 = vpop.permute.xlu0 %6239  ;;  %10863 = vmatprep.subr.bf16.mxu1 %v11624_v6 }
 0xc12   : > { %6248 = vst.msk [vmem:[#allocation2 + $0xe4] sm:$0xf] %vm5498_vm13, %v6240_v4 }
 0xc13   : > { %v6238_v17 = vpop.permute.xlu1 %6237  ;;  %v11625_v5 = vld [vmem:[#allocation2 + $0x48] ss:$12 sps:$4 sm:$0xff]  }
 0xc14   : > { %6247 = vst.msk [vmem:[#allocation2 + $0xd8] sm:$0xf] %vm5498_vm13, %v6238_v17  ;;  %10864 = vmatpush3.bf16.msra.mxu1 %v11625_v5 }
 0xc15   : > { %v6236_v0 = vpop.permute.xlu0 %6235  ;;  %10865 = vmatprep.subr.bf16.mxu1 %v11626_v59 }
 0xc16   : > { %6246 = vst.msk [vmem:[#allocation2 + $0xcc] sm:$0xf] %vm5498_vm13, %v6236_v0 }
 0xc17   : > { %v6234_v15 = vpop.permute.xlu1 %6233  ;;  %v11627_v52 = vld [vmem:[#allocation2 + $0x30] ss:$12 sps:$4 sm:$0xff]  }
 0xc18   : > { %6245 = vst.msk [vmem:[#allocation2 + $0xc0] sm:$0xf] %vm5498_vm13, %v6234_v15  ;;  %10866 = vmatpush3.bf16.msra.mxu1 %v11627_v52 }
 0xc19   : > { %v6304_v57 = vpop.permute.xlu0 %6303 }
 0xc1a   : > { %6312 = vst.msk [vmem:[#allocation2 + $0x1a4] sm:$0xf] %vm5498_vm13, %v6304_v57 }
 0xc1b   : > { %v6302_v58 = vpop.permute.xlu1 %6301  ;;  %v11628_v50 = vld [vmem:[#allocation2 + $0xd8] ss:$12 sps:$4 sm:$0xff]  }
 0xc1c   : > { %6311 = vst.msk [vmem:[#allocation2 + $0x198] sm:$0xf] %vm5498_vm13, %v6302_v58  ;;  %10867 = vmatprep.subr.bf16.mxu1 %v11628_v50 }
 0xc1d   : > { %v6300_v19 = vpop.permute.xlu0 %6299  ;;  %10868 = vmatpush3.bf16.msra.mxu1 %v11629_v33  ;;  %v11660_v33 = vld [vmem:[%s14582_s18 + $0x4] ss:$12 sps:$4 sm:$0xff]  }
 0xc1e   : > { %6310 = vst.msk [vmem:[#allocation2 + $0x18c] sm:$0xf] %vm5498_vm13, %v6300_v19  ;;  %v6934_v19 = vld [vmem:[%s14584_s3 + $0x8] sm:$0xff] }
 0xc1f   : > { %v6298_v23 = vpop.permute.xlu1 %6297  ;;  %v11630_v36 = vld [vmem:[#allocation2 + $0xc0] ss:$12 sps:$4 sm:$0xff]  }
 0xc20   : > { %6309 = vst.msk [vmem:[#allocation2 + $0x180] sm:$0xf] %vm5498_vm13, %v6298_v23  ;;  %10869 = vmatprep.subr.bf16.mxu1 %v11630_v36  ;;  %v11666_v23 = vld [vmem:[%s14582_s18 + $0x8] ss:$12 sps:$4 sm:$0xff]   ;;  %v6933_v36 = vld [vmem:[%s14584_s3] sm:$0xff] }
 0xc21   : > { %10870 = vmatpush3.bf16.msra.mxu1 %v11631_v8  ;;  %v6936_v8 = vld [vmem:[%s14584_s3 + $0x18] sm:$0xff] }
 0xc23   : > { %v11635_v44 = vld [vmem:[#allocation2 + $0x198] ss:$12 sps:$4 sm:$0xff]  }
 0xc24   : > { %6558 = vmatmul.mubr.bf16.vlgmr.msra.gmra.mxu1 %v11632_v7  ;;  %11289 = vmatprep.subr.bf16.mxu0 %v11635_v44  ;;  %v6935_v7 = vld [vmem:[%s14584_s3 + $0x10] sm:$0xff]  ;;  %s14591_s3 = sld [smem:[#allocation11_spill]] }
 0xc25   : > { %11290 = vmatpush3.bf16.msra.mxu0 %v11635_v44  ;;  %6565 = vmatprep.mubr.bf16.mxu1 %v11637_v42 }
 0xc27   : > { %v11636_v40 = vld [vmem:[#allocation2 + $0x180] ss:$12 sps:$4 sm:$0xff]  }
 0xc28   : > { %11291 = vmatprep.subr.bf16.mxu0 %v11636_v40 }
 0xc29   : > { %11292 = vmatpush3.bf16.msra.mxu0 %v11636_v40 }
 0xc2a   : > { %11297 = vmatprep.subr.msk.mxu0 %vm1494_vm1, %v6635_v25  ;;  %v6369_v9 = vpop.permute.xlu0 %6368 }
 0xc2c   : > { %6566 = vmatmul.mubr.bf16.gmra.mxu1 %v11640_v51  ;;  %11294 = vmatmul.mubr.msk.bf16.vlgmr.msra.gmra.mxu0 %vm3199_vm12, %v11641_v48  ;;  %v6364_v21 = vpop.permute.xlu1 %6363 }
 0xc2d   : > { %11298 = vmatpush3.msk.msra.mxu0 %vm1494_vm1, %v6635_v25  ;;  %7133 = vmatprep.mubr.bf16.mxu1 %v11660_v33 }
 0xc2e   : > { %11299 = vmatprep.subr.mxu0 %v6634_v41  ;;  %v6379_v35 = vpop.permute.xlu0 %6378 }
 0xc2f   : > { %11300 = vmatpush3.msra.mxu0 %v6634_v41 }
 0xc30   : > { %11301 = vmatprep.subr.mxu0 %v6633_v56  ;;  %v6374_v20 = vpop.permute.xlu1 %6373 }
 0xc31   : > { %11302 = vmatpush3.msra.mxu0 %v6633_v56 }
 0xc32   : > { %11303 = vmatprep.subr.mxu0 %v6632_v34 }
 0xc33   : > { %11304 = vmatpush3.msra.mxu0 %v6632_v34 }
 0xc34   : > { %11305 = vmatprep.subr.mxu0 %v6631_v11 }
 0xc35   : > { %11306 = vmatpush3.msra.mxu0 %v6631_v11 }
 0xc36   : > { %11307 = vmatprep.subr.mxu0 %v6630_v22 }
 0xc37   : > { %11308 = vmatpush3.msra.mxu0 %v6630_v22 }
 0xc38   : > { %11309 = vmatprep.subr.mxu0 %v6629_v29 }
 0xc39   : > { %11310 = vmatpush3.msra.mxu0 %v6629_v29 }
 0xc3a   : > { %11311 = vmatprep.subr.mxu0 %v6628_v27 }
 0xc3b   : > { %11312 = vmatpush3.msra.mxu0 %v6628_v27 }
 0xc3c   : > { %11313 = vmatprep.subr.mxu0 %v6627_v63 }
 0xc3d   : > { %11314 = vmatpush3.msra.mxu0 %v6627_v63 }
 0xc3e   : > { %11315 = vmatprep.subr.mxu0 %v6626_v53 }
 0xc3f   : > { %11316 = vmatpush3.msra.mxu0 %v6626_v53 }
 0xc40   : > { %11317 = vmatprep.subr.mxu0 %v6625_v60 }
 0xc41   : > { %11318 = vmatpush3.msra.mxu0 %v6625_v60 }
 0xc42   : > { %11319 = vmatprep.subr.mxu0 %v6624_v18 }
 0xc43   : > { %11320 = vmatpush3.msra.mxu0 %v6624_v18 }
 0xc44   : > { %11321 = vmatprep.subr.mxu0 %v6623_v14 }
 0xc45   : > { %11322 = vmatpush3.msra.mxu0 %v6623_v14 }
 0xce4   : > { %v10871_v28 = vpop.f32.mrf.mxu1 }
 0xce6   : > { %v10872_v1 = vpop.f32.mrf.mxu1 }
 0xce7   : > { %v10873_v47 = vadd.f32 %v10872_v1, %v10871_v28 }
 0xce8   : > { %v10874_v32 = vpop.f32.mrf.mxu1 }
 0xce9   : > { %v6560_v10 = vadd.f32 %v10873_v47, %v6364_v21 }
 0xcea   : > { %v10875_v39 = vpop.f32.mrf.mxu1 }
 0xceb   : > { %v10876_v45 = vadd.f32 %v10875_v39, %v10874_v32 }
 0xcec   : > { %v10877_v12 = vpop.f32.mrf.mxu1  ;;  %v11295_v49 = vpop.f32.mrf.mxu0 }
 0xced   : > { %v6563_v16 = vadd.f32 %v10876_v45, %v6369_v9 }
 0xcee   : > { %v10878_v13 = vpop.f32.mrf.mxu1  ;;  %v6608_v43 = vpop.f32.mrf.mxu0 }
 0xcef   : > { %v10879_v61 = vadd.f32 %v10878_v13, %v10877_v12  ;;  %v6609_v3 = vadd.f32 %v6608_v43, %v6560_v10 }
 0xcf0   : > { %v10880_v55 = vpop.f32.mrf.mxu1  ;;  %v11296_v38 = vpop.f32.mrf.mxu0 }
 0xcf1   : > { %v6568_v54 = vadd.f32 %v10879_v61, %v6374_v20  ;;  %11323 = vmatprep.mubr.msk.f32.mxu0 %vm5954_vm14, %v6609_v3 }
 0xcf2   : > { %v10881_v24 = vpop.f32.mrf.mxu1  ;;  %v6611_v30 = vpop.f32.mrf.mxu0 }
 0xcf3   : > { %v6617_v26 = vadd.f32 %v11295_v49, %v6568_v54  ;;  %v10882_v2 = vadd.f32 %v10881_v24, %v10880_v55  ;;  %v6612_v46 = vadd.f32 %v6611_v30, %v6563_v16 }
 0xcf5   : > { %v6571_v31 = vadd.f32 %v10882_v2, %v6379_v35  ;;  %11324 = vmatmul.mubr.msk.f32.vlgmr.msra.gmra.mxu0 %vm5954_vm14, %v6612_v46 }
 0xcf6   : > { %11326 = vmatprep.mubr.msk.f32.mxu0 %vm5954_vm14, %v6617_v26 }
 0xcf7   : > { %v6620_v62 = vadd.f32 %v11296_v38, %v6571_v31 }
 0xcf9   : > { %11327 = vmatmul.mubr.msk.f32.gmra.mxu0 %vm5954_vm14, %v6620_v62 }
 0xcfa   : > { %11333 = vmatprep.mubr.msk.bf16.mxu0 %vm3199_vm12, %v11666_v23 }
 0xdb5   : > { %v11325_v37 = vpop.f32.mrf.mxu0 }
 0xdb6   : > { %v6737_v6 = vmax.f32 %v11325_v37, 0.0 }
 0xdb7   : > { %v6717_v4 = vpop.f32.mrf.mxu0 }
 0xdb8   : > { %v10493_v17 = vpack.c.bf16 %v6737_v6, %v6737_v6  ;;  %v6736_v5 = vmax.f32 %v6717_v4, 0.0  ;;  %v11658_v4 = vld [vmem:[%s14582_s18] ss:$12 sps:$4 sm:$0xff]  }
 0xdb9   : > { %v11328_v59 = vpop.f32.mrf.mxu0 }
 0xdba   : > { %6758 = vst.msk [vmem:[#allocation2 + $0xc] sm:$0xf] %vm6756_vm0, %v10493_v17  ;;  %v10492_v0 = vpack.c.bf16 %v6736_v5, %v6736_v5  ;;  %v6739_v15 = vmax.f32 %v11328_v59, 0.0  ;;  %6859 = vrot.lane.b32.xlu0 %v10493_v17, %s11842_s7 }
 0xdbb   : > { %v6727_v52 = vpop.f32.mrf.mxu0 }
 0xdbc   : > { %6757 = vst.msk [vmem:[#allocation2] sm:$0xf] %vm6756_vm0, %v10492_v0  ;;  %v10495_v57 = vpack.c.bf16 %v6739_v15, %v6739_v15  ;;  %v6738_v58 = vmax.f32 %v6727_v52, 0.0  ;;  %6857 = vrot.lane.b32.xlu1 %v10492_v0, %s11842_s7  ;;  %v11667_v15 = vld [vmem:[%s14582_s18 + $0x20] ss:$12 sps:$4 sm:$0xff]  }
 0xdbe   : > { %6760 = vst.msk [vmem:[#allocation2 + $0x24] sm:$0xf] %vm6756_vm0, %v10495_v57  ;;  %v10494_v50 = vpack.c.bf16 %v6738_v58, %v6738_v58  ;;  %6795 = vrot.lane.b32.xlu0 %v10493_v17, %s14523_s11 }
 0xdc0   : > { %6759 = vst.msk [vmem:[#allocation2 + $0x18] sm:$0xf] %vm6756_vm0, %v10494_v50  ;;  %6793 = vrot.lane.b32.xlu1 %v10492_v0, %s14523_s11 }
 0xdc2   : > { %6843 = vrot.lane.b32.xlu0 %v10493_v17, %s14510_s2 }
 0xdc3   : > { %v11657_v6 = vld [vmem:[#allocation2] ss:$12 sps:$4 sm:$0xff]  }
 0xdc4   : > { %6841 = vrot.lane.b32.xlu1 %v10492_v0, %s14510_s2 }
 0xdc6   : > { %6779 = vrot.lane.b32.xlu0 %v10493_v17, %s14518_s15 }
 0xdc7   : > { %v11655_v35 = vld [vmem:[#allocation2 + $0x18] ss:$12 sps:$4 sm:$0xff]  }
 0xdc8   : > { %6777 = vrot.lane.b32.xlu1 %v10492_v0, %s14518_s15 }
 0xdca   : > { %6827 = vrot.lane.b32.xlu0 %v10493_v17, %s14512_s1 }
 0xdcc   : > { %6825 = vrot.lane.b32.xlu1 %v10492_v0, %s14512_s1 }
 0xdce   : > { %6863 = vrot.lane.b32.xlu0 %v10495_v57, %s11842_s7 }
 0xdd0   : > { %6861 = vrot.lane.b32.xlu1 %v10494_v50, %s11842_s7 }
 0xdd2   : > { %6799 = vrot.lane.b32.xlu0 %v10495_v57, %s14523_s11 }
 0xdd4   : > { %6797 = vrot.lane.b32.xlu1 %v10494_v50, %s14523_s11 }
 0xdd6   : > { %6847 = vrot.lane.b32.xlu0 %v10495_v57, %s14510_s2 }
 0xdd8   : > { %6845 = vrot.lane.b32.xlu1 %v10494_v50, %s14510_s2  ;;  %s14516_s2 = smov 121  }
 0xdda   : > { %6783 = vrot.lane.b32.xlu0 %v10495_v57, %s14518_s15 }
 0xddc   : > { %6781 = vrot.lane.b32.xlu1 %v10494_v50, %s14518_s15  ;;  %s1221_s15 = scalar_lea.vmem %s14587_s4, %s13906_s26  ;;  %s14592_s4 = sld [smem:[#allocation12_spill]] }
 0xdde   : > { %6831 = vrot.lane.b32.xlu0 %v10495_v57, %s14512_s1 }
 0xde0   : > { %6829 = vrot.lane.b32.xlu1 %v10494_v50, %s14512_s1  ;;  %s14514_s1 = smov 114  }
 0xde2   : > { %6767 = vrot.lane.b32.xlu0 %v10495_v57, %s14583_s0 }
 0xde4   : > { %6765 = vrot.lane.b32.xlu1 %v10494_v50, %s14583_s0 }
 0xde6   : > { %6763 = vrot.lane.b32.xlu0 %v10493_v17, %s14583_s0 }
 0xde8   : > { %6761 = vrot.lane.b32.xlu1 %v10492_v0, %s14583_s0 }
 0xdea   : > { %6815 = vrot.lane.b32.xlu0 %v10495_v57, %s14516_s2 }
 0xdec   : > { %6813 = vrot.lane.b32.xlu1 %v10494_v50, %s14516_s2 }
 0xdee   : > { %6811 = vrot.lane.b32.xlu0 %v10493_v17, %s14516_s2 }
 0xdf0   : > { %6809 = vrot.lane.b32.xlu1 %v10492_v0, %s14516_s2  ;;  %s14586_s2 = sld [smem:[#allocation20_spill]] }
 0xdf2   : > { %6879 = vrot.lane.b32.xlu0 %v10495_v57, %s14514_s1 }
 0xdf4   : > { %6877 = vrot.lane.b32.xlu1 %v10494_v50, %s14514_s1 }
 0xdf6   : > { %6875 = vrot.lane.b32.xlu0 %v10493_v17, %s14514_s1  ;;  %v11665_v17 = vld [vmem:[%s14582_s18 + $0x1c] ss:$12 sps:$4 sm:$0xff]  }
 0xdf8   : > { %6873 = vrot.lane.b32.xlu1 %v10492_v0, %s14514_s1  ;;  %s14585_s1 = sld [smem:[#allocation27_spill]]  ;;  %v11663_v0 = vld [vmem:[%s14582_s18 + $0x18] ss:$12 sps:$4 sm:$0xff]  }
 0xdfa   : > { %6944 = vperm.xlu0 %11529, %v6934_v19   ;;  %v7314_v19 = vld [vmem:[%s14586_s2 + $0x20] sm:$0xf] }
 0xdfc   : > { %6939 = vperm.xlu1 %11530, %v6933_v36  }
 0xdfe   : > { %6954 = vperm.xlu0 %11529, %v6936_v8   ;;  %v7203_v52 = vld [vmem:[%s14585_s1 + $0x20] sm:$0xf]  ;;  %v7202_v57 = vld [vmem:[%s14585_s1 + $0x18] sm:$0xff]  ;;  %v7201_v58 = vld [vmem:[%s14585_s1 + $0x10] sm:$0xff] }
 0xdff   : > { %v7200_v50 = vld [vmem:[%s14585_s1 + $0x8] sm:$0xff]  ;;  %v7199_v33 = vld [vmem:[%s14585_s1] sm:$0xff]  ;;  %s14589_s1 = smov 126  }
 0xe00   : > { %6949 = vperm.xlu1 %11530, %v6935_v7  }
 0xe2c   : > { %v6860_v42 = vpop.permute.xlu0 %6859 }
 0xe2d   : > { %6870 = vst.msk [vmem:[#allocation2 + $0x15c] sm:$0xf] %vm6756_vm0, %v6860_v42 }
 0xe2e   : > { %v6858_v44 = vpop.permute.xlu1 %6857 }
 0xe2f   : > { %6869 = vst.msk [vmem:[#allocation2 + $0x150] sm:$0xf] %vm6756_vm0, %v6858_v44 }
 0xe30   : > { %v6796_v40 = vpop.permute.xlu0 %6795 }
 0xe31   : > { %6806 = vst.msk [vmem:[#allocation2 + $0x9c] sm:$0xf] %vm6756_vm0, %v6796_v40 }
 0xe32   : > { %v6794_v25 = vpop.permute.xlu1 %6793 }
 0xe33   : > { %6805 = vst.msk [vmem:[#allocation2 + $0x90] sm:$0xf] %vm6756_vm0, %v6794_v25 }
 0xe34   : > { %v6844_v51 = vpop.permute.xlu0 %6843 }
 0xe35   : > { %6854 = vst.msk [vmem:[#allocation2 + $0x12c] sm:$0xf] %vm6756_vm0, %v6844_v51 }
 0xe36   : > { %v6842_v48 = vpop.permute.xlu1 %6841  ;;  %v11644_v32 = vld [vmem:[#allocation2 + $0x150] ss:$12 sps:$4 sm:$0xff]  }
 0xe37   : > { %6853 = vst.msk [vmem:[#allocation2 + $0x120] sm:$0xf] %vm6756_vm0, %v6842_v48 }
 0xe38   : > { %v6780_v41 = vpop.permute.xlu0 %6779 }
 0xe39   : > { %6790 = vst.msk [vmem:[#allocation2 + $0x6c] sm:$0xf] %vm6756_vm0, %v6780_v41 }
 0xe3a   : > { %v6778_v56 = vpop.permute.xlu1 %6777  ;;  %v11645_v39 = vld [vmem:[#allocation2 + $0x90] ss:$12 sps:$4 sm:$0xff]  }
 0xe3b   : > { %6789 = vst.msk [vmem:[#allocation2 + $0x60] sm:$0xf] %vm6756_vm0, %v6778_v56 }
 0xe3c   : > { %v6828_v34 = vpop.permute.xlu0 %6827 }
 0xe3d   : > { %6838 = vst.msk [vmem:[#allocation2 + $0xfc] sm:$0xf] %vm6756_vm0, %v6828_v34 }
 0xe3e   : > { %v6826_v11 = vpop.permute.xlu1 %6825  ;;  %v11648_v10 = vld [vmem:[#allocation2 + $0x120] ss:$12 sps:$4 sm:$0xff]  }
 0xe3f   : > { %6837 = vst.msk [vmem:[#allocation2 + $0xf0] sm:$0xf] %vm6756_vm0, %v6826_v11 }
 0xe40   : > { %v6864_v22 = vpop.permute.xlu0 %6863 }
 0xe41   : > { %6872 = vst.msk [vmem:[#allocation2 + $0x174] sm:$0xf] %vm6756_vm0, %v6864_v22 }
 0xe42   : > { %v6862_v29 = vpop.permute.xlu1 %6861  ;;  %v11649_v20 = vld [vmem:[#allocation2 + $0x60] ss:$12 sps:$4 sm:$0xff]  }
 0xe43   : > { %6871 = vst.msk [vmem:[#allocation2 + $0x168] sm:$0xf] %vm6756_vm0, %v6862_v29 }
 0xe44   : > { %v6800_v27 = vpop.permute.xlu0 %6799 }
 0xe45   : > { %6808 = vst.msk [vmem:[#allocation2 + $0xb4] sm:$0xf] %vm6756_vm0, %v6800_v27 }
 0xe46   : > { %v6798_v63 = vpop.permute.xlu1 %6797  ;;  %v11652_v54 = vld [vmem:[#allocation2 + $0xf0] ss:$12 sps:$4 sm:$0xff]  }
 0xe47   : > { %6807 = vst.msk [vmem:[#allocation2 + $0xa8] sm:$0xf] %vm6756_vm0, %v6798_v63 }
 0xe48   : > { %v6848_v53 = vpop.permute.xlu0 %6847 }
 0xe49   : > { %6856 = vst.msk [vmem:[#allocation2 + $0x144] sm:$0xf] %vm6756_vm0, %v6848_v53 }
 0xe4a   : > { %v6846_v60 = vpop.permute.xlu1 %6845  ;;  %v11642_v18 = vld [vmem:[#allocation2 + $0x168] ss:$12 sps:$4 sm:$0xff]  }
 0xe4b   : > { %6855 = vst.msk [vmem:[#allocation2 + $0x138] sm:$0xf] %vm6756_vm0, %v6846_v60  ;;  %10904 = vmatprep.subr.bf16.mxu1 %v11642_v18 }
 0xe4c   : > { %v6784_v14 = vpop.permute.xlu0 %6783 }
 0xe4d   : > { %6792 = vst.msk [vmem:[#allocation2 + $0x84] sm:$0xf] %vm6756_vm0, %v6784_v14 }
 0xe4e   : > { %v6782_v28 = vpop.permute.xlu1 %6781  ;;  %v11643_v1 = vld [vmem:[#allocation2 + $0xa8] ss:$12 sps:$4 sm:$0xff]  }
 0xe4f   : > { %6791 = vst.msk [vmem:[#allocation2 + $0x78] sm:$0xf] %vm6756_vm0, %v6782_v28  ;;  %10905 = vmatpush3.bf16.msra.mxu1 %v11643_v1 }
 0xe50   : > { %v6832_v21 = vpop.permute.xlu0 %6831  ;;  %10906 = vmatprep.subr.bf16.mxu1 %v11644_v32 }
 0xe51   : > { %6840 = vst.msk [vmem:[#allocation2 + $0x114] sm:$0xf] %vm6756_vm0, %v6832_v21 }
 0xe52   : > { %v6830_v47 = vpop.permute.xlu1 %6829  ;;  %v11646_v12 = vld [vmem:[#allocation2 + $0x138] ss:$12 sps:$4 sm:$0xff]  }
 0xe53   : > { %6839 = vst.msk [vmem:[#allocation2 + $0x108] sm:$0xf] %vm6756_vm0, %v6830_v47  ;;  %10907 = vmatpush3.bf16.msra.mxu1 %v11645_v39  ;;  %v7313_v47 = vld [vmem:[%s14586_s2 + $0x18] sm:$0xff] }
 0xe54   : > { %v6768_v49 = vpop.permute.xlu0 %6767  ;;  %10908 = vmatprep.subr.bf16.mxu1 %v11646_v12  ;;  %v7312_v12 = vld [vmem:[%s14586_s2 + $0x10] sm:$0xff] }
 0xe55   : > { %6776 = vst.msk [vmem:[#allocation2 + $0x54] sm:$0xf] %vm6756_vm0, %v6768_v49 }
 0xe56   : > { %v6766_v9 = vpop.permute.xlu1 %6765  ;;  %v11647_v45 = vld [vmem:[#allocation2 + $0x78] ss:$12 sps:$4 sm:$0xff]  }
 0xe57   : > { %6775 = vst.msk [vmem:[#allocation2 + $0x48] sm:$0xf] %vm6756_vm0, %v6766_v9  ;;  %10909 = vmatpush3.bf16.msra.mxu1 %v11647_v45  ;;  %v7311_v9 = vld [vmem:[%s14586_s2 + $0x8] sm:$0xff]  ;;  %v7310_v45 = vld [vmem:[%s14586_s2] sm:$0xff]  ;;  %s14590_s2 = smov 120  }
 0xe58   : > { %v6764_v13 = vpop.permute.xlu0 %6763  ;;  %10910 = vmatprep.subr.bf16.mxu1 %v11648_v10 }
 0xe59   : > { %6774 = vst.msk [vmem:[#allocation2 + $0x3c] sm:$0xf] %vm6756_vm0, %v6764_v13 }
 0xe5a   : > { %v6762_v43 = vpop.permute.xlu1 %6761  ;;  %v11650_v61 = vld [vmem:[#allocation2 + $0x108] ss:$12 sps:$4 sm:$0xff]  }
 0xe5b   : > { %6773 = vst.msk [vmem:[#allocation2 + $0x30] sm:$0xf] %vm6756_vm0, %v6762_v43  ;;  %10911 = vmatpush3.bf16.msra.mxu1 %v11649_v20 }
 0xe5c   : > { %v6816_v3 = vpop.permute.xlu0 %6815  ;;  %10912 = vmatprep.subr.bf16.mxu1 %v11650_v61 }
 0xe5d   : > { %6824 = vst.msk [vmem:[#allocation2 + $0xe4] sm:$0xf] %vm6756_vm0, %v6816_v3 }
 0xe5e   : > { %v6814_v55 = vpop.permute.xlu1 %6813  ;;  %v11651_v38 = vld [vmem:[#allocation2 + $0x48] ss:$12 sps:$4 sm:$0xff]  }
 0xe5f   : > { %6823 = vst.msk [vmem:[#allocation2 + $0xd8] sm:$0xf] %vm6756_vm0, %v6814_v55  ;;  %10913 = vmatpush3.bf16.msra.mxu1 %v11651_v38 }
 0xe60   : > { %v6812_v16 = vpop.permute.xlu0 %6811  ;;  %10914 = vmatprep.subr.bf16.mxu1 %v11652_v54 }
 0xe61   : > { %6822 = vst.msk [vmem:[#allocation2 + $0xcc] sm:$0xf] %vm6756_vm0, %v6812_v16 }
 0xe62   : > { %v6810_v24 = vpop.permute.xlu1 %6809  ;;  %v11653_v30 = vld [vmem:[#allocation2 + $0x30] ss:$12 sps:$4 sm:$0xff]  }
 0xe63   : > { %6821 = vst.msk [vmem:[#allocation2 + $0xc0] sm:$0xf] %vm6756_vm0, %v6810_v24  ;;  %10915 = vmatpush3.bf16.msra.mxu1 %v11653_v30 }
 0xe64   : > { %v6880_v26 = vpop.permute.xlu0 %6879 }
 0xe65   : > { %6888 = vst.msk [vmem:[#allocation2 + $0x1a4] sm:$0xf] %vm6756_vm0, %v6880_v26 }
 0xe66   : > { %v6878_v2 = vpop.permute.xlu1 %6877  ;;  %v11654_v46 = vld [vmem:[#allocation2 + $0xd8] ss:$12 sps:$4 sm:$0xff]  }
 0xe67   : > { %6887 = vst.msk [vmem:[#allocation2 + $0x198] sm:$0xf] %vm6756_vm0, %v6878_v2  ;;  %10916 = vmatprep.subr.bf16.mxu1 %v11654_v46 }
 0xe68   : > { %v6876_v31 = vpop.permute.xlu0 %6875  ;;  %10917 = vmatpush3.bf16.msra.mxu1 %v11655_v35 }
 0xe69   : > { %6886 = vst.msk [vmem:[#allocation2 + $0x18c] sm:$0xf] %vm6756_vm0, %v6876_v31  ;;  %v11686_v31 = vld [vmem:[%s14591_s3 + $0x4] ss:$12 sps:$4 sm:$0xff]  }
 0xe6a   : > { %v6874_v62 = vpop.permute.xlu1 %6873  ;;  %v11656_v37 = vld [vmem:[#allocation2 + $0xc0] ss:$12 sps:$4 sm:$0xff]  }
 0xe6b   : > { %6885 = vst.msk [vmem:[#allocation2 + $0x180] sm:$0xf] %vm6756_vm0, %v6874_v62  ;;  %10918 = vmatprep.subr.bf16.mxu1 %v11656_v37  ;;  %v7600_v62 = vld [vmem:[%s14592_s4 + $0x8] sm:$0xff] }
 0xe6c   : > { %10919 = vmatpush3.bf16.msra.mxu1 %v11657_v6  ;;  %v11692_v37 = vld [vmem:[%s14591_s3 + $0x8] ss:$12 sps:$4 sm:$0xff]   ;;  %v7599_v6 = vld [vmem:[%s14592_s4] sm:$0xff] }
 0xe6e   : > { %v11661_v5 = vld [vmem:[#allocation2 + $0x198] ss:$12 sps:$4 sm:$0xff]  }
 0xe6f   : > { %7134 = vmatmul.mubr.bf16.vlgmr.msra.gmra.mxu1 %v11658_v4  ;;  %11329 = vmatprep.subr.bf16.mxu0 %v11661_v5  ;;  %v7602_v4 = vld [vmem:[%s14592_s4 + $0x18] sm:$0xff] }
 0xe70   : > { %11330 = vmatpush3.bf16.msra.mxu0 %v11661_v5  ;;  %7141 = vmatprep.mubr.bf16.mxu1 %v11665_v17  ;;  %v7601_v17 = vld [vmem:[%s14592_s4 + $0x10] sm:$0xff]  ;;  %s14596_s4 = smov 122  }
 0xe72   : > { %v11662_v59 = vld [vmem:[#allocation2 + $0x180] ss:$12 sps:$4 sm:$0xff]  }
 0xe73   : > { %11331 = vmatprep.subr.bf16.mxu0 %v11662_v59 }
 0xe74   : > { %11332 = vmatpush3.bf16.msra.mxu0 %v11662_v59 }
 0xe75   : > { %11337 = vmatprep.subr.msk.mxu0 %vm1494_vm1, %v7203_v52  ;;  %v6945_v51 = vpop.permute.xlu0 %6944 }
 0xe77   : > { %7142 = vmatmul.mubr.bf16.gmra.mxu1 %v11663_v0  ;;  %11334 = vmatmul.mubr.msk.bf16.vlgmr.msra.gmra.mxu0 %vm3199_vm12, %v11667_v15  ;;  %v6940_v7 = vpop.permute.xlu1 %6939 }
 0xe78   : > { %11338 = vmatpush3.msk.msra.mxu0 %vm1494_vm1, %v7203_v52  ;;  %7799 = vmatprep.mubr.bf16.mxu1 %v11686_v31 }
 0xe79   : > { %11339 = vmatprep.subr.mxu0 %v7202_v57  ;;  %v6955_v21 = vpop.permute.xlu0 %6954 }
 0xe7a   : > { %11340 = vmatpush3.msra.mxu0 %v7202_v57 }
 0xe7b   : > { %11341 = vmatprep.subr.mxu0 %v7201_v58  ;;  %v6950_v11 = vpop.permute.xlu1 %6949 }
 0xe7c   : > { %11342 = vmatpush3.msra.mxu0 %v7201_v58 }
 0xe7d   : > { %11343 = vmatprep.subr.mxu0 %v7200_v50 }
 0xe7e   : > { %11344 = vmatpush3.msra.mxu0 %v7200_v50 }
 0xe7f   : > { %11345 = vmatprep.subr.mxu0 %v7199_v33 }
 0xe80   : > { %11346 = vmatpush3.msra.mxu0 %v7199_v33 }
 0xe81   : > { %11353 = vmatprep.subr.msk.mxu0 %vm1494_vm1, %v7314_v19 }
 0xf2f   : > { %v10920_v23 = vpop.f32.mrf.mxu1 }
 0xf31   : > { %v10921_v36 = vpop.f32.mrf.mxu1 }
 0xf32   : > { %v10922_v42 = vadd.f32 %v10921_v36, %v10920_v23 }
 0xf33   : > { %v10923_v8 = vpop.f32.mrf.mxu1 }
 0xf34   : > { %v7136_v41 = vadd.f32 %v10922_v42, %v6940_v7 }
 0xf35   : > { %v10924_v44 = vpop.f32.mrf.mxu1 }
 0xf36   : > { %v10925_v48 = vadd.f32 %v10924_v44, %v10923_v8 }
 0xf37   : > { %v10926_v40 = vpop.f32.mrf.mxu1  ;;  %v11335_v25 = vpop.f32.mrf.mxu0 }
 0xf38   : > { %v7139_v60 = vadd.f32 %v10925_v48, %v6945_v51 }
 0xf39   : > { %v10927_v56 = vpop.f32.mrf.mxu1  ;;  %v7184_v34 = vpop.f32.mrf.mxu0 }
 0xf3a   : > { %v10928_v22 = vadd.f32 %v10927_v56, %v10926_v40  ;;  %v7185_v29 = vadd.f32 %v7184_v34, %v7136_v41 }
 0xf3b   : > { %v10929_v27 = vpop.f32.mrf.mxu1  ;;  %v11336_v63 = vpop.f32.mrf.mxu0 }
 0xf3c   : > { %v7144_v53 = vadd.f32 %v10928_v22, %v6950_v11  ;;  %11347 = vmatprep.mubr.msk.f32.mxu0 %vm7204_vm2, %v7185_v29 }
 0xf3d   : > { %v10930_v18 = vpop.f32.mrf.mxu1  ;;  %v7187_v14 = vpop.f32.mrf.mxu0 }
 0xf3e   : > { %v7193_v28 = vadd.f32 %v11335_v25, %v7144_v53  ;;  %v10931_v1 = vadd.f32 %v10930_v18, %v10929_v27  ;;  %v7188_v32 = vadd.f32 %v7187_v14, %v7139_v60 }
 0xf40   : > { %v7147_v39 = vadd.f32 %v10931_v1, %v6955_v21  ;;  %11348 = vmatmul.mubr.msk.f32.vlgmr.msra.gmra.mxu0 %vm7204_vm2, %v7188_v32 }
 0xf41   : > { %11354 = vmatpush3.msk.msra.mxu0 %vm1494_vm1, %v7314_v19  ;;  %11350 = vmatprep.mubr.msk.f32.mxu0 %vm7204_vm2, %v7193_v28 }
 0xf42   : > { %v7196_v49 = vadd.f32 %v11336_v63, %v7147_v39  ;;  %11355 = vmatprep.subr.mxu0 %v7313_v47 }
 0xf43   : > { %11356 = vmatpush3.msra.mxu0 %v7313_v47 }
 0xf44   : > { %11357 = vmatprep.subr.mxu0 %v7312_v12  ;;  %11351 = vmatmul.mubr.msk.f32.gmra.mxu0 %vm7204_vm2, %v7196_v49 }
 0xf45   : > { %11358 = vmatpush3.msra.mxu0 %v7312_v12  ;;  %11363 = vmatprep.mubr.msk.f32.mxu0 %vm7204_vm2, %v7185_v29 }
 0xf46   : > { %11359 = vmatprep.subr.mxu0 %v7311_v9 }
 0xf47   : > { %11360 = vmatpush3.msra.mxu0 %v7311_v9 }
 0xf48   : > { %11361 = vmatprep.subr.mxu0 %v7310_v45 }
 0xf49   : > { %11362 = vmatpush3.msra.mxu0 %v7310_v45 }
 0xf4a   : > { %11364 = vmatmul.mubr.msk.f32.vlgmr.msra.gmra.mxu0 %vm7204_vm2, %v7188_v32 }
 0xf4b   : > { %11366 = vmatprep.mubr.msk.f32.mxu0 %vm7204_vm2, %v7193_v28 }
 0xf4e   : > { %11367 = vmatmul.mubr.msk.f32.gmra.mxu0 %vm7204_vm2, %v7196_v49 }
 0xf4f   : > { %11373 = vmatprep.mubr.msk.bf16.mxu0 %vm3199_vm12, %v11692_v37 }
0x1000   : > { %v11349_v10 = vpop.f32.mrf.mxu0 }
0x1001   : > { %7307 = vst.msk [vmem:[%s1221_s15 + $0x8] sm:$0xff] %vm7305_vm3, %v11349_v10 }
0x1002   : > { %v7286_v13 = vpop.f32.mrf.mxu0 }
0x1003   : > { %7306 = vst.msk [vmem:[%s1221_s15] sm:$0xff] %vm7305_vm3, %v7286_v13 }
0x1004   : > { %v11352_v43 = vpop.f32.mrf.mxu0 }
0x1005   : > { %7309 = vst.msk [vmem:[%s1221_s15 + $0x18] sm:$0xff] %vm7305_vm3, %v11352_v43 }
0x1006   : > { %v7296_v20 = vpop.f32.mrf.mxu0 }
0x1007   : > { %7308 = vst.msk [vmem:[%s1221_s15 + $0x10] sm:$0xff] %vm7305_vm3, %v7296_v20  ;;  %s14588_s15 = smov 116  }
0x100a   : > { %v11365_v61 = vpop.f32.mrf.mxu0 }
0x100b   : > { %v7404_v3 = vmax.f32 %v11365_v61, 0.0 }
0x100c   : > { %v7384_v55 = vpop.f32.mrf.mxu0 }
0x100d   : > { %v10497_v38 = vpack.c.bf16 %v7404_v3, %v7404_v3  ;;  %v7403_v54 = vmax.f32 %v7384_v55, 0.0  ;;  %v11684_v55 = vld [vmem:[%s14591_s3] ss:$12 sps:$4 sm:$0xff]  }
0x100e   : > { %v11368_v16 = vpop.f32.mrf.mxu0 }
0x100f   : > { %7424 = vst.msk [vmem:[#allocation2 + $0xc] sm:$0xf] %vm6756_vm0, %v10497_v38  ;;  %v10496_v24 = vpack.c.bf16 %v7403_v54, %v7403_v54  ;;  %v7406_v30 = vmax.f32 %v11368_v16, 0.0  ;;  %7525 = vrot.lane.b32.xlu0 %v10497_v38, %s11842_s7 }
0x1010   : > { %v7394_v26 = vpop.f32.mrf.mxu0 }
0x1011   : > { %7423 = vst.msk [vmem:[#allocation2] sm:$0xf] %vm6756_vm0, %v10496_v24  ;;  %v10499_v2 = vpack.c.bf16 %v7406_v30, %v7406_v30  ;;  %v7405_v46 = vmax.f32 %v7394_v26, 0.0  ;;  %7523 = vrot.lane.b32.xlu1 %v10496_v24, %s11842_s7  ;;  %v11693_v30 = vld [vmem:[%s14591_s3 + $0x20] ss:$12 sps:$4 sm:$0xff]  }
0x1013   : > { %7426 = vst.msk [vmem:[#allocation2 + $0x24] sm:$0xf] %vm6756_vm0, %v10499_v2  ;;  %v10498_v35 = vpack.c.bf16 %v7405_v46, %v7405_v46  ;;  %7461 = vrot.lane.b32.xlu0 %v10497_v38, %s14523_s11 }
0x1015   : > { %7425 = vst.msk [vmem:[#allocation2 + $0x18] sm:$0xf] %vm6756_vm0, %v10498_v35  ;;  %7459 = vrot.lane.b32.xlu1 %v10496_v24, %s14523_s11 }
0x1017   : > { %7509 = vrot.lane.b32.xlu0 %v10497_v38, %s14588_s15 }
0x1018   : > { %v11683_v3 = vld [vmem:[#allocation2] ss:$12 sps:$4 sm:$0xff]  }
0x1019   : > { %7507 = vrot.lane.b32.xlu1 %v10496_v24, %s14588_s15 }
0x101b   : > { %7445 = vrot.lane.b32.xlu0 %v10497_v38, %s14589_s1 }
0x101c   : > { %v11681_v13 = vld [vmem:[#allocation2 + $0x18] ss:$12 sps:$4 sm:$0xff]  }
0x101d   : > { %7443 = vrot.lane.b32.xlu1 %v10496_v24, %s14589_s1 }
0x101f   : > { %7493 = vrot.lane.b32.xlu0 %v10497_v38, %s14590_s2 }
0x1021   : > { %7491 = vrot.lane.b32.xlu1 %v10496_v24, %s14590_s2 }
0x1023   : > { %7529 = vrot.lane.b32.xlu0 %v10499_v2, %s11842_s7 }
0x1025   : > { %7527 = vrot.lane.b32.xlu1 %v10498_v35, %s11842_s7  ;;  %s14593_s7 = smov 121  }
0x1027   : > { %7465 = vrot.lane.b32.xlu0 %v10499_v2, %s14523_s11 }
0x1029   : > { %7463 = vrot.lane.b32.xlu1 %v10498_v35, %s14523_s11  ;;  %s14530_s11 = smov 119  }
0x102b   : > { %7513 = vrot.lane.b32.xlu0 %v10499_v2, %s14588_s15 }
0x102d   : > { %7511 = vrot.lane.b32.xlu1 %v10498_v35, %s14588_s15  ;;  %s14594_s15 = smov 114  }
0x102f   : > { %7449 = vrot.lane.b32.xlu0 %v10499_v2, %s14589_s1 }
0x1031   : > { %7447 = vrot.lane.b32.xlu1 %v10498_v35, %s14589_s1 }
0x1033   : > { %7497 = vrot.lane.b32.xlu0 %v10499_v2, %s14590_s2 }
0x1035   : > { %7495 = vrot.lane.b32.xlu1 %v10498_v35, %s14590_s2 }
0x1037   : > { %7433 = vrot.lane.b32.xlu0 %v10499_v2, %s14583_s0 }
0x1039   : > { %7431 = vrot.lane.b32.xlu1 %v10498_v35, %s14583_s0 }
0x103b   : > { %7429 = vrot.lane.b32.xlu0 %v10497_v38, %s14583_s0 }
0x103d   : > { %7427 = vrot.lane.b32.xlu1 %v10496_v24, %s14583_s0 }
0x103f   : > { %7481 = vrot.lane.b32.xlu0 %v10499_v2, %s14593_s7 }
0x1041   : > { %7479 = vrot.lane.b32.xlu1 %v10498_v35, %s14593_s7 }
0x1043   : > { %7477 = vrot.lane.b32.xlu0 %v10497_v38, %s14593_s7 }
0x1045   : > { %7475 = vrot.lane.b32.xlu1 %v10496_v24, %s14593_s7 }
0x1047   : > { %7545 = vrot.lane.b32.xlu0 %v10499_v2, %s14594_s15 }
0x1049   : > { %7543 = vrot.lane.b32.xlu1 %v10498_v35, %s14594_s15 }
0x104b   : > { %7541 = vrot.lane.b32.xlu0 %v10497_v38, %s14594_s15  ;;  %v11691_v38 = vld [vmem:[%s14591_s3 + $0x1c] ss:$12 sps:$4 sm:$0xff]  }
0x104d   : > { %7539 = vrot.lane.b32.xlu1 %v10496_v24, %s14594_s15  ;;  %s14595_s15 = sld [smem:[#allocation24_spill]]  ;;  %v11689_v24 = vld [vmem:[%s14591_s3 + $0x18] ss:$12 sps:$4 sm:$0xff]   ;;  %s14528_s3 = smov 124  }
0x104f   : > { %7610 = vperm.xlu0 %11529, %v7600_v62  }
0x1051   : > { %7605 = vperm.xlu1 %11530, %v7599_v6  }
0x1053   : > { %7620 = vperm.xlu0 %11529, %v7602_v4   ;;  %v7869_v26 = vld [vmem:[%s14595_s15 + $0x20] sm:$0xf]  ;;  %v7868_v2 = vld [vmem:[%s14595_s15 + $0x18] sm:$0xff]  ;;  %v7867_v46 = vld [vmem:[%s14595_s15 + $0x10] sm:$0xff] }
0x1054   : > { %v7866_v35 = vld [vmem:[%s14595_s15 + $0x8] sm:$0xff]  ;;  %v7865_v31 = vld [vmem:[%s14595_s15] sm:$0xff] }
0x1055   : > { %7615 = vperm.xlu1 %11530, %v7601_v17  }
0x1081   : > { %v7526_v5 = vpop.permute.xlu0 %7525 }
0x1082   : > { %7536 = vst.msk [vmem:[#allocation2 + $0x15c] sm:$0xf] %vm6756_vm0, %v7526_v5 }
0x1083   : > { %v7524_v59 = vpop.permute.xlu1 %7523 }
0x1084   : > { %7535 = vst.msk [vmem:[#allocation2 + $0x150] sm:$0xf] %vm6756_vm0, %v7524_v59 }
0x1085   : > { %v7462_v0 = vpop.permute.xlu0 %7461 }
0x1086   : > { %7472 = vst.msk [vmem:[#allocation2 + $0x9c] sm:$0xf] %vm6756_vm0, %v7462_v0 }
0x1087   : > { %v7460_v15 = vpop.permute.xlu1 %7459 }
0x1088   : > { %7471 = vst.msk [vmem:[#allocation2 + $0x90] sm:$0xf] %vm6756_vm0, %v7460_v15 }
0x1089   : > { %v7510_v52 = vpop.permute.xlu0 %7509 }
0x108a   : > { %7520 = vst.msk [vmem:[#allocation2 + $0x12c] sm:$0xf] %vm6756_vm0, %v7510_v52 }
0x108b   : > { %v7508_v57 = vpop.permute.xlu1 %7507  ;;  %v11670_v41 = vld [vmem:[#allocation2 + $0x150] ss:$12 sps:$4 sm:$0xff]  }
0x108c   : > { %7519 = vst.msk [vmem:[#allocation2 + $0x120] sm:$0xf] %vm6756_vm0, %v7508_v57 }
0x108d   : > { %v7446_v58 = vpop.permute.xlu0 %7445 }
0x108e   : > { %7456 = vst.msk [vmem:[#allocation2 + $0x6c] sm:$0xf] %vm6756_vm0, %v7446_v58 }
0x108f   : > { %v7444_v50 = vpop.permute.xlu1 %7443  ;;  %v11671_v11 = vld [vmem:[#allocation2 + $0x90] ss:$12 sps:$4 sm:$0xff]  }
0x1090   : > { %7455 = vst.msk [vmem:[#allocation2 + $0x60] sm:$0xf] %vm6756_vm0, %v7444_v50 }
0x1091   : > { %v7494_v33 = vpop.permute.xlu0 %7493 }
0x1092   : > { %7504 = vst.msk [vmem:[#allocation2 + $0xfc] sm:$0xf] %vm6756_vm0, %v7494_v33 }
0x1093   : > { %v7492_v19 = vpop.permute.xlu1 %7491  ;;  %v11674_v53 = vld [vmem:[#allocation2 + $0x120] ss:$12 sps:$4 sm:$0xff]  }
0x1094   : > { %7503 = vst.msk [vmem:[#allocation2 + $0xf0] sm:$0xf] %vm6756_vm0, %v7492_v19 }
0x1095   : > { %v7530_v23 = vpop.permute.xlu0 %7529 }
0x1096   : > { %7538 = vst.msk [vmem:[#allocation2 + $0x174] sm:$0xf] %vm6756_vm0, %v7530_v23 }
0x1097   : > { %v7528_v36 = vpop.permute.xlu1 %7527  ;;  %v11675_v14 = vld [vmem:[#allocation2 + $0x60] ss:$12 sps:$4 sm:$0xff]  }
0x1098   : > { %7537 = vst.msk [vmem:[#allocation2 + $0x168] sm:$0xf] %vm6756_vm0, %v7528_v36 }
0x1099   : > { %v7466_v8 = vpop.permute.xlu0 %7465 }
0x109a   : > { %7474 = vst.msk [vmem:[#allocation2 + $0xb4] sm:$0xf] %vm6756_vm0, %v7466_v8 }
0x109b   : > { %v7464_v7 = vpop.permute.xlu1 %7463  ;;  %v11678_v47 = vld [vmem:[#allocation2 + $0xf0] ss:$12 sps:$4 sm:$0xff]  }
0x109c   : > { %7473 = vst.msk [vmem:[#allocation2 + $0xa8] sm:$0xf] %vm6756_vm0, %v7464_v7 }
0x109d   : > { %v7514_v42 = vpop.permute.xlu0 %7513 }
0x109e   : > { %7522 = vst.msk [vmem:[#allocation2 + $0x144] sm:$0xf] %vm6756_vm0, %v7514_v42 }
0x109f   : > { %v7512_v44 = vpop.permute.xlu1 %7511  ;;  %v11668_v40 = vld [vmem:[#allocation2 + $0x168] ss:$12 sps:$4 sm:$0xff]  }
0x10a0   : > { %7521 = vst.msk [vmem:[#allocation2 + $0x138] sm:$0xf] %vm6756_vm0, %v7512_v44  ;;  %10954 = vmatprep.subr.bf16.mxu1 %v11668_v40 }
0x10a1   : > { %v7450_v25 = vpop.permute.xlu0 %7449 }
0x10a2   : > { %7458 = vst.msk [vmem:[#allocation2 + $0x84] sm:$0xf] %vm6756_vm0, %v7450_v25 }
0x10a3   : > { %v7448_v51 = vpop.permute.xlu1 %7447  ;;  %v11669_v48 = vld [vmem:[#allocation2 + $0xa8] ss:$12 sps:$4 sm:$0xff]  }
0x10a4   : > { %7457 = vst.msk [vmem:[#allocation2 + $0x78] sm:$0xf] %vm6756_vm0, %v7448_v51  ;;  %10955 = vmatpush3.bf16.msra.mxu1 %v11669_v48 }
0x10a5   : > { %v7498_v56 = vpop.permute.xlu0 %7497  ;;  %10956 = vmatprep.subr.bf16.mxu1 %v11670_v41 }
0x10a6   : > { %7506 = vst.msk [vmem:[#allocation2 + $0x114] sm:$0xf] %vm6756_vm0, %v7498_v56 }
0x10a7   : > { %v7496_v34 = vpop.permute.xlu1 %7495  ;;  %v11672_v22 = vld [vmem:[#allocation2 + $0x138] ss:$12 sps:$4 sm:$0xff]  }
0x10a8   : > { %7505 = vst.msk [vmem:[#allocation2 + $0x108] sm:$0xf] %vm6756_vm0, %v7496_v34  ;;  %10957 = vmatpush3.bf16.msra.mxu1 %v11671_v11 }
0x10a9   : > { %v7434_v29 = vpop.permute.xlu0 %7433  ;;  %10958 = vmatprep.subr.bf16.mxu1 %v11672_v22 }
0x10aa   : > { %7442 = vst.msk [vmem:[#allocation2 + $0x54] sm:$0xf] %vm6756_vm0, %v7434_v29 }
0x10ab   : > { %v7432_v27 = vpop.permute.xlu1 %7431  ;;  %v11673_v63 = vld [vmem:[#allocation2 + $0x78] ss:$12 sps:$4 sm:$0xff]  }
0x10ac   : > { %7441 = vst.msk [vmem:[#allocation2 + $0x48] sm:$0xf] %vm6756_vm0, %v7432_v27  ;;  %10959 = vmatpush3.bf16.msra.mxu1 %v11673_v63 }
0x10ad   : > { %v7430_v60 = vpop.permute.xlu0 %7429  ;;  %10960 = vmatprep.subr.bf16.mxu1 %v11674_v53 }
0x10ae   : > { %7440 = vst.msk [vmem:[#allocation2 + $0x3c] sm:$0xf] %vm6756_vm0, %v7430_v60 }
0x10af   : > { %v7428_v18 = vpop.permute.xlu1 %7427  ;;  %v11676_v28 = vld [vmem:[#allocation2 + $0x108] ss:$12 sps:$4 sm:$0xff]  }
0x10b0   : > { %7439 = vst.msk [vmem:[#allocation2 + $0x30] sm:$0xf] %vm6756_vm0, %v7428_v18  ;;  %10961 = vmatpush3.bf16.msra.mxu1 %v11675_v14 }
0x10b1   : > { %v7482_v1 = vpop.permute.xlu0 %7481  ;;  %10962 = vmatprep.subr.bf16.mxu1 %v11676_v28 }
0x10b2   : > { %7490 = vst.msk [vmem:[#allocation2 + $0xe4] sm:$0xf] %vm6756_vm0, %v7482_v1 }
0x10b3   : > { %v7480_v32 = vpop.permute.xlu1 %7479  ;;  %v11677_v21 = vld [vmem:[#allocation2 + $0x48] ss:$12 sps:$4 sm:$0xff]  }
0x10b4   : > { %7489 = vst.msk [vmem:[#allocation2 + $0xd8] sm:$0xf] %vm6756_vm0, %v7480_v32  ;;  %10963 = vmatpush3.bf16.msra.mxu1 %v11677_v21  ;;  %v11712_v21 = vld [vmem:[%s14597_s5 + $0x4] ss:$12 sps:$4 sm:$0xff]  }
0x10b5   : > { %v7478_v39 = vpop.permute.xlu0 %7477  ;;  %10964 = vmatprep.subr.bf16.mxu1 %v11678_v47  ;;  %v8168_v47 = vld [vmem:[%s14598_s6 + $0x8] sm:$0xff] }
0x10b6   : > { %7488 = vst.msk [vmem:[#allocation2 + $0xcc] sm:$0xf] %vm6756_vm0, %v7478_v39  ;;  %v11718_v39 = vld [vmem:[%s14597_s5 + $0x8] ss:$12 sps:$4 sm:$0xff]  }
0x10b7   : > { %v7476_v12 = vpop.permute.xlu1 %7475  ;;  %v11679_v49 = vld [vmem:[#allocation2 + $0x30] ss:$12 sps:$4 sm:$0xff]  }
0x10b8   : > { %7487 = vst.msk [vmem:[#allocation2 + $0xc0] sm:$0xf] %vm6756_vm0, %v7476_v12  ;;  %10965 = vmatpush3.bf16.msra.mxu1 %v11679_v49  ;;  %v8167_v12 = vld [vmem:[%s14598_s6] sm:$0xff]  ;;  %v8170_v49 = vld [vmem:[%s14598_s6 + $0x18] sm:$0xff] }
0x10b9   : > { %v7546_v9 = vpop.permute.xlu0 %7545 }
0x10ba   : > { %7554 = vst.msk [vmem:[#allocation2 + $0x1a4] sm:$0xf] %vm6756_vm0, %v7546_v9  ;;  %v8169_v9 = vld [vmem:[%s14598_s6 + $0x10] sm:$0xff]  ;;  %s14601_s6 = sld [smem:[#allocation21_spill]] }
0x10bb   : > { %v7544_v45 = vpop.permute.xlu1 %7543  ;;  %v11680_v10 = vld [vmem:[#allocation2 + $0xd8] ss:$12 sps:$4 sm:$0xff]  }
0x10bc   : > { %7553 = vst.msk [vmem:[#allocation2 + $0x198] sm:$0xf] %vm6756_vm0, %v7544_v45  ;;  %10966 = vmatprep.subr.bf16.mxu1 %v11680_v10 }
0x10bd   : > { %v7542_v43 = vpop.permute.xlu0 %7541  ;;  %10967 = vmatpush3.bf16.msra.mxu1 %v11681_v13 }
0x10be   : > { %7552 = vst.msk [vmem:[#allocation2 + $0x18c] sm:$0xf] %vm6756_vm0, %v7542_v43 }
0x10bf   : > { %v7540_v20 = vpop.permute.xlu1 %7539  ;;  %v11682_v61 = vld [vmem:[#allocation2 + $0xc0] ss:$12 sps:$4 sm:$0xff]  }
0x10c0   : > { %7551 = vst.msk [vmem:[#allocation2 + $0x180] sm:$0xf] %vm6756_vm0, %v7540_v20  ;;  %10968 = vmatprep.subr.bf16.mxu1 %v11682_v61 }
0x10c1   : > { %10969 = vmatpush3.bf16.msra.mxu1 %v11683_v3 }
0x10c3   : > { %v11687_v54 = vld [vmem:[#allocation2 + $0x198] ss:$12 sps:$4 sm:$0xff]  }
0x10c4   : > { %7800 = vmatmul.mubr.bf16.vlgmr.msra.gmra.mxu1 %v11684_v55  ;;  %11369 = vmatprep.subr.bf16.mxu0 %v11687_v54 }
0x10c5   : > { %11370 = vmatpush3.bf16.msra.mxu0 %v11687_v54  ;;  %7807 = vmatprep.mubr.bf16.mxu1 %v11691_v38 }
0x10c7   : > { %v11688_v16 = vld [vmem:[#allocation2 + $0x180] ss:$12 sps:$4 sm:$0xff]  }
0x10c8   : > { %11371 = vmatprep.subr.bf16.mxu0 %v11688_v16 }
0x10c9   : > { %11372 = vmatpush3.bf16.msra.mxu0 %v11688_v16 }
0x10ca   : > { %11377 = vmatprep.subr.msk.mxu0 %vm1494_vm1, %v7869_v26  ;;  %v7611_v15 = vpop.permute.xlu0 %7610 }
0x10cc   : > { %7808 = vmatmul.mubr.bf16.gmra.mxu1 %v11689_v24  ;;  %11374 = vmatmul.mubr.msk.bf16.vlgmr.msra.gmra.mxu0 %vm3199_vm12, %v11693_v30  ;;  %v7606_v4 = vpop.permute.xlu1 %7605 }
0x10cd   : > { %11378 = vmatpush3.msk.msra.mxu0 %vm1494_vm1, %v7869_v26  ;;  %vm7990_vm1 = vcmask 125952   ;;  %11397 = vmatprep.mubr.msk.bf16.mxu1 %vm3199_vm12, %v11718_v39 }
0x10ce   : > { %11379 = vmatprep.subr.mxu0 %v7868_v2  ;;  %v7621_v41 = vpop.permute.xlu0 %7620 }
0x10cf   : > { %11380 = vmatpush3.msra.mxu0 %v7868_v2 }
0x10d0   : > { %11381 = vmatprep.subr.mxu0 %v7867_v46  ;;  %v7616_v33 = vpop.permute.xlu1 %7615 }
0x10d1   : > { %11382 = vmatpush3.msra.mxu0 %v7867_v46 }
0x10d2   : > { %11383 = vmatprep.subr.mxu0 %v7866_v35 }
0x10d3   : > { %11384 = vmatpush3.msra.mxu0 %v7866_v35 }
0x10d4   : > { %11385 = vmatprep.subr.mxu0 %v7865_v31 }
0x10d5   : > { %11386 = vmatpush3.msra.mxu0 %v7865_v31 }
0x1184   : > { %v10970_v62 = vpop.f32.mrf.mxu1 }
0x1186   : > { %v10971_v37 = vpop.f32.mrf.mxu1 }
0x1187   : > { %v10972_v17 = vadd.f32 %v10971_v37, %v10970_v62 }
0x1188   : > { %v10973_v6 = vpop.f32.mrf.mxu1 }
0x1189   : > { %v7802_v57 = vadd.f32 %v10972_v17, %v7606_v4 }
0x118a   : > { %v10974_v5 = vpop.f32.mrf.mxu1 }
0x118b   : > { %v10975_v52 = vadd.f32 %v10974_v5, %v10973_v6 }
0x118c   : > { %v10976_v59 = vpop.f32.mrf.mxu1  ;;  %v11375_v0 = vpop.f32.mrf.mxu0 }
0x118d   : > { %v7805_v42 = vadd.f32 %v10975_v52, %v7611_v15 }
0x118e   : > { %v10977_v58 = vpop.f32.mrf.mxu1  ;;  %v7850_v50 = vpop.f32.mrf.mxu0 }
0x118f   : > { %v10978_v19 = vadd.f32 %v10977_v58, %v10976_v59  ;;  %v7851_v23 = vadd.f32 %v7850_v50, %v7802_v57 }
0x1190   : > { %v10979_v36 = vpop.f32.mrf.mxu1  ;;  %v11376_v8 = vpop.f32.mrf.mxu0 }
0x1191   : > { %v7810_v7 = vadd.f32 %v10978_v19, %v7616_v33  ;;  %11387 = vmatprep.mubr.msk.f32.mxu0 %vm7204_vm2, %v7851_v23 }
0x1192   : > { %v10980_v44 = vpop.f32.mrf.mxu1  ;;  %v7853_v40 = vpop.f32.mrf.mxu0 }
0x1193   : > { %v7859_v25 = vadd.f32 %v11375_v0, %v7810_v7  ;;  %v10981_v51 = vadd.f32 %v10980_v44, %v10979_v36  ;;  %v7854_v48 = vadd.f32 %v7853_v40, %v7805_v42 }
0x1195   : > { %v7813_v56 = vadd.f32 %v10981_v51, %v7621_v41  ;;  %11388 = vmatmul.mubr.msk.f32.vlgmr.msra.gmra.mxu0 %vm7204_vm2, %v7854_v48 }
0x1196   : > { %11390 = vmatprep.mubr.msk.f32.mxu0 %vm7204_vm2, %v7859_v25 }
0x1197   : > { %v7862_v34 = vadd.f32 %v11376_v8, %v7813_v56 }
0x1199   : > { %11391 = vmatmul.mubr.msk.f32.gmra.mxu0 %vm7204_vm2, %v7862_v34 }
0x119a   : > { %8367 = vmatprep.mubr.bf16.mxu0 %v11712_v21 }
0x1255   : > { %v11389_v11 = vpop.f32.mrf.mxu0 }
0x1256   : > { %v7971_v22 = vmax.f32 %v11389_v11, 0.0 }
0x1257   : > { %v7951_v29 = vpop.f32.mrf.mxu0 }
0x1258   : > { %v10501_v27 = vpack.c.bf16 %v7971_v22, %v7971_v22  ;;  %v7970_v63 = vmax.f32 %v7951_v29, 0.0  ;;  %v11710_v29 = vld [vmem:[%s14597_s5] ss:$12 sps:$4 sm:$0xff]  }
0x1259   : > { %v11392_v53 = vpop.f32.mrf.mxu0 }
0x125a   : > { %7992 = vst.msk [vmem:[#allocation2 + $0xc] sm:$0xf] %vm7990_vm1, %v10501_v27  ;;  %v10500_v60 = vpack.c.bf16 %v7970_v63, %v7970_v63  ;;  %v7973_v18 = vmax.f32 %v11392_v53, 0.0  ;;  %8093 = vrot.lane.b32.xlu0 %v10501_v27, %s14530_s11 }
0x125b   : > { %v7961_v14 = vpop.f32.mrf.mxu0 }
0x125c   : > { %7991 = vst.msk [vmem:[#allocation2] sm:$0xf] %vm7990_vm1, %v10500_v60  ;;  %v10503_v28 = vpack.c.bf16 %v7973_v18, %v7973_v18  ;;  %v7972_v1 = vmax.f32 %v7961_v14, 0.0  ;;  %8091 = vrot.lane.b32.xlu1 %v10500_v60, %s14530_s11  ;;  %v11719_v18 = vld [vmem:[%s14597_s5 + $0x20] ss:$12 sps:$4 sm:$0xff]  }
0x125e   : > { %7994 = vst.msk [vmem:[#allocation2 + $0x24] sm:$0xf] %vm7990_vm1, %v10503_v28  ;;  %v10502_v32 = vpack.c.bf16 %v7972_v1, %v7972_v1  ;;  %8029 = vrot.lane.b32.xlu0 %v10501_v27, %s14528_s3  ;;  %v8538_v1 = vld [vmem:[%s14601_s6 + $0x8] sm:$0xff] }
0x1260   : > { %7993 = vst.msk [vmem:[#allocation2 + $0x18] sm:$0xf] %vm7990_vm1, %v10502_v32  ;;  %8027 = vrot.lane.b32.xlu1 %v10500_v60, %s14528_s3 }
0x1262   : > { %8077 = vrot.lane.b32.xlu0 %v10501_v27, %s14590_s2 }
0x1263   : > { %v11709_v22 = vld [vmem:[#allocation2] ss:$12 sps:$4 sm:$0xff]  }
0x1264   : > { %8075 = vrot.lane.b32.xlu1 %v10500_v60, %s14590_s2 }
0x1266   : > { %8013 = vrot.lane.b32.xlu0 %v10501_v27, %s14589_s1 }
0x1267   : > { %v11707_v41 = vld [vmem:[#allocation2 + $0x18] ss:$12 sps:$4 sm:$0xff]  }
0x1268   : > { %8011 = vrot.lane.b32.xlu1 %v10500_v60, %s14589_s1 }
0x126a   : > { %8061 = vrot.lane.b32.xlu0 %v10501_v27, %s14596_s4 }
0x126c   : > { %8059 = vrot.lane.b32.xlu1 %v10500_v60, %s14596_s4 }
0x126e   : > { %8097 = vrot.lane.b32.xlu0 %v10503_v28, %s14530_s11 }
0x1270   : > { %8095 = vrot.lane.b32.xlu1 %v10502_v32, %s14530_s11  ;;  %s14599_s11 = smov 118  }
0x1272   : > { %8033 = vrot.lane.b32.xlu0 %v10503_v28, %s14528_s3 }
0x1274   : > { %8031 = vrot.lane.b32.xlu1 %v10502_v32, %s14528_s3  ;;  %s14532_s3 = smov 123  }
0x1276   : > { %8081 = vrot.lane.b32.xlu0 %v10503_v28, %s14590_s2 }
0x1278   : > { %8079 = vrot.lane.b32.xlu1 %v10502_v32, %s14590_s2 }
0x127a   : > { %8017 = vrot.lane.b32.xlu0 %v10503_v28, %s14589_s1 }
0x127c   : > { %8015 = vrot.lane.b32.xlu1 %v10502_v32, %s14589_s1 }
0x127e   : > { %8065 = vrot.lane.b32.xlu0 %v10503_v28, %s14596_s4 }
0x1280   : > { %8063 = vrot.lane.b32.xlu1 %v10502_v32, %s14596_s4 }
0x1282   : > { %8001 = vrot.lane.b32.xlu0 %v10503_v28, %s14583_s0 }
0x1284   : > { %7999 = vrot.lane.b32.xlu1 %v10502_v32, %s14583_s0 }
0x1286   : > { %7997 = vrot.lane.b32.xlu0 %v10501_v27, %s14583_s0 }
0x1288   : > { %7995 = vrot.lane.b32.xlu1 %v10500_v60, %s14583_s0 }
0x128a   : > { %8049 = vrot.lane.b32.xlu0 %v10503_v28, %s14532_s3 }
0x128c   : > { %8047 = vrot.lane.b32.xlu1 %v10502_v32, %s14532_s3 }
0x128e   : > { %8045 = vrot.lane.b32.xlu0 %v10501_v27, %s14532_s3 }
0x1290   : > { %8043 = vrot.lane.b32.xlu1 %v10500_v60, %s14532_s3  ;;  %s14600_s3 = sld [smem:[#allocation28_spill]] }
0x1292   : > { %8113 = vrot.lane.b32.xlu0 %v10503_v28, %s14599_s11 }
0x1294   : > { %8111 = vrot.lane.b32.xlu1 %v10502_v32, %s14599_s11 }
0x1296   : > { %8109 = vrot.lane.b32.xlu0 %v10501_v27, %s14599_s11  ;;  %v11717_v27 = vld [vmem:[%s14597_s5 + $0x1c] ss:$12 sps:$4 sm:$0xff]   ;;  %v8433_v28 = vld [vmem:[%s14600_s3] sm:$0xff] }
0x1297   : > { %v8434_v14 = vld [vmem:[%s14600_s3 + $0x8] sm:$0xff]  ;;  %s1226_s3 = scalar_lea.vmem %s12049_s19, %s13906_s26 }
0x1298   : > { %8107 = vrot.lane.b32.xlu1 %v10500_v60, %s14599_s11  ;;  %v11715_v60 = vld [vmem:[%s14597_s5 + $0x18] ss:$12 sps:$4 sm:$0xff]   ;;  %s14602_s5 = smov 119  }
0x129a   : > { %8178 = vperm.xlu0 %11529, %v8168_v47  }
0x129c   : > { %8173 = vperm.xlu1 %11530, %v8167_v12  }
0x129e   : > { %8188 = vperm.xlu0 %11529, %v8170_v49  }
0x12a0   : > { %8183 = vperm.xlu1 %11530, %v8169_v9  }
0x12cc   : > { %v8094_v45 = vpop.permute.xlu0 %8093 }
0x12cd   : > { %8104 = vst.msk [vmem:[#allocation2 + $0x15c] sm:$0xf] %vm7990_vm1, %v8094_v45 }
0x12ce   : > { %v8092_v10 = vpop.permute.xlu1 %8091 }
0x12cf   : > { %8103 = vst.msk [vmem:[#allocation2 + $0x150] sm:$0xf] %vm7990_vm1, %v8092_v10 }
0x12d0   : > { %v8030_v13 = vpop.permute.xlu0 %8029 }
0x12d1   : > { %8040 = vst.msk [vmem:[#allocation2 + $0x9c] sm:$0xf] %vm7990_vm1, %v8030_v13 }
0x12d2   : > { %v8028_v43 = vpop.permute.xlu1 %8027 }
0x12d3   : > { %8039 = vst.msk [vmem:[#allocation2 + $0x90] sm:$0xf] %vm7990_vm1, %v8028_v43 }
0x12d4   : > { %v8078_v20 = vpop.permute.xlu0 %8077 }
0x12d5   : > { %8088 = vst.msk [vmem:[#allocation2 + $0x12c] sm:$0xf] %vm7990_vm1, %v8078_v20 }
0x12d6   : > { %v8076_v61 = vpop.permute.xlu1 %8075  ;;  %v11696_v6 = vld [vmem:[#allocation2 + $0x150] ss:$12 sps:$4 sm:$0xff]  }
0x12d7   : > { %8087 = vst.msk [vmem:[#allocation2 + $0x120] sm:$0xf] %vm7990_vm1, %v8076_v61 }
0x12d8   : > { %v8014_v3 = vpop.permute.xlu0 %8013 }
0x12d9   : > { %8024 = vst.msk [vmem:[#allocation2 + $0x6c] sm:$0xf] %vm7990_vm1, %v8014_v3 }
0x12da   : > { %v8012_v55 = vpop.permute.xlu1 %8011  ;;  %v11697_v5 = vld [vmem:[#allocation2 + $0x90] ss:$12 sps:$4 sm:$0xff]  }
0x12db   : > { %8023 = vst.msk [vmem:[#allocation2 + $0x60] sm:$0xf] %vm7990_vm1, %v8012_v55 }
0x12dc   : > { %v8062_v38 = vpop.permute.xlu0 %8061 }
0x12dd   : > { %8072 = vst.msk [vmem:[#allocation2 + $0xfc] sm:$0xf] %vm7990_vm1, %v8062_v38 }
0x12de   : > { %v8060_v54 = vpop.permute.xlu1 %8059  ;;  %v11700_v57 = vld [vmem:[#allocation2 + $0x120] ss:$12 sps:$4 sm:$0xff]  }
0x12df   : > { %8071 = vst.msk [vmem:[#allocation2 + $0xf0] sm:$0xf] %vm7990_vm1, %v8060_v54 }
0x12e0   : > { %v8098_v16 = vpop.permute.xlu0 %8097 }
0x12e1   : > { %8106 = vst.msk [vmem:[#allocation2 + $0x174] sm:$0xf] %vm7990_vm1, %v8098_v16 }
0x12e2   : > { %v8096_v24 = vpop.permute.xlu1 %8095  ;;  %v11701_v33 = vld [vmem:[#allocation2 + $0x60] ss:$12 sps:$4 sm:$0xff]  }
0x12e3   : > { %8105 = vst.msk [vmem:[#allocation2 + $0x168] sm:$0xf] %vm7990_vm1, %v8096_v24 }
0x12e4   : > { %v8034_v30 = vpop.permute.xlu0 %8033 }
0x12e5   : > { %8042 = vst.msk [vmem:[#allocation2 + $0xb4] sm:$0xf] %vm7990_vm1, %v8034_v30 }
0x12e6   : > { %v8032_v26 = vpop.permute.xlu1 %8031  ;;  %v11704_v7 = vld [vmem:[#allocation2 + $0xf0] ss:$12 sps:$4 sm:$0xff]  }
0x12e7   : > { %8041 = vst.msk [vmem:[#allocation2 + $0xa8] sm:$0xf] %vm7990_vm1, %v8032_v26 }
0x12e8   : > { %v8082_v2 = vpop.permute.xlu0 %8081 }
0x12e9   : > { %8090 = vst.msk [vmem:[#allocation2 + $0x144] sm:$0xf] %vm7990_vm1, %v8082_v2 }
0x12ea   : > { %v8080_v46 = vpop.permute.xlu1 %8079  ;;  %v11694_v35 = vld [vmem:[#allocation2 + $0x168] ss:$12 sps:$4 sm:$0xff]  }
0x12eb   : > { %8089 = vst.msk [vmem:[#allocation2 + $0x138] sm:$0xf] %vm7990_vm1, %v8080_v46  ;;  %10995 = vmatprep.subr.bf16.mxu0 %v11694_v35 }
0x12ec   : > { %v8018_v31 = vpop.permute.xlu0 %8017 }
0x12ed   : > { %8026 = vst.msk [vmem:[#allocation2 + $0x84] sm:$0xf] %vm7990_vm1, %v8018_v31 }
0x12ee   : > { %v8016_v62 = vpop.permute.xlu1 %8015  ;;  %v11695_v37 = vld [vmem:[#allocation2 + $0xa8] ss:$12 sps:$4 sm:$0xff]  }
0x12ef   : > { %8025 = vst.msk [vmem:[#allocation2 + $0x78] sm:$0xf] %vm7990_vm1, %v8016_v62  ;;  %10996 = vmatpush3.bf16.msra.mxu0 %v11695_v37  ;;  %v8537_v37 = vld [vmem:[%s14601_s6] sm:$0xff]  ;;  %s14604_s6 = sld [smem:[#allocation15_spill]] }
0x12f0   : > { %v8066_v4 = vpop.permute.xlu0 %8065  ;;  %10997 = vmatprep.subr.bf16.mxu0 %v11696_v6 }
0x12f1   : > { %8074 = vst.msk [vmem:[#allocation2 + $0x114] sm:$0xf] %vm7990_vm1, %v8066_v4 }
0x12f2   : > { %v8064_v17 = vpop.permute.xlu1 %8063  ;;  %v11698_v59 = vld [vmem:[#allocation2 + $0x138] ss:$12 sps:$4 sm:$0xff]  }
0x12f3   : > { %8073 = vst.msk [vmem:[#allocation2 + $0x108] sm:$0xf] %vm7990_vm1, %v8064_v17  ;;  %10998 = vmatpush3.bf16.msra.mxu0 %v11697_v5 }
0x12f4   : > { %v8002_v0 = vpop.permute.xlu0 %8001  ;;  %10999 = vmatprep.subr.bf16.mxu0 %v11698_v59 }
0x12f5   : > { %8010 = vst.msk [vmem:[#allocation2 + $0x54] sm:$0xf] %vm7990_vm1, %v8002_v0 }
0x12f6   : > { %v8000_v15 = vpop.permute.xlu1 %7999  ;;  %v11699_v52 = vld [vmem:[#allocation2 + $0x78] ss:$12 sps:$4 sm:$0xff]  }
0x12f7   : > { %8009 = vst.msk [vmem:[#allocation2 + $0x48] sm:$0xf] %vm7990_vm1, %v8000_v15  ;;  %11000 = vmatpush3.bf16.msra.mxu0 %v11699_v52 }
0x12f8   : > { %v7998_v58 = vpop.permute.xlu0 %7997  ;;  %11001 = vmatprep.subr.bf16.mxu0 %v11700_v57 }
0x12f9   : > { %8008 = vst.msk [vmem:[#allocation2 + $0x3c] sm:$0xf] %vm7990_vm1, %v7998_v58 }
0x12fa   : > { %v7996_v50 = vpop.permute.xlu1 %7995  ;;  %v11702_v19 = vld [vmem:[#allocation2 + $0x108] ss:$12 sps:$4 sm:$0xff]  }
0x12fb   : > { %8007 = vst.msk [vmem:[#allocation2 + $0x30] sm:$0xf] %vm7990_vm1, %v7996_v50  ;;  %11002 = vmatpush3.bf16.msra.mxu0 %v11701_v33 }
0x12fc   : > { %v8050_v23 = vpop.permute.xlu0 %8049  ;;  %11003 = vmatprep.subr.bf16.mxu0 %v11702_v19 }
0x12fd   : > { %8058 = vst.msk [vmem:[#allocation2 + $0xe4] sm:$0xf] %vm7990_vm1, %v8050_v23 }
0x12fe   : > { %v8048_v36 = vpop.permute.xlu1 %8047  ;;  %v11703_v8 = vld [vmem:[#allocation2 + $0x48] ss:$12 sps:$4 sm:$0xff]  }
0x12ff   : > { %8057 = vst.msk [vmem:[#allocation2 + $0xd8] sm:$0xf] %vm7990_vm1, %v8048_v36  ;;  %11004 = vmatpush3.bf16.msra.mxu0 %v11703_v8 }
0x1300   : > { %v8046_v42 = vpop.permute.xlu0 %8045  ;;  %11005 = vmatprep.subr.bf16.mxu0 %v11704_v7 }
0x1301   : > { %8056 = vst.msk [vmem:[#allocation2 + $0xcc] sm:$0xf] %vm7990_vm1, %v8046_v42 }
0x1302   : > { %v8044_v44 = vpop.permute.xlu1 %8043  ;;  %v11705_v40 = vld [vmem:[#allocation2 + $0x30] ss:$12 sps:$4 sm:$0xff]  }
0x1303   : > { %8055 = vst.msk [vmem:[#allocation2 + $0xc0] sm:$0xf] %vm7990_vm1, %v8044_v44  ;;  %11006 = vmatpush3.bf16.msra.mxu0 %v11705_v40  ;;  %v11738_v44 = vld [vmem:[%s14604_s6 + $0x4] ss:$12 sps:$4 sm:$0xff]   ;;  %v8821_v40 = vld [vmem:[%s14605_s8 + $0x8] sm:$0xff] }
0x1304   : > { %v8114_v25 = vpop.permute.xlu0 %8113 }
0x1305   : > { %8122 = vst.msk [vmem:[#allocation2 + $0x1a4] sm:$0xf] %vm7990_vm1, %v8114_v25  ;;  %v11744_v25 = vld [vmem:[%s14604_s6 + $0x8] ss:$12 sps:$4 sm:$0xff]  }
0x1306   : > { %v8112_v51 = vpop.permute.xlu1 %8111  ;;  %v11706_v48 = vld [vmem:[#allocation2 + $0xd8] ss:$12 sps:$4 sm:$0xff]  }
0x1307   : > { %8121 = vst.msk [vmem:[#allocation2 + $0x198] sm:$0xf] %vm7990_vm1, %v8112_v51  ;;  %11007 = vmatprep.subr.bf16.mxu0 %v11706_v48  ;;  %v8820_v51 = vld [vmem:[%s14605_s8] sm:$0xff]  ;;  %v8823_v48 = vld [vmem:[%s14605_s8 + $0x18] sm:$0xff] }
0x1308   : > { %v8110_v56 = vpop.permute.xlu0 %8109  ;;  %11008 = vmatpush3.bf16.msra.mxu0 %v11707_v41  ;;  %v8822_v41 = vld [vmem:[%s14605_s8 + $0x10] sm:$0xff]  ;;  %s14608_s8 = sld [smem:[#allocation17_spill]] }
0x1309   : > { %8120 = vst.msk [vmem:[#allocation2 + $0x18c] sm:$0xf] %vm7990_vm1, %v8110_v56 }
0x130a   : > { %v8108_v34 = vpop.permute.xlu1 %8107  ;;  %v11708_v11 = vld [vmem:[#allocation2 + $0xc0] ss:$12 sps:$4 sm:$0xff]  }
0x130b   : > { %8119 = vst.msk [vmem:[#allocation2 + $0x180] sm:$0xf] %vm7990_vm1, %v8108_v34  ;;  %11009 = vmatprep.subr.bf16.mxu0 %v11708_v11 }
0x130c   : > { %11010 = vmatpush3.bf16.msra.mxu0 %v11709_v22 }
0x130e   : > { %v11713_v63 = vld [vmem:[#allocation2 + $0x198] ss:$12 sps:$4 sm:$0xff]  }
0x130f   : > { %8368 = vmatmul.mubr.bf16.vlgmr.msra.gmra.mxu0 %v11710_v29  ;;  %11393 = vmatprep.subr.bf16.mxu1 %v11713_v63 }
0x1310   : > { %11394 = vmatpush3.bf16.msra.mxu1 %v11713_v63  ;;  %8375 = vmatprep.mubr.bf16.mxu0 %v11717_v27 }
0x1312   : > { %v11714_v53 = vld [vmem:[#allocation2 + $0x180] ss:$12 sps:$4 sm:$0xff]  }
0x1313   : > { %11395 = vmatprep.subr.bf16.mxu1 %v11714_v53 }
0x1314   : > { %11396 = vmatpush3.bf16.msra.mxu1 %v11714_v53 }
0x1315   : > { %11401 = vmatprep.subr.mxu1 %v8434_v14  ;;  %v8179_v10 = vpop.permute.xlu0 %8178 }
0x1317   : > { %8376 = vmatmul.mubr.bf16.gmra.mxu0 %v11715_v60  ;;  %11398 = vmatmul.mubr.msk.bf16.vlgmr.msra.gmra.mxu1 %vm3199_vm12, %v11719_v18  ;;  %v8174_v39 = vpop.permute.xlu1 %8173 }
0x1318   : > { %11402 = vmatpush3.msra.mxu1 %v8434_v14  ;;  %9020 = vmatprep.mubr.bf16.mxu0 %v11738_v44 }
0x1319   : > { %11403 = vmatprep.subr.mxu1 %v8433_v28  ;;  %v8189_v62 = vpop.permute.xlu0 %8188 }
0x131a   : > { %11404 = vmatpush3.msra.mxu1 %v8433_v28 }
0x131b   : > { %11411 = vmatprep.subr.mxu1 %v8538_v1  ;;  %v8184_v3 = vpop.permute.xlu1 %8183 }
0x13cf   : > { %v11011_v32 = vpop.f32.mrf.mxu0 }
0x13d1   : > { %v11012_v21 = vpop.f32.mrf.mxu0 }
0x13d2   : > { %v11013_v12 = vadd.f32 %v11012_v21, %v11011_v32 }
0x13d3   : > { %v11014_v47 = vpop.f32.mrf.mxu0 }
0x13d4   : > { %v8370_v43 = vadd.f32 %v11013_v12, %v8174_v39 }
0x13d5   : > { %v11015_v49 = vpop.f32.mrf.mxu0 }
0x13d6   : > { %v11016_v13 = vadd.f32 %v11015_v49, %v11014_v47 }
0x13d7   : > { %v11017_v9 = vpop.f32.mrf.mxu0  ;;  %v11399_v45 = vpop.f32.mrf.mxu1 }
0x13d8   : > { %v8373_v30 = vadd.f32 %v11016_v13, %v8179_v10 }
0x13d9   : > { %v11018_v20 = vpop.f32.mrf.mxu0  ;;  %v8418_v61 = vpop.f32.mrf.mxu1 }
0x13da   : > { %v11019_v55 = vadd.f32 %v11018_v20, %v11017_v9  ;;  %v8419_v38 = vadd.f32 %v8418_v61, %v8370_v43 }
0x13db   : > { %v11020_v54 = vpop.f32.mrf.mxu0  ;;  %v11400_v16 = vpop.f32.mrf.mxu1 }
0x13dc   : > { %v8378_v24 = vadd.f32 %v11019_v55, %v8184_v3  ;;  %11405 = vmatprep.mubr.msk.f32.mxu1 %vm7305_vm3, %v8419_v38 }
0x13dd   : > { %v11021_v26 = vpop.f32.mrf.mxu0  ;;  %v8421_v2 = vpop.f32.mrf.mxu1 }
0x13de   : > { %v8427_v46 = vadd.f32 %v11399_v45, %v8378_v24  ;;  %v11022_v35 = vadd.f32 %v11021_v26, %v11020_v54  ;;  %v8422_v31 = vadd.f32 %v8421_v2, %v8373_v30 }
0x13e0   : > { %v8381_v6 = vadd.f32 %v11022_v35, %v8189_v62  ;;  %11406 = vmatmul.mubr.msk.f32.vlgmr.msra.gmra.mxu1 %vm7305_vm3, %v8422_v31 }
0x13e1   : > { %11408 = vmatprep.mubr.msk.f32.mxu1 %vm7305_vm3, %v8427_v46  ;;  %11412 = vmatpush3.msra.mxu1 %v8538_v1 }
0x13e2   : > { %v8430_v4 = vadd.f32 %v11400_v16, %v8381_v6  ;;  %11413 = vmatprep.subr.mxu1 %v8537_v37 }
0x13e3   : > { %11414 = vmatpush3.msra.mxu1 %v8537_v37 }
0x13e4   : > { %11409 = vmatmul.mubr.msk.f32.gmra.mxu1 %vm7305_vm3, %v8430_v4 }
0x13e5   : > { %11415 = vmatprep.mubr.msk.f32.mxu1 %vm7305_vm3, %v8419_v38 }
0x13e8   : > { %11416 = vmatmul.mubr.msk.f32.vlgmr.msra.gmra.mxu1 %vm7305_vm3, %v8422_v31 }
0x13e9   : > { %11418 = vmatprep.mubr.msk.f32.mxu1 %vm7305_vm3, %v8427_v46 }
0x13ec   : > { %11419 = vmatmul.mubr.msk.f32.gmra.mxu1 %vm7305_vm3, %v8430_v4 }
0x13ed   : > { %11425 = vmatprep.mubr.msk.bf16.mxu1 %vm3199_vm12, %v11744_v25 }
0x14a0   : > { %v11407_v17 = vpop.f32.mrf.mxu1 }
0x14a1   : > { %8534 = vst.msk [vmem:[%s1226_s3 + $0x8] sm:$0xff] %vm8532_vm4, %v11407_v17 }
0x14a2   : > { %v8513_v5 = vpop.f32.mrf.mxu1 }
0x14a3   : > { %8533 = vst.msk [vmem:[%s1226_s3] sm:$0xff] %vm8532_vm4, %v8513_v5 }
0x14a4   : > { %v11410_v59 = vpop.f32.mrf.mxu1 }
0x14a5   : > { %8536 = vst.msk [vmem:[%s1226_s3 + $0x18] sm:$0xff] %vm8532_vm4, %v11410_v59 }
0x14a6   : > { %v8523_v0 = vpop.f32.mrf.mxu1 }
0x14a7   : > { %8535 = vst.msk [vmem:[%s1226_s3 + $0x10] sm:$0xff] %vm8532_vm4, %v8523_v0  ;;  %s14603_s3 = smov 124  }
0x14a8   : > { %v11417_v15 = vpop.f32.mrf.mxu1 }
0x14a9   : > { %v8625_v52 = vmax.f32 %v11417_v15, 0.0 }
0x14aa   : > { %v8605_v57 = vpop.f32.mrf.mxu1 }
0x14ab   : > { %v10505_v58 = vpack.c.bf16 %v8625_v52, %v8625_v52  ;;  %v8624_v50 = vmax.f32 %v8605_v57, 0.0  ;;  %v11736_v57 = vld [vmem:[%s14604_s6] ss:$12 sps:$4 sm:$0xff]  }
0x14ac   : > { %v11420_v33 = vpop.f32.mrf.mxu1 }
0x14ad   : > { %8645 = vst.msk [vmem:[#allocation2 + $0xc] sm:$0xf] %vm7990_vm1, %v10505_v58  ;;  %v10504_v19 = vpack.c.bf16 %v8624_v50, %v8624_v50  ;;  %v8627_v23 = vmax.f32 %v11420_v33, 0.0  ;;  %8746 = vrot.lane.b32.xlu0 %v10505_v58, %s14602_s5 }
0x14ae   : > { %v8615_v36 = vpop.f32.mrf.mxu1 }
0x14af   : > { %8644 = vst.msk [vmem:[#allocation2] sm:$0xf] %vm7990_vm1, %v10504_v19  ;;  %v10507_v8 = vpack.c.bf16 %v8627_v23, %v8627_v23  ;;  %v8626_v7 = vmax.f32 %v8615_v36, 0.0  ;;  %8744 = vrot.lane.b32.xlu1 %v10504_v19, %s14602_s5  ;;  %v11745_v23 = vld [vmem:[%s14604_s6 + $0x20] ss:$12 sps:$4 sm:$0xff]  }
0x14b1   : > { %8647 = vst.msk [vmem:[#allocation2 + $0x24] sm:$0xf] %vm7990_vm1, %v10507_v8  ;;  %v10506_v42 = vpack.c.bf16 %v8626_v7, %v8626_v7  ;;  %8682 = vrot.lane.b32.xlu0 %v10505_v58, %s14603_s3 }
0x14b3   : > { %8646 = vst.msk [vmem:[#allocation2 + $0x18] sm:$0xf] %vm7990_vm1, %v10506_v42  ;;  %8680 = vrot.lane.b32.xlu1 %v10504_v19, %s14603_s3 }
0x14b5   : > { %8730 = vrot.lane.b32.xlu0 %v10505_v58, %s14590_s2 }
0x14b6   : > { %v11735_v52 = vld [vmem:[#allocation2] ss:$12 sps:$4 sm:$0xff]  }
0x14b7   : > { %8728 = vrot.lane.b32.xlu1 %v10504_v19, %s14590_s2 }
0x14b9   : > { %8666 = vrot.lane.b32.xlu0 %v10505_v58, %s14589_s1 }
0x14ba   : > { %v11733_v5 = vld [vmem:[#allocation2 + $0x18] ss:$12 sps:$4 sm:$0xff]  }
0x14bb   : > { %8664 = vrot.lane.b32.xlu1 %v10504_v19, %s14589_s1 }
0x14bd   : > { %8714 = vrot.lane.b32.xlu0 %v10505_v58, %s14596_s4 }
0x14bf   : > { %8712 = vrot.lane.b32.xlu1 %v10504_v19, %s14596_s4 }
0x14c1   : > { %8750 = vrot.lane.b32.xlu0 %v10507_v8, %s14602_s5 }
0x14c3   : > { %8748 = vrot.lane.b32.xlu1 %v10506_v42, %s14602_s5  ;;  %s14606_s5 = smov 123  }
0x14c5   : > { %8686 = vrot.lane.b32.xlu0 %v10507_v8, %s14603_s3 }
0x14c7   : > { %8684 = vrot.lane.b32.xlu1 %v10506_v42, %s14603_s3 }
0x14c9   : > { %8734 = vrot.lane.b32.xlu0 %v10507_v8, %s14590_s2 }
0x14cb   : > { %8732 = vrot.lane.b32.xlu1 %v10506_v42, %s14590_s2 }
0x14cd   : > { %8670 = vrot.lane.b32.xlu0 %v10507_v8, %s14589_s1 }
0x14cf   : > { %8668 = vrot.lane.b32.xlu1 %v10506_v42, %s14589_s1 }
0x14d1   : > { %8718 = vrot.lane.b32.xlu0 %v10507_v8, %s14596_s4 }
0x14d3   : > { %8716 = vrot.lane.b32.xlu1 %v10506_v42, %s14596_s4 }
0x14d5   : > { %8654 = vrot.lane.b32.xlu0 %v10507_v8, %s14583_s0 }
0x14d7   : > { %8652 = vrot.lane.b32.xlu1 %v10506_v42, %s14583_s0 }
0x14d9   : > { %8650 = vrot.lane.b32.xlu0 %v10505_v58, %s14583_s0 }
0x14db   : > { %8648 = vrot.lane.b32.xlu1 %v10504_v19, %s14583_s0 }
0x14dd   : > { %8702 = vrot.lane.b32.xlu0 %v10507_v8, %s14606_s5 }
0x14df   : > { %8700 = vrot.lane.b32.xlu1 %v10506_v42, %s14606_s5 }
0x14e1   : > { %8698 = vrot.lane.b32.xlu0 %v10505_v58, %s14606_s5 }
0x14e3   : > { %8696 = vrot.lane.b32.xlu1 %v10504_v19, %s14606_s5 }
0x14e5   : > { %8766 = vrot.lane.b32.xlu0 %v10507_v8, %s14599_s11 }
0x14e7   : > { %8764 = vrot.lane.b32.xlu1 %v10506_v42, %s14599_s11 }
0x14e9   : > { %8762 = vrot.lane.b32.xlu0 %v10505_v58, %s14599_s11  ;;  %v11743_v58 = vld [vmem:[%s14604_s6 + $0x1c] ss:$12 sps:$4 sm:$0xff]  }
0x14eb   : > { %8760 = vrot.lane.b32.xlu1 %v10504_v19, %s14599_s11  ;;  %s14607_s11 = sld [smem:[#allocation25_spill]]  ;;  %v11741_v19 = vld [vmem:[%s14604_s6 + $0x18] ss:$12 sps:$4 sm:$0xff]   ;;  %s11850_s6 = smov 125  }
0x14ed   : > { %8831 = vperm.xlu0 %11529, %v8821_v40  }
0x14ef   : > { %8826 = vperm.xlu1 %11530, %v8820_v51  }
0x14f1   : > { %8841 = vperm.xlu0 %11529, %v8823_v48   ;;  %v9087_v36 = vld [vmem:[%s14607_s11 + $0x8] sm:$0xff]  ;;  %v9086_v8 = vld [vmem:[%s14607_s11] sm:$0xff] }
0x14f3   : > { %8836 = vperm.xlu1 %11530, %v8822_v41  }
0x151f   : > { %v8747_v56 = vpop.permute.xlu0 %8746 }
0x1520   : > { %8757 = vst.msk [vmem:[#allocation2 + $0x15c] sm:$0xf] %vm7990_vm1, %v8747_v56 }
0x1521   : > { %v8745_v34 = vpop.permute.xlu1 %8744 }
0x1522   : > { %8756 = vst.msk [vmem:[#allocation2 + $0x150] sm:$0xf] %vm7990_vm1, %v8745_v34 }
0x1523   : > { %v8683_v11 = vpop.permute.xlu0 %8682 }
0x1524   : > { %8693 = vst.msk [vmem:[#allocation2 + $0x9c] sm:$0xf] %vm7990_vm1, %v8683_v11 }
0x1525   : > { %v8681_v22 = vpop.permute.xlu1 %8680 }
0x1526   : > { %8692 = vst.msk [vmem:[#allocation2 + $0x90] sm:$0xf] %vm7990_vm1, %v8681_v22 }
0x1527   : > { %v8731_v29 = vpop.permute.xlu0 %8730 }
0x1528   : > { %8741 = vst.msk [vmem:[#allocation2 + $0x12c] sm:$0xf] %vm7990_vm1, %v8731_v29 }
0x1529   : > { %v8729_v27 = vpop.permute.xlu1 %8728  ;;  %v11722_v45 = vld [vmem:[#allocation2 + $0x150] ss:$12 sps:$4 sm:$0xff]  }
0x152a   : > { %8740 = vst.msk [vmem:[#allocation2 + $0x120] sm:$0xf] %vm7990_vm1, %v8729_v27 }
0x152b   : > { %v8667_v63 = vpop.permute.xlu0 %8666 }
0x152c   : > { %8677 = vst.msk [vmem:[#allocation2 + $0x6c] sm:$0xf] %vm7990_vm1, %v8667_v63 }
0x152d   : > { %v8665_v53 = vpop.permute.xlu1 %8664  ;;  %v11723_v43 = vld [vmem:[#allocation2 + $0x90] ss:$12 sps:$4 sm:$0xff]  }
0x152e   : > { %8676 = vst.msk [vmem:[#allocation2 + $0x60] sm:$0xf] %vm7990_vm1, %v8665_v53 }
0x152f   : > { %v8715_v60 = vpop.permute.xlu0 %8714 }
0x1530   : > { %8725 = vst.msk [vmem:[#allocation2 + $0xfc] sm:$0xf] %vm7990_vm1, %v8715_v60 }
0x1531   : > { %v8713_v18 = vpop.permute.xlu1 %8712  ;;  %v11726_v38 = vld [vmem:[#allocation2 + $0x120] ss:$12 sps:$4 sm:$0xff]  }
0x1532   : > { %8724 = vst.msk [vmem:[#allocation2 + $0xf0] sm:$0xf] %vm7990_vm1, %v8713_v18 }
0x1533   : > { %v8751_v14 = vpop.permute.xlu0 %8750 }
0x1534   : > { %8759 = vst.msk [vmem:[#allocation2 + $0x174] sm:$0xf] %vm7990_vm1, %v8751_v14 }
0x1535   : > { %v8749_v28 = vpop.permute.xlu1 %8748  ;;  %v11727_v24 = vld [vmem:[#allocation2 + $0x60] ss:$12 sps:$4 sm:$0xff]  }
0x1536   : > { %8758 = vst.msk [vmem:[#allocation2 + $0x168] sm:$0xf] %vm7990_vm1, %v8749_v28 }
0x1537   : > { %v8687_v1 = vpop.permute.xlu0 %8686 }
0x1538   : > { %8695 = vst.msk [vmem:[#allocation2 + $0xb4] sm:$0xf] %vm7990_vm1, %v8687_v1 }
0x1539   : > { %v8685_v32 = vpop.permute.xlu1 %8684  ;;  %v11730_v35 = vld [vmem:[#allocation2 + $0xf0] ss:$12 sps:$4 sm:$0xff]  }
0x153a   : > { %8694 = vst.msk [vmem:[#allocation2 + $0xa8] sm:$0xf] %vm7990_vm1, %v8685_v32 }
0x153b   : > { %v8735_v21 = vpop.permute.xlu0 %8734 }
0x153c   : > { %8743 = vst.msk [vmem:[#allocation2 + $0x144] sm:$0xf] %vm7990_vm1, %v8735_v21 }
0x153d   : > { %v8733_v47 = vpop.permute.xlu1 %8732  ;;  %v11720_v39 = vld [vmem:[#allocation2 + $0x168] ss:$12 sps:$4 sm:$0xff]  }
0x153e   : > { %8742 = vst.msk [vmem:[#allocation2 + $0x138] sm:$0xf] %vm7990_vm1, %v8733_v47  ;;  %11039 = vmatprep.subr.bf16.mxu0 %v11720_v39 }
0x153f   : > { %v8671_v12 = vpop.permute.xlu0 %8670 }
0x1540   : > { %8679 = vst.msk [vmem:[#allocation2 + $0x84] sm:$0xf] %vm7990_vm1, %v8671_v12 }
0x1541   : > { %v8669_v49 = vpop.permute.xlu1 %8668  ;;  %v11721_v9 = vld [vmem:[#allocation2 + $0xa8] ss:$12 sps:$4 sm:$0xff]  }
0x1542   : > { %8678 = vst.msk [vmem:[#allocation2 + $0x78] sm:$0xf] %vm7990_vm1, %v8669_v49  ;;  %11040 = vmatpush3.bf16.msra.mxu0 %v11721_v9 }
0x1543   : > { %v8719_v10 = vpop.permute.xlu0 %8718  ;;  %11041 = vmatprep.subr.bf16.mxu0 %v11722_v45 }
0x1544   : > { %8727 = vst.msk [vmem:[#allocation2 + $0x114] sm:$0xf] %vm7990_vm1, %v8719_v10 }
0x1545   : > { %v8717_v13 = vpop.permute.xlu1 %8716  ;;  %v11724_v20 = vld [vmem:[#allocation2 + $0x138] ss:$12 sps:$4 sm:$0xff]  }
0x1546   : > { %8726 = vst.msk [vmem:[#allocation2 + $0x108] sm:$0xf] %vm7990_vm1, %v8717_v13  ;;  %11042 = vmatpush3.bf16.msra.mxu0 %v11723_v43 }
0x1547   : > { %v8655_v61 = vpop.permute.xlu0 %8654  ;;  %11043 = vmatprep.subr.bf16.mxu0 %v11724_v20 }
0x1548   : > { %8663 = vst.msk [vmem:[#allocation2 + $0x54] sm:$0xf] %vm7990_vm1, %v8655_v61 }
0x1549   : > { %v8653_v3 = vpop.permute.xlu1 %8652  ;;  %v11725_v55 = vld [vmem:[#allocation2 + $0x78] ss:$12 sps:$4 sm:$0xff]  }
0x154a   : > { %8662 = vst.msk [vmem:[#allocation2 + $0x48] sm:$0xf] %vm7990_vm1, %v8653_v3  ;;  %11044 = vmatpush3.bf16.msra.mxu0 %v11725_v55 }
0x154b   : > { %v8651_v54 = vpop.permute.xlu0 %8650  ;;  %11045 = vmatprep.subr.bf16.mxu0 %v11726_v38 }
0x154c   : > { %8661 = vst.msk [vmem:[#allocation2 + $0x3c] sm:$0xf] %vm7990_vm1, %v8651_v54 }
0x154d   : > { %v8649_v16 = vpop.permute.xlu1 %8648  ;;  %v11728_v30 = vld [vmem:[#allocation2 + $0x108] ss:$12 sps:$4 sm:$0xff]  }
0x154e   : > { %8660 = vst.msk [vmem:[#allocation2 + $0x30] sm:$0xf] %vm7990_vm1, %v8649_v16  ;;  %11046 = vmatpush3.bf16.msra.mxu0 %v11727_v24 }
0x154f   : > { %v8703_v26 = vpop.permute.xlu0 %8702  ;;  %11047 = vmatprep.subr.bf16.mxu0 %v11728_v30  ;;  %v11764_v30 = vld [vmem:[%s14608_s8 + $0x4] ss:$12 sps:$4 sm:$0xff]  }
0x1550   : > { %8711 = vst.msk [vmem:[#allocation2 + $0xe4] sm:$0xf] %vm7990_vm1, %v8703_v26  ;;  %v9383_v26 = vld [vmem:[%s14609_s9 + $0x8] sm:$0xff] }
0x1551   : > { %v8701_v2 = vpop.permute.xlu1 %8700  ;;  %v11729_v46 = vld [vmem:[#allocation2 + $0x48] ss:$12 sps:$4 sm:$0xff]  }
0x1552   : > { %8710 = vst.msk [vmem:[#allocation2 + $0xd8] sm:$0xf] %vm7990_vm1, %v8701_v2  ;;  %11048 = vmatpush3.bf16.msra.mxu0 %v11729_v46  ;;  %v11770_v2 = vld [vmem:[%s14608_s8 + $0x8] ss:$12 sps:$4 sm:$0xff]   ;;  %v9382_v46 = vld [vmem:[%s14609_s9] sm:$0xff] }
0x1553   : > { %v8699_v31 = vpop.permute.xlu0 %8698  ;;  %11049 = vmatprep.subr.bf16.mxu0 %v11730_v35  ;;  %v9385_v35 = vld [vmem:[%s14609_s9 + $0x18] sm:$0xff] }
0x1554   : > { %8709 = vst.msk [vmem:[#allocation2 + $0xcc] sm:$0xf] %vm7990_vm1, %v8699_v31  ;;  %v9384_v31 = vld [vmem:[%s14609_s9 + $0x10] sm:$0xff] }
0x1555   : > { %v8697_v62 = vpop.permute.xlu1 %8696  ;;  %v11731_v37 = vld [vmem:[#allocation2 + $0x30] ss:$12 sps:$4 sm:$0xff]  }
0x1556   : > { %8708 = vst.msk [vmem:[#allocation2 + $0xc0] sm:$0xf] %vm7990_vm1, %v8697_v62  ;;  %11050 = vmatpush3.bf16.msra.mxu0 %v11731_v37 }
0x1557   : > { %v8767_v6 = vpop.permute.xlu0 %8766 }
0x1558   : > { %8775 = vst.msk [vmem:[#allocation2 + $0x1a4] sm:$0xf] %vm7990_vm1, %v8767_v6 }
0x1559   : > { %v8765_v4 = vpop.permute.xlu1 %8764  ;;  %v11732_v17 = vld [vmem:[#allocation2 + $0xd8] ss:$12 sps:$4 sm:$0xff]  }
0x155a   : > { %8774 = vst.msk [vmem:[#allocation2 + $0x198] sm:$0xf] %vm7990_vm1, %v8765_v4  ;;  %11051 = vmatprep.subr.bf16.mxu0 %v11732_v17 }
0x155b   : > { %v8763_v59 = vpop.permute.xlu0 %8762  ;;  %11052 = vmatpush3.bf16.msra.mxu0 %v11733_v5 }
0x155c   : > { %8773 = vst.msk [vmem:[#allocation2 + $0x18c] sm:$0xf] %vm7990_vm1, %v8763_v59 }
0x155d   : > { %v8761_v0 = vpop.permute.xlu1 %8760  ;;  %v11734_v15 = vld [vmem:[#allocation2 + $0xc0] ss:$12 sps:$4 sm:$0xff]  }
0x155e   : > { %8772 = vst.msk [vmem:[#allocation2 + $0x180] sm:$0xf] %vm7990_vm1, %v8761_v0  ;;  %11053 = vmatprep.subr.bf16.mxu0 %v11734_v15 }
0x155f   : > { %11054 = vmatpush3.bf16.msra.mxu0 %v11735_v52 }
0x1561   : > { %v11739_v50 = vld [vmem:[#allocation2 + $0x198] ss:$12 sps:$4 sm:$0xff]  }
0x1562   : > { %9021 = vmatmul.mubr.bf16.vlgmr.msra.gmra.mxu0 %v11736_v57  ;;  %11421 = vmatprep.subr.bf16.mxu1 %v11739_v50 }
0x1563   : > { %11422 = vmatpush3.bf16.msra.mxu1 %v11739_v50  ;;  %9028 = vmatprep.mubr.bf16.mxu0 %v11743_v58 }
0x1565   : > { %v11740_v33 = vld [vmem:[#allocation2 + $0x180] ss:$12 sps:$4 sm:$0xff]  }
0x1566   : > { %11423 = vmatprep.subr.bf16.mxu1 %v11740_v33 }
0x1567   : > { %11424 = vmatpush3.bf16.msra.mxu1 %v11740_v33 }
0x1568   : > { %11429 = vmatprep.subr.mxu1 %v9087_v36  ;;  %v8832_v56 = vpop.permute.xlu0 %8831 }
0x156a   : > { %9029 = vmatmul.mubr.bf16.gmra.mxu0 %v11741_v19  ;;  %11426 = vmatmul.mubr.msk.bf16.vlgmr.msra.gmra.mxu1 %vm3199_vm12, %v11745_v23  ;;  %v8827_v40 = vpop.permute.xlu1 %8826 }
0x156b   : > { %11430 = vmatpush3.msra.mxu1 %v9087_v36  ;;  %11443 = vmatprep.mubr.msk.bf16.mxu0 %vm3199_vm12, %v11770_v2 }
0x156c   : > { %11431 = vmatprep.subr.mxu1 %v9086_v8  ;;  %v8842_v12 = vpop.permute.xlu0 %8841 }
0x156d   : > { %11432 = vmatpush3.msra.mxu1 %v9086_v8 }
0x156e   : > { %v8837_v27 = vpop.permute.xlu1 %8836 }
0x1622   : > { %v11055_v7 = vpop.f32.mrf.mxu0 }
0x1624   : > { %v11056_v42 = vpop.f32.mrf.mxu0 }
0x1625   : > { %v11057_v25 = vadd.f32 %v11056_v42, %v11055_v7 }
0x1626   : > { %v11058_v44 = vpop.f32.mrf.mxu0 }
0x1627   : > { %v9023_v11 = vadd.f32 %v11057_v25, %v8827_v40 }
0x1628   : > { %v11059_v51 = vpop.f32.mrf.mxu0 }
0x1629   : > { %v11060_v34 = vadd.f32 %v11059_v51, %v11058_v44 }
0x162a   : > { %v11061_v48 = vpop.f32.mrf.mxu0  ;;  %v11427_v41 = vpop.f32.mrf.mxu1 }
0x162b   : > { %v9026_v28 = vadd.f32 %v11060_v34, %v8832_v56 }
0x162c   : > { %v11062_v22 = vpop.f32.mrf.mxu0  ;;  %v9071_v29 = vpop.f32.mrf.mxu1 }
0x162d   : > { %v11063_v63 = vadd.f32 %v11062_v22, %v11061_v48  ;;  %v9072_v53 = vadd.f32 %v9071_v29, %v9023_v11 }
0x162e   : > { %v11064_v60 = vpop.f32.mrf.mxu0  ;;  %v11428_v18 = vpop.f32.mrf.mxu1 }
0x162f   : > { %v9031_v14 = vadd.f32 %v11063_v63, %v8837_v27  ;;  %11433 = vmatprep.mubr.msk.f32.mxu1 %vm7305_vm3, %v9072_v53 }
0x1630   : > { %v11065_v1 = vpop.f32.mrf.mxu0  ;;  %v9074_v32 = vpop.f32.mrf.mxu1 }
0x1631   : > { %v9080_v21 = vadd.f32 %v11427_v41, %v9031_v14  ;;  %v11066_v47 = vadd.f32 %v11065_v1, %v11064_v60  ;;  %v9075_v39 = vadd.f32 %v9074_v32, %v9026_v28 }
0x1633   : > { %v9034_v49 = vadd.f32 %v11066_v47, %v8842_v12  ;;  %11434 = vmatmul.mubr.msk.f32.vlgmr.msra.gmra.mxu1 %vm7305_vm3, %v9075_v39 }
0x1634   : > { %11436 = vmatprep.mubr.msk.f32.mxu1 %vm7305_vm3, %v9080_v21 }
0x1635   : > { %v9083_v9 = vadd.f32 %v11428_v18, %v9034_v49 }
0x1637   : > { %11437 = vmatmul.mubr.msk.f32.gmra.mxu1 %vm7305_vm3, %v9083_v9 }
0x1638   : > { %9582 = vmatprep.mubr.bf16.mxu1 %v11764_v30 }
0x16f3   : > { %v11435_v45 = vpop.f32.mrf.mxu1 }
0x16f4   : > { %v9186_v10 = vmax.f32 %v11435_v45, 0.0 }
0x16f5   : > { %v9166_v13 = vpop.f32.mrf.mxu1 }
0x16f6   : > { %v10509_v43 = vpack.c.bf16 %v9186_v10, %v9186_v10  ;;  %v9185_v20 = vmax.f32 %v9166_v13, 0.0  ;;  %v11762_v13 = vld [vmem:[%s14608_s8] ss:$12 sps:$4 sm:$0xff]  }
0x16f7   : > { %v11438_v61 = vpop.f32.mrf.mxu1 }
0x16f8   : > { %v10508_v3 = vpack.c.bf16 %v9185_v20, %v9185_v20  ;;  %v9188_v55 = vmax.f32 %v11438_v61, 0.0  ;;  %9308 = vrot.lane.b32.xlu0 %v10509_v43, %s14593_s7  ;;  %9207 = vst.msk [vmem:[#allocation2 + $0xc] sm:$0xf] %vm9205_vm5, %v10509_v43 }
0x16f9   : > { %v9176_v38 = vpop.f32.mrf.mxu1 }
0x16fa   : > { %v10511_v54 = vpack.c.bf16 %v9188_v55, %v9188_v55  ;;  %v9187_v16 = vmax.f32 %v9176_v38, 0.0  ;;  %9306 = vrot.lane.b32.xlu1 %v10508_v3, %s14593_s7  ;;  %9206 = vst.msk [vmem:[#allocation2] sm:$0xf] %vm9205_vm5, %v10508_v3  ;;  %v11771_v55 = vld [vmem:[%s14608_s8 + $0x20] ss:$12 sps:$4 sm:$0xff]  }
0x16fc   : > { %v10510_v24 = vpack.c.bf16 %v9187_v16, %v9187_v16  ;;  %9244 = vrot.lane.b32.xlu0 %v10509_v43, %s11850_s6  ;;  %9209 = vst.msk [vmem:[#allocation2 + $0x24] sm:$0xf] %vm9205_vm5, %v10511_v54 }
0x16fe   : > { %9242 = vrot.lane.b32.xlu1 %v10508_v3, %s11850_s6  ;;  %9208 = vst.msk [vmem:[#allocation2 + $0x18] sm:$0xf] %vm9205_vm5, %v10510_v24 }
0x1700   : > { %9292 = vrot.lane.b32.xlu0 %v10509_v43, %s14596_s4 }
0x1701   : > { %v11761_v10 = vld [vmem:[#allocation2] ss:$12 sps:$4 sm:$0xff]  }
0x1702   : > { %9290 = vrot.lane.b32.xlu1 %v10508_v3, %s14596_s4 }
0x1704   : > { %9228 = vrot.lane.b32.xlu0 %v10509_v43, %s14589_s1 }
0x1705   : > { %v11759_v12 = vld [vmem:[#allocation2 + $0x18] ss:$12 sps:$4 sm:$0xff]  }
0x1706   : > { %9226 = vrot.lane.b32.xlu1 %v10508_v3, %s14589_s1 }
0x1708   : > { %9276 = vrot.lane.b32.xlu0 %v10509_v43, %s14606_s5 }
0x170a   : > { %9274 = vrot.lane.b32.xlu1 %v10508_v3, %s14606_s5 }
0x170c   : > { %9312 = vrot.lane.b32.xlu0 %v10511_v54, %s14593_s7 }
0x170e   : > { %9310 = vrot.lane.b32.xlu1 %v10510_v24, %s14593_s7 }
0x1710   : > { %9248 = vrot.lane.b32.xlu0 %v10511_v54, %s11850_s6 }
0x1712   : > { %9246 = vrot.lane.b32.xlu1 %v10510_v24, %s11850_s6  ;;  %s14610_s6 = sld [smem:[#allocation29_spill]] }
0x1714   : > { %9296 = vrot.lane.b32.xlu0 %v10511_v54, %s14596_s4 }
0x1716   : > { %9294 = vrot.lane.b32.xlu1 %v10510_v24, %s14596_s4  ;;  %s1231_s4 = scalar_lea.vmem %s12054_s20, %s13906_s26 }
0x1718   : > { %9232 = vrot.lane.b32.xlu0 %v10511_v54, %s14589_s1  ;;  %v9649_v38 = vld [vmem:[%s14610_s6 + $0x8] sm:$0x1] }
0x171a   : > { %9230 = vrot.lane.b32.xlu1 %v10510_v24, %s14589_s1 }
0x171c   : > { %9280 = vrot.lane.b32.xlu0 %v10511_v54, %s14606_s5 }
0x171e   : > { %9278 = vrot.lane.b32.xlu1 %v10510_v24, %s14606_s5 }
0x1720   : > { %9216 = vrot.lane.b32.xlu0 %v10511_v54, %s14583_s0 }
0x1722   : > { %9214 = vrot.lane.b32.xlu1 %v10510_v24, %s14583_s0 }
0x1724   : > { %9212 = vrot.lane.b32.xlu0 %v10509_v43, %s14583_s0 }
0x1726   : > { %9210 = vrot.lane.b32.xlu1 %v10508_v3, %s14583_s0 }
0x1728   : > { %9264 = vrot.lane.b32.xlu0 %v10511_v54, %s14603_s3 }
0x172a   : > { %9262 = vrot.lane.b32.xlu1 %v10510_v24, %s14603_s3 }
0x172c   : > { %9260 = vrot.lane.b32.xlu0 %v10509_v43, %s14603_s3 }
0x172e   : > { %9258 = vrot.lane.b32.xlu1 %v10508_v3, %s14603_s3 }
0x1730   : > { %9328 = vrot.lane.b32.xlu0 %v10511_v54, %s14590_s2  ;;  %v9648_v54 = vld [vmem:[%s14610_s6] sm:$0xff] }
0x1732   : > { %9326 = vrot.lane.b32.xlu1 %v10510_v24, %s14590_s2 }
0x1734   : > { %9324 = vrot.lane.b32.xlu0 %v10509_v43, %s14590_s2  ;;  %v11769_v43 = vld [vmem:[%s14608_s8 + $0x1c] ss:$12 sps:$4 sm:$0xff]  }
0x1736   : > { %9322 = vrot.lane.b32.xlu1 %v10508_v3, %s14590_s2  ;;  %v11767_v3 = vld [vmem:[%s14608_s8 + $0x18] ss:$12 sps:$4 sm:$0xff]  }
0x1738   : > { %9393 = vperm.xlu0 %11529, %v9383_v26  }
0x173a   : > { %9388 = vperm.xlu1 %11530, %v9382_v46  }
0x173c   : > { %9403 = vperm.xlu0 %11529, %v9385_v35  }
0x173e   : > { %9398 = vperm.xlu1 %11530, %v9384_v31  }
0x176a   : > { %v9309_v62 = vpop.permute.xlu0 %9308 }
0x176b   : > { %9319 = vst.msk [vmem:[#allocation2 + $0x15c] sm:$0xf] %vm9205_vm5, %v9309_v62 }
0x176c   : > { %v9307_v37 = vpop.permute.xlu1 %9306 }
0x176d   : > { %9318 = vst.msk [vmem:[#allocation2 + $0x150] sm:$0xf] %vm9205_vm5, %v9307_v37 }
0x176e   : > { %v9245_v6 = vpop.permute.xlu0 %9244 }
0x176f   : > { %9255 = vst.msk [vmem:[#allocation2 + $0x9c] sm:$0xf] %vm9205_vm5, %v9245_v6 }
0x1770   : > { %v9243_v4 = vpop.permute.xlu1 %9242 }
0x1771   : > { %9254 = vst.msk [vmem:[#allocation2 + $0x90] sm:$0xf] %vm9205_vm5, %v9243_v4 }
0x1772   : > { %v9293_v17 = vpop.permute.xlu0 %9292 }
0x1773   : > { %9303 = vst.msk [vmem:[#allocation2 + $0x12c] sm:$0xf] %vm9205_vm5, %v9293_v17 }
0x1774   : > { %v9291_v5 = vpop.permute.xlu1 %9290  ;;  %v11748_v44 = vld [vmem:[#allocation2 + $0x150] ss:$12 sps:$4 sm:$0xff]  }
0x1775   : > { %9302 = vst.msk [vmem:[#allocation2 + $0x120] sm:$0xf] %vm9205_vm5, %v9291_v5 }
0x1776   : > { %v9229_v59 = vpop.permute.xlu0 %9228 }
0x1777   : > { %9239 = vst.msk [vmem:[#allocation2 + $0x6c] sm:$0xf] %vm9205_vm5, %v9229_v59 }
0x1778   : > { %v9227_v0 = vpop.permute.xlu1 %9226  ;;  %v11749_v51 = vld [vmem:[#allocation2 + $0x90] ss:$12 sps:$4 sm:$0xff]  }
0x1779   : > { %9238 = vst.msk [vmem:[#allocation2 + $0x60] sm:$0xf] %vm9205_vm5, %v9227_v0 }
0x177a   : > { %v9277_v15 = vpop.permute.xlu0 %9276 }
0x177b   : > { %9287 = vst.msk [vmem:[#allocation2 + $0xfc] sm:$0xf] %vm9205_vm5, %v9277_v15 }
0x177c   : > { %v9275_v52 = vpop.permute.xlu1 %9274  ;;  %v11752_v11 = vld [vmem:[#allocation2 + $0x120] ss:$12 sps:$4 sm:$0xff]  }
0x177d   : > { %9286 = vst.msk [vmem:[#allocation2 + $0xf0] sm:$0xf] %vm9205_vm5, %v9275_v52 }
0x177e   : > { %v9313_v57 = vpop.permute.xlu0 %9312 }
0x177f   : > { %9321 = vst.msk [vmem:[#allocation2 + $0x174] sm:$0xf] %vm9205_vm5, %v9313_v57 }
0x1780   : > { %v9311_v58 = vpop.permute.xlu1 %9310  ;;  %v11753_v27 = vld [vmem:[#allocation2 + $0x60] ss:$12 sps:$4 sm:$0xff]  }
0x1781   : > { %9320 = vst.msk [vmem:[#allocation2 + $0x168] sm:$0xf] %vm9205_vm5, %v9311_v58 }
0x1782   : > { %v9249_v50 = vpop.permute.xlu0 %9248 }
0x1783   : > { %9257 = vst.msk [vmem:[#allocation2 + $0xb4] sm:$0xf] %vm9205_vm5, %v9249_v50 }
0x1784   : > { %v9247_v33 = vpop.permute.xlu1 %9246  ;;  %v11756_v14 = vld [vmem:[#allocation2 + $0xf0] ss:$12 sps:$4 sm:$0xff]  }
0x1785   : > { %9256 = vst.msk [vmem:[#allocation2 + $0xa8] sm:$0xf] %vm9205_vm5, %v9247_v33 }
0x1786   : > { %v9297_v19 = vpop.permute.xlu0 %9296 }
0x1787   : > { %9305 = vst.msk [vmem:[#allocation2 + $0x144] sm:$0xf] %vm9205_vm5, %v9297_v19 }
0x1788   : > { %v9295_v23 = vpop.permute.xlu1 %9294  ;;  %v11746_v36 = vld [vmem:[#allocation2 + $0x168] ss:$12 sps:$4 sm:$0xff]  }
0x1789   : > { %9304 = vst.msk [vmem:[#allocation2 + $0x138] sm:$0xf] %vm9205_vm5, %v9295_v23  ;;  %11077 = vmatprep.subr.bf16.mxu1 %v11746_v36 }
0x178a   : > { %v9233_v8 = vpop.permute.xlu0 %9232 }
0x178b   : > { %9241 = vst.msk [vmem:[#allocation2 + $0x84] sm:$0xf] %vm9205_vm5, %v9233_v8 }
0x178c   : > { %v9231_v7 = vpop.permute.xlu1 %9230  ;;  %v11747_v42 = vld [vmem:[#allocation2 + $0xa8] ss:$12 sps:$4 sm:$0xff]  }
0x178d   : > { %9240 = vst.msk [vmem:[#allocation2 + $0x78] sm:$0xf] %vm9205_vm5, %v9231_v7  ;;  %11078 = vmatpush3.bf16.msra.mxu1 %v11747_v42 }
0x178e   : > { %v9281_v40 = vpop.permute.xlu0 %9280  ;;  %11079 = vmatprep.subr.bf16.mxu1 %v11748_v44 }
0x178f   : > { %9289 = vst.msk [vmem:[#allocation2 + $0x114] sm:$0xf] %vm9205_vm5, %v9281_v40 }
0x1790   : > { %v9279_v25 = vpop.permute.xlu1 %9278  ;;  %v11750_v48 = vld [vmem:[#allocation2 + $0x138] ss:$12 sps:$4 sm:$0xff]  }
0x1791   : > { %9288 = vst.msk [vmem:[#allocation2 + $0x108] sm:$0xf] %vm9205_vm5, %v9279_v25  ;;  %11080 = vmatpush3.bf16.msra.mxu1 %v11749_v51 }
0x1792   : > { %v9217_v41 = vpop.permute.xlu0 %9216  ;;  %11081 = vmatprep.subr.bf16.mxu1 %v11750_v48 }
0x1793   : > { %9225 = vst.msk [vmem:[#allocation2 + $0x54] sm:$0xf] %vm9205_vm5, %v9217_v41 }
0x1794   : > { %v9215_v56 = vpop.permute.xlu1 %9214  ;;  %v11751_v34 = vld [vmem:[#allocation2 + $0x78] ss:$12 sps:$4 sm:$0xff]  }
0x1795   : > { %9224 = vst.msk [vmem:[#allocation2 + $0x48] sm:$0xf] %vm9205_vm5, %v9215_v56  ;;  %11082 = vmatpush3.bf16.msra.mxu1 %v11751_v34 }
0x1796   : > { %v9213_v22 = vpop.permute.xlu0 %9212  ;;  %11083 = vmatprep.subr.bf16.mxu1 %v11752_v11 }
0x1797   : > { %9223 = vst.msk [vmem:[#allocation2 + $0x3c] sm:$0xf] %vm9205_vm5, %v9213_v22 }
0x1798   : > { %v9211_v29 = vpop.permute.xlu1 %9210  ;;  %v11754_v63 = vld [vmem:[#allocation2 + $0x108] ss:$12 sps:$4 sm:$0xff]  }
0x1799   : > { %9222 = vst.msk [vmem:[#allocation2 + $0x30] sm:$0xf] %vm9205_vm5, %v9211_v29  ;;  %11084 = vmatpush3.bf16.msra.mxu1 %v11753_v27 }
0x179a   : > { %v9265_v53 = vpop.permute.xlu0 %9264  ;;  %11085 = vmatprep.subr.bf16.mxu1 %v11754_v63 }
0x179b   : > { %9273 = vst.msk [vmem:[#allocation2 + $0xe4] sm:$0xf] %vm9205_vm5, %v9265_v53 }
0x179c   : > { %v9263_v60 = vpop.permute.xlu1 %9262  ;;  %v11755_v18 = vld [vmem:[#allocation2 + $0x48] ss:$12 sps:$4 sm:$0xff]  }
0x179d   : > { %9272 = vst.msk [vmem:[#allocation2 + $0xd8] sm:$0xf] %vm9205_vm5, %v9263_v60  ;;  %11086 = vmatpush3.bf16.msra.mxu1 %v11755_v18 }
0x179e   : > { %v9261_v28 = vpop.permute.xlu0 %9260  ;;  %11087 = vmatprep.subr.bf16.mxu1 %v11756_v14 }
0x179f   : > { %9271 = vst.msk [vmem:[#allocation2 + $0xcc] sm:$0xf] %vm9205_vm5, %v9261_v28 }
0x17a0   : > { %v9259_v1 = vpop.permute.xlu1 %9258  ;;  %v11757_v32 = vld [vmem:[#allocation2 + $0x30] ss:$12 sps:$4 sm:$0xff]  }
0x17a1   : > { %9270 = vst.msk [vmem:[#allocation2 + $0xc0] sm:$0xf] %vm9205_vm5, %v9259_v1  ;;  %11088 = vmatpush3.bf16.msra.mxu1 %v11757_v32 }
0x17a2   : > { %v9329_v21 = vpop.permute.xlu0 %9328 }
0x17a3   : > { %9337 = vst.msk [vmem:[#allocation2 + $0x1a4] sm:$0xf] %vm9205_vm5, %v9329_v21 }
0x17a4   : > { %v9327_v47 = vpop.permute.xlu1 %9326  ;;  %v11758_v39 = vld [vmem:[#allocation2 + $0xd8] ss:$12 sps:$4 sm:$0xff]  }
0x17a5   : > { %9336 = vst.msk [vmem:[#allocation2 + $0x198] sm:$0xf] %vm9205_vm5, %v9327_v47  ;;  %11089 = vmatprep.subr.bf16.mxu1 %v11758_v39 }
0x17a6   : > { %v9325_v49 = vpop.permute.xlu0 %9324  ;;  %11090 = vmatpush3.bf16.msra.mxu1 %v11759_v12 }
0x17a7   : > { %9335 = vst.msk [vmem:[#allocation2 + $0x18c] sm:$0xf] %vm9205_vm5, %v9325_v49 }
0x17a8   : > { %v9323_v9 = vpop.permute.xlu1 %9322  ;;  %v11760_v45 = vld [vmem:[#allocation2 + $0xc0] ss:$12 sps:$4 sm:$0xff]  }
0x17a9   : > { %9334 = vst.msk [vmem:[#allocation2 + $0x180] sm:$0xf] %vm9205_vm5, %v9323_v9  ;;  %11091 = vmatprep.subr.bf16.mxu1 %v11760_v45 }
0x17aa   : > { %11092 = vmatpush3.bf16.msra.mxu1 %v11761_v10 }
0x17ac   : > { %v11765_v20 = vld [vmem:[#allocation2 + $0x198] ss:$12 sps:$4 sm:$0xff]  }
0x17ad   : > { %9583 = vmatmul.mubr.bf16.vlgmr.msra.gmra.mxu1 %v11762_v13  ;;  %11439 = vmatprep.subr.bf16.mxu0 %v11765_v20 }
0x17ae   : > { %11440 = vmatpush3.bf16.msra.mxu0 %v11765_v20  ;;  %9590 = vmatprep.mubr.bf16.mxu1 %v11769_v43 }
0x17b0   : > { %v11766_v61 = vld [vmem:[#allocation2 + $0x180] ss:$12 sps:$4 sm:$0xff]  }
0x17b1   : > { %11441 = vmatprep.subr.bf16.mxu0 %v11766_v61 }
0x17b2   : > { %11442 = vmatpush3.bf16.msra.mxu0 %v11766_v61 }
0x17b3   : > { %11447 = vmatprep.subr.msk.mxu0 %vm9663_vm6, %v9649_v38  ;;  %v9394_v62 = vpop.permute.xlu0 %9393 }
0x17b5   : > { %9591 = vmatmul.mubr.bf16.gmra.mxu1 %v11767_v3  ;;  %11444 = vmatmul.mubr.msk.bf16.vlgmr.msra.gmra.mxu0 %vm3199_vm12, %v11771_v55  ;;  %v9389_v26 = vpop.permute.xlu1 %9388 }
0x17b6   : > { %11448 = vmatpush3.msk.msra.mxu0 %vm9663_vm6, %v9649_v38 }
0x17b7   : > { %11449 = vmatprep.subr.mxu0 %v9648_v54  ;;  %v9404_v8 = vpop.permute.xlu0 %9403 }
0x17b8   : > { %11450 = vmatpush3.msra.mxu0 %v9648_v54 }
0x17b9   : > { %v9399_v5 = vpop.permute.xlu1 %9398 }
0x186d   : > { %v11093_v16 = vpop.f32.mrf.mxu1 }
0x186f   : > { %v11094_v24 = vpop.f32.mrf.mxu1 }
0x1870   : > { %v11095_v2 = vadd.f32 %v11094_v24, %v11093_v16 }
0x1871   : > { %v11096_v30 = vpop.f32.mrf.mxu1 }
0x1872   : > { %v9585_v6 = vadd.f32 %v11095_v2, %v9389_v26 }
0x1873   : > { %v11097_v46 = vpop.f32.mrf.mxu1 }
0x1874   : > { %v11098_v37 = vadd.f32 %v11097_v46, %v11096_v30 }
0x1875   : > { %v11099_v35 = vpop.f32.mrf.mxu1  ;;  %v11445_v31 = vpop.f32.mrf.mxu0 }
0x1876   : > { %v9588_v58 = vadd.f32 %v11098_v37, %v9394_v62 }
0x1877   : > { %v11100_v4 = vpop.f32.mrf.mxu1  ;;  %v9633_v17 = vpop.f32.mrf.mxu0 }
0x1878   : > { %v11101_v59 = vadd.f32 %v11100_v4, %v11099_v35  ;;  %v9634_v0 = vadd.f32 %v9633_v17, %v9585_v6 }
0x1879   : > { %v11102_v15 = vpop.f32.mrf.mxu1  ;;  %v11446_v52 = vpop.f32.mrf.mxu0 }
0x187a   : > { %v9593_v57 = vadd.f32 %v11101_v59, %v9399_v5  ;;  %11451 = vmatprep.mubr.msk.f32.mxu0 %vm9650_vm7, %v9634_v0 }
0x187b   : > { %v11103_v50 = vpop.f32.mrf.mxu1  ;;  %v9636_v33 = vpop.f32.mrf.mxu0 }
0x187c   : > { %v9642_v19 = vadd.f32 %v11445_v31, %v9593_v57  ;;  %v11104_v23 = vadd.f32 %v11103_v50, %v11102_v15  ;;  %v9637_v36 = vadd.f32 %v9636_v33, %v9588_v58 }
0x187e   : > { %v9596_v7 = vadd.f32 %v11104_v23, %v9404_v8  ;;  %11452 = vmatmul.mubr.msk.f32.vlgmr.msra.gmra.mxu0 %vm9650_vm7, %v9637_v36 }
0x187f   : > { %11454 = vmatprep.mubr.msk.f32.mxu0 %vm9650_vm7, %v9642_v19 }
0x1880   : > { %v9645_v42 = vadd.f32 %v11446_v52, %v9596_v7 }
0x1882   : > { %11455 = vmatmul.mubr.msk.f32.gmra.mxu0 %vm9650_vm7, %v9645_v42 }
0x193e   : > { %v11453_v44 = vpop.f32.mrf.mxu0 }
0x193f   : > { %9754 = vst.msk [vmem:[%s1231_s4 + $0x8] sm:$0xff] %vm9752_vm8, %v11453_v44 }
0x1940   : > { %v9733_v40 = vpop.f32.mrf.mxu0 }
0x1941   : > { %9753 = vst.msk [vmem:[%s1231_s4] sm:$0xff] %vm9752_vm8, %v9733_v40 }
0x1942   : > { %v11456_v25 = vpop.f32.mrf.mxu0 }
0x1943   : > { %9756 = vst.msk [vmem:[%s1231_s4 + $0x18] sm:$0xff] %vm9752_vm8, %v11456_v25 }
0x1944   : > { %v9743_v51 = vpop.f32.mrf.mxu0 }
0x1945   : > { %9755 = vst.msk [vmem:[%s1231_s4 + $0x10] sm:$0xff] %vm9752_vm8, %v9743_v51 }
0x1946 PF: > { %s90_s22 = sadd.s32 1, %s11786_s22  }
0x1947   : > { %p87_p4 = scmp.ge.s32.totalorder %s90_s22, 4  }
0x1949   :  { %89 = sbr.rel (!%p87_p4) target bundleno = 75 (0x4b), region = 277 }

</bundles_post_ra>
